<compile_context>
chip_gen: v7x
topology: tpu7x:2x2x1
jax: 0.10.0
libtpu: 0.0.40
codegen_flags: <defaults>
</compile_context>

<pallas_src>
import functools
import numpy as np

import jax
import jax.numpy as jnp
from jax import lax
from jax.experimental import pallas as pl
from jax.experimental.pallas import tpu as pltpu

# ----------------------------- model sizes (small, consistent with module) ---
V_FORM, V_UPOS, V_FEATS = 50, 10, 12
FORM_DIM, UPOS_DIM = 16, 16
INPUT_DIM = FORM_DIM + UPOS_DIM          # embeddings: cat(form, sum(upos, feats))
H = 32                                   # lstm_hidden_dim
NUM_LAYERS = 2                           # lstm_num_layers
ENC_DIM = 2 * H                          # bidirectional
ARC_MLP = 32                             # arc_mlp_dim
LAB_MLP = 16                             # label_mlp_dim
N_LABELS = 8                             # output_dims['deprel']
LEAKY_SLOPE = 0.1                        # dl4dp MLP = Linear + LeakyReLU(0.1) + Dropout
PROJ_DIM = 2 * ARC_MLP + 2 * LAB_MLP     # fused MLP output width = 96
K_LAB = LAB_MLP + 1                      # bilinear aug dim (bias_x / bias_y) = 17
TOK_SLAB = 128                           # lane-dense packed per-token output width
GATE = 4 * H                             # per-direction gate width


def _sigmoid(x):
    # explicit exp-based sigmoid (EUP-friendly, guaranteed Mosaic lowering)
    return 1.0 / (1.0 + jnp.exp(-x))


# ----------------------------- the single fused kernel -----------------------
def _parser_kernel(x_ref, m_ref,
                   w0_ref, b0_ref, u0f_ref, u0b_ref,
                   w1_ref, b1_ref, u1f_ref, u1b_ref,
                   wp_ref, bp_ref, aw_ref, lw_ref, gs_ref,
                   seld_ref, smask_ref, csel_ref, hmask_ref,
                   h_ref, tok_ref, h0_scr,
                   *, batch, seq, n_tok):
    """Whole BiaffineParser forward + parse in one launch.

    x_ref:     (B*S, Din) f32 masked embeddings (root at t=0 of each sentence)
    m_ref:     (B, S)     f32 validity mask (incl. root)
    w{0,1}:    (Din_l, 8H) bf16 hoisted input-projection weights, columns
               [fwd i|f|o|g | bwd i|f|o|g];  b{0,1}: (1, 8H) f32 combined bias
    u{l}{f,b}: (H, 4H) bf16 recurrent weights, columns [i|f|o|g]
    wp/bp:     (2H, 96)/(1, 96) fused arc_h|arc_d|lab_h|lab_d MLP
    aw:        (ARC_MLP+1, ARC_MLP) arc biaffine (bias_x as last row)
    lw:        (K, L*K) label bilinear flattened;  gs: (L*K, L) group-sum
    seld/smask:(N, B*S) constant dependent-row selector / sentence mask
    csel:      (B*S, S) constant column -> in-sentence-position map
    hmask:     (N, S)   constant valid-head mask (j <= len, j != self)
    h_ref:     (B, S, 2H) encoder output;  tok_ref: (N, 128) packed per-token slab
    h0_scr:    (B, S, 2H) VMEM scratch for layer-0 output
    """
    BS = batch * seq

    def bilstm_layer(gi3, uf_ref, ub_ref, out_ref):
        # gi3: (B, S, 8H) hoisted input gates (+bias).  Both directions run in
        # the same statically-unrolled body; each writes its own lane slice.
        hf = jnp.zeros((batch, H), jnp.float32)
        cf = jnp.zeros((batch, H), jnp.float32)
        hb = jnp.zeros((batch, H), jnp.float32)
        cb = jnp.zeros((batch, H), jnp.float32)

        def cell(g, c_prev, m):
            s = _sigmoid(g[:, 0:3 * H])                   # i|f|o in one EUP push
            gg = jnp.tanh(g[:, 3 * H:4 * H])
            c = s[:, H:2 * H] * c_prev + s[:, 0:H] * gg
            hh = s[:, 2 * H:3 * H] * jnp.tanh(c)
            # zero state at padded steps -> packed-sequence semantics
            return hh * m, c * m

        for i in range(seq):                              # static unroll (S known)
            tf, tb = i, seq - 1 - i
            rg_f = jnp.dot(hf.astype(jnp.bfloat16), uf_ref[...],
                           preferred_element_type=jnp.float32)
            rg_b = jnp.dot(hb.astype(jnp.bfloat16), ub_ref[...],
                           preferred_element_type=jnp.float32)
            g_f = gi3[:, tf:tf + 1, 0:GATE].reshape(batch, GATE) + rg_f
            g_b = gi3[:, tb:tb + 1, GATE:2 * GATE].reshape(batch, GATE) + rg_b
            hf, cf = cell(g_f, cf, m_ref[:, tf:tf + 1])
            hb, cb = cell(g_b, cb, m_ref[:, tb:tb + 1])
            out_ref[:, tf:tf + 1, 0:H] = hf.reshape(batch, 1, H)
            out_ref[:, tb:tb + 1, H:2 * H] = hb.reshape(batch, 1, H)

    # ---- 2-layer BiLSTM encoder: input projections hoisted (1 fat matmul/layer)
    gi0 = (jnp.dot(x_ref[...].astype(jnp.bfloat16), w0_ref[...],
                   preferred_element_type=jnp.float32) + b0_ref[...]
           ).reshape(batch, seq, 2 * GATE)
    bilstm_layer(gi0, u0f_ref, u0b_ref, h0_scr)

    h0 = h0_scr[...].reshape(BS, ENC_DIM)
    gi1 = (jnp.dot(h0.astype(jnp.bfloat16), w1_ref[...],
                   preferred_element_type=jnp.float32) + b1_ref[...]
           ).reshape(batch, seq, 2 * GATE)
    bilstm_layer(gi1, u1f_ref, u1b_ref, h_ref)            # layer 1 -> output ref

    h1 = h_ref[...].reshape(BS, ENC_DIM)

    # ---- fused arc/label MLP projections: one matmul for every position
    y = (jnp.dot(h1.astype(jnp.bfloat16), wp_ref[...],
                 preferred_element_type=jnp.float32) + bp_ref[...])
    y = jnp.where(y >= 0, y, LEAKY_SLOPE * y)             # LeakyReLU(0.1)
    arc_h = y[:, 0:ARC_MLP]                               # (BS, 32)
    arc_d = y[:, ARC_MLP:2 * ARC_MLP]                     # (BS, 32)
    labh_all = y[:, 2 * ARC_MLP:2 * ARC_MLP + LAB_MLP]    # (BS, 16)
    labd_all = y[:, 2 * ARC_MLP + LAB_MLP:PROJ_DIM]       # (BS, 16)

    # ---- arc biaffine (bias_x folded as broadcast bias row); per-token rows only
    t_term = (jnp.dot(arc_d, aw_ref[0:ARC_MLP, :], preferred_element_type=jnp.float32)
              + aw_ref[ARC_MLP:ARC_MLP + 1, :])           # (BS, 32)
    t_sel = jnp.dot(seld_ref[...], t_term, preferred_element_type=jnp.float32)  # (N, 32)
    cross = lax.dot_general(t_sel, arc_h, (((1,), (1,)), ((), ())),
                            preferred_element_type=jnp.float32)                 # (N, BS)
    arc_scores = jnp.dot(cross * smask_ref[...], csel_ref[...],
                         preferred_element_type=jnp.float32)                    # (N, S)

    # ---- head prediction: length/self-masked argmax
    # TODO(synk): real ArcBiaffine.parse runs Tarjan/MST decoding on CPU; this
    # masked argmax is the in-kernel stand-in.
    iota = lax.broadcasted_iota(jnp.int32, (n_tok, seq), 1).astype(jnp.float32)
    masked = jnp.where(hmask_ref[...] > 0.5, arc_scores, -1e30)
    mx = jnp.max(masked, axis=1, keepdims=True)
    heads_f = jnp.min(jnp.where(masked == mx, iota, float(seq)),
                      axis=1, keepdims=True)              # (N, 1) first-max index
    one_s = (iota == heads_f).astype(jnp.float32)         # (N, S) head one-hot
    head_sel = jnp.concatenate([one_s] * batch, axis=-1) * smask_ref[...]  # (N, BS)

    # ---- label bilinear: bias_x as bias row, bias_y via h_aug, tile kept in VMEM
    lab_h = jnp.dot(head_sel, labh_all, preferred_element_type=jnp.float32)   # (N, 16)
    lab_d = jnp.dot(seld_ref[...], labd_all, preferred_element_type=jnp.float32)
    t_lab = (jnp.dot(lab_d, lw_ref[0:LAB_MLP, :], preferred_element_type=jnp.float32)
             + lw_ref[LAB_MLP:LAB_MLP + 1, :])            # (N, L*K)
    h_aug = jnp.concatenate([lab_h, jnp.ones((n_tok, 1), jnp.float32)], axis=-1)
    h_tiled = jnp.concatenate([h_aug] * N_LABELS, axis=-1)  # (N, L*K) built in VMEM
    lab_scores = jnp.dot(t_lab * h_tiled, gs_ref[...],
                         preferred_element_type=jnp.float32)                   # (N, L)

    # ---- label argmax (first-max index)
    liota = lax.broadcasted_iota(jnp.int32, (n_tok, N_LABELS), 1).astype(jnp.float32)
    lmx = jnp.max(lab_scores, axis=1, keepdims=True)
    labs_f = jnp.min(jnp.where(lab_scores == lmx, liota, float(N_LABELS)),
                     axis=1, keepdims=True)               # (N, 1)

    # ---- one lane-dense 128-wide packed store for all per-token results
    pad = jnp.zeros((n_tok, TOK_SLAB - seq - N_LABELS - 2), jnp.float32)
    tok_ref[...] = jnp.concatenate([arc_scores, lab_scores, heads_f, labs_f, pad],
                                   axis=-1)


# ----------------------------- weight / constant preparation -----------------
def _reorder_ifog(w):
    """Reorder gate columns from PyTorch [i|f|g|o] to kernel [i|f|o|g]."""
    return jnp.concatenate([w[:, 0:2 * H], w[:, 3 * H:4 * H], w[:, 2 * H:3 * H]],
                           axis=1)


def _prep_weights(params):
    lstm = []
    for layer in range(NUM_LAYERS):
        w_in = jnp.concatenate(
            [_reorder_ifog(params[f"w_ih_l{layer}_f"].T),
             _reorder_ifog(params[f"w_ih_l{layer}_b"].T)],
            axis=1).astype(jnp.bfloat16)                           # (Din_l, 8H)
        bias = jnp.concatenate(
            [_reorder_ifog(params[f"b_l{layer}_f"].reshape(1, -1)),
             _reorder_ifog(params[f"b_l{layer}_b"].reshape(1, -1))],
            axis=1)                                                # (1, 8H) f32
        u_f = _reorder_ifog(params[f"w_hh_l{layer}_f"].T).astype(jnp.bfloat16)
        u_b = _reorder_ifog(params[f"w_hh_l{layer}_b"].T).astype(jnp.bfloat16)
        lstm += [w_in, bias, u_f, u_b]

    wproj = jnp.concatenate([params["arc_h_w"], params["arc_d_w"],
                             params["lab_h_w"], params["lab_d_w"]],
                            axis=1).astype(jnp.bfloat16)           # (2H, 96)
    bproj = jnp.concatenate([params["arc_h_b"], params["arc_d_b"],
                             params["lab_h_b"], params["lab_d_b"]]
                            ).reshape(1, PROJ_DIM)                 # (1, 96)
    arcw = params["arc_w"]                                         # (A+1, A)
    labw = jnp.transpose(params["lab_w"], (1, 0, 2)).reshape(K_LAB, N_LABELS * K_LAB)
    gsum = jnp.asarray(np.kron(np.eye(N_LABELS, dtype=np.float32),
                               np.ones((K_LAB, 1), np.float32)))   # (L*K, L)
    return lstm, wproj, bproj, arcw, labw, gsum


def _batch_constants(lengths, S):
    """_get_batch_indexes (eval: rows=2) plus constant selection matrices."""
    idx0 = np.concatenate([np.full(k, i, np.int32) for i, k in enumerate(lengths)])
    idx1 = np.concatenate([np.arange(1, k + 1, dtype=np.int32) for k in lengths])
    B, N, BS = len(lengths), int(sum(lengths)), len(lengths) * S

    sel_d = np.zeros((N, BS), np.float32)                 # token -> its own row
    sel_d[np.arange(N), idx0 * S + idx1] = 1.0
    sentmask = (np.arange(BS)[None, :] // S == idx0[:, None]).astype(np.float32)
    colsel = np.kron(np.ones((B, 1), np.float32), np.eye(S, dtype=np.float32))
    lens_tok = np.asarray(lengths, np.int32)[idx0]
    pos = np.arange(S)[None, :]
    headmask = ((pos <= lens_tok[:, None]) & (pos != idx1[:, None])).astype(np.float32)
    return idx0, idx1, sel_d, sentmask, colsel, headmask


# ----------------------------- BiaffineParser forward + parse ----------------
def forward_and_parse(params, form_ids, upos_ids, feats_ids, *, lengths):
    B = len(lengths)
    max_len = max(lengths)
    S = max_len + 1                                       # root at position 0
    N = int(sum(lengths))
    assert TOK_SLAB >= S + N_LABELS + 2

    # Embeddings('cat'): cat(form, Embeddings('sum', upos+feats)); eval -> no dropout.
    form_e = params["form_table"][form_ids]                         # (B, max_len, Df)
    uf_e = params["upos_table"][upos_ids] + params["feats_table"][feats_ids]
    x_words = jnp.concatenate([form_e, uf_e], axis=-1)              # (B, max_len, Din)
    root = jnp.broadcast_to(params["root"][None, None, :], (B, 1, INPUT_DIM))
    x = jnp.concatenate([root, x_words], axis=1)                    # (B, S, Din)

    mask = jnp.asarray((np.arange(S)[None, :]
                        < (np.asarray(lengths)[:, None] + 1)).astype(np.float32))
    x = x * mask[:, :, None]
    x2 = x.reshape(B * S, INPUT_DIM)                                # no transpose

    idx0, idx1, sel_d, sentmask, colsel, headmask = _batch_constants(lengths, S)
    lstm_w, wproj, bproj, arcw, labw, gsum = _prep_weights(params)

    kernel = functools.partial(_parser_kernel, batch=B, seq=S, n_tok=N)
    h, tok = pl.pallas_call(
        kernel,
        out_shape=(jax.ShapeDtypeStruct((B, S, ENC_DIM), jnp.float32),
                   jax.ShapeDtypeStruct((N, TOK_SLAB), jnp.float32)),
        scratch_shapes=[pltpu.VMEM((B, S, ENC_DIM), jnp.float32)],
    )(x2, mask, *lstm_w, wproj, bproj, arcw, labw, gsum,
      jnp.asarray(sel_d), jnp.asarray(sentmask),
      jnp.asarray(colsel), jnp.asarray(headmask))

    arc_scores = tok[:, 0:S]                                        # (N, S)
    lab_scores = tok[:, S:S + N_LABELS]                             # (N, L)
    pred_arcs = tok[:, S + N_LABELS].astype(jnp.int32)              # (N,)
    pred_labs = tok[:, S + N_LABELS + 1].astype(jnp.int32)          # (N,)
    indexes = jnp.asarray(np.stack([idx0, idx1]))
    return h, indexes, arc_scores, pred_arcs, lab_scores, pred_labs


# ----------------------------- deterministic parameter init ------------------
def init_params(key):
    ks = iter(jax.random.split(key, 40))

    def norm(shape, scale=0.1):
        return jax.random.normal(next(ks), shape, jnp.float32) * scale

    p = {}
    p["form_table"] = norm((V_FORM, FORM_DIM))
    p["upos_table"] = norm((V_UPOS, UPOS_DIM))
    p["feats_table"] = norm((V_FEATS, UPOS_DIM))
    p["root"] = jax.random.uniform(next(ks), (INPUT_DIM,), jnp.float32)  # nn.init.uniform_

    din = INPUT_DIM
    for layer in range(NUM_LAYERS):
        for d in ("f", "b"):
            p[f"w_ih_l{layer}_{d}"] = norm((4 * H, din))     # PyTorch [i|f|g|o] rows
            p[f"w_hh_l{layer}_{d}"] = norm((4 * H, H))
            p[f"b_l{layer}_{d}"] = norm((4 * H,))            # = b_ih + b_hh combined
        din = 2 * H

    p["arc_h_w"] = norm((ENC_DIM, ARC_MLP)); p["arc_h_b"] = norm((ARC_MLP,))
    p["arc_d_w"] = norm((ENC_DIM, ARC_MLP)); p["arc_d_b"] = norm((ARC_MLP,))
    p["arc_w"] = norm((ARC_MLP + 1, ARC_MLP))                # Biaffine(bias_x=T, bias_y=F)
    p["lab_h_w"] = norm((ENC_DIM, LAB_MLP)); p["lab_h_b"] = norm((LAB_MLP,))
    p["lab_d_w"] = norm((ENC_DIM, LAB_MLP)); p["lab_d_b"] = norm((LAB_MLP,))
    p["lab_w"] = norm((N_LABELS, K_LAB, K_LAB))              # Bilinear(bias_x=T, bias_y=T)
    return p


# ----------------------------- main -------------------------------------------
if __name__ == "__main__":
    key = jax.random.PRNGKey(0)
    pkey, dkey = jax.random.split(key)
    params = init_params(pkey)

    lengths = (5, 7)                         # two sentences
    B, max_len = len(lengths), max(lengths)

    k1, k2, k3 = jax.random.split(dkey, 3)
    form_ids = jax.random.randint(k1, (B, max_len), 0, V_FORM)
    upos_ids = jax.random.randint(k2, (B, max_len), 0, V_UPOS)
    feats_ids = jax.random.randint(k3, (B, max_len), 0, V_FEATS)

    run = jax.jit(functools.partial(forward_and_parse, lengths=lengths))
    h, indexes, arc_scores, pred_arcs, lab_scores, pred_labs = run(
        params, form_ids, upos_ids, feats_ids)

    jax.block_until_ready((h, arc_scores, lab_scores, pred_arcs, pred_labs))
    print("KERNEL_OK")
</pallas_src>

<mosaic_0001>
module attributes {stable_mosaic.version = 11 : i64} {
  func.func @_parser_kernel(%arg0: memref<16x32xf32, #tpu.memory_space<vmem>>, %arg1: memref<2x8xf32, #tpu.memory_space<vmem>>, %arg2: memref<32x256xbf16, #tpu.memory_space<vmem>>, %arg3: memref<1x256xf32, #tpu.memory_space<vmem>>, %arg4: memref<32x128xbf16, #tpu.memory_space<vmem>>, %arg5: memref<32x128xbf16, #tpu.memory_space<vmem>>, %arg6: memref<64x256xbf16, #tpu.memory_space<vmem>>, %arg7: memref<1x256xf32, #tpu.memory_space<vmem>>, %arg8: memref<32x128xbf16, #tpu.memory_space<vmem>>, %arg9: memref<32x128xbf16, #tpu.memory_space<vmem>>, %arg10: memref<64x96xbf16, #tpu.memory_space<vmem>>, %arg11: memref<1x96xf32, #tpu.memory_space<vmem>>, %arg12: memref<33x32xf32, #tpu.memory_space<vmem>>, %arg13: memref<17x136xf32, #tpu.memory_space<vmem>>, %arg14: memref<136x8xf32, #tpu.memory_space<vmem>>, %arg15: memref<12x16xf32, #tpu.memory_space<vmem>>, %arg16: memref<12x16xf32, #tpu.memory_space<vmem>>, %arg17: memref<16x8xf32, #tpu.memory_space<vmem>>, %arg18: memref<12x8xf32, #tpu.memory_space<vmem>>, %arg19: memref<2x8x64xf32, #tpu.memory_space<vmem>>, %arg20: memref<12x128xf32, #tpu.memory_space<vmem>>, %arg21: memref<2x8x64xf32, #tpu.memory_space<vmem>>) attributes {dimension_semantics = [], scalar_prefetch = 0 : i64, scratch_operands = 1 : i64, tpu.core_type = #tpu.core_type<tc>} {
    %c0 = arith.constant 0 : index
    %c0_0 = arith.constant 0 : index
    %0 = vector.load %arg0[%c0, %c0_0] : memref<16x32xf32, #tpu.memory_space<vmem>>, vector<16x32xf32>
    %1 = arith.truncf %0 : vector<16x32xf32> to vector<16x32xbf16>
    %c0_1 = arith.constant 0 : index
    %c0_2 = arith.constant 0 : index
    %2 = vector.load %arg2[%c0_1, %c0_2] : memref<32x256xbf16, #tpu.memory_space<vmem>>, vector<32x256xbf16>
    %cst = arith.constant dense<0.000000e+00> : vector<16x256xf32>
    %3 = tpu.matmul %1, %2, %cst {dimension_numbers = #tpu.dot_dimension_numbers<[1], [0], [0], [1], [0, 0, 1, 1], [], []>} : vector<16x32xbf16>, vector<32x256xbf16>, vector<16x256xf32> -> vector<16x256xf32>
    %c0_3 = arith.constant 0 : index
    %c0_4 = arith.constant 0 : index
    %4 = vector.load %arg3[%c0_3, %c0_4] : memref<1x256xf32, #tpu.memory_space<vmem>>, vector<1x256xf32>
    %5 = vector.broadcast %4 : vector<1x256xf32> to vector<16x256xf32>
    %6 = arith.addf %3, %5 : vector<16x256xf32>
    %7 = vector.shape_cast %6 : vector<16x256xf32> to vector<2x8x256xf32>
    %cst_5 = arith.constant 0.000000e+00 : f32
    %8 = vector.broadcast %cst_5 : f32 to vector<2x32xf32>
    %cst_6 = arith.constant 0.000000e+00 : f32
    %9 = vector.broadcast %cst_6 : f32 to vector<2x32xf32>
    %cst_7 = arith.constant 0.000000e+00 : f32
    %10 = vector.broadcast %cst_7 : f32 to vector<2x32xf32>
    %cst_8 = arith.constant 0.000000e+00 : f32
    %11 = vector.broadcast %cst_8 : f32 to vector<2x32xf32>
    %12 = arith.truncf %8 : vector<2x32xf32> to vector<2x32xbf16>
    %c0_9 = arith.constant 0 : index
    %c0_10 = arith.constant 0 : index
    %13 = vector.load %arg4[%c0_9, %c0_10] : memref<32x128xbf16, #tpu.memory_space<vmem>>, vector<32x128xbf16>
    %cst_11 = arith.constant dense<0.000000e+00> : vector<2x128xf32>
    %14 = tpu.matmul %12, %13, %cst_11 {dimension_numbers = #tpu.dot_dimension_numbers<[1], [0], [0], [1], [0, 0, 1, 1], [], []>} : vector<2x32xbf16>, vector<32x128xbf16>, vector<2x128xf32> -> vector<2x128xf32>
    %15 = arith.truncf %10 : vector<2x32xf32> to vector<2x32xbf16>
    %c0_12 = arith.constant 0 : index
    %c0_13 = arith.constant 0 : index
    %16 = vector.load %arg5[%c0_12, %c0_13] : memref<32x128xbf16, #tpu.memory_space<vmem>>, vector<32x128xbf16>
    %cst_14 = arith.constant dense<0.000000e+00> : vector<2x128xf32>
    %17 = tpu.matmul %15, %16, %cst_14 {dimension_numbers = #tpu.dot_dimension_numbers<[1], [0], [0], [1], [0, 0, 1, 1], [], []>} : vector<2x32xbf16>, vector<32x128xbf16>, vector<2x128xf32> -> vector<2x128xf32>
    %18 = vector.extract_strided_slice %7 {offsets = [0, 0, 0], sizes = [2, 1, 128], strides = [1, 1, 1]} : vector<2x8x256xf32> to vector<2x1x128xf32>
    %19 = vector.shape_cast %18 : vector<2x1x128xf32> to vector<2x128xf32>
    %20 = arith.addf %19, %14 : vector<2x128xf32>
    %21 = vector.extract_strided_slice %7 {offsets = [0, 7, 128], sizes = [2, 1, 128], strides = [1, 1, 1]} : vector<2x8x256xf32> to vector<2x1x128xf32>
    %22 = vector.shape_cast %21 : vector<2x1x128xf32> to vector<2x128xf32>
    %23 = arith.addf %22, %17 : vector<2x128xf32>
    %c0_15 = arith.constant 0 : index
    %c0_16 = arith.constant 0 : index
    %24 = vector.load %arg1[%c0_15, %c0_16] : memref<2x8xf32, #tpu.memory_space<vmem>>, vector<2x1xf32>
    %25 = vector.extract_strided_slice %20 {offsets = [0, 0], sizes = [2, 96], strides = [1, 1]} : vector<2x128xf32> to vector<2x96xf32>
    %cst_17 = arith.constant 0.000000e+00 : f32
    %26 = vector.broadcast %cst_17 : f32 to vector<2x96xf32>
    %27 = arith.subf %26, %25 : vector<2x96xf32>
    %28 = math.exp %27 : vector<2x96xf32>
    %cst_18 = arith.constant 1.000000e+00 : f32
    %29 = vector.broadcast %cst_18 : f32 to vector<2x96xf32>
    %30 = arith.addf %29, %28 : vector<2x96xf32>
    %cst_19 = arith.constant 1.000000e+00 : f32
    %31 = vector.broadcast %cst_19 : f32 to vector<2x96xf32>
    %32 = arith.divf %31, %30 : vector<2x96xf32>
    %33 = vector.extract_strided_slice %20 {offsets = [0, 96], sizes = [2, 32], strides = [1, 1]} : vector<2x128xf32> to vector<2x32xf32>
    %34 = math.tanh %33 : vector<2x32xf32>
    %35 = vector.extract_strided_slice %32 {offsets = [0, 32], sizes = [2, 32], strides = [1, 1]} : vector<2x96xf32> to vector<2x32xf32>
    %36 = arith.mulf %35, %9 : vector<2x32xf32>
    %37 = vector.extract_strided_slice %32 {offsets = [0, 0], sizes = [2, 32], strides = [1, 1]} : vector<2x96xf32> to vector<2x32xf32>
    %38 = arith.mulf %37, %34 : vector<2x32xf32>
    %39 = arith.addf %36, %38 : vector<2x32xf32>
    %40 = vector.extract_strided_slice %32 {offsets = [0, 64], sizes = [2, 32], strides = [1, 1]} : vector<2x96xf32> to vector<2x32xf32>
    %41 = math.tanh %39 : vector<2x32xf32>
    %42 = arith.mulf %40, %41 : vector<2x32xf32>
    %43 = vector.broadcast %24 : vector<2x1xf32> to vector<2x32xf32>
    %44 = arith.mulf %42, %43 : vector<2x32xf32>
    %45 = vector.broadcast %24 : vector<2x1xf32> to vector<2x32xf32>
    %46 = arith.mulf %39, %45 : vector<2x32xf32>
    %c0_20 = arith.constant 0 : index
    %c7 = arith.constant 7 : index
    %47 = vector.load %arg1[%c0_20, %c7] : memref<2x8xf32, #tpu.memory_space<vmem>>, vector<2x1xf32>
    %48 = vector.extract_strided_slice %23 {offsets = [0, 0], sizes = [2, 96], strides = [1, 1]} : vector<2x128xf32> to vector<2x96xf32>
    %cst_21 = arith.constant 0.000000e+00 : f32
    %49 = vector.broadcast %cst_21 : f32 to vector<2x96xf32>
    %50 = arith.subf %49, %48 : vector<2x96xf32>
    %51 = math.exp %50 : vector<2x96xf32>
    %cst_22 = arith.constant 1.000000e+00 : f32
    %52 = vector.broadcast %cst_22 : f32 to vector<2x96xf32>
    %53 = arith.addf %52, %51 : vector<2x96xf32>
    %cst_23 = arith.constant 1.000000e+00 : f32
    %54 = vector.broadcast %cst_23 : f32 to vector<2x96xf32>
    %55 = arith.divf %54, %53 : vector<2x96xf32>
    %56 = vector.extract_strided_slice %23 {offsets = [0, 96], sizes = [2, 32], strides = [1, 1]} : vector<2x128xf32> to vector<2x32xf32>
    %57 = math.tanh %56 : vector<2x32xf32>
    %58 = vector.extract_strided_slice %55 {offsets = [0, 32], sizes = [2, 32], strides = [1, 1]} : vector<2x96xf32> to vector<2x32xf32>
    %59 = arith.mulf %58, %11 : vector<2x32xf32>
    %60 = vector.extract_strided_slice %55 {offsets = [0, 0], sizes = [2, 32], strides = [1, 1]} : vector<2x96xf32> to vector<2x32xf32>
    %61 = arith.mulf %60, %57 : vector<2x32xf32>
    %62 = arith.addf %59, %61 : vector<2x32xf32>
    %63 = vector.extract_strided_slice %55 {offsets = [0, 64], sizes = [2, 32], strides = [1, 1]} : vector<2x96xf32> to vector<2x32xf32>
    %64 = math.tanh %62 : vector<2x32xf32>
    %65 = arith.mulf %63, %64 : vector<2x32xf32>
    %66 = vector.broadcast %47 : vector<2x1xf32> to vector<2x32xf32>
    %67 = arith.mulf %65, %66 : vector<2x32xf32>
    %68 = vector.broadcast %47 : vector<2x1xf32> to vector<2x32xf32>
    %69 = arith.mulf %62, %68 : vector<2x32xf32>
    %70 = vector.shape_cast %44 : vector<2x32xf32> to vector<2x1x32xf32>
    %c0_24 = arith.constant 0 : index
    %c0_25 = arith.constant 0 : index
    %c0_26 = arith.constant 0 : index
    %71 = vector.load %arg21[%c0_24, %c0_25, %c0_26] : memref<2x8x64xf32, #tpu.memory_space<vmem>>, vector<2x1x32xf32>
    tpu.vector_store %arg21[%c0_24, %c0_25, %c0_26], %70 {strides = array<i32>} : memref<2x8x64xf32, #tpu.memory_space<vmem>>, vector<2x1x32xf32>,
    %72 = vector.shape_cast %67 : vector<2x32xf32> to vector<2x1x32xf32>
    %c0_27 = arith.constant 0 : index
    %c7_28 = arith.constant 7 : index
    %c32 = arith.constant 32 : index
    %73 = vector.load %arg21[%c0_27, %c7_28, %c32] : memref<2x8x64xf32, #tpu.memory_space<vmem>>, vector<2x1x32xf32>
    tpu.vector_store %arg21[%c0_27, %c7_28, %c32], %72 {strides = array<i32>} : memref<2x8x64xf32, #tpu.memory_space<vmem>>, vector<2x1x32xf32>,
    %74 = arith.truncf %44 : vector<2x32xf32> to vector<2x32xbf16>
    %c0_29 = arith.constant 0 : index
    %c0_30 = arith.constant 0 : index
    %75 = vector.load %arg4[%c0_29, %c0_30] : memref<32x128xbf16, #tpu.memory_space<vmem>>, vector<32x128xbf16>
    %cst_31 = arith.constant dense<0.000000e+00> : vector<2x128xf32>
    %76 = tpu.matmul %74, %75, %cst_31 {dimension_numbers = #tpu.dot_dimension_numbers<[1], [0], [0], [1], [0, 0, 1, 1], [], []>} : vector<2x32xbf16>, vector<32x128xbf16>, vector<2x128xf32> -> vector<2x128xf32>
    %77 = arith.truncf %67 : vector<2x32xf32> to vector<2x32xbf16>
    %c0_32 = arith.constant 0 : index
    %c0_33 = arith.constant 0 : index
    %78 = vector.load %arg5[%c0_32, %c0_33] : memref<32x128xbf16, #tpu.memory_space<vmem>>, vector<32x128xbf16>
    %cst_34 = arith.constant dense<0.000000e+00> : vector<2x128xf32>
    %79 = tpu.matmul %77, %78, %cst_34 {dimension_numbers = #tpu.dot_dimension_numbers<[1], [0], [0], [1], [0, 0, 1, 1], [], []>} : vector<2x32xbf16>, vector<32x128xbf16>, vector<2x128xf32> -> vector<2x128xf32>
    %80 = vector.extract_strided_slice %7 {offsets = [0, 1, 0], sizes = [2, 1, 128], strides = [1, 1, 1]} : vector<2x8x256xf32> to vector<2x1x128xf32>
    %81 = vector.shape_cast %80 : vector<2x1x128xf32> to vector<2x128xf32>
    %82 = arith.addf %81, %76 : vector<2x128xf32>
    %83 = vector.extract_strided_slice %7 {offsets = [0, 6, 128], sizes = [2, 1, 128], strides = [1, 1, 1]} : vector<2x8x256xf32> to vector<2x1x128xf32>
    %84 = vector.shape_cast %83 : vector<2x1x128xf32> to vector<2x128xf32>
    %85 = arith.addf %84, %79 : vector<2x128xf32>
    %c0_35 = arith.constant 0 : index
    %c1 = arith.constant 1 : index
    %86 = vector.load %arg1[%c0_35, %c1] : memref<2x8xf32, #tpu.memory_space<vmem>>, vector<2x1xf32>
    %87 = vector.extract_strided_slice %82 {offsets = [0, 0], sizes = [2, 96], strides = [1, 1]} : vector<2x128xf32> to vector<2x96xf32>
    %cst_36 = arith.constant 0.000000e+00 : f32
    %88 = vector.broadcast %cst_36 : f32 to vector<2x96xf32>
    %89 = arith.subf %88, %87 : vector<2x96xf32>
    %90 = math.exp %89 : vector<2x96xf32>
    %cst_37 = arith.constant 1.000000e+00 : f32
    %91 = vector.broadcast %cst_37 : f32 to vector<2x96xf32>
    %92 = arith.addf %91, %90 : vector<2x96xf32>
    %cst_38 = arith.constant 1.000000e+00 : f32
    %93 = vector.broadcast %cst_38 : f32 to vector<2x96xf32>
    %94 = arith.divf %93, %92 : vector<2x96xf32>
    %95 = vector.extract_strided_slice %82 {offsets = [0, 96], sizes = [2, 32], strides = [1, 1]} : vector<2x128xf32> to vector<2x32xf32>
    %96 = math.tanh %95 : vector<2x32xf32>
    %97 = vector.extract_strided_slice %94 {offsets = [0, 32], sizes = [2, 32], strides = [1, 1]} : vector<2x96xf32> to vector<2x32xf32>
    %98 = arith.mulf %97, %46 : vector<2x32xf32>
    %99 = vector.extract_strided_slice %94 {offsets = [0, 0], sizes = [2, 32], strides = [1, 1]} : vector<2x96xf32> to vector<2x32xf32>
    %100 = arith.mulf %99, %96 : vector<2x32xf32>
    %101 = arith.addf %98, %100 : vector<2x32xf32>
    %102 = vector.extract_strided_slice %94 {offsets = [0, 64], sizes = [2, 32], strides = [1, 1]} : vector<2x96xf32> to vector<2x32xf32>
    %103 = math.tanh %101 : vector<2x32xf32>
    %104 = arith.mulf %102, %103 : vector<2x32xf32>
    %105 = vector.broadcast %86 : vector<2x1xf32> to vector<2x32xf32>
    %106 = arith.mulf %104, %105 : vector<2x32xf32>
    %107 = vector.broadcast %86 : vector<2x1xf32> to vector<2x32xf32>
    %108 = arith.mulf %101, %107 : vector<2x32xf32>
    %c0_39 = arith.constant 0 : index
    %c6 = arith.constant 6 : index
    %109 = vector.load %arg1[%c0_39, %c6] : memref<2x8xf32, #tpu.memory_space<vmem>>, vector<2x1xf32>
    %110 = vector.extract_strided_slice %85 {offsets = [0, 0], sizes = [2, 96], strides = [1, 1]} : vector<2x128xf32> to vector<2x96xf32>
    %cst_40 = arith.constant 0.000000e+00 : f32
    %111 = vector.broadcast %cst_40 : f32 to vector<2x96xf32>
    %112 = arith.subf %111, %110 : vector<2x96xf32>
    %113 = math.exp %112 : vector<2x96xf32>
    %cst_41 = arith.constant 1.000000e+00 : f32
    %114 = vector.broadcast %cst_41 : f32 to vector<2x96xf32>
    %115 = arith.addf %114, %113 : vector<2x96xf32>
    %cst_42 = arith.constant 1.000000e+00 : f32
    %116 = vector.broadcast %cst_42 : f32 to vector<2x96xf32>
    %117 = arith.divf %116, %115 : vector<2x96xf32>
    %118 = vector.extract_strided_slice %85 {offsets = [0, 96], sizes = [2, 32], strides = [1, 1]} : vector<2x128xf32> to vector<2x32xf32>
    %119 = math.tanh %118 : vector<2x32xf32>
    %120 = vector.extract_strided_slice %117 {offsets = [0, 32], sizes = [2, 32], strides = [1, 1]} : vector<2x96xf32> to vector<2x32xf32>
    %121 = arith.mulf %120, %69 : vector<2x32xf32>
    %122 = vector.extract_strided_slice %117 {offsets = [0, 0], sizes = [2, 32], strides = [1, 1]} : vector<2x96xf32> to vector<2x32xf32>
    %123 = arith.mulf %122, %119 : vector<2x32xf32>
    %124 = arith.addf %121, %123 : vector<2x32xf32>
    %125 = vector.extract_strided_slice %117 {offsets = [0, 64], sizes = [2, 32], strides = [1, 1]} : vector<2x96xf32> to vector<2x32xf32>
    %126 = math.tanh %124 : vector<2x32xf32>
    %127 = arith.mulf %125, %126 : vector<2x32xf32>
    %128 = vector.broadcast %109 : vector<2x1xf32> to vector<2x32xf32>
    %129 = arith.mulf %127, %128 : vector<2x32xf32>
    %130 = vector.broadcast %109 : vector<2x1xf32> to vector<2x32xf32>
    %131 = arith.mulf %124, %130 : vector<2x32xf32>
    %132 = vector.shape_cast %106 : vector<2x32xf32> to vector<2x1x32xf32>
    %c0_43 = arith.constant 0 : index
    %c1_44 = arith.constant 1 : index
    %c0_45 = arith.constant 0 : index
    %133 = vector.load %arg21[%c0_43, %c1_44, %c0_45] : memref<2x8x64xf32, #tpu.memory_space<vmem>>, vector<2x1x32xf32>
    tpu.vector_store %arg21[%c0_43, %c1_44, %c0_45], %132 {strides = array<i32>} : memref<2x8x64xf32, #tpu.memory_space<vmem>>, vector<2x1x32xf32>,
    %134 = vector.shape_cast %129 : vector<2x32xf32> to vector<2x1x32xf32>
    %c0_46 = arith.constant 0 : index
    %c6_47 = arith.constant 6 : index
    %c32_48 = arith.constant 32 : index
    %135 = vector.load %arg21[%c0_46, %c6_47, %c32_48] : memref<2x8x64xf32, #tpu.memory_space<vmem>>, vector<2x1x32xf32>
    tpu.vector_store %arg21[%c0_46, %c6_47, %c32_48], %134 {strides = array<i32>} : memref<2x8x64xf32, #tpu.memory_space<vmem>>, vector<2x1x32xf32>,
    %136 = arith.truncf %106 : vector<2x32xf32> to vector<2x32xbf16>
    %c0_49 = arith.constant 0 : index
    %c0_50 = arith.constant 0 : index
    %137 = vector.load %arg4[%c0_49, %c0_50] : memref<32x128xbf16, #tpu.memory_space<vmem>>, vector<32x128xbf16>
    %cst_51 = arith.constant dense<0.000000e+00> : vector<2x128xf32>
    %138 = tpu.matmul %136, %137, %cst_51 {dimension_numbers = #tpu.dot_dimension_numbers<[1], [0], [0], [1], [0, 0, 1, 1], [], []>} : vector<2x32xbf16>, vector<32x128xbf16>, vector<2x128xf32> -> vector<2x128xf32>
    %139 = arith.truncf %129 : vector<2x32xf32> to vector<2x32xbf16>
    %c0_52 = arith.constant 0 : index
    %c0_53 = arith.constant 0 : index
    %140 = vector.load %arg5[%c0_52, %c0_53] : memref<32x128xbf16, #tpu.memory_space<vmem>>, vector<32x128xbf16>
    %cst_54 = arith.constant dense<0.000000e+00> : vector<2x128xf32>
    %141 = tpu.matmul %139, %140, %cst_54 {dimension_numbers = #tpu.dot_dimension_numbers<[1], [0], [0], [1], [0, 0, 1, 1], [], []>} : vector<2x32xbf16>, vector<32x128xbf16>, vector<2x128xf32> -> vector<2x128xf32>
    %142 = vector.extract_strided_slice %7 {offsets = [0, 2, 0], sizes = [2, 1, 128], strides = [1, 1, 1]} : vector<2x8x256xf32> to vector<2x1x128xf32>
    %143 = vector.shape_cast %142 : vector<2x1x128xf32> to vector<2x128xf32>
    %144 = arith.addf %143, %138 : vector<2x128xf32>
    %145 = vector.extract_strided_slice %7 {offsets = [0, 5, 128], sizes = [2, 1, 128], strides = [1, 1, 1]} : vector<2x8x256xf32> to vector<2x1x128xf32>
    %146 = vector.shape_cast %145 : vector<2x1x128xf32> to vector<2x128xf32>
    %147 = arith.addf %146, %141 : vector<2x128xf32>
    %c0_55 = arith.constant 0 : index
    %c2 = arith.constant 2 : index
    %148 = vector.load %arg1[%c0_55, %c2] : memref<2x8xf32, #tpu.memory_space<vmem>>, vector<2x1xf32>
    %149 = vector.extract_strided_slice %144 {offsets = [0, 0], sizes = [2, 96], strides = [1, 1]} : vector<2x128xf32> to vector<2x96xf32>
    %cst_56 = arith.constant 0.000000e+00 : f32
    %150 = vector.broadcast %cst_56 : f32 to vector<2x96xf32>
    %151 = arith.subf %150, %149 : vector<2x96xf32>
    %152 = math.exp %151 : vector<2x96xf32>
    %cst_57 = arith.constant 1.000000e+00 : f32
    %153 = vector.broadcast %cst_57 : f32 to vector<2x96xf32>
    %154 = arith.addf %153, %152 : vector<2x96xf32>
    %cst_58 = arith.constant 1.000000e+00 : f32
    %155 = vector.broadcast %cst_58 : f32 to vector<2x96xf32>
    %156 = arith.divf %155, %154 : vector<2x96xf32>
    %157 = vector.extract_strided_slice %144 {offsets = [0, 96], sizes = [2, 32], strides = [1, 1]} : vector<2x128xf32> to vector<2x32xf32>
    %158 = math.tanh %157 : vector<2x32xf32>
    %159 = vector.extract_strided_slice %156 {offsets = [0, 32], sizes = [2, 32], strides = [1, 1]} : vector<2x96xf32> to vector<2x32xf32>
    %160 = arith.mulf %159, %108 : vector<2x32xf32>
    %161 = vector.extract_strided_slice %156 {offsets = [0, 0], sizes = [2, 32], strides = [1, 1]} : vector<2x96xf32> to vector<2x32xf32>
    %162 = arith.mulf %161, %158 : vector<2x32xf32>
    %163 = arith.addf %160, %162 : vector<2x32xf32>
    %164 = vector.extract_strided_slice %156 {offsets = [0, 64], sizes = [2, 32], strides = [1, 1]} : vector<2x96xf32> to vector<2x32xf32>
    %165 = math.tanh %163 : vector<2x32xf32>
    %166 = arith.mulf %164, %165 : vector<2x32xf32>
    %167 = vector.broadcast %148 : vector<2x1xf32> to vector<2x32xf32>
    %168 = arith.mulf %166, %167 : vector<2x32xf32>
    %169 = vector.broadcast %148 : vector<2x1xf32> to vector<2x32xf32>
    %170 = arith.mulf %163, %169 : vector<2x32xf32>
    %c0_59 = arith.constant 0 : index
    %c5 = arith.constant 5 : index
    %171 = vector.load %arg1[%c0_59, %c5] : memref<2x8xf32, #tpu.memory_space<vmem>>, vector<2x1xf32>
    %172 = vector.extract_strided_slice %147 {offsets = [0, 0], sizes = [2, 96], strides = [1, 1]} : vector<2x128xf32> to vector<2x96xf32>
    %cst_60 = arith.constant 0.000000e+00 : f32
    %173 = vector.broadcast %cst_60 : f32 to vector<2x96xf32>
    %174 = arith.subf %173, %172 : vector<2x96xf32>
    %175 = math.exp %174 : vector<2x96xf32>
    %cst_61 = arith.constant 1.000000e+00 : f32
    %176 = vector.broadcast %cst_61 : f32 to vector<2x96xf32>
    %177 = arith.addf %176, %175 : vector<2x96xf32>
    %cst_62 = arith.constant 1.000000e+00 : f32
    %178 = vector.broadcast %cst_62 : f32 to vector<2x96xf32>
    %179 = arith.divf %178, %177 : vector<2x96xf32>
    %180 = vector.extract_strided_slice %147 {offsets = [0, 96], sizes = [2, 32], strides = [1, 1]} : vector<2x128xf32> to vector<2x32xf32>
    %181 = math.tanh %180 : vector<2x32xf32>
    %182 = vector.extract_strided_slice %179 {offsets = [0, 32], sizes = [2, 32], strides = [1, 1]} : vector<2x96xf32> to vector<2x32xf32>
    %183 = arith.mulf %182, %131 : vector<2x32xf32>
    %184 = vector.extract_strided_slice %179 {offsets = [0, 0], sizes = [2, 32], strides = [1, 1]} : vector<2x96xf32> to vector<2x32xf32>
    %185 = arith.mulf %184, %181 : vector<2x32xf32>
    %186 = arith.addf %183, %185 : vector<2x32xf32>
    %187 = vector.extract_strided_slice %179 {offsets = [0, 64], sizes = [2, 32], strides = [1, 1]} : vector<2x96xf32> to vector<2x32xf32>
    %188 = math.tanh %186 : vector<2x32xf32>
    %189 = arith.mulf %187, %188 : vector<2x32xf32>
    %190 = vector.broadcast %171 : vector<2x1xf32> to vector<2x32xf32>
    %191 = arith.mulf %189, %190 : vector<2x32xf32>
    %192 = vector.broadcast %171 : vector<2x1xf32> to vector<2x32xf32>
    %193 = arith.mulf %186, %192 : vector<2x32xf32>
    %194 = vector.shape_cast %168 : vector<2x32xf32> to vector<2x1x32xf32>
    %c0_63 = arith.constant 0 : index
    %c2_64 = arith.constant 2 : index
    %c0_65 = arith.constant 0 : index
    %195 = vector.load %arg21[%c0_63, %c2_64, %c0_65] : memref<2x8x64xf32, #tpu.memory_space<vmem>>, vector<2x1x32xf32>
    tpu.vector_store %arg21[%c0_63, %c2_64, %c0_65], %194 {strides = array<i32>} : memref<2x8x64xf32, #tpu.memory_space<vmem>>, vector<2x1x32xf32>,
    %196 = vector.shape_cast %191 : vector<2x32xf32> to vector<2x1x32xf32>
    %c0_66 = arith.constant 0 : index
    %c5_67 = arith.constant 5 : index
    %c32_68 = arith.constant 32 : index
    %197 = vector.load %arg21[%c0_66, %c5_67, %c32_68] : memref<2x8x64xf32, #tpu.memory_space<vmem>>, vector<2x1x32xf32>
    tpu.vector_store %arg21[%c0_66, %c5_67, %c32_68], %196 {strides = array<i32>} : memref<2x8x64xf32, #tpu.memory_space<vmem>>, vector<2x1x32xf32>,
    %198 = arith.truncf %168 : vector<2x32xf32> to vector<2x32xbf16>
    %c0_69 = arith.constant 0 : index
    %c0_70 = arith.constant 0 : index
    %199 = vector.load %arg4[%c0_69, %c0_70] : memref<32x128xbf16, #tpu.memory_space<vmem>>, vector<32x128xbf16>
    %cst_71 = arith.constant dense<0.000000e+00> : vector<2x128xf32>
    %200 = tpu.matmul %198, %199, %cst_71 {dimension_numbers = #tpu.dot_dimension_numbers<[1], [0], [0], [1], [0, 0, 1, 1], [], []>} : vector<2x32xbf16>, vector<32x128xbf16>, vector<2x128xf32> -> vector<2x128xf32>
    %201 = arith.truncf %191 : vector<2x32xf32> to vector<2x32xbf16>
    %c0_72 = arith.constant 0 : index
    %c0_73 = arith.constant 0 : index
    %202 = vector.load %arg5[%c0_72, %c0_73] : memref<32x128xbf16, #tpu.memory_space<vmem>>, vector<32x128xbf16>
    %cst_74 = arith.constant dense<0.000000e+00> : vector<2x128xf32>
    %203 = tpu.matmul %201, %202, %cst_74 {dimension_numbers = #tpu.dot_dimension_numbers<[1], [0], [0], [1], [0, 0, 1, 1], [], []>} : vector<2x32xbf16>, vector<32x128xbf16>, vector<2x128xf32> -> vector<2x128xf32>
    %204 = vector.extract_strided_slice %7 {offsets = [0, 3, 0], sizes = [2, 1, 128], strides = [1, 1, 1]} : vector<2x8x256xf32> to vector<2x1x128xf32>
    %205 = vector.shape_cast %204 : vector<2x1x128xf32> to vector<2x128xf32>
    %206 = arith.addf %205, %200 : vector<2x128xf32>
    %207 = vector.extract_strided_slice %7 {offsets = [0, 4, 128], sizes = [2, 1, 128], strides = [1, 1, 1]} : vector<2x8x256xf32> to vector<2x1x128xf32>
    %208 = vector.shape_cast %207 : vector<2x1x128xf32> to vector<2x128xf32>
    %209 = arith.addf %208, %203 : vector<2x128xf32>
    %c0_75 = arith.constant 0 : index
    %c3 = arith.constant 3 : index
    %210 = vector.load %arg1[%c0_75, %c3] : memref<2x8xf32, #tpu.memory_space<vmem>>, vector<2x1xf32>
    %211 = vector.extract_strided_slice %206 {offsets = [0, 0], sizes = [2, 96], strides = [1, 1]} : vector<2x128xf32> to vector<2x96xf32>
    %cst_76 = arith.constant 0.000000e+00 : f32
    %212 = vector.broadcast %cst_76 : f32 to vector<2x96xf32>
    %213 = arith.subf %212, %211 : vector<2x96xf32>
    %214 = math.exp %213 : vector<2x96xf32>
    %cst_77 = arith.constant 1.000000e+00 : f32
    %215 = vector.broadcast %cst_77 : f32 to vector<2x96xf32>
    %216 = arith.addf %215, %214 : vector<2x96xf32>
    %cst_78 = arith.constant 1.000000e+00 : f32
    %217 = vector.broadcast %cst_78 : f32 to vector<2x96xf32>
    %218 = arith.divf %217, %216 : vector<2x96xf32>
    %219 = vector.extract_strided_slice %206 {offsets = [0, 96], sizes = [2, 32], strides = [1, 1]} : vector<2x128xf32> to vector<2x32xf32>
    %220 = math.tanh %219 : vector<2x32xf32>
    %221 = vector.extract_strided_slice %218 {offsets = [0, 32], sizes = [2, 32], strides = [1, 1]} : vector<2x96xf32> to vector<2x32xf32>
    %222 = arith.mulf %221, %170 : vector<2x32xf32>
    %223 = vector.extract_strided_slice %218 {offsets = [0, 0], sizes = [2, 32], strides = [1, 1]} : vector<2x96xf32> to vector<2x32xf32>
    %224 = arith.mulf %223, %220 : vector<2x32xf32>
    %225 = arith.addf %222, %224 : vector<2x32xf32>
    %226 = vector.extract_strided_slice %218 {offsets = [0, 64], sizes = [2, 32], strides = [1, 1]} : vector<2x96xf32> to vector<2x32xf32>
    %227 = math.tanh %225 : vector<2x32xf32>
    %228 = arith.mulf %226, %227 : vector<2x32xf32>
    %229 = vector.broadcast %210 : vector<2x1xf32> to vector<2x32xf32>
    %230 = arith.mulf %228, %229 : vector<2x32xf32>
    %231 = vector.broadcast %210 : vector<2x1xf32> to vector<2x32xf32>
    %232 = arith.mulf %225, %231 : vector<2x32xf32>
    %c0_79 = arith.constant 0 : index
    %c4 = arith.constant 4 : index
    %233 = vector.load %arg1[%c0_79, %c4] : memref<2x8xf32, #tpu.memory_space<vmem>>, vector<2x1xf32>
    %234 = vector.extract_strided_slice %209 {offsets = [0, 0], sizes = [2, 96], strides = [1, 1]} : vector<2x128xf32> to vector<2x96xf32>
    %cst_80 = arith.constant 0.000000e+00 : f32
    %235 = vector.broadcast %cst_80 : f32 to vector<2x96xf32>
    %236 = arith.subf %235, %234 : vector<2x96xf32>
    %237 = math.exp %236 : vector<2x96xf32>
    %cst_81 = arith.constant 1.000000e+00 : f32
    %238 = vector.broadcast %cst_81 : f32 to vector<2x96xf32>
    %239 = arith.addf %238, %237 : vector<2x96xf32>
    %cst_82 = arith.constant 1.000000e+00 : f32
    %240 = vector.broadcast %cst_82 : f32 to vector<2x96xf32>
    %241 = arith.divf %240, %239 : vector<2x96xf32>
    %242 = vector.extract_strided_slice %209 {offsets = [0, 96], sizes = [2, 32], strides = [1, 1]} : vector<2x128xf32> to vector<2x32xf32>
    %243 = math.tanh %242 : vector<2x32xf32>
    %244 = vector.extract_strided_slice %241 {offsets = [0, 32], sizes = [2, 32], strides = [1, 1]} : vector<2x96xf32> to vector<2x32xf32>
    %245 = arith.mulf %244, %193 : vector<2x32xf32>
    %246 = vector.extract_strided_slice %241 {offsets = [0, 0], sizes = [2, 32], strides = [1, 1]} : vector<2x96xf32> to vector<2x32xf32>
    %247 = arith.mulf %246, %243 : vector<2x32xf32>
    %248 = arith.addf %245, %247 : vector<2x32xf32>
    %249 = vector.extract_strided_slice %241 {offsets = [0, 64], sizes = [2, 32], strides = [1, 1]} : vector<2x96xf32> to vector<2x32xf32>
    %250 = math.tanh %248 : vector<2x32xf32>
    %251 = arith.mulf %249, %250 : vector<2x32xf32>
    %252 = vector.broadcast %233 : vector<2x1xf32> to vector<2x32xf32>
    %253 = arith.mulf %251, %252 : vector<2x32xf32>
    %254 = vector.broadcast %233 : vector<2x1xf32> to vector<2x32xf32>
    %255 = arith.mulf %248, %254 : vector<2x32xf32>
    %256 = vector.shape_cast %230 : vector<2x32xf32> to vector<2x1x32xf32>
    %c0_83 = arith.constant 0 : index
    %c3_84 = arith.constant 3 : index
    %c0_85 = arith.constant 0 : index
    %257 = vector.load %arg21[%c0_83, %c3_84, %c0_85] : memref<2x8x64xf32, #tpu.memory_space<vmem>>, vector<2x1x32xf32>
    tpu.vector_store %arg21[%c0_83, %c3_84, %c0_85], %256 {strides = array<i32>} : memref<2x8x64xf32, #tpu.memory_space<vmem>>, vector<2x1x32xf32>,
    %258 = vector.shape_cast %253 : vector<2x32xf32> to vector<2x1x32xf32>
    %c0_86 = arith.constant 0 : index
    %c4_87 = arith.constant 4 : index
    %c32_88 = arith.constant 32 : index
    %259 = vector.load %arg21[%c0_86, %c4_87, %c32_88] : memref<2x8x64xf32, #tpu.memory_space<vmem>>, vector<2x1x32xf32>
    tpu.vector_store %arg21[%c0_86, %c4_87, %c32_88], %258 {strides = array<i32>} : memref<2x8x64xf32, #tpu.memory_space<vmem>>, vector<2x1x32xf32>,
    %260 = arith.truncf %230 : vector<2x32xf32> to vector<2x32xbf16>
    %c0_89 = arith.constant 0 : index
    %c0_90 = arith.constant 0 : index
    %261 = vector.load %arg4[%c0_89, %c0_90] : memref<32x128xbf16, #tpu.memory_space<vmem>>, vector<32x128xbf16>
    %cst_91 = arith.constant dense<0.000000e+00> : vector<2x128xf32>
    %262 = tpu.matmul %260, %261, %cst_91 {dimension_numbers = #tpu.dot_dimension_numbers<[1], [0], [0], [1], [0, 0, 1, 1], [], []>} : vector<2x32xbf16>, vector<32x128xbf16>, vector<2x128xf32> -> vector<2x128xf32>
    %263 = arith.truncf %253 : vector<2x32xf32> to vector<2x32xbf16>
    %c0_92 = arith.constant 0 : index
    %c0_93 = arith.constant 0 : index
    %264 = vector.load %arg5[%c0_92, %c0_93] : memref<32x128xbf16, #tpu.memory_space<vmem>>, vector<32x128xbf16>
    %cst_94 = arith.constant dense<0.000000e+00> : vector<2x128xf32>
    %265 = tpu.matmul %263, %264, %cst_94 {dimension_numbers = #tpu.dot_dimension_numbers<[1], [0], [0], [1], [0, 0, 1, 1], [], []>} : vector<2x32xbf16>, vector<32x128xbf16>, vector<2x128xf32> -> vector<2x128xf32>
    %266 = vector.extract_strided_slice %7 {offsets = [0, 4, 0], sizes = [2, 1, 128], strides = [1, 1, 1]} : vector<2x8x256xf32> to vector<2x1x128xf32>
    %267 = vector.shape_cast %266 : vector<2x1x128xf32> to vector<2x128xf32>
    %268 = arith.addf %267, %262 : vector<2x128xf32>
    %269 = vector.extract_strided_slice %7 {offsets = [0, 3, 128], sizes = [2, 1, 128], strides = [1, 1, 1]} : vector<2x8x256xf32> to vector<2x1x128xf32>
    %270 = vector.shape_cast %269 : vector<2x1x128xf32> to vector<2x128xf32>
    %271 = arith.addf %270, %265 : vector<2x128xf32>
    %c0_95 = arith.constant 0 : index
    %c4_96 = arith.constant 4 : index
    %272 = vector.load %arg1[%c0_95, %c4_96] : memref<2x8xf32, #tpu.memory_space<vmem>>, vector<2x1xf32>
    %273 = vector.extract_strided_slice %268 {offsets = [0, 0], sizes = [2, 96], strides = [1, 1]} : vector<2x128xf32> to vector<2x96xf32>
    %cst_97 = arith.constant 0.000000e+00 : f32
    %274 = vector.broadcast %cst_97 : f32 to vector<2x96xf32>
    %275 = arith.subf %274, %273 : vector<2x96xf32>
    %276 = math.exp %275 : vector<2x96xf32>
    %cst_98 = arith.constant 1.000000e+00 : f32
    %277 = vector.broadcast %cst_98 : f32 to vector<2x96xf32>
    %278 = arith.addf %277, %276 : vector<2x96xf32>
    %cst_99 = arith.constant 1.000000e+00 : f32
    %279 = vector.broadcast %cst_99 : f32 to vector<2x96xf32>
    %280 = arith.divf %279, %278 : vector<2x96xf32>
    %281 = vector.extract_strided_slice %268 {offsets = [0, 96], sizes = [2, 32], strides = [1, 1]} : vector<2x128xf32> to vector<2x32xf32>
    %282 = math.tanh %281 : vector<2x32xf32>
    %283 = vector.extract_strided_slice %280 {offsets = [0, 32], sizes = [2, 32], strides = [1, 1]} : vector<2x96xf32> to vector<2x32xf32>
    %284 = arith.mulf %283, %232 : vector<2x32xf32>
    %285 = vector.extract_strided_slice %280 {offsets = [0, 0], sizes = [2, 32], strides = [1, 1]} : vector<2x96xf32> to vector<2x32xf32>
    %286 = arith.mulf %285, %282 : vector<2x32xf32>
    %287 = arith.addf %284, %286 : vector<2x32xf32>
    %288 = vector.extract_strided_slice %280 {offsets = [0, 64], sizes = [2, 32], strides = [1, 1]} : vector<2x96xf32> to vector<2x32xf32>
    %289 = math.tanh %287 : vector<2x32xf32>
    %290 = arith.mulf %288, %289 : vector<2x32xf32>
    %291 = vector.broadcast %272 : vector<2x1xf32> to vector<2x32xf32>
    %292 = arith.mulf %290, %291 : vector<2x32xf32>
    %293 = vector.broadcast %272 : vector<2x1xf32> to vector<2x32xf32>
    %294 = arith.mulf %287, %293 : vector<2x32xf32>
    %c0_100 = arith.constant 0 : index
    %c3_101 = arith.constant 3 : index
    %295 = vector.load %arg1[%c0_100, %c3_101] : memref<2x8xf32, #tpu.memory_space<vmem>>, vector<2x1xf32>
    %296 = vector.extract_strided_slice %271 {offsets = [0, 0], sizes = [2, 96], strides = [1, 1]} : vector<2x128xf32> to vector<2x96xf32>
    %cst_102 = arith.constant 0.000000e+00 : f32
    %297 = vector.broadcast %cst_102 : f32 to vector<2x96xf32>
    %298 = arith.subf %297, %296 : vector<2x96xf32>
    %299 = math.exp %298 : vector<2x96xf32>
    %cst_103 = arith.constant 1.000000e+00 : f32
    %300 = vector.broadcast %cst_103 : f32 to vector<2x96xf32>
    %301 = arith.addf %300, %299 : vector<2x96xf32>
    %cst_104 = arith.constant 1.000000e+00 : f32
    %302 = vector.broadcast %cst_104 : f32 to vector<2x96xf32>
    %303 = arith.divf %302, %301 : vector<2x96xf32>
    %304 = vector.extract_strided_slice %271 {offsets = [0, 96], sizes = [2, 32], strides = [1, 1]} : vector<2x128xf32> to vector<2x32xf32>
    %305 = math.tanh %304 : vector<2x32xf32>
    %306 = vector.extract_strided_slice %303 {offsets = [0, 32], sizes = [2, 32], strides = [1, 1]} : vector<2x96xf32> to vector<2x32xf32>
    %307 = arith.mulf %306, %255 : vector<2x32xf32>
    %308 = vector.extract_strided_slice %303 {offsets = [0, 0], sizes = [2, 32], strides = [1, 1]} : vector<2x96xf32> to vector<2x32xf32>
    %309 = arith.mulf %308, %305 : vector<2x32xf32>
    %310 = arith.addf %307, %309 : vector<2x32xf32>
    %311 = vector.extract_strided_slice %303 {offsets = [0, 64], sizes = [2, 32], strides = [1, 1]} : vector<2x96xf32> to vector<2x32xf32>
    %312 = math.tanh %310 : vector<2x32xf32>
    %313 = arith.mulf %311, %312 : vector<2x32xf32>
    %314 = vector.broadcast %295 : vector<2x1xf32> to vector<2x32xf32>
    %315 = arith.mulf %313, %314 : vector<2x32xf32>
    %316 = vector.broadcast %295 : vector<2x1xf32> to vector<2x32xf32>
    %317 = arith.mulf %310, %316 : vector<2x32xf32>
    %318 = vector.shape_cast %292 : vector<2x32xf32> to vector<2x1x32xf32>
    %c0_105 = arith.constant 0 : index
    %c4_106 = arith.constant 4 : index
    %c0_107 = arith.constant 0 : index
    %319 = vector.load %arg21[%c0_105, %c4_106, %c0_107] : memref<2x8x64xf32, #tpu.memory_space<vmem>>, vector<2x1x32xf32>
    tpu.vector_store %arg21[%c0_105, %c4_106, %c0_107], %318 {strides = array<i32>} : memref<2x8x64xf32, #tpu.memory_space<vmem>>, vector<2x1x32xf32>,
    %320 = vector.shape_cast %315 : vector<2x32xf32> to vector<2x1x32xf32>
    %c0_108 = arith.constant 0 : index
    %c3_109 = arith.constant 3 : index
    %c32_110 = arith.constant 32 : index
    %321 = vector.load %arg21[%c0_108, %c3_109, %c32_110] : memref<2x8x64xf32, #tpu.memory_space<vmem>>, vector<2x1x32xf32>
    tpu.vector_store %arg21[%c0_108, %c3_109, %c32_110], %320 {strides = array<i32>} : memref<2x8x64xf32, #tpu.memory_space<vmem>>, vector<2x1x32xf32>,
    %322 = arith.truncf %292 : vector<2x32xf32> to vector<2x32xbf16>
    %c0_111 = arith.constant 0 : index
    %c0_112 = arith.constant 0 : index
    %323 = vector.load %arg4[%c0_111, %c0_112] : memref<32x128xbf16, #tpu.memory_space<vmem>>, vector<32x128xbf16>
    %cst_113 = arith.constant dense<0.000000e+00> : vector<2x128xf32>
    %324 = tpu.matmul %322, %323, %cst_113 {dimension_numbers = #tpu.dot_dimension_numbers<[1], [0], [0], [1], [0, 0, 1, 1], [], []>} : vector<2x32xbf16>, vector<32x128xbf16>, vector<2x128xf32> -> vector<2x128xf32>
    %325 = arith.truncf %315 : vector<2x32xf32> to vector<2x32xbf16>
    %c0_114 = arith.constant 0 : index
    %c0_115 = arith.constant 0 : index
    %326 = vector.load %arg5[%c0_114, %c0_115] : memref<32x128xbf16, #tpu.memory_space<vmem>>, vector<32x128xbf16>
    %cst_116 = arith.constant dense<0.000000e+00> : vector<2x128xf32>
    %327 = tpu.matmul %325, %326, %cst_116 {dimension_numbers = #tpu.dot_dimension_numbers<[1], [0], [0], [1], [0, 0, 1, 1], [], []>} : vector<2x32xbf16>, vector<32x128xbf16>, vector<2x128xf32> -> vector<2x128xf32>
    %328 = vector.extract_strided_slice %7 {offsets = [0, 5, 0], sizes = [2, 1, 128], strides = [1, 1, 1]} : vector<2x8x256xf32> to vector<2x1x128xf32>
    %329 = vector.shape_cast %328 : vector<2x1x128xf32> to vector<2x128xf32>
    %330 = arith.addf %329, %324 : vector<2x128xf32>
    %331 = vector.extract_strided_slice %7 {offsets = [0, 2, 128], sizes = [2, 1, 128], strides = [1, 1, 1]} : vector<2x8x256xf32> to vector<2x1x128xf32>
    %332 = vector.shape_cast %331 : vector<2x1x128xf32> to vector<2x128xf32>
    %333 = arith.addf %332, %327 : vector<2x128xf32>
    %c0_117 = arith.constant 0 : index
    %c5_118 = arith.constant 5 : index
    %334 = vector.load %arg1[%c0_117, %c5_118] : memref<2x8xf32, #tpu.memory_space<vmem>>, vector<2x1xf32>
    %335 = vector.extract_strided_slice %330 {offsets = [0, 0], sizes = [2, 96], strides = [1, 1]} : vector<2x128xf32> to vector<2x96xf32>
    %cst_119 = arith.constant 0.000000e+00 : f32
    %336 = vector.broadcast %cst_119 : f32 to vector<2x96xf32>
    %337 = arith.subf %336, %335 : vector<2x96xf32>
    %338 = math.exp %337 : vector<2x96xf32>
    %cst_120 = arith.constant 1.000000e+00 : f32
    %339 = vector.broadcast %cst_120 : f32 to vector<2x96xf32>
    %340 = arith.addf %339, %338 : vector<2x96xf32>
    %cst_121 = arith.constant 1.000000e+00 : f32
    %341 = vector.broadcast %cst_121 : f32 to vector<2x96xf32>
    %342 = arith.divf %341, %340 : vector<2x96xf32>
    %343 = vector.extract_strided_slice %330 {offsets = [0, 96], sizes = [2, 32], strides = [1, 1]} : vector<2x128xf32> to vector<2x32xf32>
    %344 = math.tanh %343 : vector<2x32xf32>
    %345 = vector.extract_strided_slice %342 {offsets = [0, 32], sizes = [2, 32], strides = [1, 1]} : vector<2x96xf32> to vector<2x32xf32>
    %346 = arith.mulf %345, %294 : vector<2x32xf32>
    %347 = vector.extract_strided_slice %342 {offsets = [0, 0], sizes = [2, 32], strides = [1, 1]} : vector<2x96xf32> to vector<2x32xf32>
    %348 = arith.mulf %347, %344 : vector<2x32xf32>
    %349 = arith.addf %346, %348 : vector<2x32xf32>
    %350 = vector.extract_strided_slice %342 {offsets = [0, 64], sizes = [2, 32], strides = [1, 1]} : vector<2x96xf32> to vector<2x32xf32>
    %351 = math.tanh %349 : vector<2x32xf32>
    %352 = arith.mulf %350, %351 : vector<2x32xf32>
    %353 = vector.broadcast %334 : vector<2x1xf32> to vector<2x32xf32>
    %354 = arith.mulf %352, %353 : vector<2x32xf32>
    %355 = vector.broadcast %334 : vector<2x1xf32> to vector<2x32xf32>
    %356 = arith.mulf %349, %355 : vector<2x32xf32>
    %c0_122 = arith.constant 0 : index
    %c2_123 = arith.constant 2 : index
    %357 = vector.load %arg1[%c0_122, %c2_123] : memref<2x8xf32, #tpu.memory_space<vmem>>, vector<2x1xf32>
    %358 = vector.extract_strided_slice %333 {offsets = [0, 0], sizes = [2, 96], strides = [1, 1]} : vector<2x128xf32> to vector<2x96xf32>
    %cst_124 = arith.constant 0.000000e+00 : f32
    %359 = vector.broadcast %cst_124 : f32 to vector<2x96xf32>
    %360 = arith.subf %359, %358 : vector<2x96xf32>
    %361 = math.exp %360 : vector<2x96xf32>
    %cst_125 = arith.constant 1.000000e+00 : f32
    %362 = vector.broadcast %cst_125 : f32 to vector<2x96xf32>
    %363 = arith.addf %362, %361 : vector<2x96xf32>
    %cst_126 = arith.constant 1.000000e+00 : f32
    %364 = vector.broadcast %cst_126 : f32 to vector<2x96xf32>
    %365 = arith.divf %364, %363 : vector<2x96xf32>
    %366 = vector.extract_strided_slice %333 {offsets = [0, 96], sizes = [2, 32], strides = [1, 1]} : vector<2x128xf32> to vector<2x32xf32>
    %367 = math.tanh %366 : vector<2x32xf32>
    %368 = vector.extract_strided_slice %365 {offsets = [0, 32], sizes = [2, 32], strides = [1, 1]} : vector<2x96xf32> to vector<2x32xf32>
    %369 = arith.mulf %368, %317 : vector<2x32xf32>
    %370 = vector.extract_strided_slice %365 {offsets = [0, 0], sizes = [2, 32], strides = [1, 1]} : vector<2x96xf32> to vector<2x32xf32>
    %371 = arith.mulf %370, %367 : vector<2x32xf32>
    %372 = arith.addf %369, %371 : vector<2x32xf32>
    %373 = vector.extract_strided_slice %365 {offsets = [0, 64], sizes = [2, 32], strides = [1, 1]} : vector<2x96xf32> to vector<2x32xf32>
    %374 = math.tanh %372 : vector<2x32xf32>
    %375 = arith.mulf %373, %374 : vector<2x32xf32>
    %376 = vector.broadcast %357 : vector<2x1xf32> to vector<2x32xf32>
    %377 = arith.mulf %375, %376 : vector<2x32xf32>
    %378 = vector.broadcast %357 : vector<2x1xf32> to vector<2x32xf32>
    %379 = arith.mulf %372, %378 : vector<2x32xf32>
    %380 = vector.shape_cast %354 : vector<2x32xf32> to vector<2x1x32xf32>
    %c0_127 = arith.constant 0 : index
    %c5_128 = arith.constant 5 : index
    %c0_129 = arith.constant 0 : index
    %381 = vector.load %arg21[%c0_127, %c5_128, %c0_129] : memref<2x8x64xf32, #tpu.memory_space<vmem>>, vector<2x1x32xf32>
    tpu.vector_store %arg21[%c0_127, %c5_128, %c0_129], %380 {strides = array<i32>} : memref<2x8x64xf32, #tpu.memory_space<vmem>>, vector<2x1x32xf32>,
    %382 = vector.shape_cast %377 : vector<2x32xf32> to vector<2x1x32xf32>
    %c0_130 = arith.constant 0 : index
    %c2_131 = arith.constant 2 : index
    %c32_132 = arith.constant 32 : index
    %383 = vector.load %arg21[%c0_130, %c2_131, %c32_132] : memref<2x8x64xf32, #tpu.memory_space<vmem>>, vector<2x1x32xf32>
    tpu.vector_store %arg21[%c0_130, %c2_131, %c32_132], %382 {strides = array<i32>} : memref<2x8x64xf32, #tpu.memory_space<vmem>>, vector<2x1x32xf32>,
    %384 = arith.truncf %354 : vector<2x32xf32> to vector<2x32xbf16>
    %c0_133 = arith.constant 0 : index
    %c0_134 = arith.constant 0 : index
    %385 = vector.load %arg4[%c0_133, %c0_134] : memref<32x128xbf16, #tpu.memory_space<vmem>>, vector<32x128xbf16>
    %cst_135 = arith.constant dense<0.000000e+00> : vector<2x128xf32>
    %386 = tpu.matmul %384, %385, %cst_135 {dimension_numbers = #tpu.dot_dimension_numbers<[1], [0], [0], [1], [0, 0, 1, 1], [], []>} : vector<2x32xbf16>, vector<32x128xbf16>, vector<2x128xf32> -> vector<2x128xf32>
    %387 = arith.truncf %377 : vector<2x32xf32> to vector<2x32xbf16>
    %c0_136 = arith.constant 0 : index
    %c0_137 = arith.constant 0 : index
    %388 = vector.load %arg5[%c0_136, %c0_137] : memref<32x128xbf16, #tpu.memory_space<vmem>>, vector<32x128xbf16>
    %cst_138 = arith.constant dense<0.000000e+00> : vector<2x128xf32>
    %389 = tpu.matmul %387, %388, %cst_138 {dimension_numbers = #tpu.dot_dimension_numbers<[1], [0], [0], [1], [0, 0, 1, 1], [], []>} : vector<2x32xbf16>, vector<32x128xbf16>, vector<2x128xf32> -> vector<2x128xf32>
    %390 = vector.extract_strided_slice %7 {offsets = [0, 6, 0], sizes = [2, 1, 128], strides = [1, 1, 1]} : vector<2x8x256xf32> to vector<2x1x128xf32>
    %391 = vector.shape_cast %390 : vector<2x1x128xf32> to vector<2x128xf32>
    %392 = arith.addf %391, %386 : vector<2x128xf32>
    %393 = vector.extract_strided_slice %7 {offsets = [0, 1, 128], sizes = [2, 1, 128], strides = [1, 1, 1]} : vector<2x8x256xf32> to vector<2x1x128xf32>
    %394 = vector.shape_cast %393 : vector<2x1x128xf32> to vector<2x128xf32>
    %395 = arith.addf %394, %389 : vector<2x128xf32>
    %c0_139 = arith.constant 0 : index
    %c6_140 = arith.constant 6 : index
    %396 = vector.load %arg1[%c0_139, %c6_140] : memref<2x8xf32, #tpu.memory_space<vmem>>, vector<2x1xf32>
    %397 = vector.extract_strided_slice %392 {offsets = [0, 0], sizes = [2, 96], strides = [1, 1]} : vector<2x128xf32> to vector<2x96xf32>
    %cst_141 = arith.constant 0.000000e+00 : f32
    %398 = vector.broadcast %cst_141 : f32 to vector<2x96xf32>
    %399 = arith.subf %398, %397 : vector<2x96xf32>
    %400 = math.exp %399 : vector<2x96xf32>
    %cst_142 = arith.constant 1.000000e+00 : f32
    %401 = vector.broadcast %cst_142 : f32 to vector<2x96xf32>
    %402 = arith.addf %401, %400 : vector<2x96xf32>
    %cst_143 = arith.constant 1.000000e+00 : f32
    %403 = vector.broadcast %cst_143 : f32 to vector<2x96xf32>
    %404 = arith.divf %403, %402 : vector<2x96xf32>
    %405 = vector.extract_strided_slice %392 {offsets = [0, 96], sizes = [2, 32], strides = [1, 1]} : vector<2x128xf32> to vector<2x32xf32>
    %406 = math.tanh %405 : vector<2x32xf32>
    %407 = vector.extract_strided_slice %404 {offsets = [0, 32], sizes = [2, 32], strides = [1, 1]} : vector<2x96xf32> to vector<2x32xf32>
    %408 = arith.mulf %407, %356 : vector<2x32xf32>
    %409 = vector.extract_strided_slice %404 {offsets = [0, 0], sizes = [2, 32], strides = [1, 1]} : vector<2x96xf32> to vector<2x32xf32>
    %410 = arith.mulf %409, %406 : vector<2x32xf32>
    %411 = arith.addf %408, %410 : vector<2x32xf32>
    %412 = vector.extract_strided_slice %404 {offsets = [0, 64], sizes = [2, 32], strides = [1, 1]} : vector<2x96xf32> to vector<2x32xf32>
    %413 = math.tanh %411 : vector<2x32xf32>
    %414 = arith.mulf %412, %413 : vector<2x32xf32>
    %415 = vector.broadcast %396 : vector<2x1xf32> to vector<2x32xf32>
    %416 = arith.mulf %414, %415 : vector<2x32xf32>
    %417 = vector.broadcast %396 : vector<2x1xf32> to vector<2x32xf32>
    %418 = arith.mulf %411, %417 : vector<2x32xf32>
    %c0_144 = arith.constant 0 : index
    %c1_145 = arith.constant 1 : index
    %419 = vector.load %arg1[%c0_144, %c1_145] : memref<2x8xf32, #tpu.memory_space<vmem>>, vector<2x1xf32>
    %420 = vector.extract_strided_slice %395 {offsets = [0, 0], sizes = [2, 96], strides = [1, 1]} : vector<2x128xf32> to vector<2x96xf32>
    %cst_146 = arith.constant 0.000000e+00 : f32
    %421 = vector.broadcast %cst_146 : f32 to vector<2x96xf32>
    %422 = arith.subf %421, %420 : vector<2x96xf32>
    %423 = math.exp %422 : vector<2x96xf32>
    %cst_147 = arith.constant 1.000000e+00 : f32
    %424 = vector.broadcast %cst_147 : f32 to vector<2x96xf32>
    %425 = arith.addf %424, %423 : vector<2x96xf32>
    %cst_148 = arith.constant 1.000000e+00 : f32
    %426 = vector.broadcast %cst_148 : f32 to vector<2x96xf32>
    %427 = arith.divf %426, %425 : vector<2x96xf32>
    %428 = vector.extract_strided_slice %395 {offsets = [0, 96], sizes = [2, 32], strides = [1, 1]} : vector<2x128xf32> to vector<2x32xf32>
    %429 = math.tanh %428 : vector<2x32xf32>
    %430 = vector.extract_strided_slice %427 {offsets = [0, 32], sizes = [2, 32], strides = [1, 1]} : vector<2x96xf32> to vector<2x32xf32>
    %431 = arith.mulf %430, %379 : vector<2x32xf32>
    %432 = vector.extract_strided_slice %427 {offsets = [0, 0], sizes = [2, 32], strides = [1, 1]} : vector<2x96xf32> to vector<2x32xf32>
    %433 = arith.mulf %432, %429 : vector<2x32xf32>
    %434 = arith.addf %431, %433 : vector<2x32xf32>
    %435 = vector.extract_strided_slice %427 {offsets = [0, 64], sizes = [2, 32], strides = [1, 1]} : vector<2x96xf32> to vector<2x32xf32>
    %436 = math.tanh %434 : vector<2x32xf32>
    %437 = arith.mulf %435, %436 : vector<2x32xf32>
    %438 = vector.broadcast %419 : vector<2x1xf32> to vector<2x32xf32>
    %439 = arith.mulf %437, %438 : vector<2x32xf32>
    %440 = vector.broadcast %419 : vector<2x1xf32> to vector<2x32xf32>
    %441 = arith.mulf %434, %440 : vector<2x32xf32>
    %442 = vector.shape_cast %416 : vector<2x32xf32> to vector<2x1x32xf32>
    %c0_149 = arith.constant 0 : index
    %c6_150 = arith.constant 6 : index
    %c0_151 = arith.constant 0 : index
    %443 = vector.load %arg21[%c0_149, %c6_150, %c0_151] : memref<2x8x64xf32, #tpu.memory_space<vmem>>, vector<2x1x32xf32>
    tpu.vector_store %arg21[%c0_149, %c6_150, %c0_151], %442 {strides = array<i32>} : memref<2x8x64xf32, #tpu.memory_space<vmem>>, vector<2x1x32xf32>,
    %444 = vector.shape_cast %439 : vector<2x32xf32> to vector<2x1x32xf32>
    %c0_152 = arith.constant 0 : index
    %c1_153 = arith.constant 1 : index
    %c32_154 = arith.constant 32 : index
    %445 = vector.load %arg21[%c0_152, %c1_153, %c32_154] : memref<2x8x64xf32, #tpu.memory_space<vmem>>, vector<2x1x32xf32>
    tpu.vector_store %arg21[%c0_152, %c1_153, %c32_154], %444 {strides = array<i32>} : memref<2x8x64xf32, #tpu.memory_space<vmem>>, vector<2x1x32xf32>,
    %446 = arith.truncf %416 : vector<2x32xf32> to vector<2x32xbf16>
    %c0_155 = arith.constant 0 : index
    %c0_156 = arith.constant 0 : index
    %447 = vector.load %arg4[%c0_155, %c0_156] : memref<32x128xbf16, #tpu.memory_space<vmem>>, vector<32x128xbf16>
    %cst_157 = arith.constant dense<0.000000e+00> : vector<2x128xf32>
    %448 = tpu.matmul %446, %447, %cst_157 {dimension_numbers = #tpu.dot_dimension_numbers<[1], [0], [0], [1], [0, 0, 1, 1], [], []>} : vector<2x32xbf16>, vector<32x128xbf16>, vector<2x128xf32> -> vector<2x128xf32>
    %449 = arith.truncf %439 : vector<2x32xf32> to vector<2x32xbf16>
    %c0_158 = arith.constant 0 : index
    %c0_159 = arith.constant 0 : index
    %450 = vector.load %arg5[%c0_158, %c0_159] : memref<32x128xbf16, #tpu.memory_space<vmem>>, vector<32x128xbf16>
    %cst_160 = arith.constant dense<0.000000e+00> : vector<2x128xf32>
    %451 = tpu.matmul %449, %450, %cst_160 {dimension_numbers = #tpu.dot_dimension_numbers<[1], [0], [0], [1], [0, 0, 1, 1], [], []>} : vector<2x32xbf16>, vector<32x128xbf16>, vector<2x128xf32> -> vector<2x128xf32>
    %452 = vector.extract_strided_slice %7 {offsets = [0, 7, 0], sizes = [2, 1, 128], strides = [1, 1, 1]} : vector<2x8x256xf32> to vector<2x1x128xf32>
    %453 = vector.shape_cast %452 : vector<2x1x128xf32> to vector<2x128xf32>
    %454 = arith.addf %453, %448 : vector<2x128xf32>
    %455 = vector.extract_strided_slice %7 {offsets = [0, 0, 128], sizes = [2, 1, 128], strides = [1, 1, 1]} : vector<2x8x256xf32> to vector<2x1x128xf32>
    %456 = vector.shape_cast %455 : vector<2x1x128xf32> to vector<2x128xf32>
    %457 = arith.addf %456, %451 : vector<2x128xf32>
    %c0_161 = arith.constant 0 : index
    %c7_162 = arith.constant 7 : index
    %458 = vector.load %arg1[%c0_161, %c7_162] : memref<2x8xf32, #tpu.memory_space<vmem>>, vector<2x1xf32>
    %459 = vector.extract_strided_slice %454 {offsets = [0, 0], sizes = [2, 96], strides = [1, 1]} : vector<2x128xf32> to vector<2x96xf32>
    %cst_163 = arith.constant 0.000000e+00 : f32
    %460 = vector.broadcast %cst_163 : f32 to vector<2x96xf32>
    %461 = arith.subf %460, %459 : vector<2x96xf32>
    %462 = math.exp %461 : vector<2x96xf32>
    %cst_164 = arith.constant 1.000000e+00 : f32
    %463 = vector.broadcast %cst_164 : f32 to vector<2x96xf32>
    %464 = arith.addf %463, %462 : vector<2x96xf32>
    %cst_165 = arith.constant 1.000000e+00 : f32
    %465 = vector.broadcast %cst_165 : f32 to vector<2x96xf32>
    %466 = arith.divf %465, %464 : vector<2x96xf32>
    %467 = vector.extract_strided_slice %454 {offsets = [0, 96], sizes = [2, 32], strides = [1, 1]} : vector<2x128xf32> to vector<2x32xf32>
    %468 = math.tanh %467 : vector<2x32xf32>
    %469 = vector.extract_strided_slice %466 {offsets = [0, 32], sizes = [2, 32], strides = [1, 1]} : vector<2x96xf32> to vector<2x32xf32>
    %470 = arith.mulf %469, %418 : vector<2x32xf32>
    %471 = vector.extract_strided_slice %466 {offsets = [0, 0], sizes = [2, 32], strides = [1, 1]} : vector<2x96xf32> to vector<2x32xf32>
    %472 = arith.mulf %471, %468 : vector<2x32xf32>
    %473 = arith.addf %470, %472 : vector<2x32xf32>
    %474 = vector.extract_strided_slice %466 {offsets = [0, 64], sizes = [2, 32], strides = [1, 1]} : vector<2x96xf32> to vector<2x32xf32>
    %475 = math.tanh %473 : vector<2x32xf32>
    %476 = arith.mulf %474, %475 : vector<2x32xf32>
    %477 = vector.broadcast %458 : vector<2x1xf32> to vector<2x32xf32>
    %478 = arith.mulf %476, %477 : vector<2x32xf32>
    %c0_166 = arith.constant 0 : index
    %c0_167 = arith.constant 0 : index
    %479 = vector.load %arg1[%c0_166, %c0_167] : memref<2x8xf32, #tpu.memory_space<vmem>>, vector<2x1xf32>
    %480 = vector.extract_strided_slice %457 {offsets = [0, 0], sizes = [2, 96], strides = [1, 1]} : vector<2x128xf32> to vector<2x96xf32>
    %cst_168 = arith.constant 0.000000e+00 : f32
    %481 = vector.broadcast %cst_168 : f32 to vector<2x96xf32>
    %482 = arith.subf %481, %480 : vector<2x96xf32>
    %483 = math.exp %482 : vector<2x96xf32>
    %cst_169 = arith.constant 1.000000e+00 : f32
    %484 = vector.broadcast %cst_169 : f32 to vector<2x96xf32>
    %485 = arith.addf %484, %483 : vector<2x96xf32>
    %cst_170 = arith.constant 1.000000e+00 : f32
    %486 = vector.broadcast %cst_170 : f32 to vector<2x96xf32>
    %487 = arith.divf %486, %485 : vector<2x96xf32>
    %488 = vector.extract_strided_slice %457 {offsets = [0, 96], sizes = [2, 32], strides = [1, 1]} : vector<2x128xf32> to vector<2x32xf32>
    %489 = math.tanh %488 : vector<2x32xf32>
    %490 = vector.extract_strided_slice %487 {offsets = [0, 32], sizes = [2, 32], strides = [1, 1]} : vector<2x96xf32> to vector<2x32xf32>
    %491 = arith.mulf %490, %441 : vector<2x32xf32>
    %492 = vector.extract_strided_slice %487 {offsets = [0, 0], sizes = [2, 32], strides = [1, 1]} : vector<2x96xf32> to vector<2x32xf32>
    %493 = arith.mulf %492, %489 : vector<2x32xf32>
    %494 = arith.addf %491, %493 : vector<2x32xf32>
    %495 = vector.extract_strided_slice %487 {offsets = [0, 64], sizes = [2, 32], strides = [1, 1]} : vector<2x96xf32> to vector<2x32xf32>
    %496 = math.tanh %494 : vector<2x32xf32>
    %497 = arith.mulf %495, %496 : vector<2x32xf32>
    %498 = vector.broadcast %479 : vector<2x1xf32> to vector<2x32xf32>
    %499 = arith.mulf %497, %498 : vector<2x32xf32>
    %500 = vector.shape_cast %478 : vector<2x32xf32> to vector<2x1x32xf32>
    %c0_171 = arith.constant 0 : index
    %c7_172 = arith.constant 7 : index
    %c0_173 = arith.constant 0 : index
    %501 = vector.load %arg21[%c0_171, %c7_172, %c0_173] : memref<2x8x64xf32, #tpu.memory_space<vmem>>, vector<2x1x32xf32>
    tpu.vector_store %arg21[%c0_171, %c7_172, %c0_173], %500 {strides = array<i32>} : memref<2x8x64xf32, #tpu.memory_space<vmem>>, vector<2x1x32xf32>,
    %502 = vector.shape_cast %499 : vector<2x32xf32> to vector<2x1x32xf32>
    %c0_174 = arith.constant 0 : index
    %c0_175 = arith.constant 0 : index
    %c32_176 = arith.constant 32 : index
    %503 = vector.load %arg21[%c0_174, %c0_175, %c32_176] : memref<2x8x64xf32, #tpu.memory_space<vmem>>, vector<2x1x32xf32>
    tpu.vector_store %arg21[%c0_174, %c0_175, %c32_176], %502 {strides = array<i32>} : memref<2x8x64xf32, #tpu.memory_space<vmem>>, vector<2x1x32xf32>,
    %c0_177 = arith.constant 0 : index
    %c0_178 = arith.constant 0 : index
    %c0_179 = arith.constant 0 : index
    %504 = vector.load %arg21[%c0_177, %c0_178, %c0_179] : memref<2x8x64xf32, #tpu.memory_space<vmem>>, vector<2x8x64xf32>
    %505 = vector.shape_cast %504 : vector<2x8x64xf32> to vector<16x64xf32>
    %506 = arith.truncf %505 : vector<16x64xf32> to vector<16x64xbf16>
    %c0_180 = arith.constant 0 : index
    %c0_181 = arith.constant 0 : index
    %507 = vector.load %arg6[%c0_180, %c0_181] : memref<64x256xbf16, #tpu.memory_space<vmem>>, vector<64x256xbf16>
    %cst_182 = arith.constant dense<0.000000e+00> : vector<16x256xf32>
    %508 = tpu.matmul %506, %507, %cst_182 {dimension_numbers = #tpu.dot_dimension_numbers<[1], [0], [0], [1], [0, 0, 1, 1], [], []>} : vector<16x64xbf16>, vector<64x256xbf16>, vector<16x256xf32> -> vector<16x256xf32>
    %c0_183 = arith.constant 0 : index
    %c0_184 = arith.constant 0 : index
    %509 = vector.load %arg7[%c0_183, %c0_184] : memref<1x256xf32, #tpu.memory_space<vmem>>, vector<1x256xf32>
    %510 = vector.broadcast %509 : vector<1x256xf32> to vector<16x256xf32>
    %511 = arith.addf %508, %510 : vector<16x256xf32>
    %512 = vector.shape_cast %511 : vector<16x256xf32> to vector<2x8x256xf32>
    %cst_185 = arith.constant 0.000000e+00 : f32
    %513 = vector.broadcast %cst_185 : f32 to vector<2x32xf32>
    %cst_186 = arith.constant 0.000000e+00 : f32
    %514 = vector.broadcast %cst_186 : f32 to vector<2x32xf32>
    %cst_187 = arith.constant 0.000000e+00 : f32
    %515 = vector.broadcast %cst_187 : f32 to vector<2x32xf32>
    %cst_188 = arith.constant 0.000000e+00 : f32
    %516 = vector.broadcast %cst_188 : f32 to vector<2x32xf32>
    %517 = arith.truncf %513 : vector<2x32xf32> to vector<2x32xbf16>
    %c0_189 = arith.constant 0 : index
    %c0_190 = arith.constant 0 : index
    %518 = vector.load %arg8[%c0_189, %c0_190] : memref<32x128xbf16, #tpu.memory_space<vmem>>, vector<32x128xbf16>
    %cst_191 = arith.constant dense<0.000000e+00> : vector<2x128xf32>
    %519 = tpu.matmul %517, %518, %cst_191 {dimension_numbers = #tpu.dot_dimension_numbers<[1], [0], [0], [1], [0, 0, 1, 1], [], []>} : vector<2x32xbf16>, vector<32x128xbf16>, vector<2x128xf32> -> vector<2x128xf32>
    %520 = arith.truncf %515 : vector<2x32xf32> to vector<2x32xbf16>
    %c0_192 = arith.constant 0 : index
    %c0_193 = arith.constant 0 : index
    %521 = vector.load %arg9[%c0_192, %c0_193] : memref<32x128xbf16, #tpu.memory_space<vmem>>, vector<32x128xbf16>
    %cst_194 = arith.constant dense<0.000000e+00> : vector<2x128xf32>
    %522 = tpu.matmul %520, %521, %cst_194 {dimension_numbers = #tpu.dot_dimension_numbers<[1], [0], [0], [1], [0, 0, 1, 1], [], []>} : vector<2x32xbf16>, vector<32x128xbf16>, vector<2x128xf32> -> vector<2x128xf32>
    %523 = vector.extract_strided_slice %512 {offsets = [0, 0, 0], sizes = [2, 1, 128], strides = [1, 1, 1]} : vector<2x8x256xf32> to vector<2x1x128xf32>
    %524 = vector.shape_cast %523 : vector<2x1x128xf32> to vector<2x128xf32>
    %525 = arith.addf %524, %519 : vector<2x128xf32>
    %526 = vector.extract_strided_slice %512 {offsets = [0, 7, 128], sizes = [2, 1, 128], strides = [1, 1, 1]} : vector<2x8x256xf32> to vector<2x1x128xf32>
    %527 = vector.shape_cast %526 : vector<2x1x128xf32> to vector<2x128xf32>
    %528 = arith.addf %527, %522 : vector<2x128xf32>
    %c0_195 = arith.constant 0 : index
    %c0_196 = arith.constant 0 : index
    %529 = vector.load %arg1[%c0_195, %c0_196] : memref<2x8xf32, #tpu.memory_space<vmem>>, vector<2x1xf32>
    %530 = vector.extract_strided_slice %525 {offsets = [0, 0], sizes = [2, 96], strides = [1, 1]} : vector<2x128xf32> to vector<2x96xf32>
    %cst_197 = arith.constant 0.000000e+00 : f32
    %531 = vector.broadcast %cst_197 : f32 to vector<2x96xf32>
    %532 = arith.subf %531, %530 : vector<2x96xf32>
    %533 = math.exp %532 : vector<2x96xf32>
    %cst_198 = arith.constant 1.000000e+00 : f32
    %534 = vector.broadcast %cst_198 : f32 to vector<2x96xf32>
    %535 = arith.addf %534, %533 : vector<2x96xf32>
    %cst_199 = arith.constant 1.000000e+00 : f32
    %536 = vector.broadcast %cst_199 : f32 to vector<2x96xf32>
    %537 = arith.divf %536, %535 : vector<2x96xf32>
    %538 = vector.extract_strided_slice %525 {offsets = [0, 96], sizes = [2, 32], strides = [1, 1]} : vector<2x128xf32> to vector<2x32xf32>
    %539 = math.tanh %538 : vector<2x32xf32>
    %540 = vector.extract_strided_slice %537 {offsets = [0, 32], sizes = [2, 32], strides = [1, 1]} : vector<2x96xf32> to vector<2x32xf32>
    %541 = arith.mulf %540, %514 : vector<2x32xf32>
    %542 = vector.extract_strided_slice %537 {offsets = [0, 0], sizes = [2, 32], strides = [1, 1]} : vector<2x96xf32> to vector<2x32xf32>
    %543 = arith.mulf %542, %539 : vector<2x32xf32>
    %544 = arith.addf %541, %543 : vector<2x32xf32>
    %545 = vector.extract_strided_slice %537 {offsets = [0, 64], sizes = [2, 32], strides = [1, 1]} : vector<2x96xf32> to vector<2x32xf32>
    %546 = math.tanh %544 : vector<2x32xf32>
    %547 = arith.mulf %545, %546 : vector<2x32xf32>
    %548 = vector.broadcast %529 : vector<2x1xf32> to vector<2x32xf32>
    %549 = arith.mulf %547, %548 : vector<2x32xf32>
    %550 = vector.broadcast %529 : vector<2x1xf32> to vector<2x32xf32>
    %551 = arith.mulf %544, %550 : vector<2x32xf32>
    %c0_200 = arith.constant 0 : index
    %c7_201 = arith.constant 7 : index
    %552 = vector.load %arg1[%c0_200, %c7_201] : memref<2x8xf32, #tpu.memory_space<vmem>>, vector<2x1xf32>
    %553 = vector.extract_strided_slice %528 {offsets = [0, 0], sizes = [2, 96], strides = [1, 1]} : vector<2x128xf32> to vector<2x96xf32>
    %cst_202 = arith.constant 0.000000e+00 : f32
    %554 = vector.broadcast %cst_202 : f32 to vector<2x96xf32>
    %555 = arith.subf %554, %553 : vector<2x96xf32>
    %556 = math.exp %555 : vector<2x96xf32>
    %cst_203 = arith.constant 1.000000e+00 : f32
    %557 = vector.broadcast %cst_203 : f32 to vector<2x96xf32>
    %558 = arith.addf %557, %556 : vector<2x96xf32>
    %cst_204 = arith.constant 1.000000e+00 : f32
    %559 = vector.broadcast %cst_204 : f32 to vector<2x96xf32>
    %560 = arith.divf %559, %558 : vector<2x96xf32>
    %561 = vector.extract_strided_slice %528 {offsets = [0, 96], sizes = [2, 32], strides = [1, 1]} : vector<2x128xf32> to vector<2x32xf32>
    %562 = math.tanh %561 : vector<2x32xf32>
    %563 = vector.extract_strided_slice %560 {offsets = [0, 32], sizes = [2, 32], strides = [1, 1]} : vector<2x96xf32> to vector<2x32xf32>
    %564 = arith.mulf %563, %516 : vector<2x32xf32>
    %565 = vector.extract_strided_slice %560 {offsets = [0, 0], sizes = [2, 32], strides = [1, 1]} : vector<2x96xf32> to vector<2x32xf32>
    %566 = arith.mulf %565, %562 : vector<2x32xf32>
    %567 = arith.addf %564, %566 : vector<2x32xf32>
    %568 = vector.extract_strided_slice %560 {offsets = [0, 64], sizes = [2, 32], strides = [1, 1]} : vector<2x96xf32> to vector<2x32xf32>
    %569 = math.tanh %567 : vector<2x32xf32>
    %570 = arith.mulf %568, %569 : vector<2x32xf32>
    %571 = vector.broadcast %552 : vector<2x1xf32> to vector<2x32xf32>
    %572 = arith.mulf %570, %571 : vector<2x32xf32>
    %573 = vector.broadcast %552 : vector<2x1xf32> to vector<2x32xf32>
    %574 = arith.mulf %567, %573 : vector<2x32xf32>
    %575 = vector.shape_cast %549 : vector<2x32xf32> to vector<2x1x32xf32>
    %c0_205 = arith.constant 0 : index
    %c0_206 = arith.constant 0 : index
    %c0_207 = arith.constant 0 : index
    %576 = vector.load %arg19[%c0_205, %c0_206, %c0_207] : memref<2x8x64xf32, #tpu.memory_space<vmem>>, vector<2x1x32xf32>
    tpu.vector_store %arg19[%c0_205, %c0_206, %c0_207], %575 {strides = array<i32>} : memref<2x8x64xf32, #tpu.memory_space<vmem>>, vector<2x1x32xf32>,
    %577 = vector.shape_cast %572 : vector<2x32xf32> to vector<2x1x32xf32>
    %c0_208 = arith.constant 0 : index
    %c7_209 = arith.constant 7 : index
    %c32_210 = arith.constant 32 : index
    %578 = vector.load %arg19[%c0_208, %c7_209, %c32_210] : memref<2x8x64xf32, #tpu.memory_space<vmem>>, vector<2x1x32xf32>
    tpu.vector_store %arg19[%c0_208, %c7_209, %c32_210], %577 {strides = array<i32>} : memref<2x8x64xf32, #tpu.memory_space<vmem>>, vector<2x1x32xf32>,
    %579 = arith.truncf %549 : vector<2x32xf32> to vector<2x32xbf16>
    %c0_211 = arith.constant 0 : index
    %c0_212 = arith.constant 0 : index
    %580 = vector.load %arg8[%c0_211, %c0_212] : memref<32x128xbf16, #tpu.memory_space<vmem>>, vector<32x128xbf16>
    %cst_213 = arith.constant dense<0.000000e+00> : vector<2x128xf32>
    %581 = tpu.matmul %579, %580, %cst_213 {dimension_numbers = #tpu.dot_dimension_numbers<[1], [0], [0], [1], [0, 0, 1, 1], [], []>} : vector<2x32xbf16>, vector<32x128xbf16>, vector<2x128xf32> -> vector<2x128xf32>
    %582 = arith.truncf %572 : vector<2x32xf32> to vector<2x32xbf16>
    %c0_214 = arith.constant 0 : index
    %c0_215 = arith.constant 0 : index
    %583 = vector.load %arg9[%c0_214, %c0_215] : memref<32x128xbf16, #tpu.memory_space<vmem>>, vector<32x128xbf16>
    %cst_216 = arith.constant dense<0.000000e+00> : vector<2x128xf32>
    %584 = tpu.matmul %582, %583, %cst_216 {dimension_numbers = #tpu.dot_dimension_numbers<[1], [0], [0], [1], [0, 0, 1, 1], [], []>} : vector<2x32xbf16>, vector<32x128xbf16>, vector<2x128xf32> -> vector<2x128xf32>
    %585 = vector.extract_strided_slice %512 {offsets = [0, 1, 0], sizes = [2, 1, 128], strides = [1, 1, 1]} : vector<2x8x256xf32> to vector<2x1x128xf32>
    %586 = vector.shape_cast %585 : vector<2x1x128xf32> to vector<2x128xf32>
    %587 = arith.addf %586, %581 : vector<2x128xf32>
    %588 = vector.extract_strided_slice %512 {offsets = [0, 6, 128], sizes = [2, 1, 128], strides = [1, 1, 1]} : vector<2x8x256xf32> to vector<2x1x128xf32>
    %589 = vector.shape_cast %588 : vector<2x1x128xf32> to vector<2x128xf32>
    %590 = arith.addf %589, %584 : vector<2x128xf32>
    %c0_217 = arith.constant 0 : index
    %c1_218 = arith.constant 1 : index
    %591 = vector.load %arg1[%c0_217, %c1_218] : memref<2x8xf32, #tpu.memory_space<vmem>>, vector<2x1xf32>
    %592 = vector.extract_strided_slice %587 {offsets = [0, 0], sizes = [2, 96], strides = [1, 1]} : vector<2x128xf32> to vector<2x96xf32>
    %cst_219 = arith.constant 0.000000e+00 : f32
    %593 = vector.broadcast %cst_219 : f32 to vector<2x96xf32>
    %594 = arith.subf %593, %592 : vector<2x96xf32>
    %595 = math.exp %594 : vector<2x96xf32>
    %cst_220 = arith.constant 1.000000e+00 : f32
    %596 = vector.broadcast %cst_220 : f32 to vector<2x96xf32>
    %597 = arith.addf %596, %595 : vector<2x96xf32>
    %cst_221 = arith.constant 1.000000e+00 : f32
    %598 = vector.broadcast %cst_221 : f32 to vector<2x96xf32>
    %599 = arith.divf %598, %597 : vector<2x96xf32>
    %600 = vector.extract_strided_slice %587 {offsets = [0, 96], sizes = [2, 32], strides = [1, 1]} : vector<2x128xf32> to vector<2x32xf32>
    %601 = math.tanh %600 : vector<2x32xf32>
    %602 = vector.extract_strided_slice %599 {offsets = [0, 32], sizes = [2, 32], strides = [1, 1]} : vector<2x96xf32> to vector<2x32xf32>
    %603 = arith.mulf %602, %551 : vector<2x32xf32>
    %604 = vector.extract_strided_slice %599 {offsets = [0, 0], sizes = [2, 32], strides = [1, 1]} : vector<2x96xf32> to vector<2x32xf32>
    %605 = arith.mulf %604, %601 : vector<2x32xf32>
    %606 = arith.addf %603, %605 : vector<2x32xf32>
    %607 = vector.extract_strided_slice %599 {offsets = [0, 64], sizes = [2, 32], strides = [1, 1]} : vector<2x96xf32> to vector<2x32xf32>
    %608 = math.tanh %606 : vector<2x32xf32>
    %609 = arith.mulf %607, %608 : vector<2x32xf32>
    %610 = vector.broadcast %591 : vector<2x1xf32> to vector<2x32xf32>
    %611 = arith.mulf %609, %610 : vector<2x32xf32>
    %612 = vector.broadcast %591 : vector<2x1xf32> to vector<2x32xf32>
    %613 = arith.mulf %606, %612 : vector<2x32xf32>
    %c0_222 = arith.constant 0 : index
    %c6_223 = arith.constant 6 : index
    %614 = vector.load %arg1[%c0_222, %c6_223] : memref<2x8xf32, #tpu.memory_space<vmem>>, vector<2x1xf32>
    %615 = vector.extract_strided_slice %590 {offsets = [0, 0], sizes = [2, 96], strides = [1, 1]} : vector<2x128xf32> to vector<2x96xf32>
    %cst_224 = arith.constant 0.000000e+00 : f32
    %616 = vector.broadcast %cst_224 : f32 to vector<2x96xf32>
    %617 = arith.subf %616, %615 : vector<2x96xf32>
    %618 = math.exp %617 : vector<2x96xf32>
    %cst_225 = arith.constant 1.000000e+00 : f32
    %619 = vector.broadcast %cst_225 : f32 to vector<2x96xf32>
    %620 = arith.addf %619, %618 : vector<2x96xf32>
    %cst_226 = arith.constant 1.000000e+00 : f32
    %621 = vector.broadcast %cst_226 : f32 to vector<2x96xf32>
    %622 = arith.divf %621, %620 : vector<2x96xf32>
    %623 = vector.extract_strided_slice %590 {offsets = [0, 96], sizes = [2, 32], strides = [1, 1]} : vector<2x128xf32> to vector<2x32xf32>
    %624 = math.tanh %623 : vector<2x32xf32>
    %625 = vector.extract_strided_slice %622 {offsets = [0, 32], sizes = [2, 32], strides = [1, 1]} : vector<2x96xf32> to vector<2x32xf32>
    %626 = arith.mulf %625, %574 : vector<2x32xf32>
    %627 = vector.extract_strided_slice %622 {offsets = [0, 0], sizes = [2, 32], strides = [1, 1]} : vector<2x96xf32> to vector<2x32xf32>
    %628 = arith.mulf %627, %624 : vector<2x32xf32>
    %629 = arith.addf %626, %628 : vector<2x32xf32>
    %630 = vector.extract_strided_slice %622 {offsets = [0, 64], sizes = [2, 32], strides = [1, 1]} : vector<2x96xf32> to vector<2x32xf32>
    %631 = math.tanh %629 : vector<2x32xf32>
    %632 = arith.mulf %630, %631 : vector<2x32xf32>
    %633 = vector.broadcast %614 : vector<2x1xf32> to vector<2x32xf32>
    %634 = arith.mulf %632, %633 : vector<2x32xf32>
    %635 = vector.broadcast %614 : vector<2x1xf32> to vector<2x32xf32>
    %636 = arith.mulf %629, %635 : vector<2x32xf32>
    %637 = vector.shape_cast %611 : vector<2x32xf32> to vector<2x1x32xf32>
    %c0_227 = arith.constant 0 : index
    %c1_228 = arith.constant 1 : index
    %c0_229 = arith.constant 0 : index
    %638 = vector.load %arg19[%c0_227, %c1_228, %c0_229] : memref<2x8x64xf32, #tpu.memory_space<vmem>>, vector<2x1x32xf32>
    tpu.vector_store %arg19[%c0_227, %c1_228, %c0_229], %637 {strides = array<i32>} : memref<2x8x64xf32, #tpu.memory_space<vmem>>, vector<2x1x32xf32>,
    %639 = vector.shape_cast %634 : vector<2x32xf32> to vector<2x1x32xf32>
    %c0_230 = arith.constant 0 : index
    %c6_231 = arith.constant 6 : index
    %c32_232 = arith.constant 32 : index
    %640 = vector.load %arg19[%c0_230, %c6_231, %c32_232] : memref<2x8x64xf32, #tpu.memory_space<vmem>>, vector<2x1x32xf32>
    tpu.vector_store %arg19[%c0_230, %c6_231, %c32_232], %639 {strides = array<i32>} : memref<2x8x64xf32, #tpu.memory_space<vmem>>, vector<2x1x32xf32>,
    %641 = arith.truncf %611 : vector<2x32xf32> to vector<2x32xbf16>
    %c0_233 = arith.constant 0 : index
    %c0_234 = arith.constant 0 : index
    %642 = vector.load %arg8[%c0_233, %c0_234] : memref<32x128xbf16, #tpu.memory_space<vmem>>, vector<32x128xbf16>
    %cst_235 = arith.constant dense<0.000000e+00> : vector<2x128xf32>
    %643 = tpu.matmul %641, %642, %cst_235 {dimension_numbers = #tpu.dot_dimension_numbers<[1], [0], [0], [1], [0, 0, 1, 1], [], []>} : vector<2x32xbf16>, vector<32x128xbf16>, vector<2x128xf32> -> vector<2x128xf32>
    %644 = arith.truncf %634 : vector<2x32xf32> to vector<2x32xbf16>
    %c0_236 = arith.constant 0 : index
    %c0_237 = arith.constant 0 : index
    %645 = vector.load %arg9[%c0_236, %c0_237] : memref<32x128xbf16, #tpu.memory_space<vmem>>, vector<32x128xbf16>
    %cst_238 = arith.constant dense<0.000000e+00> : vector<2x128xf32>
    %646 = tpu.matmul %644, %645, %cst_238 {dimension_numbers = #tpu.dot_dimension_numbers<[1], [0], [0], [1], [0, 0, 1, 1], [], []>} : vector<2x32xbf16>, vector<32x128xbf16>, vector<2x128xf32> -> vector<2x128xf32>
    %647 = vector.extract_strided_slice %512 {offsets = [0, 2, 0], sizes = [2, 1, 128], strides = [1, 1, 1]} : vector<2x8x256xf32> to vector<2x1x128xf32>
    %648 = vector.shape_cast %647 : vector<2x1x128xf32> to vector<2x128xf32>
    %649 = arith.addf %648, %643 : vector<2x128xf32>
    %650 = vector.extract_strided_slice %512 {offsets = [0, 5, 128], sizes = [2, 1, 128], strides = [1, 1, 1]} : vector<2x8x256xf32> to vector<2x1x128xf32>
    %651 = vector.shape_cast %650 : vector<2x1x128xf32> to vector<2x128xf32>
    %652 = arith.addf %651, %646 : vector<2x128xf32>
    %c0_239 = arith.constant 0 : index
    %c2_240 = arith.constant 2 : index
    %653 = vector.load %arg1[%c0_239, %c2_240] : memref<2x8xf32, #tpu.memory_space<vmem>>, vector<2x1xf32>
    %654 = vector.extract_strided_slice %649 {offsets = [0, 0], sizes = [2, 96], strides = [1, 1]} : vector<2x128xf32> to vector<2x96xf32>
    %cst_241 = arith.constant 0.000000e+00 : f32
    %655 = vector.broadcast %cst_241 : f32 to vector<2x96xf32>
    %656 = arith.subf %655, %654 : vector<2x96xf32>
    %657 = math.exp %656 : vector<2x96xf32>
    %cst_242 = arith.constant 1.000000e+00 : f32
    %658 = vector.broadcast %cst_242 : f32 to vector<2x96xf32>
    %659 = arith.addf %658, %657 : vector<2x96xf32>
    %cst_243 = arith.constant 1.000000e+00 : f32
    %660 = vector.broadcast %cst_243 : f32 to vector<2x96xf32>
    %661 = arith.divf %660, %659 : vector<2x96xf32>
    %662 = vector.extract_strided_slice %649 {offsets = [0, 96], sizes = [2, 32], strides = [1, 1]} : vector<2x128xf32> to vector<2x32xf32>
    %663 = math.tanh %662 : vector<2x32xf32>
    %664 = vector.extract_strided_slice %661 {offsets = [0, 32], sizes = [2, 32], strides = [1, 1]} : vector<2x96xf32> to vector<2x32xf32>
    %665 = arith.mulf %664, %613 : vector<2x32xf32>
    %666 = vector.extract_strided_slice %661 {offsets = [0, 0], sizes = [2, 32], strides = [1, 1]} : vector<2x96xf32> to vector<2x32xf32>
    %667 = arith.mulf %666, %663 : vector<2x32xf32>
    %668 = arith.addf %665, %667 : vector<2x32xf32>
    %669 = vector.extract_strided_slice %661 {offsets = [0, 64], sizes = [2, 32], strides = [1, 1]} : vector<2x96xf32> to vector<2x32xf32>
    %670 = math.tanh %668 : vector<2x32xf32>
    %671 = arith.mulf %669, %670 : vector<2x32xf32>
    %672 = vector.broadcast %653 : vector<2x1xf32> to vector<2x32xf32>
    %673 = arith.mulf %671, %672 : vector<2x32xf32>
    %674 = vector.broadcast %653 : vector<2x1xf32> to vector<2x32xf32>
    %675 = arith.mulf %668, %674 : vector<2x32xf32>
    %c0_244 = arith.constant 0 : index
    %c5_245 = arith.constant 5 : index
    %676 = vector.load %arg1[%c0_244, %c5_245] : memref<2x8xf32, #tpu.memory_space<vmem>>, vector<2x1xf32>
    %677 = vector.extract_strided_slice %652 {offsets = [0, 0], sizes = [2, 96], strides = [1, 1]} : vector<2x128xf32> to vector<2x96xf32>
    %cst_246 = arith.constant 0.000000e+00 : f32
    %678 = vector.broadcast %cst_246 : f32 to vector<2x96xf32>
    %679 = arith.subf %678, %677 : vector<2x96xf32>
    %680 = math.exp %679 : vector<2x96xf32>
    %cst_247 = arith.constant 1.000000e+00 : f32
    %681 = vector.broadcast %cst_247 : f32 to vector<2x96xf32>
    %682 = arith.addf %681, %680 : vector<2x96xf32>
    %cst_248 = arith.constant 1.000000e+00 : f32
    %683 = vector.broadcast %cst_248 : f32 to vector<2x96xf32>
    %684 = arith.divf %683, %682 : vector<2x96xf32>
    %685 = vector.extract_strided_slice %652 {offsets = [0, 96], sizes = [2, 32], strides = [1, 1]} : vector<2x128xf32> to vector<2x32xf32>
    %686 = math.tanh %685 : vector<2x32xf32>
    %687 = vector.extract_strided_slice %684 {offsets = [0, 32], sizes = [2, 32], strides = [1, 1]} : vector<2x96xf32> to vector<2x32xf32>
    %688 = arith.mulf %687, %636 : vector<2x32xf32>
    %689 = vector.extract_strided_slice %684 {offsets = [0, 0], sizes = [2, 32], strides = [1, 1]} : vector<2x96xf32> to vector<2x32xf32>
    %690 = arith.mulf %689, %686 : vector<2x32xf32>
    %691 = arith.addf %688, %690 : vector<2x32xf32>
    %692 = vector.extract_strided_slice %684 {offsets = [0, 64], sizes = [2, 32], strides = [1, 1]} : vector<2x96xf32> to vector<2x32xf32>
    %693 = math.tanh %691 : vector<2x32xf32>
    %694 = arith.mulf %692, %693 : vector<2x32xf32>
    %695 = vector.broadcast %676 : vector<2x1xf32> to vector<2x32xf32>
    %696 = arith.mulf %694, %695 : vector<2x32xf32>
    %697 = vector.broadcast %676 : vector<2x1xf32> to vector<2x32xf32>
    %698 = arith.mulf %691, %697 : vector<2x32xf32>
    %699 = vector.shape_cast %673 : vector<2x32xf32> to vector<2x1x32xf32>
    %c0_249 = arith.constant 0 : index
    %c2_250 = arith.constant 2 : index
    %c0_251 = arith.constant 0 : index
    %700 = vector.load %arg19[%c0_249, %c2_250, %c0_251] : memref<2x8x64xf32, #tpu.memory_space<vmem>>, vector<2x1x32xf32>
    tpu.vector_store %arg19[%c0_249, %c2_250, %c0_251], %699 {strides = array<i32>} : memref<2x8x64xf32, #tpu.memory_space<vmem>>, vector<2x1x32xf32>,
    %701 = vector.shape_cast %696 : vector<2x32xf32> to vector<2x1x32xf32>
    %c0_252 = arith.constant 0 : index
    %c5_253 = arith.constant 5 : index
    %c32_254 = arith.constant 32 : index
    %702 = vector.load %arg19[%c0_252, %c5_253, %c32_254] : memref<2x8x64xf32, #tpu.memory_space<vmem>>, vector<2x1x32xf32>
    tpu.vector_store %arg19[%c0_252, %c5_253, %c32_254], %701 {strides = array<i32>} : memref<2x8x64xf32, #tpu.memory_space<vmem>>, vector<2x1x32xf32>,
    %703 = arith.truncf %673 : vector<2x32xf32> to vector<2x32xbf16>
    %c0_255 = arith.constant 0 : index
    %c0_256 = arith.constant 0 : index
    %704 = vector.load %arg8[%c0_255, %c0_256] : memref<32x128xbf16, #tpu.memory_space<vmem>>, vector<32x128xbf16>
    %cst_257 = arith.constant dense<0.000000e+00> : vector<2x128xf32>
    %705 = tpu.matmul %703, %704, %cst_257 {dimension_numbers = #tpu.dot_dimension_numbers<[1], [0], [0], [1], [0, 0, 1, 1], [], []>} : vector<2x32xbf16>, vector<32x128xbf16>, vector<2x128xf32> -> vector<2x128xf32>
    %706 = arith.truncf %696 : vector<2x32xf32> to vector<2x32xbf16>
    %c0_258 = arith.constant 0 : index
    %c0_259 = arith.constant 0 : index
    %707 = vector.load %arg9[%c0_258, %c0_259] : memref<32x128xbf16, #tpu.memory_space<vmem>>, vector<32x128xbf16>
    %cst_260 = arith.constant dense<0.000000e+00> : vector<2x128xf32>
    %708 = tpu.matmul %706, %707, %cst_260 {dimension_numbers = #tpu.dot_dimension_numbers<[1], [0], [0], [1], [0, 0, 1, 1], [], []>} : vector<2x32xbf16>, vector<32x128xbf16>, vector<2x128xf32> -> vector<2x128xf32>
    %709 = vector.extract_strided_slice %512 {offsets = [0, 3, 0], sizes = [2, 1, 128], strides = [1, 1, 1]} : vector<2x8x256xf32> to vector<2x1x128xf32>
    %710 = vector.shape_cast %709 : vector<2x1x128xf32> to vector<2x128xf32>
    %711 = arith.addf %710, %705 : vector<2x128xf32>
    %712 = vector.extract_strided_slice %512 {offsets = [0, 4, 128], sizes = [2, 1, 128], strides = [1, 1, 1]} : vector<2x8x256xf32> to vector<2x1x128xf32>
    %713 = vector.shape_cast %712 : vector<2x1x128xf32> to vector<2x128xf32>
    %714 = arith.addf %713, %708 : vector<2x128xf32>
    %c0_261 = arith.constant 0 : index
    %c3_262 = arith.constant 3 : index
    %715 = vector.load %arg1[%c0_261, %c3_262] : memref<2x8xf32, #tpu.memory_space<vmem>>, vector<2x1xf32>
    %716 = vector.extract_strided_slice %711 {offsets = [0, 0], sizes = [2, 96], strides = [1, 1]} : vector<2x128xf32> to vector<2x96xf32>
    %cst_263 = arith.constant 0.000000e+00 : f32
    %717 = vector.broadcast %cst_263 : f32 to vector<2x96xf32>
    %718 = arith.subf %717, %716 : vector<2x96xf32>
    %719 = math.exp %718 : vector<2x96xf32>
    %cst_264 = arith.constant 1.000000e+00 : f32
    %720 = vector.broadcast %cst_264 : f32 to vector<2x96xf32>
    %721 = arith.addf %720, %719 : vector<2x96xf32>
    %cst_265 = arith.constant 1.000000e+00 : f32
    %722 = vector.broadcast %cst_265 : f32 to vector<2x96xf32>
    %723 = arith.divf %722, %721 : vector<2x96xf32>
    %724 = vector.extract_strided_slice %711 {offsets = [0, 96], sizes = [2, 32], strides = [1, 1]} : vector<2x128xf32> to vector<2x32xf32>
    %725 = math.tanh %724 : vector<2x32xf32>
    %726 = vector.extract_strided_slice %723 {offsets = [0, 32], sizes = [2, 32], strides = [1, 1]} : vector<2x96xf32> to vector<2x32xf32>
    %727 = arith.mulf %726, %675 : vector<2x32xf32>
    %728 = vector.extract_strided_slice %723 {offsets = [0, 0], sizes = [2, 32], strides = [1, 1]} : vector<2x96xf32> to vector<2x32xf32>
    %729 = arith.mulf %728, %725 : vector<2x32xf32>
    %730 = arith.addf %727, %729 : vector<2x32xf32>
    %731 = vector.extract_strided_slice %723 {offsets = [0, 64], sizes = [2, 32], strides = [1, 1]} : vector<2x96xf32> to vector<2x32xf32>
    %732 = math.tanh %730 : vector<2x32xf32>
    %733 = arith.mulf %731, %732 : vector<2x32xf32>
    %734 = vector.broadcast %715 : vector<2x1xf32> to vector<2x32xf32>
    %735 = arith.mulf %733, %734 : vector<2x32xf32>
    %736 = vector.broadcast %715 : vector<2x1xf32> to vector<2x32xf32>
    %737 = arith.mulf %730, %736 : vector<2x32xf32>
    %c0_266 = arith.constant 0 : index
    %c4_267 = arith.constant 4 : index
    %738 = vector.load %arg1[%c0_266, %c4_267] : memref<2x8xf32, #tpu.memory_space<vmem>>, vector<2x1xf32>
    %739 = vector.extract_strided_slice %714 {offsets = [0, 0], sizes = [2, 96], strides = [1, 1]} : vector<2x128xf32> to vector<2x96xf32>
    %cst_268 = arith.constant 0.000000e+00 : f32
    %740 = vector.broadcast %cst_268 : f32 to vector<2x96xf32>
    %741 = arith.subf %740, %739 : vector<2x96xf32>
    %742 = math.exp %741 : vector<2x96xf32>
    %cst_269 = arith.constant 1.000000e+00 : f32
    %743 = vector.broadcast %cst_269 : f32 to vector<2x96xf32>
    %744 = arith.addf %743, %742 : vector<2x96xf32>
    %cst_270 = arith.constant 1.000000e+00 : f32
    %745 = vector.broadcast %cst_270 : f32 to vector<2x96xf32>
    %746 = arith.divf %745, %744 : vector<2x96xf32>
    %747 = vector.extract_strided_slice %714 {offsets = [0, 96], sizes = [2, 32], strides = [1, 1]} : vector<2x128xf32> to vector<2x32xf32>
    %748 = math.tanh %747 : vector<2x32xf32>
    %749 = vector.extract_strided_slice %746 {offsets = [0, 32], sizes = [2, 32], strides = [1, 1]} : vector<2x96xf32> to vector<2x32xf32>
    %750 = arith.mulf %749, %698 : vector<2x32xf32>
    %751 = vector.extract_strided_slice %746 {offsets = [0, 0], sizes = [2, 32], strides = [1, 1]} : vector<2x96xf32> to vector<2x32xf32>
    %752 = arith.mulf %751, %748 : vector<2x32xf32>
    %753 = arith.addf %750, %752 : vector<2x32xf32>
    %754 = vector.extract_strided_slice %746 {offsets = [0, 64], sizes = [2, 32], strides = [1, 1]} : vector<2x96xf32> to vector<2x32xf32>
    %755 = math.tanh %753 : vector<2x32xf32>
    %756 = arith.mulf %754, %755 : vector<2x32xf32>
    %757 = vector.broadcast %738 : vector<2x1xf32> to vector<2x32xf32>
    %758 = arith.mulf %756, %757 : vector<2x32xf32>
    %759 = vector.broadcast %738 : vector<2x1xf32> to vector<2x32xf32>
    %760 = arith.mulf %753, %759 : vector<2x32xf32>
    %761 = vector.shape_cast %735 : vector<2x32xf32> to vector<2x1x32xf32>
    %c0_271 = arith.constant 0 : index
    %c3_272 = arith.constant 3 : index
    %c0_273 = arith.constant 0 : index
    %762 = vector.load %arg19[%c0_271, %c3_272, %c0_273] : memref<2x8x64xf32, #tpu.memory_space<vmem>>, vector<2x1x32xf32>
    tpu.vector_store %arg19[%c0_271, %c3_272, %c0_273], %761 {strides = array<i32>} : memref<2x8x64xf32, #tpu.memory_space<vmem>>, vector<2x1x32xf32>,
    %763 = vector.shape_cast %758 : vector<2x32xf32> to vector<2x1x32xf32>
    %c0_274 = arith.constant 0 : index
    %c4_275 = arith.constant 4 : index
    %c32_276 = arith.constant 32 : index
    %764 = vector.load %arg19[%c0_274, %c4_275, %c32_276] : memref<2x8x64xf32, #tpu.memory_space<vmem>>, vector<2x1x32xf32>
    tpu.vector_store %arg19[%c0_274, %c4_275, %c32_276], %763 {strides = array<i32>} : memref<2x8x64xf32, #tpu.memory_space<vmem>>, vector<2x1x32xf32>,
    %765 = arith.truncf %735 : vector<2x32xf32> to vector<2x32xbf16>
    %c0_277 = arith.constant 0 : index
    %c0_278 = arith.constant 0 : index
    %766 = vector.load %arg8[%c0_277, %c0_278] : memref<32x128xbf16, #tpu.memory_space<vmem>>, vector<32x128xbf16>
    %cst_279 = arith.constant dense<0.000000e+00> : vector<2x128xf32>
    %767 = tpu.matmul %765, %766, %cst_279 {dimension_numbers = #tpu.dot_dimension_numbers<[1], [0], [0], [1], [0, 0, 1, 1], [], []>} : vector<2x32xbf16>, vector<32x128xbf16>, vector<2x128xf32> -> vector<2x128xf32>
    %768 = arith.truncf %758 : vector<2x32xf32> to vector<2x32xbf16>
    %c0_280 = arith.constant 0 : index
    %c0_281 = arith.constant 0 : index
    %769 = vector.load %arg9[%c0_280, %c0_281] : memref<32x128xbf16, #tpu.memory_space<vmem>>, vector<32x128xbf16>
    %cst_282 = arith.constant dense<0.000000e+00> : vector<2x128xf32>
    %770 = tpu.matmul %768, %769, %cst_282 {dimension_numbers = #tpu.dot_dimension_numbers<[1], [0], [0], [1], [0, 0, 1, 1], [], []>} : vector<2x32xbf16>, vector<32x128xbf16>, vector<2x128xf32> -> vector<2x128xf32>
    %771 = vector.extract_strided_slice %512 {offsets = [0, 4, 0], sizes = [2, 1, 128], strides = [1, 1, 1]} : vector<2x8x256xf32> to vector<2x1x128xf32>
    %772 = vector.shape_cast %771 : vector<2x1x128xf32> to vector<2x128xf32>
    %773 = arith.addf %772, %767 : vector<2x128xf32>
    %774 = vector.extract_strided_slice %512 {offsets = [0, 3, 128], sizes = [2, 1, 128], strides = [1, 1, 1]} : vector<2x8x256xf32> to vector<2x1x128xf32>
    %775 = vector.shape_cast %774 : vector<2x1x128xf32> to vector<2x128xf32>
    %776 = arith.addf %775, %770 : vector<2x128xf32>
    %c0_283 = arith.constant 0 : index
    %c4_284 = arith.constant 4 : index
    %777 = vector.load %arg1[%c0_283, %c4_284] : memref<2x8xf32, #tpu.memory_space<vmem>>, vector<2x1xf32>
    %778 = vector.extract_strided_slice %773 {offsets = [0, 0], sizes = [2, 96], strides = [1, 1]} : vector<2x128xf32> to vector<2x96xf32>
    %cst_285 = arith.constant 0.000000e+00 : f32
    %779 = vector.broadcast %cst_285 : f32 to vector<2x96xf32>
    %780 = arith.subf %779, %778 : vector<2x96xf32>
    %781 = math.exp %780 : vector<2x96xf32>
    %cst_286 = arith.constant 1.000000e+00 : f32
    %782 = vector.broadcast %cst_286 : f32 to vector<2x96xf32>
    %783 = arith.addf %782, %781 : vector<2x96xf32>
    %cst_287 = arith.constant 1.000000e+00 : f32
    %784 = vector.broadcast %cst_287 : f32 to vector<2x96xf32>
    %785 = arith.divf %784, %783 : vector<2x96xf32>
    %786 = vector.extract_strided_slice %773 {offsets = [0, 96], sizes = [2, 32], strides = [1, 1]} : vector<2x128xf32> to vector<2x32xf32>
    %787 = math.tanh %786 : vector<2x32xf32>
    %788 = vector.extract_strided_slice %785 {offsets = [0, 32], sizes = [2, 32], strides = [1, 1]} : vector<2x96xf32> to vector<2x32xf32>
    %789 = arith.mulf %788, %737 : vector<2x32xf32>
    %790 = vector.extract_strided_slice %785 {offsets = [0, 0], sizes = [2, 32], strides = [1, 1]} : vector<2x96xf32> to vector<2x32xf32>
    %791 = arith.mulf %790, %787 : vector<2x32xf32>
    %792 = arith.addf %789, %791 : vector<2x32xf32>
    %793 = vector.extract_strided_slice %785 {offsets = [0, 64], sizes = [2, 32], strides = [1, 1]} : vector<2x96xf32> to vector<2x32xf32>
    %794 = math.tanh %792 : vector<2x32xf32>
    %795 = arith.mulf %793, %794 : vector<2x32xf32>
    %796 = vector.broadcast %777 : vector<2x1xf32> to vector<2x32xf32>
    %797 = arith.mulf %795, %796 : vector<2x32xf32>
    %798 = vector.broadcast %777 : vector<2x1xf32> to vector<2x32xf32>
    %799 = arith.mulf %792, %798 : vector<2x32xf32>
    %c0_288 = arith.constant 0 : index
    %c3_289 = arith.constant 3 : index
    %800 = vector.load %arg1[%c0_288, %c3_289] : memref<2x8xf32, #tpu.memory_space<vmem>>, vector<2x1xf32>
    %801 = vector.extract_strided_slice %776 {offsets = [0, 0], sizes = [2, 96], strides = [1, 1]} : vector<2x128xf32> to vector<2x96xf32>
    %cst_290 = arith.constant 0.000000e+00 : f32
    %802 = vector.broadcast %cst_290 : f32 to vector<2x96xf32>
    %803 = arith.subf %802, %801 : vector<2x96xf32>
    %804 = math.exp %803 : vector<2x96xf32>
    %cst_291 = arith.constant 1.000000e+00 : f32
    %805 = vector.broadcast %cst_291 : f32 to vector<2x96xf32>
    %806 = arith.addf %805, %804 : vector<2x96xf32>
    %cst_292 = arith.constant 1.000000e+00 : f32
    %807 = vector.broadcast %cst_292 : f32 to vector<2x96xf32>
    %808 = arith.divf %807, %806 : vector<2x96xf32>
    %809 = vector.extract_strided_slice %776 {offsets = [0, 96], sizes = [2, 32], strides = [1, 1]} : vector<2x128xf32> to vector<2x32xf32>
    %810 = math.tanh %809 : vector<2x32xf32>
    %811 = vector.extract_strided_slice %808 {offsets = [0, 32], sizes = [2, 32], strides = [1, 1]} : vector<2x96xf32> to vector<2x32xf32>
    %812 = arith.mulf %811, %760 : vector<2x32xf32>
    %813 = vector.extract_strided_slice %808 {offsets = [0, 0], sizes = [2, 32], strides = [1, 1]} : vector<2x96xf32> to vector<2x32xf32>
    %814 = arith.mulf %813, %810 : vector<2x32xf32>
    %815 = arith.addf %812, %814 : vector<2x32xf32>
    %816 = vector.extract_strided_slice %808 {offsets = [0, 64], sizes = [2, 32], strides = [1, 1]} : vector<2x96xf32> to vector<2x32xf32>
    %817 = math.tanh %815 : vector<2x32xf32>
    %818 = arith.mulf %816, %817 : vector<2x32xf32>
    %819 = vector.broadcast %800 : vector<2x1xf32> to vector<2x32xf32>
    %820 = arith.mulf %818, %819 : vector<2x32xf32>
    %821 = vector.broadcast %800 : vector<2x1xf32> to vector<2x32xf32>
    %822 = arith.mulf %815, %821 : vector<2x32xf32>
    %823 = vector.shape_cast %797 : vector<2x32xf32> to vector<2x1x32xf32>
    %c0_293 = arith.constant 0 : index
    %c4_294 = arith.constant 4 : index
    %c0_295 = arith.constant 0 : index
    %824 = vector.load %arg19[%c0_293, %c4_294, %c0_295] : memref<2x8x64xf32, #tpu.memory_space<vmem>>, vector<2x1x32xf32>
    tpu.vector_store %arg19[%c0_293, %c4_294, %c0_295], %823 {strides = array<i32>} : memref<2x8x64xf32, #tpu.memory_space<vmem>>, vector<2x1x32xf32>,
    %825 = vector.shape_cast %820 : vector<2x32xf32> to vector<2x1x32xf32>
    %c0_296 = arith.constant 0 : index
    %c3_297 = arith.constant 3 : index
    %c32_298 = arith.constant 32 : index
    %826 = vector.load %arg19[%c0_296, %c3_297, %c32_298] : memref<2x8x64xf32, #tpu.memory_space<vmem>>, vector<2x1x32xf32>
    tpu.vector_store %arg19[%c0_296, %c3_297, %c32_298], %825 {strides = array<i32>} : memref<2x8x64xf32, #tpu.memory_space<vmem>>, vector<2x1x32xf32>,
    %827 = arith.truncf %797 : vector<2x32xf32> to vector<2x32xbf16>
    %c0_299 = arith.constant 0 : index
    %c0_300 = arith.constant 0 : index
    %828 = vector.load %arg8[%c0_299, %c0_300] : memref<32x128xbf16, #tpu.memory_space<vmem>>, vector<32x128xbf16>
    %cst_301 = arith.constant dense<0.000000e+00> : vector<2x128xf32>
    %829 = tpu.matmul %827, %828, %cst_301 {dimension_numbers = #tpu.dot_dimension_numbers<[1], [0], [0], [1], [0, 0, 1, 1], [], []>} : vector<2x32xbf16>, vector<32x128xbf16>, vector<2x128xf32> -> vector<2x128xf32>
    %830 = arith.truncf %820 : vector<2x32xf32> to vector<2x32xbf16>
    %c0_302 = arith.constant 0 : index
    %c0_303 = arith.constant 0 : index
    %831 = vector.load %arg9[%c0_302, %c0_303] : memref<32x128xbf16, #tpu.memory_space<vmem>>, vector<32x128xbf16>
    %cst_304 = arith.constant dense<0.000000e+00> : vector<2x128xf32>
    %832 = tpu.matmul %830, %831, %cst_304 {dimension_numbers = #tpu.dot_dimension_numbers<[1], [0], [0], [1], [0, 0, 1, 1], [], []>} : vector<2x32xbf16>, vector<32x128xbf16>, vector<2x128xf32> -> vector<2x128xf32>
    %833 = vector.extract_strided_slice %512 {offsets = [0, 5, 0], sizes = [2, 1, 128], strides = [1, 1, 1]} : vector<2x8x256xf32> to vector<2x1x128xf32>
    %834 = vector.shape_cast %833 : vector<2x1x128xf32> to vector<2x128xf32>
    %835 = arith.addf %834, %829 : vector<2x128xf32>
    %836 = vector.extract_strided_slice %512 {offsets = [0, 2, 128], sizes = [2, 1, 128], strides = [1, 1, 1]} : vector<2x8x256xf32> to vector<2x1x128xf32>
    %837 = vector.shape_cast %836 : vector<2x1x128xf32> to vector<2x128xf32>
    %838 = arith.addf %837, %832 : vector<2x128xf32>
    %c0_305 = arith.constant 0 : index
    %c5_306 = arith.constant 5 : index
    %839 = vector.load %arg1[%c0_305, %c5_306] : memref<2x8xf32, #tpu.memory_space<vmem>>, vector<2x1xf32>
    %840 = vector.extract_strided_slice %835 {offsets = [0, 0], sizes = [2, 96], strides = [1, 1]} : vector<2x128xf32> to vector<2x96xf32>
    %cst_307 = arith.constant 0.000000e+00 : f32
    %841 = vector.broadcast %cst_307 : f32 to vector<2x96xf32>
    %842 = arith.subf %841, %840 : vector<2x96xf32>
    %843 = math.exp %842 : vector<2x96xf32>
    %cst_308 = arith.constant 1.000000e+00 : f32
    %844 = vector.broadcast %cst_308 : f32 to vector<2x96xf32>
    %845 = arith.addf %844, %843 : vector<2x96xf32>
    %cst_309 = arith.constant 1.000000e+00 : f32
    %846 = vector.broadcast %cst_309 : f32 to vector<2x96xf32>
    %847 = arith.divf %846, %845 : vector<2x96xf32>
    %848 = vector.extract_strided_slice %835 {offsets = [0, 96], sizes = [2, 32], strides = [1, 1]} : vector<2x128xf32> to vector<2x32xf32>
    %849 = math.tanh %848 : vector<2x32xf32>
    %850 = vector.extract_strided_slice %847 {offsets = [0, 32], sizes = [2, 32], strides = [1, 1]} : vector<2x96xf32> to vector<2x32xf32>
    %851 = arith.mulf %850, %799 : vector<2x32xf32>
    %852 = vector.extract_strided_slice %847 {offsets = [0, 0], sizes = [2, 32], strides = [1, 1]} : vector<2x96xf32> to vector<2x32xf32>
    %853 = arith.mulf %852, %849 : vector<2x32xf32>
    %854 = arith.addf %851, %853 : vector<2x32xf32>
    %855 = vector.extract_strided_slice %847 {offsets = [0, 64], sizes = [2, 32], strides = [1, 1]} : vector<2x96xf32> to vector<2x32xf32>
    %856 = math.tanh %854 : vector<2x32xf32>
    %857 = arith.mulf %855, %856 : vector<2x32xf32>
    %858 = vector.broadcast %839 : vector<2x1xf32> to vector<2x32xf32>
    %859 = arith.mulf %857, %858 : vector<2x32xf32>
    %860 = vector.broadcast %839 : vector<2x1xf32> to vector<2x32xf32>
    %861 = arith.mulf %854, %860 : vector<2x32xf32>
    %c0_310 = arith.constant 0 : index
    %c2_311 = arith.constant 2 : index
    %862 = vector.load %arg1[%c0_310, %c2_311] : memref<2x8xf32, #tpu.memory_space<vmem>>, vector<2x1xf32>
    %863 = vector.extract_strided_slice %838 {offsets = [0, 0], sizes = [2, 96], strides = [1, 1]} : vector<2x128xf32> to vector<2x96xf32>
    %cst_312 = arith.constant 0.000000e+00 : f32
    %864 = vector.broadcast %cst_312 : f32 to vector<2x96xf32>
    %865 = arith.subf %864, %863 : vector<2x96xf32>
    %866 = math.exp %865 : vector<2x96xf32>
    %cst_313 = arith.constant 1.000000e+00 : f32
    %867 = vector.broadcast %cst_313 : f32 to vector<2x96xf32>
    %868 = arith.addf %867, %866 : vector<2x96xf32>
    %cst_314 = arith.constant 1.000000e+00 : f32
    %869 = vector.broadcast %cst_314 : f32 to vector<2x96xf32>
    %870 = arith.divf %869, %868 : vector<2x96xf32>
    %871 = vector.extract_strided_slice %838 {offsets = [0, 96], sizes = [2, 32], strides = [1, 1]} : vector<2x128xf32> to vector<2x32xf32>
    %872 = math.tanh %871 : vector<2x32xf32>
    %873 = vector.extract_strided_slice %870 {offsets = [0, 32], sizes = [2, 32], strides = [1, 1]} : vector<2x96xf32> to vector<2x32xf32>
    %874 = arith.mulf %873, %822 : vector<2x32xf32>
    %875 = vector.extract_strided_slice %870 {offsets = [0, 0], sizes = [2, 32], strides = [1, 1]} : vector<2x96xf32> to vector<2x32xf32>
    %876 = arith.mulf %875, %872 : vector<2x32xf32>
    %877 = arith.addf %874, %876 : vector<2x32xf32>
    %878 = vector.extract_strided_slice %870 {offsets = [0, 64], sizes = [2, 32], strides = [1, 1]} : vector<2x96xf32> to vector<2x32xf32>
    %879 = math.tanh %877 : vector<2x32xf32>
    %880 = arith.mulf %878, %879 : vector<2x32xf32>
    %881 = vector.broadcast %862 : vector<2x1xf32> to vector<2x32xf32>
    %882 = arith.mulf %880, %881 : vector<2x32xf32>
    %883 = vector.broadcast %862 : vector<2x1xf32> to vector<2x32xf32>
    %884 = arith.mulf %877, %883 : vector<2x32xf32>
    %885 = vector.shape_cast %859 : vector<2x32xf32> to vector<2x1x32xf32>
    %c0_315 = arith.constant 0 : index
    %c5_316 = arith.constant 5 : index
    %c0_317 = arith.constant 0 : index
    %886 = vector.load %arg19[%c0_315, %c5_316, %c0_317] : memref<2x8x64xf32, #tpu.memory_space<vmem>>, vector<2x1x32xf32>
    tpu.vector_store %arg19[%c0_315, %c5_316, %c0_317], %885 {strides = array<i32>} : memref<2x8x64xf32, #tpu.memory_space<vmem>>, vector<2x1x32xf32>,
    %887 = vector.shape_cast %882 : vector<2x32xf32> to vector<2x1x32xf32>
    %c0_318 = arith.constant 0 : index
    %c2_319 = arith.constant 2 : index
    %c32_320 = arith.constant 32 : index
    %888 = vector.load %arg19[%c0_318, %c2_319, %c32_320] : memref<2x8x64xf32, #tpu.memory_space<vmem>>, vector<2x1x32xf32>
    tpu.vector_store %arg19[%c0_318, %c2_319, %c32_320], %887 {strides = array<i32>} : memref<2x8x64xf32, #tpu.memory_space<vmem>>, vector<2x1x32xf32>,
    %889 = arith.truncf %859 : vector<2x32xf32> to vector<2x32xbf16>
    %c0_321 = arith.constant 0 : index
    %c0_322 = arith.constant 0 : index
    %890 = vector.load %arg8[%c0_321, %c0_322] : memref<32x128xbf16, #tpu.memory_space<vmem>>, vector<32x128xbf16>
    %cst_323 = arith.constant dense<0.000000e+00> : vector<2x128xf32>
    %891 = tpu.matmul %889, %890, %cst_323 {dimension_numbers = #tpu.dot_dimension_numbers<[1], [0], [0], [1], [0, 0, 1, 1], [], []>} : vector<2x32xbf16>, vector<32x128xbf16>, vector<2x128xf32> -> vector<2x128xf32>
    %892 = arith.truncf %882 : vector<2x32xf32> to vector<2x32xbf16>
    %c0_324 = arith.constant 0 : index
    %c0_325 = arith.constant 0 : index
    %893 = vector.load %arg9[%c0_324, %c0_325] : memref<32x128xbf16, #tpu.memory_space<vmem>>, vector<32x128xbf16>
    %cst_326 = arith.constant dense<0.000000e+00> : vector<2x128xf32>
    %894 = tpu.matmul %892, %893, %cst_326 {dimension_numbers = #tpu.dot_dimension_numbers<[1], [0], [0], [1], [0, 0, 1, 1], [], []>} : vector<2x32xbf16>, vector<32x128xbf16>, vector<2x128xf32> -> vector<2x128xf32>
    %895 = vector.extract_strided_slice %512 {offsets = [0, 6, 0], sizes = [2, 1, 128], strides = [1, 1, 1]} : vector<2x8x256xf32> to vector<2x1x128xf32>
    %896 = vector.shape_cast %895 : vector<2x1x128xf32> to vector<2x128xf32>
    %897 = arith.addf %896, %891 : vector<2x128xf32>
    %898 = vector.extract_strided_slice %512 {offsets = [0, 1, 128], sizes = [2, 1, 128], strides = [1, 1, 1]} : vector<2x8x256xf32> to vector<2x1x128xf32>
    %899 = vector.shape_cast %898 : vector<2x1x128xf32> to vector<2x128xf32>
    %900 = arith.addf %899, %894 : vector<2x128xf32>
    %c0_327 = arith.constant 0 : index
    %c6_328 = arith.constant 6 : index
    %901 = vector.load %arg1[%c0_327, %c6_328] : memref<2x8xf32, #tpu.memory_space<vmem>>, vector<2x1xf32>
    %902 = vector.extract_strided_slice %897 {offsets = [0, 0], sizes = [2, 96], strides = [1, 1]} : vector<2x128xf32> to vector<2x96xf32>
    %cst_329 = arith.constant 0.000000e+00 : f32
    %903 = vector.broadcast %cst_329 : f32 to vector<2x96xf32>
    %904 = arith.subf %903, %902 : vector<2x96xf32>
    %905 = math.exp %904 : vector<2x96xf32>
    %cst_330 = arith.constant 1.000000e+00 : f32
    %906 = vector.broadcast %cst_330 : f32 to vector<2x96xf32>
    %907 = arith.addf %906, %905 : vector<2x96xf32>
    %cst_331 = arith.constant 1.000000e+00 : f32
    %908 = vector.broadcast %cst_331 : f32 to vector<2x96xf32>
    %909 = arith.divf %908, %907 : vector<2x96xf32>
    %910 = vector.extract_strided_slice %897 {offsets = [0, 96], sizes = [2, 32], strides = [1, 1]} : vector<2x128xf32> to vector<2x32xf32>
    %911 = math.tanh %910 : vector<2x32xf32>
    %912 = vector.extract_strided_slice %909 {offsets = [0, 32], sizes = [2, 32], strides = [1, 1]} : vector<2x96xf32> to vector<2x32xf32>
    %913 = arith.mulf %912, %861 : vector<2x32xf32>
    %914 = vector.extract_strided_slice %909 {offsets = [0, 0], sizes = [2, 32], strides = [1, 1]} : vector<2x96xf32> to vector<2x32xf32>
    %915 = arith.mulf %914, %911 : vector<2x32xf32>
    %916 = arith.addf %913, %915 : vector<2x32xf32>
    %917 = vector.extract_strided_slice %909 {offsets = [0, 64], sizes = [2, 32], strides = [1, 1]} : vector<2x96xf32> to vector<2x32xf32>
    %918 = math.tanh %916 : vector<2x32xf32>
    %919 = arith.mulf %917, %918 : vector<2x32xf32>
    %920 = vector.broadcast %901 : vector<2x1xf32> to vector<2x32xf32>
    %921 = arith.mulf %919, %920 : vector<2x32xf32>
    %922 = vector.broadcast %901 : vector<2x1xf32> to vector<2x32xf32>
    %923 = arith.mulf %916, %922 : vector<2x32xf32>
    %c0_332 = arith.constant 0 : index
    %c1_333 = arith.constant 1 : index
    %924 = vector.load %arg1[%c0_332, %c1_333] : memref<2x8xf32, #tpu.memory_space<vmem>>, vector<2x1xf32>
    %925 = vector.extract_strided_slice %900 {offsets = [0, 0], sizes = [2, 96], strides = [1, 1]} : vector<2x128xf32> to vector<2x96xf32>
    %cst_334 = arith.constant 0.000000e+00 : f32
    %926 = vector.broadcast %cst_334 : f32 to vector<2x96xf32>
    %927 = arith.subf %926, %925 : vector<2x96xf32>
    %928 = math.exp %927 : vector<2x96xf32>
    %cst_335 = arith.constant 1.000000e+00 : f32
    %929 = vector.broadcast %cst_335 : f32 to vector<2x96xf32>
    %930 = arith.addf %929, %928 : vector<2x96xf32>
    %cst_336 = arith.constant 1.000000e+00 : f32
    %931 = vector.broadcast %cst_336 : f32 to vector<2x96xf32>
    %932 = arith.divf %931, %930 : vector<2x96xf32>
    %933 = vector.extract_strided_slice %900 {offsets = [0, 96], sizes = [2, 32], strides = [1, 1]} : vector<2x128xf32> to vector<2x32xf32>
    %934 = math.tanh %933 : vector<2x32xf32>
    %935 = vector.extract_strided_slice %932 {offsets = [0, 32], sizes = [2, 32], strides = [1, 1]} : vector<2x96xf32> to vector<2x32xf32>
    %936 = arith.mulf %935, %884 : vector<2x32xf32>
    %937 = vector.extract_strided_slice %932 {offsets = [0, 0], sizes = [2, 32], strides = [1, 1]} : vector<2x96xf32> to vector<2x32xf32>
    %938 = arith.mulf %937, %934 : vector<2x32xf32>
    %939 = arith.addf %936, %938 : vector<2x32xf32>
    %940 = vector.extract_strided_slice %932 {offsets = [0, 64], sizes = [2, 32], strides = [1, 1]} : vector<2x96xf32> to vector<2x32xf32>
    %941 = math.tanh %939 : vector<2x32xf32>
    %942 = arith.mulf %940, %941 : vector<2x32xf32>
    %943 = vector.broadcast %924 : vector<2x1xf32> to vector<2x32xf32>
    %944 = arith.mulf %942, %943 : vector<2x32xf32>
    %945 = vector.broadcast %924 : vector<2x1xf32> to vector<2x32xf32>
    %946 = arith.mulf %939, %945 : vector<2x32xf32>
    %947 = vector.shape_cast %921 : vector<2x32xf32> to vector<2x1x32xf32>
    %c0_337 = arith.constant 0 : index
    %c6_338 = arith.constant 6 : index
    %c0_339 = arith.constant 0 : index
    %948 = vector.load %arg19[%c0_337, %c6_338, %c0_339] : memref<2x8x64xf32, #tpu.memory_space<vmem>>, vector<2x1x32xf32>
    tpu.vector_store %arg19[%c0_337, %c6_338, %c0_339], %947 {strides = array<i32>} : memref<2x8x64xf32, #tpu.memory_space<vmem>>, vector<2x1x32xf32>,
    %949 = vector.shape_cast %944 : vector<2x32xf32> to vector<2x1x32xf32>
    %c0_340 = arith.constant 0 : index
    %c1_341 = arith.constant 1 : index
    %c32_342 = arith.constant 32 : index
    %950 = vector.load %arg19[%c0_340, %c1_341, %c32_342] : memref<2x8x64xf32, #tpu.memory_space<vmem>>, vector<2x1x32xf32>
    tpu.vector_store %arg19[%c0_340, %c1_341, %c32_342], %949 {strides = array<i32>} : memref<2x8x64xf32, #tpu.memory_space<vmem>>, vector<2x1x32xf32>,
    %951 = arith.truncf %921 : vector<2x32xf32> to vector<2x32xbf16>
    %c0_343 = arith.constant 0 : index
    %c0_344 = arith.constant 0 : index
    %952 = vector.load %arg8[%c0_343, %c0_344] : memref<32x128xbf16, #tpu.memory_space<vmem>>, vector<32x128xbf16>
    %cst_345 = arith.constant dense<0.000000e+00> : vector<2x128xf32>
    %953 = tpu.matmul %951, %952, %cst_345 {dimension_numbers = #tpu.dot_dimension_numbers<[1], [0], [0], [1], [0, 0, 1, 1], [], []>} : vector<2x32xbf16>, vector<32x128xbf16>, vector<2x128xf32> -> vector<2x128xf32>
    %954 = arith.truncf %944 : vector<2x32xf32> to vector<2x32xbf16>
    %c0_346 = arith.constant 0 : index
    %c0_347 = arith.constant 0 : index
    %955 = vector.load %arg9[%c0_346, %c0_347] : memref<32x128xbf16, #tpu.memory_space<vmem>>, vector<32x128xbf16>
    %cst_348 = arith.constant dense<0.000000e+00> : vector<2x128xf32>
    %956 = tpu.matmul %954, %955, %cst_348 {dimension_numbers = #tpu.dot_dimension_numbers<[1], [0], [0], [1], [0, 0, 1, 1], [], []>} : vector<2x32xbf16>, vector<32x128xbf16>, vector<2x128xf32> -> vector<2x128xf32>
    %957 = vector.extract_strided_slice %512 {offsets = [0, 7, 0], sizes = [2, 1, 128], strides = [1, 1, 1]} : vector<2x8x256xf32> to vector<2x1x128xf32>
    %958 = vector.shape_cast %957 : vector<2x1x128xf32> to vector<2x128xf32>
    %959 = arith.addf %958, %953 : vector<2x128xf32>
    %960 = vector.extract_strided_slice %512 {offsets = [0, 0, 128], sizes = [2, 1, 128], strides = [1, 1, 1]} : vector<2x8x256xf32> to vector<2x1x128xf32>
    %961 = vector.shape_cast %960 : vector<2x1x128xf32> to vector<2x128xf32>
    %962 = arith.addf %961, %956 : vector<2x128xf32>
    %c0_349 = arith.constant 0 : index
    %c7_350 = arith.constant 7 : index
    %963 = vector.load %arg1[%c0_349, %c7_350] : memref<2x8xf32, #tpu.memory_space<vmem>>, vector<2x1xf32>
    %964 = vector.extract_strided_slice %959 {offsets = [0, 0], sizes = [2, 96], strides = [1, 1]} : vector<2x128xf32> to vector<2x96xf32>
    %cst_351 = arith.constant 0.000000e+00 : f32
    %965 = vector.broadcast %cst_351 : f32 to vector<2x96xf32>
    %966 = arith.subf %965, %964 : vector<2x96xf32>
    %967 = math.exp %966 : vector<2x96xf32>
    %cst_352 = arith.constant 1.000000e+00 : f32
    %968 = vector.broadcast %cst_352 : f32 to vector<2x96xf32>
    %969 = arith.addf %968, %967 : vector<2x96xf32>
    %cst_353 = arith.constant 1.000000e+00 : f32
    %970 = vector.broadcast %cst_353 : f32 to vector<2x96xf32>
    %971 = arith.divf %970, %969 : vector<2x96xf32>
    %972 = vector.extract_strided_slice %959 {offsets = [0, 96], sizes = [2, 32], strides = [1, 1]} : vector<2x128xf32> to vector<2x32xf32>
    %973 = math.tanh %972 : vector<2x32xf32>
    %974 = vector.extract_strided_slice %971 {offsets = [0, 32], sizes = [2, 32], strides = [1, 1]} : vector<2x96xf32> to vector<2x32xf32>
    %975 = arith.mulf %974, %923 : vector<2x32xf32>
    %976 = vector.extract_strided_slice %971 {offsets = [0, 0], sizes = [2, 32], strides = [1, 1]} : vector<2x96xf32> to vector<2x32xf32>
    %977 = arith.mulf %976, %973 : vector<2x32xf32>
    %978 = arith.addf %975, %977 : vector<2x32xf32>
    %979 = vector.extract_strided_slice %971 {offsets = [0, 64], sizes = [2, 32], strides = [1, 1]} : vector<2x96xf32> to vector<2x32xf32>
    %980 = math.tanh %978 : vector<2x32xf32>
    %981 = arith.mulf %979, %980 : vector<2x32xf32>
    %982 = vector.broadcast %963 : vector<2x1xf32> to vector<2x32xf32>
    %983 = arith.mulf %981, %982 : vector<2x32xf32>
    %c0_354 = arith.constant 0 : index
    %c0_355 = arith.constant 0 : index
    %984 = vector.load %arg1[%c0_354, %c0_355] : memref<2x8xf32, #tpu.memory_space<vmem>>, vector<2x1xf32>
    %985 = vector.extract_strided_slice %962 {offsets = [0, 0], sizes = [2, 96], strides = [1, 1]} : vector<2x128xf32> to vector<2x96xf32>
    %cst_356 = arith.constant 0.000000e+00 : f32
    %986 = vector.broadcast %cst_356 : f32 to vector<2x96xf32>
    %987 = arith.subf %986, %985 : vector<2x96xf32>
    %988 = math.exp %987 : vector<2x96xf32>
    %cst_357 = arith.constant 1.000000e+00 : f32
    %989 = vector.broadcast %cst_357 : f32 to vector<2x96xf32>
    %990 = arith.addf %989, %988 : vector<2x96xf32>
    %cst_358 = arith.constant 1.000000e+00 : f32
    %991 = vector.broadcast %cst_358 : f32 to vector<2x96xf32>
    %992 = arith.divf %991, %990 : vector<2x96xf32>
    %993 = vector.extract_strided_slice %962 {offsets = [0, 96], sizes = [2, 32], strides = [1, 1]} : vector<2x128xf32> to vector<2x32xf32>
    %994 = math.tanh %993 : vector<2x32xf32>
    %995 = vector.extract_strided_slice %992 {offsets = [0, 32], sizes = [2, 32], strides = [1, 1]} : vector<2x96xf32> to vector<2x32xf32>
    %996 = arith.mulf %995, %946 : vector<2x32xf32>
    %997 = vector.extract_strided_slice %992 {offsets = [0, 0], sizes = [2, 32], strides = [1, 1]} : vector<2x96xf32> to vector<2x32xf32>
    %998 = arith.mulf %997, %994 : vector<2x32xf32>
    %999 = arith.addf %996, %998 : vector<2x32xf32>
    %1000 = vector.extract_strided_slice %992 {offsets = [0, 64], sizes = [2, 32], strides = [1, 1]} : vector<2x96xf32> to vector<2x32xf32>
    %1001 = math.tanh %999 : vector<2x32xf32>
    %1002 = arith.mulf %1000, %1001 : vector<2x32xf32>
    %1003 = vector.broadcast %984 : vector<2x1xf32> to vector<2x32xf32>
    %1004 = arith.mulf %1002, %1003 : vector<2x32xf32>
    %1005 = vector.shape_cast %983 : vector<2x32xf32> to vector<2x1x32xf32>
    %c0_359 = arith.constant 0 : index
    %c7_360 = arith.constant 7 : index
    %c0_361 = arith.constant 0 : index
    %1006 = vector.load %arg19[%c0_359, %c7_360, %c0_361] : memref<2x8x64xf32, #tpu.memory_space<vmem>>, vector<2x1x32xf32>
    tpu.vector_store %arg19[%c0_359, %c7_360, %c0_361], %1005 {strides = array<i32>} : memref<2x8x64xf32, #tpu.memory_space<vmem>>, vector<2x1x32xf32>,
    %1007 = vector.shape_cast %1004 : vector<2x32xf32> to vector<2x1x32xf32>
    %c0_362 = arith.constant 0 : index
    %c0_363 = arith.constant 0 : index
    %c32_364 = arith.constant 32 : index
    %1008 = vector.load %arg19[%c0_362, %c0_363, %c32_364] : memref<2x8x64xf32, #tpu.memory_space<vmem>>, vector<2x1x32xf32>
    tpu.vector_store %arg19[%c0_362, %c0_363, %c32_364], %1007 {strides = array<i32>} : memref<2x8x64xf32, #tpu.memory_space<vmem>>, vector<2x1x32xf32>,
    %c0_365 = arith.constant 0 : index
    %c0_366 = arith.constant 0 : index
    %c0_367 = arith.constant 0 : index
    %1009 = vector.load %arg19[%c0_365, %c0_366, %c0_367] : memref<2x8x64xf32, #tpu.memory_space<vmem>>, vector<2x8x64xf32>
    %1010 = vector.shape_cast %1009 : vector<2x8x64xf32> to vector<16x64xf32>
    %1011 = arith.truncf %1010 : vector<16x64xf32> to vector<16x64xbf16>
    %c0_368 = arith.constant 0 : index
    %c0_369 = arith.constant 0 : index
    %1012 = vector.load %arg10[%c0_368, %c0_369] : memref<64x96xbf16, #tpu.memory_space<vmem>>, vector<64x96xbf16>
    %cst_370 = arith.constant dense<0.000000e+00> : vector<16x96xf32>
    %1013 = tpu.matmul %1011, %1012, %cst_370 {dimension_numbers = #tpu.dot_dimension_numbers<[1], [0], [0], [1], [0, 0, 1, 1], [], []>} : vector<16x64xbf16>, vector<64x96xbf16>, vector<16x96xf32> -> vector<16x96xf32>
    %c0_371 = arith.constant 0 : index
    %c0_372 = arith.constant 0 : index
    %1014 = vector.load %arg11[%c0_371, %c0_372] : memref<1x96xf32, #tpu.memory_space<vmem>>, vector<1x96xf32>
    %1015 = vector.broadcast %1014 : vector<1x96xf32> to vector<16x96xf32>
    %1016 = arith.addf %1013, %1015 : vector<16x96xf32>
    %cst_373 = arith.constant 0.000000e+00 : f32
    %1017 = vector.broadcast %cst_373 : f32 to vector<16x96xf32>
    %1018 = arith.cmpf oge, %1016, %1017 : vector<16x96xf32>
    %cst_374 = arith.constant 1.000000e-01 : f32
    %1019 = vector.broadcast %cst_374 : f32 to vector<16x96xf32>
    %1020 = arith.mulf %1019, %1016 : vector<16x96xf32>
    %1021 = arith.select %1018, %1016, %1020 : vector<16x96xi1>, vector<16x96xf32>
    %1022 = vector.extract_strided_slice %1021 {offsets = [0, 0], sizes = [16, 32], strides = [1, 1]} : vector<16x96xf32> to vector<16x32xf32>
    %1023 = vector.extract_strided_slice %1021 {offsets = [0, 32], sizes = [16, 32], strides = [1, 1]} : vector<16x96xf32> to vector<16x32xf32>
    %1024 = vector.extract_strided_slice %1021 {offsets = [0, 64], sizes = [16, 16], strides = [1, 1]} : vector<16x96xf32> to vector<16x16xf32>
    %1025 = vector.extract_strided_slice %1021 {offsets = [0, 80], sizes = [16, 16], strides = [1, 1]} : vector<16x96xf32> to vector<16x16xf32>
    %c0_375 = arith.constant 0 : index
    %c0_376 = arith.constant 0 : index
    %1026 = vector.load %arg12[%c0_375, %c0_376] : memref<33x32xf32, #tpu.memory_space<vmem>>, vector<32x32xf32>
    %cst_377 = arith.constant dense<0.000000e+00> : vector<16x32xf32>
    %1027 = tpu.matmul %1023, %1026, %cst_377 {dimension_numbers = #tpu.dot_dimension_numbers<[1], [0], [0], [1], [0, 0, 1, 1], [], []>} : vector<16x32xf32>, vector<32x32xf32>, vector<16x32xf32> -> vector<16x32xf32>
    %c32_378 = arith.constant 32 : index
    %c0_379 = arith.constant 0 : index
    %1028 = vector.load %arg12[%c32_378, %c0_379] : memref<33x32xf32, #tpu.memory_space<vmem>>, vector<1x32xf32>
    %1029 = vector.broadcast %1028 : vector<1x32xf32> to vector<16x32xf32>
    %1030 = arith.addf %1027, %1029 : vector<16x32xf32>
    %c0_380 = arith.constant 0 : index
    %c0_381 = arith.constant 0 : index
    %1031 = vector.load %arg15[%c0_380, %c0_381] : memref<12x16xf32, #tpu.memory_space<vmem>>, vector<12x16xf32>
    %cst_382 = arith.constant dense<0.000000e+00> : vector<12x32xf32>
    %1032 = tpu.matmul %1031, %1030, %cst_382 {dimension_numbers = #tpu.dot_dimension_numbers<[1], [0], [0], [1], [0, 0, 1, 1], [], []>} : vector<12x16xf32>, vector<16x32xf32>, vector<12x32xf32> -> vector<12x32xf32>
    %cst_383 = arith.constant dense<0.000000e+00> : vector<12x16xf32>
    %1033 = tpu.matmul %1032, %1022, %cst_383 {dimension_numbers = #tpu.dot_dimension_numbers<[1], [1], [0], [0], [0, 0, 1, 0], [], []>} : vector<12x32xf32>, vector<16x32xf32>, vector<12x16xf32> -> vector<12x16xf32>
    %c0_384 = arith.constant 0 : index
    %c0_385 = arith.constant 0 : index
    %1034 = vector.load %arg16[%c0_384, %c0_385] : memref<12x16xf32, #tpu.memory_space<vmem>>, vector<12x16xf32>
    %1035 = arith.mulf %1033, %1034 : vector<12x16xf32>
    %c0_386 = arith.constant 0 : index
    %c0_387 = arith.constant 0 : index
    %1036 = vector.load %arg17[%c0_386, %c0_387] : memref<16x8xf32, #tpu.memory_space<vmem>>, vector<16x8xf32>
    %cst_388 = arith.constant dense<0.000000e+00> : vector<12x8xf32>
    %1037 = tpu.matmul %1035, %1036, %cst_388 {dimension_numbers = #tpu.dot_dimension_numbers<[1], [0], [0], [1], [0, 0, 1, 1], [], []>} : vector<12x16xf32>, vector<16x8xf32>, vector<12x8xf32> -> vector<12x8xf32>
    %1038 = tpu.iota {dimensions = array<i32: 1>} : vector<12x8xi32>
    %1039 = arith.sitofp %1038 : vector<12x8xi32> to vector<12x8xf32>
    %c0_389 = arith.constant 0 : index
    %c0_390 = arith.constant 0 : index
    %1040 = vector.load %arg18[%c0_389, %c0_390] : memref<12x8xf32, #tpu.memory_space<vmem>>, vector<12x8xf32>
    %cst_391 = arith.constant 5.000000e-01 : f32
    %1041 = vector.broadcast %cst_391 : f32 to vector<12x8xf32>
    %1042 = arith.cmpf ogt, %1040, %1041 : vector<12x8xf32>
    %cst_392 = arith.constant -1.000000e+30 : f32
    %1043 = vector.broadcast %cst_392 : f32 to vector<12x8xf32>
    %1044 = arith.select %1042, %1037, %1043 : vector<12x8xi1>, vector<12x8xf32>
    %cst_393 = arith.constant dense<0xFF800000> : vector<12xf32>
    %1045 = vector.multi_reduction <maximumf>, %1044, %cst_393 [1] : vector<12x8xf32> to vector<12xf32>
    %1046 = vector.shape_cast %1045 : vector<12xf32> to vector<12x1xf32>
    %1047 = vector.broadcast %1046 : vector<12x1xf32> to vector<12x8xf32>
    %1048 = arith.cmpf oeq, %1044, %1047 : vector<12x8xf32>
    %cst_394 = arith.constant 8.000000e+00 : f32
    %1049 = vector.broadcast %cst_394 : f32 to vector<12x8xf32>
    %1050 = arith.select %1048, %1039, %1049 : vector<12x8xi1>, vector<12x8xf32>
    %cst_395 = arith.constant dense<0x7F800000> : vector<12xf32>
    %1051 = vector.multi_reduction <minimumf>, %1050, %cst_395 [1] : vector<12x8xf32> to vector<12xf32>
    %1052 = vector.shape_cast %1051 : vector<12xf32> to vector<12x1xf32>
    %1053 = vector.broadcast %1052 : vector<12x1xf32> to vector<12x8xf32>
    %1054 = arith.cmpf oeq, %1039, %1053 : vector<12x8xf32>
    %1055 = arith.extui %1054 : vector<12x8xi1> to vector<12x8xi32>
    %1056 = arith.sitofp %1055 : vector<12x8xi32> to vector<12x8xf32>
    %1057 = tpu.concatenate %1056, %1056 in 1 : vector<12x8xf32>, vector<12x8xf32> -> vector<12x16xf32>
    %c0_396 = arith.constant 0 : index
    %c0_397 = arith.constant 0 : index
    %1058 = vector.load %arg16[%c0_396, %c0_397] : memref<12x16xf32, #tpu.memory_space<vmem>>, vector<12x16xf32>
    %1059 = arith.mulf %1057, %1058 : vector<12x16xf32>
    %cst_398 = arith.constant dense<0.000000e+00> : vector<12x16xf32>
    %1060 = tpu.matmul %1059, %1024, %cst_398 {dimension_numbers = #tpu.dot_dimension_numbers<[1], [0], [0], [1], [0, 0, 1, 1], [], []>} : vector<12x16xf32>, vector<16x16xf32>, vector<12x16xf32> -> vector<12x16xf32>
    %c0_399 = arith.constant 0 : index
    %c0_400 = arith.constant 0 : index
    %1061 = vector.load %arg15[%c0_399, %c0_400] : memref<12x16xf32, #tpu.memory_space<vmem>>, vector<12x16xf32>
    %cst_401 = arith.constant dense<0.000000e+00> : vector<12x16xf32>
    %1062 = tpu.matmul %1061, %1025, %cst_401 {dimension_numbers = #tpu.dot_dimension_numbers<[1], [0], [0], [1], [0, 0, 1, 1], [], []>} : vector<12x16xf32>, vector<16x16xf32>, vector<12x16xf32> -> vector<12x16xf32>
    %c0_402 = arith.constant 0 : index
    %c0_403 = arith.constant 0 : index
    %1063 = vector.load %arg13[%c0_402, %c0_403] : memref<17x136xf32, #tpu.memory_space<vmem>>, vector<16x136xf32>
    %cst_404 = arith.constant dense<0.000000e+00> : vector<12x136xf32>
    %1064 = tpu.matmul %1062, %1063, %cst_404 {dimension_numbers = #tpu.dot_dimension_numbers<[1], [0], [0], [1], [0, 0, 1, 1], [], []>} : vector<12x16xf32>, vector<16x136xf32>, vector<12x136xf32> -> vector<12x136xf32>
    %c16 = arith.constant 16 : index
    %c0_405 = arith.constant 0 : index
    %1065 = vector.load %arg13[%c16, %c0_405] : memref<17x136xf32, #tpu.memory_space<vmem>>, vector<1x136xf32>
    %1066 = vector.broadcast %1065 : vector<1x136xf32> to vector<12x136xf32>
    %1067 = arith.addf %1064, %1066 : vector<12x136xf32>
    %cst_406 = arith.constant 1.000000e+00 : f32
    %1068 = vector.broadcast %cst_406 : f32 to vector<12x1xf32>
    %1069 = tpu.concatenate %1060, %1068 in 1 : vector<12x16xf32>, vector<12x1xf32> -> vector<12x17xf32>
    %1070 = tpu.concatenate %1069, %1069, %1069, %1069, %1069, %1069, %1069, %1069 in 1 : vector<12x17xf32>, vector<12x17xf32>, vector<12x17xf32>, vector<12x17xf32>, vector<12x17xf32>, vector<12x17xf32>, vector<12x17xf32>, vector<12x17xf32> -> vector<12x136xf32>
    %1071 = arith.mulf %1067, %1070 : vector<12x136xf32>
    %c0_407 = arith.constant 0 : index
    %c0_408 = arith.constant 0 : index
    %1072 = vector.load %arg14[%c0_407, %c0_408] : memref<136x8xf32, #tpu.memory_space<vmem>>, vector<136x8xf32>
    %cst_409 = arith.constant dense<0.000000e+00> : vector<12x8xf32>
    %1073 = tpu.matmul %1071, %1072, %cst_409 {dimension_numbers = #tpu.dot_dimension_numbers<[1], [0], [0], [1], [0, 0, 1, 1], [], []>} : vector<12x136xf32>, vector<136x8xf32>, vector<12x8xf32> -> vector<12x8xf32>
    %1074 = tpu.iota {dimensions = array<i32: 1>} : vector<12x8xi32>
    %1075 = arith.sitofp %1074 : vector<12x8xi32> to vector<12x8xf32>
    %cst_410 = arith.constant dense<0xFF800000> : vector<12xf32>
    %1076 = vector.multi_reduction <maximumf>, %1073, %cst_410 [1] : vector<12x8xf32> to vector<12xf32>
    %1077 = vector.shape_cast %1076 : vector<12xf32> to vector<12x1xf32>
    %1078 = vector.broadcast %1077 : vector<12x1xf32> to vector<12x8xf32>
    %1079 = arith.cmpf oeq, %1073, %1078 : vector<12x8xf32>
    %cst_411 = arith.constant 8.000000e+00 : f32
    %1080 = vector.broadcast %cst_411 : f32 to vector<12x8xf32>
    %1081 = arith.select %1079, %1075, %1080 : vector<12x8xi1>, vector<12x8xf32>
    %cst_412 = arith.constant dense<0x7F800000> : vector<12xf32>
    %1082 = vector.multi_reduction <minimumf>, %1081, %cst_412 [1] : vector<12x8xf32> to vector<12xf32>
    %1083 = vector.shape_cast %1082 : vector<12xf32> to vector<12x1xf32>
    %cst_413 = arith.constant 0.000000e+00 : f32
    %1084 = vector.broadcast %cst_413 : f32 to vector<12x110xf32>
    %1085 = tpu.concatenate %1037, %1073, %1052, %1083, %1084 in 1 : vector<12x8xf32>, vector<12x8xf32>, vector<12x1xf32>, vector<12x1xf32>, vector<12x110xf32> -> vector<12x128xf32>
    %c0_414 = arith.constant 0 : index
    %c0_415 = arith.constant 0 : index
    %1086 = vector.load %arg20[%c0_414, %c0_415] : memref<12x128xf32, #tpu.memory_space<vmem>>, vector<12x128xf32>
    tpu.vector_store %arg20[%c0_414, %c0_415], %1085 {strides = array<i32>} : memref<12x128xf32, #tpu.memory_space<vmem>>, vector<12x128xf32>,
    return
  }
}

</mosaic_0001>

<bundles_post_ra>
// kernel: forward_and_parse.1
= control target key start
LH: loop header
LB: loop body
LE: loop exit
PB: predicated region body
PF: predicated region fallthrough
CT: control target
= control target key end

     0   :  { %s9821_s0 = inlined_call_operand.vmem [shape: f32[16,32], index: 0, kind: input, shape index: {}]   ;;  %s9822_s1 = inlined_call_operand.vmem [shape: f32[2,8], index: 1, kind: input, shape index: {}]   ;;  %s9823_s2 = inlined_call_operand.vmem [shape: bf16[32,256], index: 2, kind: input, shape index: {}]   ;;  %s9824_s3 = inlined_call_operand.vmem [shape: f32[1,256], index: 3, kind: input, shape index: {}]   ;;  %s9825_s4 = inlined_call_operand.vmem [shape: bf16[32,128], index: 4, kind: input, shape index: {}]   ;;  %s9826_s5 = inlined_call_operand.vmem [shape: bf16[32,128], index: 5, kind: input, shape index: {}]   ;;  %s9827_s6 = inlined_call_operand.vmem [shape: bf16[64,256], index: 6, kind: input, shape index: {}]   ;;  %s9828_s7 = inlined_call_operand.vmem [shape: f32[1,256], index: 7, kind: input, shape index: {}]   ;;  %s9829_s8 = inlined_call_operand.vmem [shape: bf16[32,128], index: 8, kind: input, shape index: {}]   ;;  %s9830_s9 = inlined_call_operand.vmem [shape: bf16[32,128], index: 9, kind: input, shape index: {}]   ;;  %s9831_s10 = inlined_call_operand.vmem [shape: bf16[64,96], index: 10, kind: input, shape index: {}]   ;;  %s9832_s11 = inlined_call_operand.vmem [shape: f32[1,96], index: 11, kind: input, shape index: {}]   ;;  %s9833_s12 = inlined_call_operand.vmem [shape: f32[33,32], index: 12, kind: input, shape index: {}]   ;;  %s9834_s13 = inlined_call_operand.vmem [shape: f32[17,136], index: 13, kind: input, shape index: {}]   ;;  %s9835_s14 = inlined_call_operand.vmem [shape: f32[136,8], index: 14, kind: input, shape index: {}]   ;;  %s9836_s15 = inlined_call_operand.vmem [shape: f32[12,16], index: 15, kind: input, shape index: {}]   ;;  %s9837_s16 = inlined_call_operand.vmem [shape: f32[12,16], index: 16, kind: input, shape index: {}]   ;;  %s9838_s17 = inlined_call_operand.vmem [shape: f32[16,8], index: 17, kind: input, shape index: {}]   ;;  %s9839_s18 = inlined_call_operand.vmem [shape: f32[12,8], index: 18, kind: input, shape index: {}]   ;;  %s9840_s19 = inlined_call_operand.hbm [shape: f32[2,8,64], index: 19, kind: output, shape index: {0}]   ;;  %s9841_s20 = inlined_call_operand.vmem [shape: f32[12,128], index: 20, kind: output, shape index: {1}]  }
   0x1   :  { %9857 = sst [smem:[#allocation6_spill]] %s9821_s0 }
   0x2   :  { %9858 = sst [smem:[#allocation7_spill]] %s9822_s1 }
   0x3   :  { %9859 = sst [smem:[#allocation8_spill]] %s9823_s2 }
   0x4   :  { %9860 = sst [smem:[#allocation9_spill]] %s9824_s3 }
   0x5   :  { %9861 = sst [smem:[#allocation10_spill]] %s9825_s4 }
   0x6   :  { %s9862_s23 = sld [smem:[#allocation8_spill]]  ;;  %v7397_v2 = vmov 0.0   ;;  %v7398_v3 = vmov 0   ;;  %s9863_s26 = sld [smem:[#allocation10_spill]]  ;;  %vm7399_vm0 = vmmov 0   ;;  %vm105_vm1 = vcmask 261120  }
   0x7   :  { %6336 = vmatprep.subr.bf16.mxu1 %v7397_v2  ;;  %141 = vmatprep.mubr.bf16.mxu0 %v7398_v3  ;;  %s9864_s22 = sld [smem:[#allocation6_spill]]  ;;  %v6783_v11 = vld [vmem:[%s9826_s5] sm:$0xff]   ;;  %v6784_v12 = vld [vmem:[%s9826_s5 + $0x8] sm:$0xff]  }
   0x8   :  { %6733 = vset.pattern.permute.xlu0 %v7398_v3  ;;  %6340 = vmatprep.mubr.msk.bf16.mxu1 %vm7399_vm0, %v7397_v2 }
   0xc   :  { %v6775_v0 = vld [vmem:[%s9862_s23 + $0x4] ss:$8 sps:$4 sm:$0xff]   ;;  %v6777_v1 = vld [vmem:[%s9862_s23] ss:$8 sps:$4 sm:$0xff]   ;;  %v6779_v5 = vld [vmem:[%s9862_s23 + $0x14] ss:$8 sps:$4 sm:$0xff]  }
   0xd   :  { %109 = vmatprep.subr.bf16.mxu0 %v6775_v0  ;;  %v6778_v4 = vld [vmem:[%s9863_s26] sm:$0xff]   ;;  %v6781_v6 = vld [vmem:[%s9862_s23 + $0x10] ss:$8 sps:$4 sm:$0xff]   ;;  %v6782_v7 = vld [vmem:[%s9863_s26 + $0x8] sm:$0xff]  }
   0xe   :  { %110 = vmatpush1.bf16.msra.mxu0 %v6777_v1  ;;  %6337 = vmatpush3.bf16.msra.mxu1 %v6778_v4  ;;  %v66_v8 = vld [vmem:[%s9864_s22] sm:$0xff]  ;;  %v67_v9 = vld [vmem:[%s9864_s22 + $0x8] sm:$0xff] }
   0xf   :  { %111 = vmatprep.subr.bf16.mxu0 %v6779_v5  ;;  %6338 = vmatprep.subr.bf16.mxu1 %v7397_v2  ;;  %v68_v10 = vpack.c.bf16 %v67_v9, %v66_v8 }
  0x12   :  { %112 = vmatpush1.bf16.msra.mxu0 %v6781_v6  ;;  %6339 = vmatpush3.bf16.msra.mxu1 %v6782_v7 }
  0x13   :  { %6344 = vmatprep.subr.bf16.mxu0 %v7397_v2  ;;  %6352 = vmatprep.subr.bf16.mxu1 %v7397_v2 }
  0x15   :  { %6079 = vmatmul.mubr.msk.bf16.vlgmr.msra.gmra.mrb[0].mxu0 %vm105_vm1, %v68_v10  ;;  %6341 = vmatmul.mubr.bf16.vlgmr.msra.gmra.mrb[0].mxu1 %v7398_v3 }
  0x16   :  { %6345 = vmatpush3.bf16.msra.mxu0 %v6783_v11  ;;  %6348 = vmatprep.mubr.msk.bf16.mxu0 %vm7399_vm0, %v7397_v2 }
  0x17   :  { %6346 = vmatprep.subr.bf16.mxu0 %v7397_v2  ;;  %6356 = vmatprep.mubr.msk.bf16.mxu1 %vm7399_vm0, %v7397_v2 }
  0x1a   :  { %6347 = vmatpush3.bf16.msra.mxu0 %v6784_v12 }
  0x1b   :  { %6360 = vmatprep.subr.bf16.mxu0 %v7397_v2 }
  0x1d   :  { %6349 = vmatmul.mubr.bf16.vlgmr.msra.gmra.mrb[4].mxu0 %v7398_v3 }
  0x1e   :  { %6364 = vmatprep.mubr.msk.bf16.mxu0 %vm7399_vm0, %v7397_v2 }
  0x1f   :  { %26 = vsyncpa [#allocation4], 0  ;;  %v9846_v13 = vlaneseq  ;;  %s9865_s29 = sld [smem:[#allocation9_spill]]  ;;  %s7400_s30 = smov 32   ;;  %v7401_v44 = vmov 7   ;;  %vm432_vm2 = vcmask 1041409  }
  0x20   :  { %6734 = vset.pattern.permute.xlu1 %v7401_v44  ;;  %s9866_s1 = sld [smem:[#allocation7_spill]]  ;;  %s7402_s4 = smov 64   ;;  %vm407_vm3 = vcmask 253952   ;;  %vm418_vm4 = vcmask 523527   ;;  %vm715_vm5 = vcmask 254977   ;;  %vm726_vm6 = vcmask 522502  }
  0x21   :  { %v76_v14 = vshrl.u32 %v9846_v13, 7  ;;  %s7409_s2 = smov 96   ;;  %vm1024_vm7 = vcmask 256002   ;;  %vm1035_vm8 = vcmask 521477   ;;  %vm1334_vm9 = vcmask 257027  }
  0x22   :  { %vm1345_vm10 = vcmask 520452   ;;  %vm1644_vm11 = vcmask 258052   ;;  %vm9853_vm12 = vcmask 519427   ;;  %vm9854_vm13 = vcmask 259077  }
  0x23   :  { %v7577_v15 = vsub.s32 0, %v76_v14  ;;  %v7583_v19 = vsub.s32 1, %v76_v14  ;;  %vm9855_vm14 = vcmask 518402   ;;  %vm9856_vm15 = vcmask 260102  }
  0x25   :  { %v73_v16 = vld [vmem:[%s9865_s29] sm:$0x3]  ;;  %s7418_s29 = smov 102  }
  0x26   :  { %v78_v18 = vrot.slane %v73_v16, %v7577_v15  ;;  %v82_v29 = vrot.slane %v73_v16, %v7583_v19  ;;  %v280_v14 = vld [vmem:[%s9866_s1] sm:$0x3] }
  0xe8   :  { %v143_v17 = vpop.f32.mrb[0].mxu0  ;;  %v205_v21 = vpop.f32.mrb[0].mxu1 }
  0xe9   :  { %v145_v20 = vpop.f32.mrb[1].mxu0  ;;  %v268_v22 = vrot.slane %v205_v21, 1  ;;  %v6342_v24 = vpop.f32.mrb[1].mxu1  ;;  %v7593_v37 = vadd.f32 %v143_v17, %v78_v18 }
  0xea   :  { %v147_v23 = vpop.f32.mrb[2].mxu0  ;;  %v208_v27 = vpop.f32.mrb[2].mxu1  ;;  %v7589_v32 = vadd.f32 %v145_v20, %v82_v29 }
  0xeb   :  { %v7585_v25 = vadd.f32 %v147_v23, %v78_v18  ;;  %v149_v26 = vpop.f32.mrb[3].mxu0  ;;  %v6343_v28 = vpop.f32.mrb[3].mxu1  ;;  %v271_v42 = vadd.f32 %v205_v21, %v7593_v37 }
  0xec   :  { %v7591_v33 = vadd.f32 %v149_v26, %v82_v29 }
  0xed   :  { %v272_v30 = vadd.f32 %v268_v22, %v7585_v25  ;;  %v281_v53 = vsub.f32 0.0, %v271_v42 }
  0xef   :  { %6861 = vtanh.f32 %v272_v30  ;;  %v282_v48 = vsub.f32 0.0, %v272_v30  ;;  %v283_v55 = vmul.f32 1.442695, %v281_v53 }
  0xf0   :  { %v261_v31 = vpop.f32.mrb[4].mxu0 }
  0xf1   :  { %v274_v34 = vrot.slane %v261_v31, 1  ;;  %v275_v35 = vrot.slane %v261_v31, 2  ;;  %v6350_v36 = vpop.f32.mrb[5].mxu0  ;;  %v285_v49 = vmul.f32 1.442695, %v282_v48 }
  0xf2   :  { %v264_v38 = vpop.f32.mrb[6].mxu0  ;;  %v6785_v36 = vld [vmem:[%s9826_s5] sm:$0xff]  }
  0xf3   :  { %v278_v39 = vadd.f32 %v274_v34, %v7589_v32  ;;  %v279_v40 = vadd.f32 %v275_v35, %v7591_v33  ;;  %v6351_v41 = vpop.f32.mrb[7].mxu0  ;;  %v6786_v38 = vld [vmem:[%s9863_s26] sm:$0xff]   ;;  %6361 = vmatpush3.bf16.msra.mxu0 %v6785_v36 }
  0xf4   :  { %6353 = vmatpush3.bf16.msra.mxu1 %v6786_v38  ;;  %6362 = vmatprep.subr.bf16.mxu0 %v7397_v2  ;;  %v6788_v41 = vld [vmem:[%s9863_s26 + $0x8] sm:$0xff]  }
  0xf5   :  { %6863 = vtanh.f32 %v278_v39  ;;  %v340_v50 = vsub.f32 0.0, %v278_v39  ;;  %v341_v51 = vsub.f32 0.0, %v279_v40  ;;  %6354 = vmatprep.subr.bf16.mxu1 %v7397_v2 }
  0xf6   :  { %6865 = vtanh.f32 %v279_v40  ;;  %v6787_v40 = vld [vmem:[%s9826_s5 + $0x8] sm:$0xff]  }
  0xf7   :  { %6867 = vtanh.f32 %v271_v42  ;;  %v342_v52 = vmul.f32 1.442695, %v340_v50  ;;  %v344_v54 = vmul.f32 1.442695, %v341_v51  ;;  %6363 = vmatpush3.bf16.msra.mxu0 %v6787_v40 }
  0xf8   :  { %6869 = vpow2.f32 %v285_v49  ;;  %6355 = vmatpush3.bf16.msra.mxu1 %v6788_v41  ;;  %6376 = vmatprep.subr.bf16.mxu0 %v7397_v2  ;;  %v7403_v41 = vmov 6  }
  0xf9   :  { %v6862_v43 = vpop.eup %6861  ;;  %6871 = vpow2.f32 %v342_v52  ;;  %6368 = vmatprep.subr.bf16.mxu1 %v7397_v2 }
  0xfa   :  { %301 = vrot.lane.b32.xlu0 %v6862_v43, %s7400_s30  ;;  %6873 = vpow2.f32 %v344_v54 }
  0xfb   :  { %6875 = vpow2.f32 %v283_v55 }
  0xff   :  { %v6864_v45 = vpop.eup %6863 }
 0x100   :  { %v6866_v46 = vpop.eup %6865  ;;  %358 = vrot.lane.b32.xlu0 %v6864_v45, %s7400_s30 }
 0x101   :  { %360 = vrot.lane.b32.xlu1 %v6866_v46, %s7400_s30  ;;  %v6868_v47 = vpop.eup %6867 }
 0x102   :  { %v6870_v56 = vpop.eup %6869 }
 0x103   :  { %v288_v57 = vadd.f32 1.0, %v6870_v56  ;;  %v6872_v58 = vpop.eup %6871 }
 0x104   :  { %v6874_v59 = vpop.eup %6873  ;;  %v346_v60 = vadd.f32 1.0, %v6872_v58 }
 0x105   :  { %299 = vrot.lane.b32.xlu1 %v6868_v47, %s7400_s30  ;;  %6877 = vrcp.f32 %v288_v57  ;;  %v347_v61 = vadd.f32 1.0, %v6874_v59  ;;  %v6876_v62 = vpop.eup %6875 }
 0x106   :  { %6879 = vrcp.f32 %v346_v60  ;;  %v287_v63 = vadd.f32 1.0, %v6876_v62 }
 0x107   :  { %6881 = vrcp.f32 %v347_v61 }
 0x108   :  { %6883 = vrcp.f32 %v287_v63 }
 0x10f   :  { %v6878_v0 = vpop.eup %6877 }
 0x110   :  { %v6880_v5 = vpop.eup %6879  ;;  %v296_v17 = vmul.f32 0.0, %v6878_v0 }
 0x111   :  { %v6882_v7 = vpop.eup %6881  ;;  %v354_v21 = vmul.f32 0.0, %v6880_v5 }
 0x112   :  { %v6884_v11 = vpop.eup %6883  ;;  %v355_v22 = vmul.f32 0.0, %v6882_v7 }
 0x113   :  { %v295_v28 = vmul.f32 0.0, %v6884_v11 }
 0x16c   :  { %v302_v1 = vpop.permute.xlu0 %301 }
 0x16d   :  { %v306_v4 = vmul.f32 %v6878_v0, %v302_v1 }
 0x16f   :  { %311 = vrot.lane.b32.xlu0 %v306_v4, %s7400_s30 }
 0x172   :  { %v359_v6 = vpop.permute.xlu0 %358 }
 0x173   :  { %v361_v8 = vpop.permute.xlu1 %360  ;;  %v364_v9 = vmul.f32 %v6880_v5, %v359_v6 }
 0x174   :  { %v365_v10 = vmul.f32 %v6882_v7, %v361_v8 }
 0x175   :  { %368 = vrot.lane.b32.xlu1 %v364_v9, %s7400_s30 }
 0x176   :  { %370 = vrot.lane.b32.xlu0 %v365_v10, %s7400_s30 }
 0x177   :  { %v300_v12 = vpop.permute.xlu1 %299 }
 0x178   :  { %v305_v16 = vmul.f32 %v6884_v11, %v300_v12 }
 0x17a   :  { %331 = vperm.xlu0 %6733, %v280_v14   ;;  %309 = vrot.lane.b32.xlu1 %v305_v16, %s7400_s30 }
 0x17e   :  { %389 = vperm.xlu1 %6734, %v280_v14   ;;  %6736 = vset.pattern.permute.xlu0 %v7403_v41 }
 0x1e1   :  { %v312_v18 = vpop.permute.xlu0 %311 }
 0x1e2   :  { %v7610_v20 = vadd.f32 %v312_v18, %v296_v17 }
 0x1e4   :  { %6885 = vtanh.f32 %v7610_v20 }
 0x1e7   :  { %v369_v23 = vpop.permute.xlu1 %368 }
 0x1e8   :  { %v371_v24 = vpop.permute.xlu0 %370  ;;  %v7613_v26 = vadd.f32 %v369_v23, %v354_v21 }
 0x1e9   :  { %v7615_v27 = vadd.f32 %v371_v24, %v355_v22 }
 0x1ea   :  { %6887 = vtanh.f32 %v7613_v26 }
 0x1eb   :  { %6889 = vtanh.f32 %v7615_v27 }
 0x1ec   :  { %v310_v29 = vpop.permute.xlu1 %309 }
 0x1ed   :  { %v7619_v30 = vadd.f32 %v310_v29, %v295_v28 }
 0x1ee   :  { %v6886_v31 = vpop.eup %6885 }
 0x1ef   :  { %6891 = vtanh.f32 %v7619_v30  ;;  %323 = vrot.lane.b32.xlu1 %v6886_v31, %s7400_s30 }
 0x1f4   :  { %v6888_v34 = vpop.eup %6887 }
 0x1f5   :  { %v6890_v35 = vpop.eup %6889  ;;  %380 = vrot.lane.b32.xlu0 %v6888_v34, %s7400_s30 }
 0x1f6   :  { %382 = vrot.lane.b32.xlu1 %v6890_v35, %s7400_s30 }
 0x1f9   :  { %v6892_v39 = vpop.eup %6891  ;;  %v7644_v45 = vpop.permute.xlu0 %331 }
 0x1fa   :  { %321 = vrot.lane.b32.xlu0 %v6892_v39, %s7400_s30  ;;  %v333_v47 = vrot.slane %v7644_v45, 1 }
 0x1fd   :  { %v7642_v42 = vpop.permute.xlu1 %389 }
 0x1fe   :  { %v391_v50 = vrot.slane %v7642_v42, 1  ;;  %v392_v53 = vrot.slane %v7642_v42, 2 }
 0x261   :  { %v324_v43 = vpop.permute.xlu1 %323 }
 0x262   :  { %v328_v46 = vmul.f32 %v6878_v0, %v324_v43  ;;  %v7404_v43 = vmov 1  }
 0x263   :  { %6735 = vset.pattern.permute.xlu1 %v7404_v43 }
 0x264   :  { %v7649_v48 = vmul.f32 %v333_v47, %v328_v46 }
 0x266   :  { %v422_v56 = vpack.c.bf16 %v7649_v48, %v7649_v48 }
 0x267   :  { %v381_v49 = vpop.permute.xlu0 %380 }
 0x268   :  { %v386_v51 = vmul.f32 %v6880_v5, %v381_v49  ;;  %v383_v52 = vpop.permute.xlu1 %382  ;;  %v430_v63 = vunpack.c.l.b16 %v422_v56 }
 0x269   :  { %v387_v54 = vmul.f32 %v6882_v7, %v383_v52 }
 0x26a   :  { %v7655_v55 = vmul.f32 %v391_v50, %v386_v51  ;;  %v431_v7 = vrot.slane %v430_v63, 7 }
 0x26b   :  { %v7661_v57 = vmul.f32 %v392_v53, %v387_v54 }
 0x26c   :  { %v492_v58 = vpack.c.bf16 %v7655_v55, %v7655_v55  ;;  %v322_v59 = vpop.permute.xlu0 %321 }
 0x26d   :  { %v493_v60 = vpack.c.bf16 %v7661_v57, %v7661_v57  ;;  %v327_v61 = vmul.f32 %v6884_v11, %v322_v59 }
 0x26e   :  { %v500_v62 = vunpack.c.l.b16 %v492_v58 }
 0x26f   :  { %v501_v0 = vunpack.c.l.b16 %v493_v60  ;;  %v7668_v1 = vmul.f32 %v7644_v45, %v327_v61 }
 0x270   :  { %v502_v4 = vrot.slane %v500_v62, 7 }
 0x271   :  { %v503_v5 = vrot.slane %v501_v0, 6  ;;  %v421_v6 = vpack.c.bf16 %v7668_v1, %v7668_v1 }
 0x273   :  { %v429_v8 = vunpack.c.l.b16 %v421_v6  ;;  %v504_v9 = vsel %vm432_vm2, %v503_v5, %v502_v4 }
 0x274   :  { %v505_v10 = vpack.c.b16 %v504_v9, %v504_v9 }
 0x275   :  { %v433_v12 = vsel %vm432_vm2, %v431_v7, %v429_v8 }
 0x276   :  { %506 = vrot.lane.b32.xlu0 %v505_v10, %s7402_s4  ;;  %v434_v11 = vpack.c.b16 %v433_v12, %v433_v12 }
 0x278   :  { %435 = vrot.lane.b32.xlu1 %v434_v11, %s7402_s4 }
 0x2e8   :  { %v507_v14 = vpop.permute.xlu0 %506 }
 0x2e9   :  { %6365 = vmatmul.mubr.msk.bf16.vlgmr.msra.gmra.mrb[8].mxu0 %vm105_vm1, %v507_v14 }
 0x2ea   :  { %v436_v16 = vpop.permute.xlu1 %435  ;;  %6380 = vmatprep.mubr.msk.bf16.mxu0 %vm7399_vm0, %v7397_v2 }
 0x2eb   :  { %6357 = vmatmul.mubr.msk.bf16.vlgmr.msra.gmra.mrb[4].mxu1 %vm105_vm1, %v436_v16 }
 0x2ec   :  { %6372 = vmatprep.mubr.msk.bf16.mxu1 %vm7399_vm0, %v7397_v2 }
 0x3bc   :  { %v557_v17 = vpop.f32.mrb[8].mxu0 }
 0x3bd   :  { %v570_v18 = vrot.slane %v557_v17, 2  ;;  %v6366_v21 = vpop.f32.mrb[9].mxu0  ;;  %v571_v24 = vrot.slane %v557_v17, 3 }
 0x3be   :  { %v486_v22 = vpop.f32.mrb[4].mxu1  ;;  %v560_v23 = vpop.f32.mrb[10].mxu0 }
 0x3bf   :  { %v574_v28 = vadd.f32 %v570_v18, %v7589_v32  ;;  %v564_v29 = vrot.slane %v486_v22, 7  ;;  %v6358_v31 = vpop.f32.mrb[5].mxu1  ;;  %v6367_v34 = vpop.f32.mrb[11].mxu0  ;;  %v568_v38 = vadd.f32 %v486_v22, %v7585_v25  ;;  %v575_v40 = vadd.f32 %v571_v24, %v7591_v33 }
 0x3c0   :  { %v489_v35 = vpop.f32.mrb[6].mxu1  ;;  %v576_v31 = vld [vmem:[%s9866_s1] sm:$0x3]  ;;  %v338_v34 = vmul.f32 %v7644_v45, %v7619_v30 }
 0x3c1   :  { %6893 = vtanh.f32 %v574_v28  ;;  %v567_v36 = vadd.f32 %v564_v29, %v7593_v37  ;;  %v6359_v39 = vpop.f32.mrb[7].mxu1  ;;  %v642_v54 = vsub.f32 0.0, %v574_v28  ;;  %v578_v59 = vsub.f32 0.0, %v568_v38 }
 0x3c2   :  { %v643_v60 = vsub.f32 0.0, %v575_v40  ;;  %v397_v35 = vmul.f32 %v391_v50, %v7613_v26 }
 0x3c3   :  { %6895 = vtanh.f32 %v567_v36  ;;  %v577_v56 = vsub.f32 0.0, %v567_v36  ;;  %v644_v58 = vmul.f32 1.442695, %v642_v54  ;;  %v581_v62 = vmul.f32 1.442695, %v578_v59 }
 0x3c4   :  { %6897 = vtanh.f32 %v568_v38  ;;  %v646_v63 = vmul.f32 1.442695, %v643_v60  ;;  %v398_v36 = vmul.f32 %v392_v53, %v7615_v27  ;;  %v593_v38 = vrot.slane %v338_v34, 7  ;;  %v6789_v60 = vld [vmem:[%s9826_s5] sm:$0xff]  }
 0x3c5   :  { %6899 = vtanh.f32 %v575_v40  ;;  %v579_v61 = vmul.f32 1.442695, %v577_v56  ;;  %v658_v39 = vrot.slane %v397_v35, 1  ;;  %6377 = vmatpush3.bf16.msra.mxu0 %v6789_v60 }
 0x3c6   :  { %6901 = vpow2.f32 %v644_v58  ;;  %v659_v54 = vrot.slane %v398_v36, 1  ;;  %6378 = vmatprep.subr.bf16.mxu0 %v7397_v2 }
 0x3c7   :  { %6903 = vpow2.f32 %v579_v61  ;;  %v6790_v61 = vld [vmem:[%s9863_s26] sm:$0xff]  }
 0x3c8   :  { %6905 = vpow2.f32 %v581_v62  ;;  %6369 = vmatpush3.bf16.msra.mxu1 %v6790_v61 }
 0x3c9   :  { %6907 = vpow2.f32 %v646_v63  ;;  %v6791_v63 = vld [vmem:[%s9826_s5 + $0x8] sm:$0xff]   ;;  %6370 = vmatprep.subr.bf16.mxu1 %v7397_v2 }
 0x3ca   :  { %6379 = vmatpush3.bf16.msra.mxu0 %v6791_v63 }
 0x3cb   :  { %v6894_v46 = vpop.eup %6893  ;;  %6392 = vmatprep.subr.bf16.mxu0 %v7397_v2 }
 0x3cc   :  { %666 = vrot.lane.b32.xlu0 %v6894_v46, %s7400_s30 }
 0x3cd   :  { %v6896_v49 = vpop.eup %6895 }
 0x3ce   :  { %601 = vrot.lane.b32.xlu1 %v6896_v49, %s7400_s30  ;;  %v6898_v51 = vpop.eup %6897  ;;  %v339_v49 = vmul.f32 %v333_v47, %v7610_v20 }
 0x3cf   :  { %v6900_v52 = vpop.eup %6899 }
 0x3d0   :  { %603 = vrot.lane.b32.xlu0 %v6898_v51, %s7400_s30  ;;  %v6902_v0 = vpop.eup %6901  ;;  %v594_v27 = vrot.slane %v339_v49, 7 }
 0x3d1   :  { %v6904_v4 = vpop.eup %6903  ;;  %v648_v5 = vadd.f32 1.0, %v6902_v0  ;;  %v6792_v0 = vld [vmem:[%s9863_s26 + $0x8] sm:$0xff]  }
 0x3d2   :  { %668 = vrot.lane.b32.xlu1 %v6900_v52, %s7400_s30  ;;  %v6906_v6 = vpop.eup %6905  ;;  %v583_v7 = vadd.f32 1.0, %v6904_v4  ;;  %6371 = vmatpush3.bf16.msra.mxu1 %v6792_v0 }
 0x3d3   :  { %v6908_v8 = vpop.eup %6907  ;;  %6909 = vrcp.f32 %v648_v5  ;;  %v584_v9 = vadd.f32 1.0, %v6906_v6  ;;  %6384 = vmatprep.subr.bf16.mxu1 %v7397_v2 }
 0x3d4   :  { %v649_v10 = vadd.f32 1.0, %v6908_v8  ;;  %6911 = vrcp.f32 %v583_v7 }
 0x3d5   :  { %6913 = vrcp.f32 %v584_v9 }
 0x3d6   :  { %6915 = vrcp.f32 %v649_v10 }
 0x3dd   :  { %v7692_v12 = vpop.eup %6909 }
 0x3de   :  { %v7695_v16 = vpop.eup %6911  ;;  %v662_v51 = vmul.f32 %v7692_v12, %v658_v39 }
 0x3df   :  { %v7699_v21 = vpop.eup %6913  ;;  %v597_v46 = vmul.f32 %v7695_v16, %v593_v38 }
 0x3e0   :  { %v6916_v24 = vpop.eup %6915  ;;  %v598_v56 = vmul.f32 %v7699_v21, %v594_v27 }
 0x3e1   :  { %v663_v42 = vmul.f32 %v6916_v24, %v659_v54 }
 0x43e   :  { %v667_v11 = vpop.permute.xlu0 %666 }
 0x43f   :  { %v672_v14 = vmul.f32 %v7692_v12, %v667_v11 }
 0x440   :  { %v602_v17 = vpop.permute.xlu1 %601 }
 0x441   :  { %v607_v18 = vmul.f32 %v7695_v16, %v602_v17  ;;  %676 = vrot.lane.b32.xlu0 %v672_v14, %s7400_s30 }
 0x442   :  { %v604_v22 = vpop.permute.xlu0 %603 }
 0x443   :  { %v608_v23 = vmul.f32 %v7699_v21, %v604_v22  ;;  %611 = vrot.lane.b32.xlu1 %v607_v18, %s7400_s30 }
 0x444   :  { %v669_v28 = vpop.permute.xlu1 %668 }
 0x445   :  { %v673_v29 = vmul.f32 %v6916_v24, %v669_v28  ;;  %613 = vrot.lane.b32.xlu0 %v608_v23, %s7400_s30 }
 0x447   :  { %678 = vrot.lane.b32.xlu1 %v673_v29, %s7400_s30 }
 0x449   :  { %697 = vperm.xlu0 %6736, %v576_v31  }
 0x44b   :  { %633 = vperm.xlu1 %6735, %v576_v31  }
 0x4b3   :  { %v677_v40 = vpop.permute.xlu0 %676 }
 0x4b4   :  { %v7723_v26 = vadd.f32 %v677_v40, %v662_v51 }
 0x4b5   :  { %v612_v30 = vpop.permute.xlu1 %611 }
 0x4b6   :  { %v7721_v52 = vadd.f32 %v612_v30, %v597_v46 }
 0x4b7   :  { %v614_v50 = vpop.permute.xlu0 %613 }
 0x4b8   :  { %6917 = vtanh.f32 %v7721_v52  ;;  %v7730_v20 = vadd.f32 %v614_v50, %v598_v56 }
 0x4b9   :  { %v679_v53 = vpop.permute.xlu1 %678  ;;  %6919 = vtanh.f32 %v7723_v26 }
 0x4ba   :  { %v7727_v58 = vadd.f32 %v679_v53, %v663_v42 }
 0x4bc   :  { %6921 = vtanh.f32 %v7727_v58 }
 0x4bd   :  { %6923 = vtanh.f32 %v7730_v20 }
 0x4c2   :  { %v6918_v45 = vpop.eup %6917 }
 0x4c3   :  { %623 = vrot.lane.b32.xlu1 %v6918_v45, %s7400_s30  ;;  %v6920_v47 = vpop.eup %6919 }
 0x4c6   :  { %v6922_v59 = vpop.eup %6921 }
 0x4c7   :  { %690 = vrot.lane.b32.xlu0 %v6922_v59, %s7400_s30  ;;  %688 = vrot.lane.b32.xlu1 %v6920_v47, %s7400_s30  ;;  %v6924_v62 = vpop.eup %6923 }
 0x4c8   :  { %v7756_v5 = vpop.permute.xlu0 %697 }
 0x4c9   :  { %v699_v14 = vrot.slane %v7756_v5, 2  ;;  %v700_v17 = vrot.slane %v7756_v5, 3 }
 0x4ca   :  { %v7754_v4 = vpop.permute.xlu1 %633 }
 0x4cb   :  { %625 = vrot.lane.b32.xlu1 %v6924_v62, %s7400_s30  ;;  %v635_v7 = vrot.slane %v7754_v4, 7 }
 0x535   :  { %v624_v6 = vpop.permute.xlu1 %623 }
 0x536   :  { %v629_v8 = vmul.f32 %v7695_v16, %v624_v6 }
 0x538   :  { %v7762_v9 = vmul.f32 %v635_v7, %v629_v8 }
 0x539   :  { %v691_v10 = vpop.permute.xlu0 %690  ;;  %v689_v11 = vpop.permute.xlu1 %688 }
 0x53a   :  { %v695_v18 = vmul.f32 %v6916_v24, %v691_v10  ;;  %v694_v22 = vmul.f32 %v7692_v12, %v689_v11  ;;  %v729_v23 = vpack.c.bf16 %v7762_v9, %v7762_v9 }
 0x53c   :  { %v7771_v28 = vmul.f32 %v700_v17, %v695_v18  ;;  %v7775_v16 = vmul.f32 %v699_v14, %v694_v22  ;;  %v737_v34 = vunpack.c.l.b16 %v729_v23  ;;  %v9849_v23 = vmov 5  }
 0x53d   :  { %v626_v29 = vpop.permute.xlu1 %625  ;;  %6738 = vset.pattern.permute.xlu1 %v9849_v23 }
 0x53e   :  { %v800_v31 = vpack.c.bf16 %v7771_v28, %v7771_v28  ;;  %v799_v24 = vpack.c.bf16 %v7775_v16, %v7775_v16  ;;  %v630_v12 = vmul.f32 %v7699_v21, %v626_v29  ;;  %v739_v49 = vrot.slane %v737_v34, 1 }
 0x53f   :  { %v9851_v29 = vmov 2  }
 0x540   :  { %v808_v35 = vunpack.c.l.b16 %v800_v31  ;;  %v807_v36 = vunpack.c.l.b16 %v799_v24  ;;  %v7783_v38 = vmul.f32 %v7754_v4, %v630_v12  ;;  %6737 = vset.pattern.permute.xlu0 %v9851_v29 }
 0x542   :  { %v810_v39 = vrot.slane %v808_v35, 5  ;;  %v809_v40 = vrot.slane %v807_v36, 6  ;;  %v730_v46 = vpack.c.bf16 %v7783_v38, %v7783_v38 }
 0x544   :  { %v738_v51 = vunpack.c.l.b16 %v730_v46  ;;  %v811_v30 = vsel %vm432_vm2, %v810_v39, %v809_v40 }
 0x545   :  { %v812_v54 = vpack.c.b16 %v811_v30, %v811_v30 }
 0x546   :  { %v740_v27 = vsel %vm432_vm2, %v738_v51, %v739_v49 }
 0x547   :  { %813 = vrot.lane.b32.xlu1 %v812_v54, %s7402_s4  ;;  %v741_v21 = vpack.c.b16 %v740_v27, %v740_v27 }
 0x549   :  { %742 = vrot.lane.b32.xlu0 %v741_v21, %s7402_s4 }
 0x5b9   :  { %v814_v42 = vpop.permute.xlu1 %813 }
 0x5ba   :  { %6381 = vmatmul.mubr.msk.bf16.vlgmr.msra.gmra.mrb[12].mxu0 %vm105_vm1, %v814_v42 }
 0x5bb   :  { %v743_v50 = vpop.permute.xlu0 %742  ;;  %6396 = vmatprep.mubr.msk.bf16.mxu0 %vm7399_vm0, %v7397_v2 }
 0x5bc   :  { %6373 = vmatmul.mubr.msk.bf16.vlgmr.msra.gmra.mrb[8].mxu1 %vm105_vm1, %v743_v50 }
 0x5bd   :  { %6388 = vmatprep.mubr.msk.bf16.mxu1 %vm7399_vm0, %v7397_v2 }
 0x68d   :  { %v864_v53 = vpop.f32.mrb[12].mxu0 }
 0x68e   :  { %v6382_v56 = vpop.f32.mrb[13].mxu0  ;;  %v878_v59 = vrot.slane %v864_v53, 3  ;;  %v879_v0 = vrot.slane %v864_v53, 4 }
 0x68f   :  { %v793_v45 = vpop.f32.mrb[8].mxu1  ;;  %v867_v47 = vpop.f32.mrb[14].mxu0 }
 0x690   :  { %v871_v60 = vrot.slane %v793_v45, 6  ;;  %v872_v61 = vrot.slane %v793_v45, 7  ;;  %v6374_v62 = vpop.f32.mrb[9].mxu1  ;;  %v6383_v63 = vpop.f32.mrb[15].mxu0  ;;  %v882_v18 = vadd.f32 %v878_v59, %v7589_v32  ;;  %v883_v22 = vadd.f32 %v879_v0, %v7591_v33 }
 0x691   :  { %v796_v6 = vpop.f32.mrb[10].mxu1 }
 0x692   :  { %v875_v8 = vadd.f32 %v871_v60, %v7593_v37  ;;  %v6375_v10 = vpop.f32.mrb[11].mxu1  ;;  %v876_v11 = vadd.f32 %v872_v61, %v7585_v25  ;;  %v951_v39 = vsub.f32 0.0, %v882_v18  ;;  %v952_v46 = vsub.f32 0.0, %v883_v22 }
 0x694   :  { %6925 = vtanh.f32 %v875_v8  ;;  %v885_v35 = vsub.f32 0.0, %v875_v8  ;;  %v886_v36 = vsub.f32 0.0, %v876_v11  ;;  %v953_v51 = vmul.f32 1.442695, %v951_v39 }
 0x695   :  { %6927 = vtanh.f32 %v876_v11  ;;  %v955_v30 = vmul.f32 1.442695, %v952_v46 }
 0x696   :  { %6929 = vtanh.f32 %v882_v18  ;;  %v887_v40 = vmul.f32 1.442695, %v885_v35  ;;  %v889_v49 = vmul.f32 1.442695, %v886_v36  ;;  %v706_v35 = vmul.f32 %v700_v17, %v7727_v58 }
 0x697   :  { %6931 = vtanh.f32 %v883_v22  ;;  %v884_v22 = vld [vmem:[%s9866_s1] sm:$0x3] }
 0x698   :  { %6933 = vpow2.f32 %v887_v40 }
 0x699   :  { %6935 = vpow2.f32 %v889_v49 }
 0x69a   :  { %6937 = vpow2.f32 %v953_v51 }
 0x69b   :  { %6939 = vpow2.f32 %v955_v30 }
 0x69e   :  { %v6926_v31 = vpop.eup %6925 }
 0x69f   :  { %v6928_v24 = vpop.eup %6927  ;;  %909 = vrot.lane.b32.xlu0 %v6926_v31, %s7400_s30  ;;  %v640_v31 = vmul.f32 %v635_v7, %v7721_v52 }
 0x6a0   :  { %911 = vrot.lane.b32.xlu1 %v6928_v24, %s7400_s30  ;;  %v6930_v12 = vpop.eup %6929  ;;  %v641_v24 = vmul.f32 %v7754_v4, %v7730_v20  ;;  %v968_v4 = vrot.slane %v706_v35, 1 }
 0x6a1   :  { %v6932_v34 = vpop.eup %6931 }
 0x6a2   :  { %v6934_v54 = vpop.eup %6933  ;;  %v902_v36 = vrot.slane %v641_v24, 7 }
 0x6a3   :  { %975 = vrot.lane.b32.xlu0 %v6930_v12, %s7400_s30  ;;  %v6936_v27 = vpop.eup %6935  ;;  %v891_v21 = vadd.f32 1.0, %v6934_v54  ;;  %v705_v12 = vmul.f32 %v699_v14, %v7723_v26 }
 0x6a4   :  { %977 = vrot.lane.b32.xlu1 %v6932_v34, %s7400_s30  ;;  %v6938_v42 = vpop.eup %6937  ;;  %v892_v50 = vadd.f32 1.0, %v6936_v27  ;;  %v901_v34 = vrot.slane %v640_v31, 7 }
 0x6a5   :  { %v6940_v53 = vpop.eup %6939  ;;  %v957_v56 = vadd.f32 1.0, %v6938_v42  ;;  %6941 = vrcp.f32 %v891_v21  ;;  %v967_v7 = vrot.slane %v705_v12, 1  ;;  %v6793_v42 = vld [vmem:[%s9863_s26] sm:$0xff]  }
 0x6a6   :  { %v958_v45 = vadd.f32 1.0, %v6940_v53  ;;  %6943 = vrcp.f32 %v892_v50  ;;  %v6795_v50 = vld [vmem:[%s9826_s5] sm:$0xff]   ;;  %6385 = vmatpush3.bf16.msra.mxu1 %v6793_v42  ;;  %v6794_v53 = vld [vmem:[%s9863_s26 + $0x8] sm:$0xff]  }
 0x6a7   :  { %6945 = vrcp.f32 %v957_v56  ;;  %6393 = vmatpush3.bf16.msra.mxu0 %v6795_v50  ;;  %6386 = vmatprep.subr.bf16.mxu1 %v7397_v2 }
 0x6a8   :  { %6947 = vrcp.f32 %v958_v45  ;;  %6394 = vmatprep.subr.bf16.mxu0 %v7397_v2 }
 0x6aa   :  { %6387 = vmatpush3.bf16.msra.mxu1 %v6794_v53 }
 0x6ab   :  { %6400 = vmatprep.subr.bf16.mxu1 %v7397_v2 }
 0x6af   :  { %v7807_v47 = vpop.eup %6941 }
 0x6b0   :  { %v7809_v60 = vpop.eup %6943  ;;  %v905_v39 = vmul.f32 %v7807_v47, %v901_v34 }
 0x6b1   :  { %v7814_v0 = vpop.eup %6945  ;;  %v906_v40 = vmul.f32 %v7809_v60, %v902_v36 }
 0x6b2   :  { %v7817_v8 = vpop.eup %6947  ;;  %v971_v26 = vmul.f32 %v7814_v0, %v967_v7 }
 0x6b3   :  { %v972_v58 = vmul.f32 %v7817_v8, %v968_v4 }
 0x711   :  { %v910_v59 = vpop.permute.xlu0 %909 }
 0x712   :  { %v915_v61 = vmul.f32 %v7807_v47, %v910_v59  ;;  %v912_v62 = vpop.permute.xlu1 %911 }
 0x713   :  { %v916_v63 = vmul.f32 %v7809_v60, %v912_v62 }
 0x714   :  { %919 = vrot.lane.b32.xlu0 %v915_v61, %s7400_s30 }
 0x715   :  { %921 = vrot.lane.b32.xlu1 %v916_v63, %s7400_s30  ;;  %v976_v6 = vpop.permute.xlu0 %975 }
 0x716   :  { %v978_v10 = vpop.permute.xlu1 %977  ;;  %v981_v11 = vmul.f32 %v7814_v0, %v976_v6 }
 0x717   :  { %v982_v18 = vmul.f32 %v7817_v8, %v978_v10 }
 0x718   :  { %985 = vrot.lane.b32.xlu0 %v981_v11, %s7400_s30  ;;  %v6796_v11 = vld [vmem:[%s9826_s5 + $0x8] sm:$0xff]  }
 0x719   :  { %987 = vrot.lane.b32.xlu1 %v982_v18, %s7400_s30  ;;  %6395 = vmatpush3.bf16.msra.mxu0 %v6796_v11 }
 0x71a   :  { %6408 = vmatprep.subr.bf16.mxu0 %v7397_v2 }
 0x71c   :  { %941 = vperm.xlu0 %6737, %v884_v22  }
 0x71d   :  { %1006 = vperm.xlu1 %6738, %v884_v22  }
 0x786   :  { %v920_v46 = vpop.permute.xlu0 %919 }
 0x787   :  { %v922_v49 = vpop.permute.xlu1 %921  ;;  %v7839_v52 = vadd.f32 %v920_v46, %v905_v39 }
 0x788   :  { %v7841_v20 = vadd.f32 %v922_v49, %v906_v40 }
 0x789   :  { %6949 = vtanh.f32 %v7839_v52 }
 0x78a   :  { %6951 = vtanh.f32 %v7841_v20  ;;  %v986_v5 = vpop.permute.xlu0 %985 }
 0x78b   :  { %v988_v14 = vpop.permute.xlu1 %987  ;;  %v7847_v17 = vadd.f32 %v986_v5, %v971_v26 }
 0x78c   :  { %v7849_v51 = vadd.f32 %v988_v14, %v972_v58 }
 0x78d   :  { %6953 = vtanh.f32 %v7847_v17 }
 0x78e   :  { %6955 = vtanh.f32 %v7849_v51 }
 0x793   :  { %v6950_v30 = vpop.eup %6949 }
 0x794   :  { %v6952_v54 = vpop.eup %6951  ;;  %931 = vrot.lane.b32.xlu1 %v6950_v30, %s7400_s30 }
 0x795   :  { %933 = vrot.lane.b32.xlu0 %v6952_v54, %s7400_s30 }
 0x797   :  { %v6954_v27 = vpop.eup %6953 }
 0x798   :  { %v6956_v21 = vpop.eup %6955  ;;  %997 = vrot.lane.b32.xlu1 %v6954_v27, %s7400_s30 }
 0x799   :  { %999 = vrot.lane.b32.xlu0 %v6956_v21, %s7400_s30 }
 0x79b   :  { %v7871_v45 = vpop.permute.xlu0 %941 }
 0x79c   :  { %v7869_v56 = vpop.permute.xlu1 %1006  ;;  %v943_v61 = vrot.slane %v7871_v45, 6  ;;  %v944_v6 = vrot.slane %v7871_v45, 7 }
 0x79d   :  { %v1009_v34 = vrot.slane %v7869_v56, 4 }
 0x806   :  { %v932_v59 = vpop.permute.xlu1 %931 }
 0x807   :  { %v937_v62 = vmul.f32 %v7807_v47, %v932_v59  ;;  %v934_v63 = vpop.permute.xlu0 %933  ;;  %v1008_v47 = vrot.slane %v7869_v56, 3 }
 0x808   :  { %v938_v10 = vmul.f32 %v7809_v60, %v934_v63 }
 0x809   :  { %v7882_v18 = vmul.f32 %v943_v61, %v937_v62 }
 0x80a   :  { %v7886_v22 = vmul.f32 %v944_v6, %v938_v10  ;;  %v998_v31 = vpop.permute.xlu1 %997 }
 0x80b   :  { %v1038_v24 = vpack.c.bf16 %v7882_v18, %v7882_v18  ;;  %v1000_v60 = vpop.permute.xlu0 %999  ;;  %v1003_v12 = vmul.f32 %v7814_v0, %v998_v31 }
 0x80c   :  { %v1039_v35 = vpack.c.bf16 %v7886_v22, %v7886_v22  ;;  %v1004_v36 = vmul.f32 %v7817_v8, %v1000_v60 }
 0x80d   :  { %v1046_v39 = vunpack.c.l.b16 %v1038_v24  ;;  %v7899_v40 = vmul.f32 %v1008_v47, %v1003_v12 }
 0x80e   :  { %v1047_v46 = vunpack.c.l.b16 %v1039_v35  ;;  %v7903_v49 = vmul.f32 %v1009_v34, %v1004_v36 }
 0x80f   :  { %v1048_v0 = vrot.slane %v1046_v39, 2  ;;  %v1109_v7 = vpack.c.bf16 %v7899_v40, %v7899_v40 }
 0x810   :  { %v1049_v4 = vrot.slane %v1047_v46, 1  ;;  %v1110_v26 = vpack.c.bf16 %v7903_v49, %v7903_v49 }
 0x811   :  { %v1117_v58 = vunpack.c.l.b16 %v1109_v7 }
 0x812   :  { %v1118_v8 = vunpack.c.l.b16 %v1110_v26  ;;  %v1050_v5 = vsel %vm432_vm2, %v1049_v4, %v1048_v0  ;;  %v9847_v4 = vmov 3   ;;  %v9848_v26 = vmov 4  }
 0x813   :  { %v1119_v14 = vrot.slane %v1117_v58, 5  ;;  %v1051_v30 = vpack.c.b16 %v1050_v5, %v1050_v5  ;;  %6739 = vset.pattern.permute.xlu1 %v9847_v4  ;;  %6740 = vset.pattern.permute.xlu0 %v9848_v26 }
 0x814   :  { %v1120_v54 = vrot.slane %v1118_v8, 4 }
 0x815   :  { %1052 = vrot.lane.b32.xlu1 %v1051_v30, %s7402_s4 }
 0x816   :  { %v1121_v27 = vsel %vm432_vm2, %v1120_v54, %v1119_v14 }
 0x817   :  { %v1122_v21 = vpack.c.b16 %v1121_v27, %v1121_v27 }
 0x819   :  { %1123 = vrot.lane.b32.xlu0 %v1122_v21, %s7402_s4 }
 0x887   :  { %v1053_v42 = vpop.permute.xlu1 %1052 }
 0x888   :  { %6389 = vmatmul.mubr.msk.bf16.vlgmr.msra.gmra.mrb[12].mxu1 %vm105_vm1, %v1053_v42 }
 0x889   :  { %6404 = vmatprep.mubr.msk.bf16.mxu1 %vm7399_vm0, %v7397_v2 }
 0x88b   :  { %v1124_v50 = vpop.permute.xlu0 %1123 }
 0x88c   :  { %6397 = vmatmul.mubr.msk.bf16.vlgmr.msra.gmra.mrb[16].mxu0 %vm105_vm1, %v1124_v50 }
 0x88d   :  { %6412 = vmatprep.mubr.msk.bf16.mxu0 %vm7399_vm0, %v7397_v2 }
 0x95b   :  { %v1103_v53 = vpop.f32.mrb[12].mxu1 }
 0x95c   :  { %v1181_v59 = vrot.slane %v1103_v53, 5  ;;  %v1182_v62 = vrot.slane %v1103_v53, 6  ;;  %v6390_v63 = vpop.f32.mrb[13].mxu1 }
 0x95d   :  { %v1106_v10 = vpop.f32.mrb[14].mxu1 }
 0x95e   :  { %v1185_v11 = vadd.f32 %v1181_v59, %v7593_v37  ;;  %v1186_v31 = vadd.f32 %v1182_v62, %v7585_v25  ;;  %v6391_v24 = vpop.f32.mrb[15].mxu1 }
 0x95f   :  { %v1174_v60 = vpop.f32.mrb[16].mxu0 }
 0x960   :  { %6957 = vtanh.f32 %v1185_v11  ;;  %v1188_v12 = vrot.slane %v1174_v60, 4  ;;  %v6398_v35 = vpop.f32.mrb[17].mxu0  ;;  %v1189_v36 = vrot.slane %v1174_v60, 5  ;;  %v1195_v30 = vsub.f32 0.0, %v1185_v11 }
 0x961   :  { %6959 = vtanh.f32 %v1186_v31  ;;  %v1177_v39 = vpop.f32.mrb[18].mxu0  ;;  %v1196_v54 = vsub.f32 0.0, %v1186_v31 }
 0x962   :  { %v1192_v46 = vadd.f32 %v1188_v12, %v7589_v32  ;;  %v6399_v0 = vpop.f32.mrb[19].mxu0  ;;  %v1193_v7 = vadd.f32 %v1189_v36, %v7591_v33  ;;  %v1197_v27 = vmul.f32 1.442695, %v1195_v30 }
 0x963   :  { %v1199_v21 = vmul.f32 1.442695, %v1196_v54 }
 0x964   :  { %6961 = vtanh.f32 %v1192_v46  ;;  %v1261_v42 = vsub.f32 0.0, %v1192_v46  ;;  %v1262_v50 = vsub.f32 0.0, %v1193_v7 }
 0x965   :  { %6963 = vtanh.f32 %v1193_v7 }
 0x966   :  { %6965 = vpow2.f32 %v1197_v27  ;;  %v1263_v53 = vmul.f32 1.442695, %v1261_v42  ;;  %v1265_v59 = vmul.f32 1.442695, %v1262_v50  ;;  %v1194_v27 = vld [vmem:[%s9866_s1] sm:$0x3]  ;;  %v950_v42 = vmul.f32 %v944_v6, %v7841_v20 }
 0x967   :  { %6967 = vpow2.f32 %v1199_v21  ;;  %v949_v21 = vmul.f32 %v943_v61, %v7839_v52 }
 0x968   :  { %6969 = vpow2.f32 %v1263_v53  ;;  %v1014_v53 = vmul.f32 %v1008_v47, %v7847_v17 }
 0x969   :  { %6971 = vpow2.f32 %v1265_v59  ;;  %v1211_v50 = vrot.slane %v949_v21, 7  ;;  %v1212_v59 = vrot.slane %v950_v42, 7 }
 0x96a   :  { %v6958_v58 = vpop.eup %6957  ;;  %v1277_v20 = vrot.slane %v1014_v53, 1 }
 0x96b   :  { %v6960_v8 = vpop.eup %6959  ;;  %1219 = vrot.lane.b32.xlu1 %v6958_v58, %s7400_s30 }
 0x96c   :  { %1221 = vrot.lane.b32.xlu0 %v6960_v8, %s7400_s30 }
 0x96e   :  { %v6962_v5 = vpop.eup %6961 }
 0x96f   :  { %v6964_v14 = vpop.eup %6963  ;;  %1285 = vrot.lane.b32.xlu1 %v6962_v5, %s7400_s30 }
 0x970   :  { %1287 = vrot.lane.b32.xlu0 %v6964_v14, %s7400_s30  ;;  %v6966_v62 = vpop.eup %6965 }
 0x971   :  { %v6968_v63 = vpop.eup %6967  ;;  %v1201_v10 = vadd.f32 1.0, %v6966_v62 }
 0x972   :  { %v1202_v24 = vadd.f32 1.0, %v6968_v63  ;;  %v6970_v60 = vpop.eup %6969  ;;  %v1015_v63 = vmul.f32 %v1009_v34, %v7849_v51 }
 0x973   :  { %v6972_v12 = vpop.eup %6971  ;;  %6973 = vrcp.f32 %v1201_v10  ;;  %v1267_v11 = vadd.f32 1.0, %v6970_v60 }
 0x974   :  { %6975 = vrcp.f32 %v1202_v24  ;;  %v1268_v31 = vadd.f32 1.0, %v6972_v12  ;;  %v1278_v6 = vrot.slane %v1015_v63, 1 }
 0x975   :  { %6977 = vrcp.f32 %v1267_v11 }
 0x976   :  { %6979 = vrcp.f32 %v1268_v31 }
 0x97d   :  { %v7929_v35 = vpop.eup %6973 }
 0x97e   :  { %v7931_v39 = vpop.eup %6975  ;;  %v1215_v62 = vmul.f32 %v7929_v35, %v1211_v50 }
 0x97f   :  { %v7937_v58 = vpop.eup %6977  ;;  %v1216_v24 = vmul.f32 %v7931_v39, %v1212_v59 }
 0x980   :  { %v7939_v5 = vpop.eup %6979  ;;  %v1281_v17 = vmul.f32 %v7937_v58, %v1277_v20 }
 0x981   :  { %v1282_v47 = vmul.f32 %v7939_v5, %v1278_v6 }
 0x9dd   :  { %v1220_v36 = vpop.permute.xlu1 %1219 }
 0x9de   :  { %v1222_v46 = vpop.permute.xlu0 %1221  ;;  %v1225_v0 = vmul.f32 %v7929_v35, %v1220_v36 }
 0x9df   :  { %v1226_v7 = vmul.f32 %v7931_v39, %v1222_v46  ;;  %v6797_v46 = vld [vmem:[%s9863_s26] sm:$0xff]  }
 0x9e0   :  { %1229 = vrot.lane.b32.xlu1 %v1225_v0, %s7400_s30  ;;  %v6799_v0 = vld [vmem:[%s9826_s5] sm:$0xff]   ;;  %6401 = vmatpush3.bf16.msra.mxu1 %v6797_v46 }
 0x9e1   :  { %1231 = vrot.lane.b32.xlu0 %v1226_v7, %s7400_s30  ;;  %v1286_v8 = vpop.permute.xlu1 %1285  ;;  %v6798_v7 = vld [vmem:[%s9863_s26 + $0x8] sm:$0xff]   ;;  %6409 = vmatpush3.bf16.msra.mxu0 %v6799_v0 }
 0x9e2   :  { %v1288_v14 = vpop.permute.xlu0 %1287  ;;  %v1291_v30 = vmul.f32 %v7937_v58, %v1286_v8  ;;  %6402 = vmatprep.subr.bf16.mxu1 %v7397_v2  ;;  %6410 = vmatprep.subr.bf16.mxu0 %v7397_v2 }
 0x9e3   :  { %v1292_v54 = vmul.f32 %v7939_v5, %v1288_v14 }
 0x9e4   :  { %1295 = vrot.lane.b32.xlu1 %v1291_v30, %s7400_s30  ;;  %6403 = vmatpush3.bf16.msra.mxu1 %v6798_v7 }
 0x9e5   :  { %1297 = vrot.lane.b32.xlu0 %v1292_v54, %s7400_s30  ;;  %6416 = vmatprep.subr.bf16.mxu1 %v7397_v2 }
 0x9e8   :  { %1251 = vperm.xlu1 %6739, %v1194_v27  }
 0x9e9   :  { %1316 = vperm.xlu0 %6740, %v1194_v27  }
 0xa52   :  { %v1230_v10 = vpop.permute.xlu1 %1229 }
 0xa53   :  { %v1232_v52 = vpop.permute.xlu0 %1231  ;;  %v7962_v61 = vadd.f32 %v1230_v10, %v1215_v62  ;;  %v6800_v62 = vld [vmem:[%s9826_s5 + $0x8] sm:$0xff]  }
 0xa54   :  { %v7964_v45 = vadd.f32 %v1232_v52, %v1216_v24  ;;  %6411 = vmatpush3.bf16.msra.mxu0 %v6800_v62 }
 0xa55   :  { %6981 = vtanh.f32 %v7962_v61  ;;  %6424 = vmatprep.subr.bf16.mxu0 %v7397_v2 }
 0xa56   :  { %v1296_v60 = vpop.permute.xlu1 %1295  ;;  %6983 = vtanh.f32 %v7964_v45 }
 0xa57   :  { %v1298_v51 = vpop.permute.xlu0 %1297  ;;  %v7970_v56 = vadd.f32 %v1296_v60, %v1281_v17 }
 0xa58   :  { %v7972_v34 = vadd.f32 %v1298_v51, %v1282_v47 }
 0xa59   :  { %6985 = vtanh.f32 %v7970_v56 }
 0xa5a   :  { %6987 = vtanh.f32 %v7972_v34 }
 0xa5f   :  { %v6982_v12 = vpop.eup %6981 }
 0xa60   :  { %1241 = vrot.lane.b32.xlu1 %v6982_v12, %s7400_s30  ;;  %v6984_v11 = vpop.eup %6983 }
 0xa63   :  { %v6986_v31 = vpop.eup %6985 }
 0xa64   :  { %1243 = vrot.lane.b32.xlu1 %v6984_v11, %s7400_s30  ;;  %1307 = vrot.lane.b32.xlu0 %v6986_v31, %s7400_s30  ;;  %v6988_v36 = vpop.eup %6987 }
 0xa67   :  { %v7992_v8 = vpop.permute.xlu1 %1251 }
 0xa68   :  { %1309 = vrot.lane.b32.xlu1 %v6988_v36, %s7400_s30  ;;  %v1253_v30 = vrot.slane %v7992_v8, 5  ;;  %v7996_v27 = vpop.permute.xlu0 %1316  ;;  %v1254_v50 = vrot.slane %v7992_v8, 6 }
 0xa69   :  { %v1319_v52 = vrot.slane %v7996_v27, 5 }
 0xad2   :  { %v1242_v14 = vpop.permute.xlu1 %1241 }
 0xad3   :  { %v1247_v54 = vmul.f32 %v7929_v35, %v1242_v14  ;;  %v1318_v35 = vrot.slane %v7996_v27, 4 }
 0xad5   :  { %v8000_v21 = vmul.f32 %v1253_v30, %v1247_v54 }
 0xad6   :  { %v1244_v42 = vpop.permute.xlu1 %1243  ;;  %v1308_v63 = vpop.permute.xlu0 %1307 }
 0xad7   :  { %v1348_v53 = vpack.c.bf16 %v8000_v21, %v8000_v21  ;;  %v1248_v59 = vmul.f32 %v7931_v39, %v1244_v42  ;;  %v1313_v24 = vmul.f32 %v7937_v58, %v1308_v63 }
 0xad9   :  { %v8012_v10 = vmul.f32 %v1254_v50, %v1248_v59  ;;  %v1356_v39 = vunpack.c.l.b16 %v1348_v53  ;;  %v8021_v17 = vmul.f32 %v1318_v35, %v1313_v24 }
 0xada   :  { %v1310_v20 = vpop.permute.xlu1 %1309 }
 0xadb   :  { %v1349_v6 = vpack.c.bf16 %v8012_v10, %v8012_v10  ;;  %v1314_v47 = vmul.f32 %v7939_v5, %v1310_v20  ;;  %v1419_v58 = vpack.c.bf16 %v8021_v17, %v8021_v17  ;;  %v1358_v12 = vrot.slane %v1356_v39, 3 }
 0xadd   :  { %v1357_v60 = vunpack.c.l.b16 %v1349_v6  ;;  %v8028_v51 = vmul.f32 %v1319_v52, %v1314_v47  ;;  %v1427_v31 = vunpack.c.l.b16 %v1419_v58 }
 0xadf   :  { %v1359_v11 = vrot.slane %v1357_v60, 2  ;;  %v1420_v36 = vpack.c.bf16 %v8028_v51, %v8028_v51  ;;  %v1429_v14 = vrot.slane %v1427_v31, 4 }
 0xae1   :  { %v1428_v46 = vunpack.c.l.b16 %v1420_v36  ;;  %v1360_v0 = vsel %vm432_vm2, %v1359_v11, %v1358_v12 }
 0xae2   :  { %v1361_v7 = vpack.c.b16 %v1360_v0, %v1360_v0 }
 0xae3   :  { %v1430_v5 = vrot.slane %v1428_v46, 3 }
 0xae4   :  { %1362 = vrot.lane.b32.xlu0 %v1361_v7, %s7402_s4 }
 0xae5   :  { %v1431_v54 = vsel %vm432_vm2, %v1430_v5, %v1429_v14 }
 0xae6   :  { %v1432_v42 = vpack.c.b16 %v1431_v54, %v1431_v54 }
 0xae8   :  { %1433 = vrot.lane.b32.xlu1 %v1432_v42, %s7402_s4 }
 0xb56   :  { %v1363_v53 = vpop.permute.xlu0 %1362 }
 0xb57   :  { %6405 = vmatmul.mubr.msk.bf16.vlgmr.msra.gmra.mrb[16].mxu1 %vm105_vm1, %v1363_v53 }
 0xb58   :  { %6420 = vmatprep.mubr.msk.bf16.mxu1 %vm7399_vm0, %v7397_v2 }
 0xb5a   :  { %v1434_v59 = vpop.permute.xlu1 %1433 }
 0xb5b   :  { %6413 = vmatmul.mubr.msk.bf16.vlgmr.msra.gmra.mrb[20].mxu0 %vm105_vm1, %v1434_v59 }
 0xb5c   :  { %6428 = vmatprep.mubr.msk.bf16.mxu0 %vm7399_vm0, %v7397_v2 }
 0xc2a   :  { %v1413_v62 = vpop.f32.mrb[16].mxu1 }
 0xc2b   :  { %v1491_v63 = vrot.slane %v1413_v62, 4  ;;  %v1492_v24 = vrot.slane %v1413_v62, 5  ;;  %v6406_v20 = vpop.f32.mrb[17].mxu1 }
 0xc2c   :  { %v1416_v39 = vpop.f32.mrb[18].mxu1 }
 0xc2d   :  { %v1495_v6 = vadd.f32 %v1491_v63, %v7593_v37  ;;  %v1496_v47 = vadd.f32 %v1492_v24, %v7585_v25  ;;  %v6407_v60 = vpop.f32.mrb[19].mxu1 }
 0xc2e   :  { %v1484_v58 = vpop.f32.mrb[20].mxu0 }
 0xc2f   :  { %6989 = vtanh.f32 %v1495_v6  ;;  %v1498_v12 = vrot.slane %v1484_v58, 5  ;;  %v6414_v11 = vpop.f32.mrb[21].mxu0  ;;  %v1499_v31 = vrot.slane %v1484_v58, 6  ;;  %v1505_v53 = vsub.f32 0.0, %v1495_v6 }
 0xc30   :  { %6991 = vtanh.f32 %v1496_v47  ;;  %v1487_v36 = vpop.f32.mrb[22].mxu0  ;;  %v1506_v59 = vsub.f32 0.0, %v1496_v47 }
 0xc31   :  { %v1502_v46 = vadd.f32 %v1498_v12, %v7589_v32  ;;  %v6415_v0 = vpop.f32.mrb[23].mxu0  ;;  %v1503_v7 = vadd.f32 %v1499_v31, %v7591_v33  ;;  %v1507_v62 = vmul.f32 1.442695, %v1505_v53 }
 0xc32   :  { %v1509_v63 = vmul.f32 1.442695, %v1506_v59 }
 0xc33   :  { %6993 = vtanh.f32 %v1502_v46  ;;  %v1571_v24 = vsub.f32 0.0, %v1502_v46  ;;  %v1572_v20 = vsub.f32 0.0, %v1503_v7 }
 0xc34   :  { %6995 = vtanh.f32 %v1503_v7 }
 0xc35   :  { %6997 = vpow2.f32 %v1507_v62  ;;  %v1573_v39 = vmul.f32 1.442695, %v1571_v24  ;;  %v1575_v60 = vmul.f32 1.442695, %v1572_v20 }
 0xc36   :  { %6999 = vpow2.f32 %v1509_v63 }
 0xc37   :  { %7001 = vpow2.f32 %v1573_v39  ;;  %v1504_v39 = vld [vmem:[%s9866_s1] sm:$0x3] }
 0xc38   :  { %7003 = vpow2.f32 %v1575_v60  ;;  %v1259_v60 = vmul.f32 %v1253_v30, %v7962_v61 }
 0xc39   :  { %v6990_v14 = vpop.eup %6989 }
 0xc3a   :  { %v6992_v5 = vpop.eup %6991  ;;  %1529 = vrot.lane.b32.xlu0 %v6990_v14, %s7400_s30 }
 0xc3b   :  { %1531 = vrot.lane.b32.xlu1 %v6992_v5, %s7400_s30 }
 0xc3d   :  { %v6994_v54 = vpop.eup %6993 }
 0xc3e   :  { %v6996_v42 = vpop.eup %6995  ;;  %1595 = vrot.lane.b32.xlu0 %v6994_v54, %s7400_s30 }
 0xc3f   :  { %1597 = vrot.lane.b32.xlu1 %v6996_v42, %s7400_s30  ;;  %v6998_v58 = vpop.eup %6997 }
 0xc40   :  { %v7000_v12 = vpop.eup %6999  ;;  %v1511_v11 = vadd.f32 1.0, %v6998_v58  ;;  %v1260_v58 = vmul.f32 %v1254_v50, %v7964_v45 }
 0xc41   :  { %v1512_v31 = vadd.f32 1.0, %v7000_v12  ;;  %v7002_v36 = vpop.eup %7001  ;;  %v1521_v12 = vrot.slane %v1259_v60, 7 }
 0xc42   :  { %v7004_v0 = vpop.eup %7003  ;;  %7005 = vrcp.f32 %v1511_v11  ;;  %v1577_v6 = vadd.f32 1.0, %v7002_v36  ;;  %v1522_v11 = vrot.slane %v1260_v58, 7 }
 0xc43   :  { %7007 = vrcp.f32 %v1512_v31  ;;  %v1578_v47 = vadd.f32 1.0, %v7004_v0  ;;  %v1324_v31 = vmul.f32 %v1318_v35, %v7970_v56  ;;  %v1325_v0 = vmul.f32 %v1319_v52, %v7972_v34 }
 0xc44   :  { %7009 = vrcp.f32 %v1577_v6 }
 0xc45   :  { %7011 = vrcp.f32 %v1578_v47  ;;  %v1587_v45 = vrot.slane %v1324_v31, 1  ;;  %v1588_v56 = vrot.slane %v1325_v0, 1 }
 0xc4c   :  { %v8050_v46 = vpop.eup %7005 }
 0xc4d   :  { %v8052_v14 = vpop.eup %7007  ;;  %v1525_v36 = vmul.f32 %v8050_v46, %v1521_v12 }
 0xc4e   :  { %v8058_v53 = vpop.eup %7009  ;;  %v1526_v6 = vmul.f32 %v8052_v14, %v1522_v11 }
 0xc4f   :  { %v8060_v62 = vpop.eup %7011  ;;  %v1591_v50 = vmul.f32 %v8058_v53, %v1587_v45 }
 0xc50   :  { %v1592_v35 = vmul.f32 %v8060_v62, %v1588_v56 }
 0xcac   :  { %v1530_v7 = vpop.permute.xlu0 %1529 }
 0xcad   :  { %v1532_v5 = vpop.permute.xlu1 %1531  ;;  %v1535_v54 = vmul.f32 %v8050_v46, %v1530_v7 }
 0xcae   :  { %v1536_v42 = vmul.f32 %v8052_v14, %v1532_v5 }
 0xcaf   :  { %1539 = vrot.lane.b32.xlu0 %v1535_v54, %s7400_s30 }
 0xcb0   :  { %1541 = vrot.lane.b32.xlu1 %v1536_v42, %s7400_s30  ;;  %v1596_v59 = vpop.permute.xlu0 %1595 }
 0xcb1   :  { %v1598_v63 = vpop.permute.xlu1 %1597  ;;  %v1601_v24 = vmul.f32 %v8058_v53, %v1596_v59 }
 0xcb2   :  { %v1602_v20 = vmul.f32 %v8060_v62, %v1598_v63  ;;  %v6801_v63 = vld [vmem:[%s9863_s26] sm:$0xff]  }
 0xcb3   :  { %1605 = vrot.lane.b32.xlu0 %v1601_v24, %s7400_s30  ;;  %v6803_v24 = vld [vmem:[%s9826_s5] sm:$0xff]   ;;  %6417 = vmatpush3.bf16.msra.mxu1 %v6801_v63 }
 0xcb4   :  { %1607 = vrot.lane.b32.xlu1 %v1602_v20, %s7400_s30  ;;  %v6802_v20 = vld [vmem:[%s9863_s26 + $0x8] sm:$0xff]   ;;  %6425 = vmatpush3.bf16.msra.mxu0 %v6803_v24 }
 0xcb5   :  { %6418 = vmatprep.subr.bf16.mxu1 %v7397_v2  ;;  %6426 = vmatprep.subr.bf16.mxu0 %v7397_v2 }
 0xcb7   :  { %1561 = vperm.xlu0 %6740, %v1504_v39   ;;  %6419 = vmatpush3.bf16.msra.mxu1 %v6802_v20 }
 0xcb8   :  { %1626 = vperm.xlu1 %6739, %v1504_v39   ;;  %6432 = vmatprep.subr.bf16.mxu1 %v7397_v2 }
 0xcbb   :  { %6741 = vset.pattern.permute.xlu0 %v9849_v23 }
 0xcbc   :  { %6742 = vset.pattern.permute.xlu1 %v9851_v29 }
 0xd21   :  { %v1540_v47 = vpop.permute.xlu0 %1539 }
 0xd22   :  { %v1542_v61 = vpop.permute.xlu1 %1541  ;;  %v8085_v30 = vadd.f32 %v1540_v47, %v1525_v36 }
 0xd23   :  { %v8087_v8 = vadd.f32 %v1542_v61, %v1526_v6  ;;  %v6804_v6 = vld [vmem:[%s9826_s5 + $0x8] sm:$0xff]  }
 0xd24   :  { %7013 = vtanh.f32 %v8085_v30  ;;  %6427 = vmatpush3.bf16.msra.mxu0 %v6804_v6 }
 0xd25   :  { %7015 = vtanh.f32 %v8087_v8  ;;  %v1606_v27 = vpop.permute.xlu0 %1605  ;;  %6440 = vmatprep.subr.bf16.mxu0 %v7397_v2 }
 0xd26   :  { %v1608_v34 = vpop.permute.xlu1 %1607  ;;  %v8093_v52 = vadd.f32 %v1606_v27, %v1591_v50 }
 0xd27   :  { %v8095_v7 = vadd.f32 %v1608_v34, %v1592_v35 }
 0xd28   :  { %7017 = vtanh.f32 %v8093_v52 }
 0xd29   :  { %7019 = vtanh.f32 %v8095_v7 }
 0xd2e   :  { %v7014_v5 = vpop.eup %7013 }
 0xd2f   :  { %v7016_v54 = vpop.eup %7015  ;;  %1551 = vrot.lane.b32.xlu0 %v7014_v5, %s7400_s30 }
 0xd30   :  { %1553 = vrot.lane.b32.xlu1 %v7016_v54, %s7400_s30 }
 0xd32   :  { %v7018_v42 = vpop.eup %7017 }
 0xd33   :  { %v7020_v59 = vpop.eup %7019  ;;  %1617 = vrot.lane.b32.xlu0 %v7018_v42, %s7400_s30 }
 0xd34   :  { %1619 = vrot.lane.b32.xlu1 %v7020_v59, %s7400_s30 }
 0xd36   :  { %v8115_v39 = vpop.permute.xlu0 %1561 }
 0xd37   :  { %v8117_v60 = vpop.permute.xlu1 %1626  ;;  %v1563_v12 = vrot.slane %v8115_v39, 4  ;;  %v1564_v36 = vrot.slane %v8115_v39, 5 }
 0xd38   :  { %v1628_v56 = vrot.slane %v8117_v60, 5  ;;  %v1629_v34 = vrot.slane %v8117_v60, 6 }
 0xda1   :  { %v1552_v58 = vpop.permute.xlu0 %1551 }
 0xda2   :  { %v1554_v11 = vpop.permute.xlu1 %1553  ;;  %v1557_v31 = vmul.f32 %v8050_v46, %v1552_v58 }
 0xda3   :  { %v1558_v0 = vmul.f32 %v8052_v14, %v1554_v11 }
 0xda4   :  { %v8128_v47 = vmul.f32 %v1563_v12, %v1557_v31 }
 0xda5   :  { %v8132_v61 = vmul.f32 %v1564_v36, %v1558_v0  ;;  %v1618_v45 = vpop.permute.xlu0 %1617 }
 0xda6   :  { %v1658_v46 = vpack.c.bf16 %v8128_v47, %v8128_v47  ;;  %v1620_v35 = vpop.permute.xlu1 %1619  ;;  %v1623_v27 = vmul.f32 %v8058_v53, %v1618_v45 }
 0xda7   :  { %v1659_v14 = vpack.c.bf16 %v8132_v61, %v8132_v61  ;;  %v1624_v54 = vmul.f32 %v8060_v62, %v1620_v35 }
 0xda8   :  { %v1666_v50 = vunpack.c.l.b16 %v1658_v46  ;;  %v8145_v59 = vmul.f32 %v1628_v56, %v1623_v27 }
 0xda9   :  { %v1667_v5 = vunpack.c.l.b16 %v1659_v14  ;;  %v8149_v24 = vmul.f32 %v1629_v34, %v1624_v54 }
 0xdaa   :  { %v1668_v42 = vrot.slane %v1666_v50, 4  ;;  %v1729_v20 = vpack.c.bf16 %v8145_v59, %v8145_v59 }
 0xdab   :  { %v1669_v63 = vrot.slane %v1667_v5, 3  ;;  %v1730_v53 = vpack.c.bf16 %v8149_v24, %v8149_v24 }
 0xdac   :  { %v1737_v11 = vunpack.c.l.b16 %v1729_v20 }
 0xdad   :  { %v1670_v58 = vsel %vm432_vm2, %v1669_v63, %v1668_v42  ;;  %v1738_v31 = vunpack.c.l.b16 %v1730_v53 }
 0xdae   :  { %v1671_v62 = vpack.c.b16 %v1670_v58, %v1670_v58  ;;  %v1739_v0 = vrot.slane %v1737_v11, 3 }
 0xdaf   :  { %v1740_v6 = vrot.slane %v1738_v31, 2 }
 0xdb0   :  { %1672 = vrot.lane.b32.xlu0 %v1671_v62, %s7402_s4 }
 0xdb1   :  { %v1741_v46 = vsel %vm432_vm2, %v1740_v6, %v1739_v0 }
 0xdb2   :  { %v1742_v14 = vpack.c.b16 %v1741_v46, %v1741_v46 }
 0xdb4   :  { %1743 = vrot.lane.b32.xlu1 %v1742_v14, %s7402_s4 }
 0xe22   :  { %v1673_v45 = vpop.permute.xlu0 %1672 }
 0xe23   :  { %6421 = vmatmul.mubr.msk.bf16.vlgmr.msra.gmra.mrb[20].mxu1 %vm105_vm1, %v1673_v45 }
 0xe24   :  { %6436 = vmatprep.mubr.msk.bf16.mxu1 %vm7399_vm0, %v7397_v2 }
 0xe26   :  { %v1744_v50 = vpop.permute.xlu1 %1743 }
 0xe27   :  { %6429 = vmatmul.mubr.msk.bf16.vlgmr.msra.gmra.mrb[24].mxu0 %vm105_vm1, %v1744_v50 }
 0xe28   :  { %6444 = vmatprep.mubr.msk.bf16.mxu0 %vm7399_vm0, %v7397_v2 }
 0xef6   :  { %v1723_v35 = vpop.f32.mrb[20].mxu1 }
 0xef7   :  { %v1801_v27 = vrot.slane %v1723_v35, 3  ;;  %v1802_v5 = vrot.slane %v1723_v35, 4  ;;  %v6422_v54 = vpop.f32.mrb[21].mxu1 }
 0xef8   :  { %v1726_v42 = vpop.f32.mrb[22].mxu1 }
 0xef9   :  { %v1805_v63 = vadd.f32 %v1801_v27, %v7593_v37  ;;  %v1806_v20 = vadd.f32 %v1802_v5, %v7585_v25  ;;  %v6423_v53 = vpop.f32.mrb[23].mxu1 }
 0xefa   :  { %v1794_v58 = vpop.f32.mrb[24].mxu0 }
 0xefb   :  { %7021 = vtanh.f32 %v1805_v63  ;;  %v1808_v11 = vrot.slane %v1794_v58, 6  ;;  %v1809_v62 = vrot.slane %v1794_v58, 7  ;;  %v6430_v31 = vpop.f32.mrb[25].mxu0  ;;  %v1815_v5 = vsub.f32 0.0, %v1805_v63 }
 0xefc   :  { %7023 = vtanh.f32 %v1806_v20  ;;  %v1797_v46 = vpop.f32.mrb[26].mxu0  ;;  %v1816_v54 = vsub.f32 0.0, %v1806_v20 }
 0xefd   :  { %v1812_v0 = vadd.f32 %v1808_v11, %v7589_v32  ;;  %v1813_v6 = vadd.f32 %v1809_v62, %v7591_v33  ;;  %v6431_v14 = vpop.f32.mrb[27].mxu0  ;;  %v1817_v42 = vmul.f32 1.442695, %v1815_v5 }
 0xefe   :  { %v1819_v53 = vmul.f32 1.442695, %v1816_v54 }
 0xeff   :  { %7025 = vtanh.f32 %v1812_v0  ;;  %v1881_v58 = vsub.f32 0.0, %v1812_v0  ;;  %v1882_v11 = vsub.f32 0.0, %v1813_v6 }
 0xf00   :  { %7027 = vtanh.f32 %v1813_v6 }
 0xf01   :  { %7029 = vpow2.f32 %v1817_v42  ;;  %v1883_v62 = vmul.f32 1.442695, %v1881_v58  ;;  %v1885_v31 = vmul.f32 1.442695, %v1882_v11 }
 0xf02   :  { %7031 = vpow2.f32 %v1819_v53 }
 0xf03   :  { %7033 = vpow2.f32 %v1883_v62 }
 0xf04   :  { %7035 = vpow2.f32 %v1885_v31 }
 0xf05   :  { %v7022_v45 = vpop.eup %7021 }
 0xf06   :  { %v7024_v50 = vpop.eup %7023  ;;  %1839 = vrot.lane.b32.xlu0 %v7022_v45, %s7400_s30 }
 0xf07   :  { %1841 = vrot.lane.b32.xlu1 %v7024_v50, %s7400_s30 }
 0xf09   :  { %v7026_v35 = vpop.eup %7025 }
 0xf0a   :  { %v7028_v27 = vpop.eup %7027  ;;  %1905 = vrot.lane.b32.xlu0 %v7026_v35, %s7400_s30 }
 0xf0b   :  { %1907 = vrot.lane.b32.xlu1 %v7028_v27, %s7400_s30  ;;  %v7030_v46 = vpop.eup %7029 }
 0xf0c   :  { %v7032_v14 = vpop.eup %7031  ;;  %v1821_v45 = vadd.f32 1.0, %v7030_v46  ;;  %v1814_v46 = vld [vmem:[%s9866_s1] sm:$0x3] }
 0xf0d   :  { %v1822_v50 = vadd.f32 1.0, %v7032_v14  ;;  %v7034_v13 = vpop.eup %7033  ;;  %v1569_v14 = vmul.f32 %v1563_v12, %v8085_v30 }
 0xf0e   :  { %v7036_v35 = vpop.eup %7035  ;;  %7037 = vrcp.f32 %v1821_v45  ;;  %v1887_v63 = vadd.f32 1.0, %v7034_v13  ;;  %v1570_v45 = vmul.f32 %v1564_v36, %v8087_v8 }
 0xf0f   :  { %7039 = vrcp.f32 %v1822_v50  ;;  %v1888_v20 = vadd.f32 1.0, %v7036_v35  ;;  %v1831_v50 = vrot.slane %v1569_v14, 7  ;;  %v6807_v14 = vld [vmem:[%s9826_s5] sm:$0xff]  }
 0xf10   :  { %7041 = vrcp.f32 %v1887_v63  ;;  %v1832_v35 = vrot.slane %v1570_v45, 7  ;;  %v1634_v63 = vmul.f32 %v1628_v56, %v8093_v52  ;;  %v6806_v45 = vld [vmem:[%s9863_s26 + $0x8] sm:$0xff]   ;;  %6441 = vmatpush3.bf16.msra.mxu0 %v6807_v14 }
 0xf11   :  { %7043 = vrcp.f32 %v1888_v20  ;;  %6442 = vmatprep.subr.bf16.mxu0 %v7397_v2 }
 0xf12   :  { %v1897_v8 = vrot.slane %v1634_v63, 1 }
 0xf18   :  { %v8173_v0 = vpop.eup %7037 }
 0xf19   :  { %v8175_v27 = vpop.eup %7039  ;;  %v1835_v20 = vmul.f32 %v8173_v0, %v1831_v50 }
 0xf1a   :  { %v8181_v53 = vpop.eup %7041 }
 0xf1b   :  { %v8183_v58 = vpop.eup %7043  ;;  %v1901_v36 = vmul.f32 %v8181_v53, %v1897_v8  ;;  %v6808_v8 = vld [vmem:[%s9826_s5 + $0x8] sm:$0xff]  }
 0xf1c   :  { %6443 = vmatpush3.bf16.msra.mxu0 %v6808_v8 }
 0xf1d   :  { %6456 = vmatprep.subr.bf16.mxu0 %v7397_v2 }
 0xf78   :  { %v1840_v6 = vpop.permute.xlu0 %1839 }
 0xf79   :  { %v1842_v5 = vpop.permute.xlu1 %1841  ;;  %v1845_v54 = vmul.f32 %v8173_v0, %v1840_v6  ;;  %v1635_v6 = vmul.f32 %v1629_v34, %v8095_v7 }
 0xf7a   :  { %v1846_v42 = vmul.f32 %v8175_v27, %v1842_v5  ;;  %v1836_v5 = vmul.f32 %v8175_v27, %v1832_v35 }
 0xf7b   :  { %1849 = vrot.lane.b32.xlu0 %v1845_v54, %s7400_s30  ;;  %v1898_v52 = vrot.slane %v1635_v6, 1 }
 0xf7c   :  { %1851 = vrot.lane.b32.xlu1 %v1846_v42, %s7400_s30  ;;  %v1906_v13 = vpop.permute.xlu0 %1905 }
 0xf7d   :  { %v1908_v11 = vpop.permute.xlu1 %1907  ;;  %v1911_v62 = vmul.f32 %v8181_v53, %v1906_v13  ;;  %v1902_v56 = vmul.f32 %v8183_v58, %v1898_v52 }
 0xf7e   :  { %v1912_v31 = vmul.f32 %v8183_v58, %v1908_v11 }
 0xf7f   :  { %1915 = vrot.lane.b32.xlu0 %v1911_v62, %s7400_s30 }
 0xf80   :  { %1917 = vrot.lane.b32.xlu1 %v1912_v31, %s7400_s30 }
 0xf83   :  { %1871 = vperm.xlu0 %6741, %v1814_v46  }
 0xf84   :  { %1936 = vperm.xlu1 %6742, %v1814_v46   ;;  %v6805_v46 = vld [vmem:[%s9863_s26] sm:$0xff]  }
 0xf85   :  { %6433 = vmatpush3.bf16.msra.mxu1 %v6805_v46 }
 0xf86   :  { %6434 = vmatprep.subr.bf16.mxu1 %v7397_v2 }
 0xf87   :  { %6744 = vset.pattern.permute.xlu0 %v7404_v43 }
 0xf88   :  { %6743 = vset.pattern.permute.xlu1 %v7403_v41 }
 0xf89   :  { %6435 = vmatpush3.bf16.msra.mxu1 %v6806_v45 }
 0xf8a   :  { %6448 = vmatprep.subr.bf16.mxu1 %v7397_v2 }
 0xfed   :  { %v1850_v54 = vpop.permute.xlu0 %1849 }
 0xfee   :  { %v1852_v30 = vpop.permute.xlu1 %1851  ;;  %v8208_v12 = vadd.f32 %v1850_v54, %v1835_v20 }
 0xfef   :  { %v8210_v39 = vadd.f32 %v1852_v30, %v1836_v5 }
 0xff0   :  { %7045 = vtanh.f32 %v8208_v12 }
 0xff1   :  { %7047 = vtanh.f32 %v8210_v39  ;;  %v1916_v60 = vpop.permute.xlu0 %1915 }
 0xff2   :  { %v1918_v7 = vpop.permute.xlu1 %1917  ;;  %v8216_v34 = vadd.f32 %v1916_v60, %v1901_v36 }
 0xff3   :  { %v8218_v42 = vadd.f32 %v1918_v7, %v1902_v56 }
 0xff4   :  { %7049 = vtanh.f32 %v8216_v34 }
 0xff5   :  { %7051 = vtanh.f32 %v8218_v42 }
 0xffa   :  { %v7046_v13 = vpop.eup %7045 }
 0xffb   :  { %v7048_v11 = vpop.eup %7047  ;;  %1861 = vrot.lane.b32.xlu1 %v7046_v13, %s7400_s30 }
 0xffc   :  { %1863 = vrot.lane.b32.xlu0 %v7048_v11, %s7400_s30 }
 0xffe   :  { %v7050_v62 = vpop.eup %7049 }
 0xfff   :  { %v7052_v31 = vpop.eup %7051  ;;  %1927 = vrot.lane.b32.xlu1 %v7050_v62, %s7400_s30 }
0x1000   :  { %1929 = vrot.lane.b32.xlu0 %v7052_v31, %s7400_s30 }
0x1002   :  { %v8240_v35 = vpop.permute.xlu0 %1871 }
0x1003   :  { %v8238_v50 = vpop.permute.xlu1 %1936  ;;  %v1873_v20 = vrot.slane %v8240_v35, 3  ;;  %v1874_v54 = vrot.slane %v8240_v35, 4 }
0x1004   :  { %v1938_v60 = vrot.slane %v8238_v50, 6  ;;  %v1939_v62 = vrot.slane %v8238_v50, 7 }
0x106d   :  { %v1862_v63 = vpop.permute.xlu1 %1861 }
0x106e   :  { %v1867_v6 = vmul.f32 %v8173_v0, %v1862_v63  ;;  %v1864_v5 = vpop.permute.xlu0 %1863 }
0x106f   :  { %v1868_v30 = vmul.f32 %v8175_v27, %v1864_v5 }
0x1070   :  { %v8251_v52 = vmul.f32 %v1873_v20, %v1867_v6 }
0x1071   :  { %v8255_v36 = vmul.f32 %v1874_v54, %v1868_v30  ;;  %v1928_v56 = vpop.permute.xlu1 %1927 }
0x1072   :  { %v1968_v0 = vpack.c.bf16 %v8251_v52, %v8251_v52  ;;  %v1930_v13 = vpop.permute.xlu0 %1929  ;;  %v1933_v11 = vmul.f32 %v8181_v53, %v1928_v56 }
0x1073   :  { %v1969_v27 = vpack.c.bf16 %v8255_v36, %v8255_v36  ;;  %v1934_v46 = vmul.f32 %v8183_v58, %v1930_v13 }
0x1074   :  { %v1976_v7 = vunpack.c.l.b16 %v1968_v0  ;;  %v8268_v45 = vmul.f32 %v1938_v60, %v1933_v11 }
0x1075   :  { %v1977_v31 = vunpack.c.l.b16 %v1969_v27  ;;  %v8272_v6 = vmul.f32 %v1939_v62, %v1934_v46 }
0x1076   :  { %v1978_v14 = vrot.slane %v1976_v7, 5  ;;  %v2039_v5 = vpack.c.bf16 %v8268_v45, %v8268_v45 }
0x1077   :  { %v1979_v63 = vrot.slane %v1977_v31, 4  ;;  %v2040_v53 = vpack.c.bf16 %v8272_v6, %v8272_v6 }
0x1078   :  { %v2047_v8 = vunpack.c.l.b16 %v2039_v5 }
0x1079   :  { %v1980_v30 = vsel %vm432_vm2, %v1979_v63, %v1978_v14  ;;  %v2048_v0 = vunpack.c.l.b16 %v2040_v53 }
0x107a   :  { %v1981_v58 = vpack.c.b16 %v1980_v30, %v1980_v30  ;;  %v2049_v27 = vrot.slane %v2047_v8, 2 }
0x107b   :  { %v2050_v56 = vrot.slane %v2048_v0, 1 }
0x107c   :  { %1982 = vrot.lane.b32.xlu1 %v1981_v58, %s7402_s4 }
0x107d   :  { %v2051_v7 = vsel %vm432_vm2, %v2050_v56, %v2049_v27 }
0x107e   :  { %v2052_v13 = vpack.c.b16 %v2051_v7, %v2051_v7 }
0x1080   :  { %2053 = vrot.lane.b32.xlu0 %v2052_v13, %s7402_s4 }
0x10ee   :  { %v1983_v11 = vpop.permute.xlu1 %1982 }
0x10ef   :  { %6437 = vmatmul.mubr.msk.bf16.vlgmr.msra.gmra.mrb[24].mxu1 %vm105_vm1, %v1983_v11 }
0x10f0   :  { %6452 = vmatprep.mubr.msk.bf16.mxu1 %vm7399_vm0, %v7397_v2 }
0x10f2   :  { %v2054_v31 = vpop.permute.xlu0 %2053 }
0x10f3   :  { %6445 = vmatmul.mubr.msk.bf16.vlgmr.msra.gmra.mrb[28].mxu0 %vm105_vm1, %v2054_v31 }
0x10f4   :  { %6460 = vmatprep.mubr.msk.bf16.mxu0 %vm7399_vm0, %v7397_v2 }
0x11c2   :  { %v2033_v46 = vpop.f32.mrb[24].mxu1 }
0x11c3   :  { %v2111_v14 = vrot.slane %v2033_v46, 2  ;;  %v2112_v63 = vrot.slane %v2033_v46, 3  ;;  %v6438_v5 = vpop.f32.mrb[25].mxu1 }
0x11c4   :  { %v2036_v53 = vpop.f32.mrb[26].mxu1 }
0x11c5   :  { %v2115_v30 = vadd.f32 %v2111_v14, %v7593_v37  ;;  %v2116_v8 = vadd.f32 %v2112_v63, %v7585_v25  ;;  %v6439_v58 = vpop.f32.mrb[27].mxu1 }
0x11c6   :  { %v2104_v0 = vpop.f32.mrb[28].mxu0 }
0x11c7   :  { %7053 = vtanh.f32 %v2115_v30  ;;  %v2118_v27 = vrot.slane %v2104_v0, 7  ;;  %v6446_v56 = vpop.f32.mrb[29].mxu0  ;;  %v2122_v7 = vadd.f32 %v2104_v0, %v7591_v33  ;;  %v2124_v53 = vsub.f32 0.0, %v2115_v30 }
0x11c8   :  { %7055 = vtanh.f32 %v2116_v8  ;;  %v2107_v13 = vpop.f32.mrb[30].mxu0  ;;  %v2125_v58 = vsub.f32 0.0, %v2116_v8 }
0x11c9   :  { %v2121_v11 = vadd.f32 %v2118_v27, %v7589_v32  ;;  %v6447_v31 = vpop.f32.mrb[31].mxu0  ;;  %v2126_v0 = vmul.f32 1.442695, %v2124_v53  ;;  %v2191_v13 = vsub.f32 0.0, %v2122_v7 }
0x11ca   :  { %v2128_v56 = vmul.f32 1.442695, %v2125_v58 }
0x11cb   :  { %7057 = vtanh.f32 %v2121_v11  ;;  %v2190_v27 = vsub.f32 0.0, %v2121_v11  ;;  %v2194_v4 = vmul.f32 1.442695, %v2191_v13  ;;  %v2123_v13 = vld [vmem:[%s9866_s1] sm:$0x3] }
0x11cc   :  { %7059 = vtanh.f32 %v2122_v7 }
0x11cd   :  { %7061 = vpow2.f32 %v2126_v0  ;;  %v2192_v31 = vmul.f32 1.442695, %v2190_v27 }
0x11ce   :  { %7063 = vpow2.f32 %v2128_v56 }
0x11cf   :  { %7065 = vpow2.f32 %v2192_v31  ;;  %v1879_v31 = vmul.f32 %v1873_v20, %v8208_v12 }
0x11d0   :  { %7067 = vpow2.f32 %v2194_v4 }
0x11d1   :  { %v7054_v46 = vpop.eup %7053 }
0x11d2   :  { %v7056_v5 = vpop.eup %7055  ;;  %2148 = vrot.lane.b32.xlu1 %v7054_v46, %s7400_s30 }
0x11d3   :  { %2150 = vrot.lane.b32.xlu0 %v7056_v5, %s7400_s30 }
0x11d5   :  { %v7058_v14 = vpop.eup %7057 }
0x11d6   :  { %v7060_v63 = vpop.eup %7059  ;;  %2214 = vrot.lane.b32.xlu1 %v7058_v14, %s7400_s30 }
0x11d7   :  { %2216 = vrot.lane.b32.xlu0 %v7060_v63, %s7400_s30  ;;  %v7062_v46 = vpop.eup %7061 }
0x11d8   :  { %v7064_v5 = vpop.eup %7063  ;;  %v2130_v26 = vadd.f32 1.0, %v7062_v46  ;;  %v1880_v46 = vmul.f32 %v1874_v54, %v8210_v39 }
0x11d9   :  { %v2131_v23 = vadd.f32 1.0, %v7064_v5  ;;  %v7066_v29 = vpop.eup %7065  ;;  %v2140_v5 = vrot.slane %v1879_v31, 7 }
0x11da   :  { %v7068_v14 = vpop.eup %7067  ;;  %7069 = vrcp.f32 %v2130_v26  ;;  %v2196_v30 = vadd.f32 1.0, %v7066_v29 }
0x11db   :  { %7071 = vrcp.f32 %v2131_v23  ;;  %v2197_v8 = vadd.f32 1.0, %v7068_v14  ;;  %v1944_v14 = vmul.f32 %v1938_v60, %v8216_v34 }
0x11dc   :  { %7073 = vrcp.f32 %v2196_v30  ;;  %v2141_v30 = vrot.slane %v1880_v46, 7  ;;  %v6811_v46 = vld [vmem:[%s9863_s26 + $0x8] sm:$0xff]  }
0x11dd   :  { %7075 = vrcp.f32 %v2197_v8  ;;  %v2206_v39 = vrot.slane %v1944_v14, 1 }
0x11e4   :  { %v8296_v11 = vpop.eup %7069 }
0x11e5   :  { %v8298_v63 = vpop.eup %7071  ;;  %v2144_v8 = vmul.f32 %v8296_v11, %v2140_v5  ;;  %v6812_v5 = vld [vmem:[%s9826_s5 + $0x8] sm:$0xff]  }
0x11e6   :  { %v8304_v26 = vpop.eup %7073 }
0x11e7   :  { %v8306_v29 = vpop.eup %7075  ;;  %v2210_v34 = vmul.f32 %v8304_v26, %v2206_v39 }
0x1244   :  { %v2149_v7 = vpop.permute.xlu1 %2148 }
0x1245   :  { %v2151_v53 = vpop.permute.xlu0 %2150  ;;  %v2154_v4 = vmul.f32 %v8296_v11, %v2149_v7  ;;  %v1945_v7 = vmul.f32 %v1939_v62, %v8218_v42 }
0x1246   :  { %v2155_v58 = vmul.f32 %v8298_v63, %v2151_v53 }
0x1247   :  { %2158 = vrot.lane.b32.xlu1 %v2154_v4, %s7400_s30  ;;  %v2145_v4 = vmul.f32 %v8298_v63, %v2141_v30  ;;  %v2207_v54 = vrot.slane %v1945_v7, 1 }
0x1248   :  { %2160 = vrot.lane.b32.xlu0 %v2155_v58, %s7400_s30  ;;  %v2215_v23 = vpop.permute.xlu1 %2214 }
0x1249   :  { %v2217_v0 = vpop.permute.xlu0 %2216  ;;  %v2220_v56 = vmul.f32 %v8304_v26, %v2215_v23  ;;  %v2211_v60 = vmul.f32 %v8306_v29, %v2207_v54 }
0x124a   :  { %v2221_v27 = vmul.f32 %v8306_v29, %v2217_v0 }
0x124b   :  { %2224 = vrot.lane.b32.xlu1 %v2220_v56, %s7400_s30 }
0x124c   :  { %2226 = vrot.lane.b32.xlu0 %v2221_v27, %s7400_s30  ;;  %v6809_v27 = vld [vmem:[%s9863_s26] sm:$0xff]  }
0x124d   :  { %6449 = vmatpush3.bf16.msra.mxu1 %v6809_v27 }
0x124e   :  { %6450 = vmatprep.subr.bf16.mxu1 %v7397_v2 }
0x124f   :  { %2180 = vperm.xlu1 %6743, %v2123_v13  }
0x1250   :  { %2245 = vperm.xlu0 %6744, %v2123_v13   ;;  %v6810_v13 = vld [vmem:[%s9826_s5] sm:$0xff]   ;;  %s7411_s5 = smov 8  }
0x1251   :  { %6457 = vmatpush3.bf16.msra.mxu0 %v6810_v13  ;;  %6451 = vmatpush3.bf16.msra.mxu1 %v6811_v46 }
0x1252   :  { %6458 = vmatprep.subr.bf16.mxu0 %v7397_v2  ;;  %6480 = vmatprep.subr.bf16.mxu1 %v7397_v2 }
0x1253   :  { %6746 = vset.pattern.permute.xlu1 %v7398_v3 }
0x1254   :  { %6745 = vset.pattern.permute.xlu0 %v7401_v44 }
0x1255   :  { %6459 = vmatpush3.bf16.msra.mxu0 %v6812_v5 }
0x12b9   :  { %v2159_v53 = vpop.permute.xlu1 %2158 }
0x12ba   :  { %v2161_v12 = vpop.permute.xlu0 %2160  ;;  %v8331_v20 = vadd.f32 %v2159_v53, %v2144_v8 }
0x12bb   :  { %v8333_v35 = vadd.f32 %v2161_v12, %v2145_v4 }
0x12bc   :  { %7077 = vtanh.f32 %v8331_v20 }
0x12bd   :  { %v2225_v58 = vpop.permute.xlu1 %2224  ;;  %7079 = vtanh.f32 %v8333_v35 }
0x12be   :  { %v2227_v42 = vpop.permute.xlu0 %2226  ;;  %v8339_v50 = vadd.f32 %v2225_v58, %v2210_v34 }
0x12bf   :  { %v8341_v62 = vadd.f32 %v2227_v42, %v2211_v60 }
0x12c0   :  { %7081 = vtanh.f32 %v8339_v50 }
0x12c1   :  { %7083 = vtanh.f32 %v8341_v62 }
0x12c6   :  { %v7078_v23 = vpop.eup %7077 }
0x12c7   :  { %2170 = vrot.lane.b32.xlu1 %v7078_v23, %s7400_s30  ;;  %v7080_v0 = vpop.eup %7079 }
0x12ca   :  { %v7082_v56 = vpop.eup %7081 }
0x12cb   :  { %2172 = vrot.lane.b32.xlu1 %v7080_v0, %s7400_s30  ;;  %2236 = vrot.lane.b32.xlu0 %v7082_v56, %s7400_s30  ;;  %v7084_v31 = vpop.eup %7083 }
0x12ce   :  { %v8364_v14 = vpop.permute.xlu1 %2180 }
0x12cf   :  { %2238 = vrot.lane.b32.xlu1 %v7084_v31, %s7400_s30  ;;  %v2182_v8 = vrot.slane %v8364_v14, 2  ;;  %v8368_v53 = vpop.permute.xlu0 %2245  ;;  %v2183_v39 = vrot.slane %v8364_v14, 3 }
0x1339   :  { %v2171_v30 = vpop.permute.xlu1 %2170 }
0x133a   :  { %v2176_v7 = vmul.f32 %v8296_v11, %v2171_v30  ;;  %v2247_v11 = vrot.slane %v8368_v53, 7 }
0x133c   :  { %v8372_v4 = vmul.f32 %v2182_v8, %v2176_v7 }
0x133d   :  { %v2173_v12 = vpop.permute.xlu1 %2172  ;;  %v2237_v60 = vpop.permute.xlu0 %2236 }
0x133e   :  { %v2276_v54 = vpack.c.bf16 %v8372_v4, %v8372_v4  ;;  %v2177_v34 = vmul.f32 %v8298_v63, %v2173_v12  ;;  %v2242_v42 = vmul.f32 %v8304_v26, %v2237_v60 }
0x1340   :  { %v8380_v58 = vmul.f32 %v2183_v39, %v2177_v34  ;;  %v2284_v0 = vunpack.c.l.b16 %v2276_v54  ;;  %v8388_v27 = vmul.f32 %v2247_v11, %v2242_v42 }
0x1341   :  { %v2239_v23 = vpop.permute.xlu1 %2238 }
0x1342   :  { %v2277_v56 = vpack.c.bf16 %v8380_v58, %v8380_v58  ;;  %v2243_v63 = vmul.f32 %v8306_v29, %v2239_v23  ;;  %v2347_v31 = vpack.c.bf16 %v8388_v27, %v8388_v27  ;;  %v2286_v5 = vrot.slane %v2284_v0, 6 }
0x1344   :  { %v2285_v13 = vunpack.c.l.b16 %v2277_v56  ;;  %v8394_v46 = vmul.f32 %v8368_v53, %v2243_v63  ;;  %v2355_v30 = vunpack.c.l.b16 %v2347_v31 }
0x1346   :  { %v2287_v26 = vrot.slane %v2285_v13, 5  ;;  %v2348_v7 = vpack.c.bf16 %v8394_v46, %v8394_v46  ;;  %v2357_v12 = vrot.slane %v2355_v30, 1 }
0x1348   :  { %v2356_v54 = vunpack.c.l.b16 %v2348_v7  ;;  %v2288_v34 = vsel %vm432_vm2, %v2287_v26, %v2286_v5 }
0x1349   :  { %v2289_v60 = vpack.c.b16 %v2288_v34, %v2288_v34 }
0x134a   :  { %v2358_v29 = vsel %vm432_vm2, %v2356_v54, %v2357_v12 }
0x134b   :  { %2290 = vrot.lane.b32.xlu0 %v2289_v60, %s7402_s4  ;;  %v2359_v42 = vpack.c.b16 %v2358_v29, %v2358_v29 }
0x134d   :  { %2360 = vrot.lane.b32.xlu1 %v2359_v42, %s7402_s4 }
0x13bd   :  { %v2291_v23 = vpop.permute.xlu0 %2290 }
0x13be   :  { %6453 = vmatmul.mubr.msk.bf16.vlgmr.msra.gmra.mrb[28].mxu1 %vm105_vm1, %v2291_v23 }
0x13bf   :  { %v2361_v0 = vpop.permute.xlu1 %2360  ;;  %6484 = vmatprep.mubr.msk.bf16.mxu1 %vm7399_vm0, %v7397_v2 }
0x13c0   :  { %6461 = vmatmul.mubr.msk.bf16.vlgmr.msra.gmra.mrb[32].mxu0 %vm105_vm1, %v2361_v0 }
0x13c1   :  { %2678 = vmatprep.mubr.bf16.mxu0 %v7398_v3 }
0x1491   :  { %v2341_v56 = vpop.f32.mrb[28].mxu1 }
0x1492   :  { %v2418_v63 = vrot.slane %v2341_v56, 1  ;;  %v2419_v13 = vrot.slane %v2341_v56, 2  ;;  %v6454_v31 = vpop.f32.mrb[29].mxu1 }
0x1493   :  { %v2344_v5 = vpop.f32.mrb[30].mxu1  ;;  %v2411_v26 = vpop.f32.mrb[32].mxu0 }
0x1494   :  { %v2422_v30 = vadd.f32 %v2418_v63, %v7593_v37  ;;  %v2423_v7 = vadd.f32 %v2419_v13, %v7585_v25  ;;  %v2425_v12 = vrot.slane %v2411_v26, 1  ;;  %v6455_v54 = vpop.f32.mrb[31].mxu1  ;;  %v6462_v34 = vpop.f32.mrb[33].mxu0  ;;  %v2428_v29 = vadd.f32 %v2411_v26, %v7589_v32 }
0x1495   :  { %v2414_v60 = vpop.f32.mrb[34].mxu0 }
0x1496   :  { %7085 = vtanh.f32 %v2422_v30  ;;  %v6463_v42 = vpop.f32.mrb[35].mxu0  ;;  %v2429_v23 = vadd.f32 %v2425_v12, %v7591_v33  ;;  %v2431_v63 = vsub.f32 0.0, %v2422_v30  ;;  %v2432_v32 = vsub.f32 0.0, %v2423_v7 }
0x1497   :  { %7087 = vtanh.f32 %v2423_v7  ;;  %v2495_v31 = vsub.f32 0.0, %v2428_v29 }
0x1498   :  { %7089 = vtanh.f32 %v2428_v29  ;;  %v2433_v13 = vmul.f32 1.442695, %v2431_v63  ;;  %v2435_v5 = vmul.f32 1.442695, %v2432_v32  ;;  %v2496_v33 = vsub.f32 0.0, %v2429_v23 }
0x1499   :  { %7091 = vtanh.f32 %v2429_v23  ;;  %v2497_v26 = vmul.f32 1.442695, %v2495_v31 }
0x149a   :  { %7093 = vpow2.f32 %v2433_v13  ;;  %v2499_v12 = vmul.f32 1.442695, %v2496_v33 }
0x149b   :  { %7095 = vpow2.f32 %v2435_v5 }
0x149c   :  { %7097 = vpow2.f32 %v2497_v26 }
0x149d   :  { %7099 = vpow2.f32 %v2499_v12 }
0x14a0   :  { %v7086_v0 = vpop.eup %7085 }
0x14a1   :  { %v7088_v56 = vpop.eup %7087  ;;  %2455 = vrot.lane.b32.xlu0 %v7086_v0, %s7400_s30 }
0x14a2   :  { %2457 = vrot.lane.b32.xlu1 %v7088_v56, %s7400_s30  ;;  %v7090_v25 = vpop.eup %7089 }
0x14a3   :  { %v7092_v37 = vpop.eup %7091 }
0x14a4   :  { %v7094_v54 = vpop.eup %7093 }
0x14a5   :  { %2519 = vrot.lane.b32.xlu0 %v7090_v25, %s7400_s30  ;;  %v7096_v34 = vpop.eup %7095  ;;  %v2437_v60 = vadd.f32 1.0, %v7094_v54  ;;  %v2430_v54 = vld [vmem:[%s9866_s1] sm:$0x3] }
0x14a6   :  { %2521 = vrot.lane.b32.xlu1 %v7092_v37, %s7400_s30  ;;  %v7098_v42 = vpop.eup %7097  ;;  %v2438_v0 = vadd.f32 1.0, %v7096_v34  ;;  %v2188_v34 = vmul.f32 %v2182_v8, %v8331_v20 }
0x14a7   :  { %v7100_v56 = vpop.eup %7099  ;;  %7101 = vrcp.f32 %v2437_v60  ;;  %v2501_v25 = vadd.f32 1.0, %v7098_v42  ;;  %v2189_v60 = vmul.f32 %v2183_v39, %v8333_v35 }
0x14a8   :  { %7103 = vrcp.f32 %v2438_v0  ;;  %v2502_v30 = vadd.f32 1.0, %v7100_v56  ;;  %v2447_v42 = vrot.slane %v2188_v34, 7  ;;  %v2252_v0 = vmul.f32 %v2247_v11, %v8339_v50 }
0x14a9   :  { %7105 = vrcp.f32 %v2501_v25  ;;  %v2253_v56 = vmul.f32 %v8368_v53, %v8341_v62  ;;  %v2448_v25 = vrot.slane %v2189_v60, 7 }
0x14aa   :  { %7107 = vrcp.f32 %v2502_v30  ;;  %v2511_v8 = vrot.slane %v2252_v0, 1 }
0x14ab   :  { %v2512_v14 = vrot.slane %v2253_v56, 1 }
0x14b1   :  { %v8415_v7 = vpop.eup %7101 }
0x14b2   :  { %v8417_v23 = vpop.eup %7103  ;;  %v2451_v30 = vmul.f32 %v8415_v7, %v2447_v42 }
0x14b3   :  { %v8422_v13 = vpop.eup %7105 }
0x14b4   :  { %v8425_v5 = vpop.eup %7107  ;;  %v2515_v35 = vmul.f32 %v8422_v13, %v2511_v8 }
0x14b5   :  { %v2516_v50 = vmul.f32 %v8425_v5, %v2512_v14 }
0x1513   :  { %v2456_v29 = vpop.permute.xlu0 %2455 }
0x1514   :  { %v2458_v37 = vpop.permute.xlu1 %2457  ;;  %v2461_v63 = vmul.f32 %v8415_v7, %v2456_v29 }
0x1515   :  { %v2462_v32 = vmul.f32 %v8417_v23, %v2458_v37  ;;  %v2452_v37 = vmul.f32 %v8417_v23, %v2448_v25 }
0x1516   :  { %2465 = vrot.lane.b32.xlu0 %v2461_v63, %s7400_s30 }
0x1517   :  { %2467 = vrot.lane.b32.xlu1 %v2462_v32, %s7400_s30  ;;  %v2520_v31 = vpop.permute.xlu0 %2519 }
0x1518   :  { %v2525_v33 = vmul.f32 %v8422_v13, %v2520_v31  ;;  %v2522_v26 = vpop.permute.xlu1 %2521 }
0x1519   :  { %v2526_v12 = vmul.f32 %v8425_v5, %v2522_v26 }
0x151a   :  { %2529 = vrot.lane.b32.xlu0 %v2525_v33, %s7400_s30 }
0x151b   :  { %2531 = vrot.lane.b32.xlu1 %v2526_v12, %s7400_s30 }
0x151e   :  { %2487 = vperm.xlu0 %6745, %v2430_v54  }
0x151f   :  { %2550 = vperm.xlu1 %6746, %v2430_v54  }
0x1588   :  { %v2466_v29 = vpop.permute.xlu0 %2465 }
0x1589   :  { %v2471_v63 = vadd.f32 %v2466_v29, %v2451_v30  ;;  %v2468_v20 = vpop.permute.xlu1 %2467 }
0x158a   :  { %v2472_v32 = vadd.f32 %v2468_v20, %v2452_v37 }
0x158b   :  { %7109 = vtanh.f32 %v2471_v63 }
0x158c   :  { %7111 = vtanh.f32 %v2472_v32  ;;  %v2530_v39 = vpop.permute.xlu0 %2529 }
0x158d   :  { %v2535_v11 = vadd.f32 %v2530_v39, %v2515_v35  ;;  %v2532_v62 = vpop.permute.xlu1 %2531 }
0x158e   :  { %v2536_v53 = vadd.f32 %v2532_v62, %v2516_v50 }
0x158f   :  { %7113 = vtanh.f32 %v2535_v11 }
0x1590   :  { %7115 = vtanh.f32 %v2536_v53 }
0x1595   :  { %v7110_v31 = vpop.eup %7109 }
0x1596   :  { %v7112_v33 = vpop.eup %7111  ;;  %2477 = vrot.lane.b32.xlu1 %v7110_v31, %s7400_s30 }
0x1597   :  { %2479 = vrot.lane.b32.xlu0 %v7112_v33, %s7400_s30 }
0x1599   :  { %v7114_v26 = vpop.eup %7113 }
0x159a   :  { %v7116_v12 = vpop.eup %7115  ;;  %2541 = vrot.lane.b32.xlu1 %v7114_v26, %s7400_s30 }
0x159b   :  { %2543 = vrot.lane.b32.xlu0 %v7116_v12, %s7400_s30 }
0x159e   :  { %401 = vrot.lane.b32.xlu1 %v7668_v1, %s7402_s4  ;;  %v6818_v1 = vld [vmem:[%s9827_s6 + $0x14] ss:$8 sps:$4 sm:$0xff]  }
0x159f   :  { %403 = vrot.lane.b32.xlu0 %v7649_v48, %s7402_s4  ;;  %v6813_v48 = vld [vmem:[%s9827_s6] ss:$8 sps:$4 sm:$0xff]  }
0x15a2   :  { %412 = vrot.lane.b32.xlu1 %v7655_v55, %s7409_s2  ;;  %v6815_v55 = vld [vmem:[%s9827_s6 + $0x4] ss:$8 sps:$4 sm:$0xff]  }
0x15a3   :  { %414 = vrot.lane.b32.xlu0 %v7661_v57, %s7409_s2  ;;  %2646 = vmatprep.subr.bf16.mxu0 %v6815_v55  ;;  %v6816_v57 = vld [vmem:[%s9827_s6 + $0x10] ss:$8 sps:$4 sm:$0xff]  }
0x15a4   :  { %2647 = vmatpush1.bf16.msra.mxu0 %v6813_v48 }
0x15a5   :  { %2648 = vmatprep.subr.bf16.mxu0 %v6818_v1 }
0x15a6   :  { %709 = vrot.lane.b32.xlu1 %v7762_v9, %s7402_s4  ;;  %v2551_v9 = vpop.permute.xlu1 %2550 }
0x15a7   :  { %711 = vrot.lane.b32.xlu0 %v7783_v38, %s7402_s4  ;;  %v6821_v38 = vld [vmem:[%s9827_s6 + $0x24] ss:$8 sps:$4 sm:$0xff]  }
0x15a8   :  { %2649 = vmatpush1.bf16.msra.mxu0 %v6816_v57  ;;  %v6825_v57 = vld [vmem:[%s9829_s8] sm:$0xff]  }
0x15a9   :  { %2650 = vmatprep.subr.bf16.mxu0 %v6821_v38 }
0x15aa   :  { %720 = vrot.lane.b32.xlu1 %v7775_v16, %s7409_s2  ;;  %v6819_v16 = vld [vmem:[%s9827_s6 + $0x20] ss:$8 sps:$4 sm:$0xff]  }
0x15ab   :  { %722 = vrot.lane.b32.xlu0 %v7771_v28, %s7409_s2  ;;  %v2488_v28 = vpop.permute.xlu0 %2487 }
0x15ac   :  { %2651 = vmatpush1.bf16.msra.mxu0 %v6819_v16  ;;  %v6828_v16 = vld [vmem:[%s9830_s9 + $0x8] sm:$0xff]  }
0x15ae   :  { %1018 = vrot.lane.b32.xlu1 %v7882_v18, %s7402_s4  ;;  %v6824_v18 = vld [vmem:[%s9827_s6 + $0x34] ss:$8 sps:$4 sm:$0xff]  }
0x15af   :  { %1020 = vrot.lane.b32.xlu0 %v7886_v22, %s7402_s4  ;;  %2652 = vmatprep.subr.bf16.mxu0 %v6824_v18 }
0x15b2   :  { %1029 = vrot.lane.b32.xlu1 %v7899_v40, %s7409_s2  ;;  %v6822_v40 = vld [vmem:[%s9827_s6 + $0x30] ss:$8 sps:$4 sm:$0xff]   ;;  %s7416_s6 = smov 85  }
0x15b3   :  { %1031 = vrot.lane.b32.xlu0 %v7903_v49, %s7409_s2  ;;  %v2489_v49 = vrot.slane %v2488_v28, 1  ;;  %2653 = vmatpush1.bf16.msra.mxu0 %v6822_v40 }
0x15b4   :  { %6464 = vmatprep.subr.bf16.mxu0 %v7397_v2 }
0x15b6   :  { %1328 = vrot.lane.b32.xlu1 %v8000_v21, %s7402_s4 }
0x15b7   :  { %1330 = vrot.lane.b32.xlu0 %v8012_v10, %s7402_s4 }
0x15ba   :  { %1339 = vrot.lane.b32.xlu1 %v8021_v17, %s7409_s2  ;;  %v2490_v17 = vrot.slane %v2488_v28, 2  ;;  %v6827_v28 = vld [vmem:[%s9830_s9] sm:$0xff]  }
0x15bb   :  { %1341 = vrot.lane.b32.xlu0 %v8028_v51, %s7409_s2 }
0x15be   :  { %1638 = vrot.lane.b32.xlu1 %v8128_v47, %s7402_s4 }
0x15bf   :  { %1640 = vrot.lane.b32.xlu0 %v8132_v61, %s7402_s4 }
0x15c2   :  { %1649 = vrot.lane.b32.xlu1 %v8145_v59, %s7409_s2 }
0x15c3   :  { %1651 = vrot.lane.b32.xlu0 %v8149_v24, %s7409_s2 }
0x15c6   :  { %1948 = vrot.lane.b32.xlu1 %v8251_v52, %s7402_s4 }
0x15c7   :  { %1950 = vrot.lane.b32.xlu0 %v8255_v36, %s7402_s4  ;;  %v2552_v36 = vrot.slane %v2551_v9, 1 }
0x15ca   :  { %1959 = vrot.lane.b32.xlu1 %v8268_v45, %s7409_s2 }
0x15cb   :  { %1961 = vrot.lane.b32.xlu0 %v8272_v6, %s7409_s2 }
0x15ce   :  { %2256 = vrot.lane.b32.xlu1 %v8372_v4, %s7402_s4 }
0x15cf   :  { %2258 = vrot.lane.b32.xlu0 %v8380_v58, %s7402_s4 }
0x15d2   :  { %2267 = vrot.lane.b32.xlu1 %v8388_v27, %s7409_s2 }
0x15d3   :  { %2269 = vrot.lane.b32.xlu0 %v8394_v46, %s7409_s2 }
0x1608   :  { %v2478_v22 = vpop.permute.xlu1 %2477 }
0x1609   :  { %v2480_v21 = vpop.permute.xlu0 %2479  ;;  %v2483_v10 = vmul.f32 %v8415_v7, %v2478_v22 }
0x160a   :  { %v2484_v51 = vmul.f32 %v8417_v23, %v2480_v21 }
0x160b   :  { %v2493_v47 = vmul.f32 %v2489_v49, %v2483_v10  ;;  %v2590_v49 = vld [vmem:[%s9828_s7] sm:$0x3]  ;;  %s7415_s7 = smov 51  }
0x160c   :  { %v2494_v61 = vmul.f32 %v2490_v17, %v2484_v51  ;;  %v2542_v59 = vpop.permute.xlu1 %2541  ;;  %v2595_v21 = vrot.slane %v2590_v49, %v7577_v15 }
0x160d   :  { %v2547_v24 = vmul.f32 %v8422_v13, %v2542_v59  ;;  %v2544_v52 = vpop.permute.xlu0 %2543  ;;  %2559 = vrot.lane.b32.xlu1 %v2493_v47, %s7402_s4 }
0x160e   :  { %v2548_v45 = vmul.f32 %v8425_v5, %v2544_v52  ;;  %2561 = vrot.lane.b32.xlu0 %v2494_v61, %s7402_s4  ;;  %v2599_v52 = vrot.slane %v2590_v49, %v7583_v19 }
0x160f   :  { %v2555_v6 = vmul.f32 %v2551_v9, %v2547_v24  ;;  %v6826_v9 = vld [vmem:[%s9829_s8 + $0x8] sm:$0xff]  }
0x1610   :  { %v2556_v4 = vmul.f32 %v2552_v36, %v2548_v45  ;;  %v402_v58 = vpop.permute.xlu1 %401 }
0x1611   :  { %408 = vst.msk [vmem:[#allocation2] sm:$0x1] %vm407_vm3, %v402_v58  ;;  %v404_v27 = vpop.permute.xlu0 %403  ;;  %2570 = vrot.lane.b32.xlu1 %v2555_v6, %s7409_s2 }
0x1612   :  { %409 = vst.msk [vmem:[#allocation2 + $0x8] sm:$0x1] %vm407_vm3, %v404_v27  ;;  %2572 = vrot.lane.b32.xlu0 %v2556_v4, %s7409_s2 }
0x1614   :  { %v413_v46 = vpop.permute.xlu1 %412 }
0x1615   :  { %419 = vst.msk [vmem:[#allocation2] sm:$0x80] %vm418_vm4, %v413_v46  ;;  %v415_v7 = vpop.permute.xlu0 %414 }
0x1616   :  { %420 = vst.msk [vmem:[#allocation2 + $0x8] sm:$0x80] %vm418_vm4, %v415_v7 }
0x1618   :  { %v710_v23 = vpop.permute.xlu1 %709 }
0x1619   :  { %716 = vst.msk [vmem:[#allocation2] sm:$0x2] %vm715_vm5, %v710_v23  ;;  %v712_v13 = vpop.permute.xlu0 %711 }
0x161a   :  { %717 = vst.msk [vmem:[#allocation2 + $0x8] sm:$0x2] %vm715_vm5, %v712_v13 }
0x161c   :  { %v721_v5 = vpop.permute.xlu1 %720 }
0x161d   :  { %727 = vst.msk [vmem:[#allocation2] sm:$0x40] %vm726_vm6, %v721_v5  ;;  %v723_v54 = vpop.permute.xlu0 %722 }
0x161e   :  { %728 = vst.msk [vmem:[#allocation2 + $0x8] sm:$0x40] %vm726_vm6, %v723_v54 }
0x1620   :  { %v1019_v34 = vpop.permute.xlu1 %1018 }
0x1621   :  { %1025 = vst.msk [vmem:[#allocation2] sm:$0x4] %vm1024_vm7, %v1019_v34  ;;  %v1021_v60 = vpop.permute.xlu0 %1020 }
0x1622   :  { %1026 = vst.msk [vmem:[#allocation2 + $0x8] sm:$0x4] %vm1024_vm7, %v1021_v60 }
0x1624   :  { %v1030_v42 = vpop.permute.xlu1 %1029 }
0x1625   :  { %1036 = vst.msk [vmem:[#allocation2] sm:$0x20] %vm1035_vm8, %v1030_v42  ;;  %v1032_v0 = vpop.permute.xlu0 %1031 }
0x1626   :  { %1037 = vst.msk [vmem:[#allocation2 + $0x8] sm:$0x20] %vm1035_vm8, %v1032_v0 }
0x1628   :  { %v1329_v56 = vpop.permute.xlu1 %1328 }
0x1629   :  { %1335 = vst.msk [vmem:[#allocation2] sm:$0x8] %vm1334_vm9, %v1329_v56  ;;  %v1331_v25 = vpop.permute.xlu0 %1330 }
0x162a   :  { %1336 = vst.msk [vmem:[#allocation2 + $0x8] sm:$0x8] %vm1334_vm9, %v1331_v25 }
0x162c   :  { %v1340_v30 = vpop.permute.xlu1 %1339 }
0x162d   :  { %1346 = vst.msk [vmem:[#allocation2] sm:$0x10] %vm1345_vm10, %v1340_v30  ;;  %v1342_v29 = vpop.permute.xlu0 %1341 }
0x162e   :  { %1347 = vst.msk [vmem:[#allocation2 + $0x8] sm:$0x10] %vm1345_vm10, %v1342_v29 }
0x1630   :  { %v1639_v37 = vpop.permute.xlu1 %1638 }
0x1631   :  { %1645 = vst.msk [vmem:[#allocation2] sm:$0x10] %vm1644_vm11, %v1639_v37  ;;  %v1641_v63 = vpop.permute.xlu0 %1640 }
0x1632   :  { %1646 = vst.msk [vmem:[#allocation2 + $0x8] sm:$0x10] %vm1644_vm11, %v1641_v63 }
0x1634   :  { %v1650_v20 = vpop.permute.xlu1 %1649 }
0x1635   :  { %1656 = vst.msk [vmem:[#allocation2] sm:$0x8] %vm9853_vm12, %v1650_v20  ;;  %v1652_v8 = vpop.permute.xlu0 %1651 }
0x1636   :  { %1657 = vst.msk [vmem:[#allocation2 + $0x8] sm:$0x8] %vm9853_vm12, %v1652_v8  ;;  %vm2273_vm12 = vcmask 517377  }
0x1638   :  { %v1949_v32 = vpop.permute.xlu1 %1948 }
0x1639   :  { %1955 = vst.msk [vmem:[#allocation2] sm:$0x20] %vm9854_vm13, %v1949_v32  ;;  %v1951_v14 = vpop.permute.xlu0 %1950 }
0x163a   :  { %1956 = vst.msk [vmem:[#allocation2 + $0x8] sm:$0x20] %vm9854_vm13, %v1951_v14  ;;  %vm2565_vm13 = vcmask 261127  }
0x163c   :  { %v1960_v35 = vpop.permute.xlu1 %1959 }
0x163d   :  { %1966 = vst.msk [vmem:[#allocation2] sm:$0x4] %vm9855_vm14, %v1960_v35  ;;  %v1962_v39 = vpop.permute.xlu0 %1961 }
0x163e   :  { %1967 = vst.msk [vmem:[#allocation2 + $0x8] sm:$0x4] %vm9855_vm14, %v1962_v39  ;;  %vm2576_vm14 = vcmask 516352  }
0x1640   :  { %v2257_v50 = vpop.permute.xlu1 %2256 }
0x1641   :  { %2263 = vst.msk [vmem:[#allocation2] sm:$0x40] %vm9856_vm15, %v2257_v50  ;;  %v2259_v11 = vpop.permute.xlu0 %2258 }
0x1642   :  { %2264 = vst.msk [vmem:[#allocation2 + $0x8] sm:$0x40] %vm9856_vm15, %v2259_v11  ;;  %vm2642_vm15 = vcmask 523264  }
0x1644   :  { %v2268_v62 = vpop.permute.xlu1 %2267 }
0x1645   :  { %2274 = vst.msk [vmem:[#allocation2] sm:$0x2] %vm2273_vm12, %v2268_v62  ;;  %v2270_v53 = vpop.permute.xlu0 %2269 }
0x1646   :  { %2275 = vst.msk [vmem:[#allocation2 + $0x8] sm:$0x2] %vm2273_vm12, %v2270_v53 }
0x167f   :  { %v2560_v31 = vpop.permute.xlu1 %2559 }
0x1680   :  { %2566 = vst.msk [vmem:[#allocation2] sm:$0x80] %vm2565_vm13, %v2560_v31  ;;  %v2562_v33 = vpop.permute.xlu0 %2561 }
0x1681   :  { %2567 = vst.msk [vmem:[#allocation2 + $0x8] sm:$0x80] %vm2565_vm13, %v2562_v33 }
0x1683   :  { %v2571_v26 = vpop.permute.xlu1 %2570 }
0x1684   :  { %2577 = vst.msk [vmem:[#allocation2] sm:$0x1] %vm2576_vm14, %v2571_v26  ;;  %v2573_v12 = vpop.permute.xlu0 %2572 }
0x1685   :  { %2578 = vst.msk [vmem:[#allocation2 + $0x8] sm:$0x1] %vm2576_vm14, %v2573_v12 }
0x168b   :  { %v2579_v48 = vld [vmem:[#allocation2] sm:$0xff] }
0x168c   :  { %v2580_v55 = vld [vmem:[#allocation2 + $0x8] sm:$0xff] }
0x168d   :  { %v2581_v1 = vpack.c.bf16 %v2580_v55, %v2579_v48 }
0x168f   :  { %6134 = vmatmul.mubr.msk.bf16.vlgmr.msra.gmra.mrb[36].mxu0 %vm2642_vm15, %v2581_v1 }
0x1690   :  { %6465 = vmatpush3.bf16.msra.mxu0 %v6825_v57  ;;  %6468 = vmatprep.mubr.msk.bf16.mxu0 %vm7399_vm0, %v7397_v2 }
0x1691   :  { %6466 = vmatprep.subr.bf16.mxu0 %v7397_v2 }
0x1694   :  { %6467 = vmatpush3.bf16.msra.mxu0 %v6826_v9 }
0x1695   :  { %6472 = vmatprep.subr.bf16.mxu0 %v7397_v2 }
0x1697   :  { %6469 = vmatmul.mubr.bf16.vlgmr.msra.gmra.mrb[40].mxu0 %v7398_v3 }
0x1698   :  { %6473 = vmatpush3.bf16.msra.mxu0 %v6827_v28  ;;  %6476 = vmatprep.mubr.msk.bf16.mxu0 %vm7399_vm0, %v7397_v2 }
0x1699   :  { %6474 = vmatprep.subr.bf16.mxu0 %v7397_v2 }
0x169c   :  { %6475 = vmatpush3.bf16.msra.mxu0 %v6828_v16 }
0x169d   :  { %6488 = vmatprep.subr.bf16.mxu0 %v7397_v2 }
0x169f   :  { %6477 = vmatmul.mubr.bf16.vlgmr.msra.gmra.mrb[44].mxu0 %v7398_v3 }
0x16a0   :  { %6492 = vmatprep.mubr.msk.bf16.mxu0 %vm7399_vm0, %v7397_v2 }
0x1762   :  { %v2680_v38 = vpop.f32.mrb[36].mxu0 }
0x1763   :  { %v2682_v18 = vpop.f32.mrb[37].mxu0  ;;  %v8611_v7 = vadd.f32 %v2680_v38, %v2595_v21 }
0x1764   :  { %v2684_v22 = vpop.f32.mrb[38].mxu0  ;;  %v8607_v45 = vadd.f32 %v2682_v18, %v2599_v52  ;;  %v2814_v18 = vld [vmem:[%s9866_s1] sm:$0x3] }
0x1765   :  { %v2686_v40 = vpop.f32.mrb[39].mxu0  ;;  %v8603_v17 = vadd.f32 %v2684_v22, %v2595_v21 }
0x1766   :  { %v8609_v6 = vadd.f32 %v2686_v40, %v2599_v52 }
0x176a   :  { %v2739_v10 = vpop.f32.mrb[40].mxu0 }
0x176b   :  { %v2802_v51 = vrot.slane %v2739_v10, 1  ;;  %v6470_v47 = vpop.f32.mrb[41].mxu0  ;;  %v2805_v54 = vadd.f32 %v2739_v10, %v8611_v7 }
0x176c   :  { %v2742_v61 = vpop.f32.mrb[42].mxu0 }
0x176d   :  { %v2806_v59 = vadd.f32 %v2802_v51, %v8603_v17  ;;  %v6471_v24 = vpop.f32.mrb[43].mxu0  ;;  %v2815_v37 = vsub.f32 0.0, %v2805_v54 }
0x176f   :  { %7117 = vtanh.f32 %v2806_v59  ;;  %v2816_v56 = vsub.f32 0.0, %v2806_v59  ;;  %v2817_v8 = vmul.f32 1.442695, %v2815_v37 }
0x1771   :  { %v2819_v25 = vmul.f32 1.442695, %v2816_v56 }
0x1772   :  { %v2795_v36 = vpop.f32.mrb[44].mxu0 }
0x1773   :  { %v2808_v4 = vrot.slane %v2795_v36, 1  ;;  %v2809_v58 = vrot.slane %v2795_v36, 2  ;;  %v6478_v27 = vpop.f32.mrb[45].mxu0 }
0x1774   :  { %v2798_v46 = vpop.f32.mrb[46].mxu0 }
0x1775   :  { %v2812_v23 = vadd.f32 %v2808_v4, %v8607_v45  ;;  %v2813_v13 = vadd.f32 %v2809_v58, %v8609_v6  ;;  %v6479_v5 = vpop.f32.mrb[47].mxu0  ;;  %v6829_v46 = vld [vmem:[%s9830_s9] sm:$0xff]  }
0x1776   :  { %6489 = vmatpush3.bf16.msra.mxu0 %v6829_v46  ;;  %v6831_v5 = vld [vmem:[%s9830_s9 + $0x8] sm:$0xff]  }
0x1777   :  { %7119 = vtanh.f32 %v2812_v23  ;;  %v2874_v30 = vsub.f32 0.0, %v2812_v23  ;;  %v2875_v29 = vsub.f32 0.0, %v2813_v13  ;;  %v6830_v23 = vld [vmem:[%s9829_s8] sm:$0xff]   ;;  %6490 = vmatprep.subr.bf16.mxu0 %v7397_v2 }
0x1778   :  { %7121 = vtanh.f32 %v2813_v13  ;;  %6481 = vmatpush3.bf16.msra.mxu1 %v6830_v23 }
0x1779   :  { %v7118_v34 = vpop.eup %7117  ;;  %7123 = vtanh.f32 %v2805_v54  ;;  %v2876_v63 = vmul.f32 1.442695, %v2874_v30  ;;  %v2878_v20 = vmul.f32 1.442695, %v2875_v29  ;;  %v6832_v54 = vld [vmem:[%s9829_s8 + $0x8] sm:$0xff]   ;;  %6482 = vmatprep.subr.bf16.mxu1 %v7397_v2 }
0x177a   :  { %2835 = vrot.lane.b32.xlu1 %v7118_v34, %s7400_s30  ;;  %7125 = vpow2.f32 %v2819_v25  ;;  %6491 = vmatpush3.bf16.msra.mxu0 %v6831_v5 }
0x177b   :  { %7127 = vpow2.f32 %v2876_v63  ;;  %6504 = vmatprep.subr.bf16.mxu0 %v7397_v2 }
0x177c   :  { %7129 = vpow2.f32 %v2878_v20  ;;  %6483 = vmatpush3.bf16.msra.mxu1 %v6832_v54 }
0x177d   :  { %7131 = vpow2.f32 %v2817_v8  ;;  %6496 = vmatprep.subr.bf16.mxu1 %v7397_v2 }
0x1781   :  { %v7120_v60 = vpop.eup %7119 }
0x1782   :  { %v7122_v42 = vpop.eup %7121  ;;  %2892 = vrot.lane.b32.xlu0 %v7120_v60, %s7400_s30 }
0x1783   :  { %2894 = vrot.lane.b32.xlu1 %v7122_v42, %s7400_s30  ;;  %v7124_v0 = vpop.eup %7123 }
0x1784   :  { %v7126_v32 = vpop.eup %7125 }
0x1785   :  { %v2822_v14 = vadd.f32 1.0, %v7126_v32  ;;  %v7128_v35 = vpop.eup %7127 }
0x1786   :  { %2833 = vrot.lane.b32.xlu0 %v7124_v0, %s7400_s30  ;;  %v7130_v39 = vpop.eup %7129  ;;  %v2880_v50 = vadd.f32 1.0, %v7128_v35 }
0x1787   :  { %7133 = vrcp.f32 %v2822_v14  ;;  %v7132_v11 = vpop.eup %7131  ;;  %v2881_v62 = vadd.f32 1.0, %v7130_v39 }
0x1788   :  { %v2821_v53 = vadd.f32 1.0, %v7132_v11  ;;  %7135 = vrcp.f32 %v2880_v50 }
0x1789   :  { %7137 = vrcp.f32 %v2881_v62 }
0x178a   :  { %7139 = vrcp.f32 %v2821_v53 }
0x1791   :  { %v7134_v31 = vpop.eup %7133 }
0x1792   :  { %v7136_v12 = vpop.eup %7135  ;;  %v2830_v22 = vmul.f32 0.0, %v7134_v31 }
0x1793   :  { %v7138_v55 = vpop.eup %7137  ;;  %v2888_v21 = vmul.f32 0.0, %v7136_v12 }
0x1794   :  { %v8622_v28 = vpop.eup %7139  ;;  %v2889_v10 = vmul.f32 0.0, %v7138_v55 }
0x1795   :  { %v2829_v24 = vmul.f32 0.0, %v8622_v28 }
0x17ec   :  { %v2836_v33 = vpop.permute.xlu1 %2835 }
0x17ed   :  { %v2840_v26 = vmul.f32 %v7134_v31, %v2836_v33 }
0x17ef   :  { %2845 = vrot.lane.b32.xlu1 %v2840_v26, %s7400_s30 }
0x17f4   :  { %v2893_v48 = vpop.permute.xlu0 %2892 }
0x17f5   :  { %v2895_v57 = vpop.permute.xlu1 %2894  ;;  %v2898_v1 = vmul.f32 %v7136_v12, %v2893_v48 }
0x17f6   :  { %v2899_v9 = vmul.f32 %v7138_v55, %v2895_v57 }
0x17f7   :  { %2902 = vrot.lane.b32.xlu0 %v2898_v1, %s7400_s30 }
0x17f8   :  { %2904 = vrot.lane.b32.xlu1 %v2899_v9, %s7400_s30  ;;  %v2834_v16 = vpop.permute.xlu0 %2833 }
0x17f9   :  { %v2839_v38 = vmul.f32 %v8622_v28, %v2834_v16 }
0x17fb   :  { %2843 = vrot.lane.b32.xlu0 %v2839_v38, %s7400_s30 }
0x17fc   :  { %2865 = vperm.xlu1 %6746, %v2814_v18  }
0x17ff   :  { %2923 = vperm.xlu0 %6745, %v2814_v18  }
0x1800   :  { %6747 = vset.pattern.permute.xlu1 %v7404_v43 }
0x1803   :  { %6748 = vset.pattern.permute.xlu0 %v7403_v41 }
0x1861   :  { %v2846_v40 = vpop.permute.xlu1 %2845 }
0x1862   :  { %v8632_v49 = vadd.f32 %v2846_v40, %v2830_v22 }
0x1864   :  { %7141 = vtanh.f32 %v8632_v49 }
0x1869   :  { %v2903_v51 = vpop.permute.xlu0 %2902 }
0x186a   :  { %v2905_v47 = vpop.permute.xlu1 %2904  ;;  %v8635_v61 = vadd.f32 %v2903_v51, %v2888_v21 }
0x186b   :  { %v8637_v59 = vadd.f32 %v2905_v47, %v2889_v10 }
0x186c   :  { %7143 = vtanh.f32 %v8635_v61 }
0x186d   :  { %7145 = vtanh.f32 %v8637_v59  ;;  %v2844_v52 = vpop.permute.xlu0 %2843 }
0x186e   :  { %v7142_v36 = vpop.eup %7141  ;;  %v8642_v4 = vadd.f32 %v2844_v52, %v2829_v24 }
0x186f   :  { %2857 = vrot.lane.b32.xlu1 %v7142_v36, %s7400_s30 }
0x1870   :  { %7147 = vtanh.f32 %v8642_v4 }
0x1876   :  { %v7144_v58 = vpop.eup %7143 }
0x1877   :  { %v7146_v27 = vpop.eup %7145  ;;  %2914 = vrot.lane.b32.xlu0 %v7144_v58, %s7400_s30 }
0x1878   :  { %2916 = vrot.lane.b32.xlu1 %v7146_v27, %s7400_s30 }
0x187a   :  { %v7148_v13 = vpop.eup %7147 }
0x187b   :  { %2855 = vrot.lane.b32.xlu0 %v7148_v13, %s7400_s30  ;;  %v8665_v34 = vpop.permute.xlu1 %2865 }
0x187c   :  { %v2867_v56 = vrot.slane %v8665_v34, 1 }
0x187e   :  { %v8667_v0 = vpop.permute.xlu0 %2923 }
0x187f   :  { %v2925_v29 = vrot.slane %v8667_v0, 1  ;;  %v2926_v20 = vrot.slane %v8667_v0, 2 }
0x18e1   :  { %v2858_v60 = vpop.permute.xlu1 %2857 }
0x18e2   :  { %v2862_v42 = vmul.f32 %v7134_v31, %v2858_v60 }
0x18e4   :  { %v8672_v25 = vmul.f32 %v2867_v56, %v2862_v42 }
0x18e6   :  { %v2954_v32 = vpack.c.bf16 %v8672_v25, %v8672_v25 }
0x18e8   :  { %v2962_v53 = vunpack.c.l.b16 %v2954_v32 }
0x18e9   :  { %v2915_v30 = vpop.permute.xlu0 %2914 }
0x18ea   :  { %v2917_v37 = vpop.permute.xlu1 %2916  ;;  %v2920_v63 = vmul.f32 %v7136_v12, %v2915_v30  ;;  %v2963_v57 = vrot.slane %v2962_v53, 7 }
0x18eb   :  { %v2921_v8 = vmul.f32 %v7138_v55, %v2917_v37 }
0x18ec   :  { %v8680_v14 = vmul.f32 %v2925_v29, %v2920_v63 }
0x18ed   :  { %v8684_v35 = vmul.f32 %v2926_v20, %v2921_v8  ;;  %v2856_v39 = vpop.permute.xlu0 %2855 }
0x18ee   :  { %v3023_v50 = vpack.c.bf16 %v8680_v14, %v8680_v14  ;;  %v2861_v11 = vmul.f32 %v8622_v28, %v2856_v39 }
0x18ef   :  { %v3024_v62 = vpack.c.bf16 %v8684_v35, %v8684_v35 }
0x18f0   :  { %v3031_v31 = vunpack.c.l.b16 %v3023_v50  ;;  %v8692_v33 = vmul.f32 %v8665_v34, %v2861_v11 }
0x18f1   :  { %v3032_v26 = vunpack.c.l.b16 %v3024_v62 }
0x18f2   :  { %v3033_v12 = vrot.slane %v3031_v31, 7  ;;  %v2953_v48 = vpack.c.bf16 %v8692_v33, %v8692_v33 }
0x18f3   :  { %v3034_v55 = vrot.slane %v3032_v26, 6 }
0x18f4   :  { %v2961_v1 = vunpack.c.l.b16 %v2953_v48 }
0x18f5   :  { %v3035_v9 = vsel %vm432_vm2, %v3034_v55, %v3033_v12 }
0x18f6   :  { %v3036_v16 = vpack.c.b16 %v3035_v9, %v3035_v9  ;;  %v2964_v28 = vsel %vm432_vm2, %v2963_v57, %v2961_v1 }
0x18f7   :  { %v2965_v38 = vpack.c.b16 %v2964_v28, %v2964_v28 }
0x18f8   :  { %3037 = vrot.lane.b32.xlu0 %v3036_v16, %s7402_s4 }
0x18f9   :  { %2966 = vrot.lane.b32.xlu1 %v2965_v38, %s7402_s4 }
0x196a   :  { %v3038_v18 = vpop.permute.xlu0 %3037 }
0x196b   :  { %6493 = vmatmul.mubr.msk.bf16.vlgmr.msra.gmra.mrb[48].mxu0 %vm105_vm1, %v3038_v18  ;;  %v2967_v22 = vpop.permute.xlu1 %2966 }
0x196c   :  { %6485 = vmatmul.mubr.msk.bf16.vlgmr.msra.gmra.mrb[32].mxu1 %vm105_vm1, %v2967_v22  ;;  %6508 = vmatprep.mubr.msk.bf16.mxu0 %vm7399_vm0, %v7397_v2 }
0x196d   :  { %6500 = vmatprep.mubr.msk.bf16.mxu1 %vm7399_vm0, %v7397_v2 }
0x1a3e   :  { %v3088_v40 = vpop.f32.mrb[48].mxu0 }
0x1a3f   :  { %v3101_v21 = vrot.slane %v3088_v40, 2  ;;  %v6494_v10 = vpop.f32.mrb[49].mxu0  ;;  %v3017_v51 = vpop.f32.mrb[32].mxu1  ;;  %v3102_v36 = vrot.slane %v3088_v40, 3 }
0x1a40   :  { %v3095_v47 = vrot.slane %v3017_v51, 7  ;;  %v3091_v24 = vpop.f32.mrb[50].mxu0  ;;  %v6486_v52 = vpop.f32.mrb[33].mxu1  ;;  %v3099_v5 = vadd.f32 %v3017_v51, %v8603_v17 }
0x1a41   :  { %v3105_v58 = vadd.f32 %v3101_v21, %v8607_v45  ;;  %v6495_v27 = vpop.f32.mrb[51].mxu0  ;;  %v3020_v46 = vpop.f32.mrb[34].mxu1  ;;  %v3106_v54 = vadd.f32 %v3102_v36, %v8609_v6  ;;  %v3107_v36 = vld [vmem:[%s9866_s1] sm:$0x3] }
0x1a42   :  { %v3098_v23 = vadd.f32 %v3095_v47, %v8611_v7  ;;  %v6487_v13 = vpop.f32.mrb[35].mxu1  ;;  %v3109_v39 = vsub.f32 0.0, %v3099_v5  ;;  %v9868_v27 = vmov 5   ;;  %v2872_v46 = vmul.f32 %v8665_v34, %v8642_v4 }
0x1a43   :  { %7149 = vtanh.f32 %v3105_v58  ;;  %v3173_v63 = vsub.f32 0.0, %v3105_v58  ;;  %v3174_v50 = vsub.f32 0.0, %v3106_v54  ;;  %v9867_v58 = vmov 2  }
0x1a44   :  { %7151 = vtanh.f32 %v3098_v23  ;;  %v3108_v8 = vsub.f32 0.0, %v3098_v23  ;;  %v3112_v62 = vmul.f32 1.442695, %v3109_v39  ;;  %v2931_v23 = vmul.f32 %v2925_v29, %v8635_v61 }
0x1a45   :  { %7153 = vtanh.f32 %v3099_v5  ;;  %v3175_v32 = vmul.f32 1.442695, %v3173_v63  ;;  %v3177_v53 = vmul.f32 1.442695, %v3174_v50  ;;  %v2932_v13 = vmul.f32 %v2926_v20, %v8637_v59 }
0x1a46   :  { %7155 = vtanh.f32 %v3106_v54  ;;  %v3110_v11 = vmul.f32 1.442695, %v3108_v8  ;;  %v3124_v5 = vrot.slane %v2872_v46, 7  ;;  %v3189_v54 = vrot.slane %v2931_v23, 1 }
0x1a47   :  { %7157 = vpow2.f32 %v3175_v32  ;;  %v3190_v8 = vrot.slane %v2932_v13, 1 }
0x1a48   :  { %7159 = vpow2.f32 %v3110_v11  ;;  %v6833_v11 = vld [vmem:[%s9830_s9] sm:$0xff]  }
0x1a49   :  { %7161 = vpow2.f32 %v3112_v62  ;;  %v6834_v62 = vld [vmem:[%s9829_s8] sm:$0xff]   ;;  %6505 = vmatpush3.bf16.msra.mxu0 %v6833_v11 }
0x1a4a   :  { %7163 = vpow2.f32 %v3177_v53  ;;  %6497 = vmatpush3.bf16.msra.mxu1 %v6834_v62  ;;  %6506 = vmatprep.subr.bf16.mxu0 %v7397_v2 }
0x1a4b   :  { %6498 = vmatprep.subr.bf16.mxu1 %v7397_v2 }
0x1a4d   :  { %v7150_v60 = vpop.eup %7149 }
0x1a4e   :  { %3197 = vrot.lane.b32.xlu0 %v7150_v60, %s7400_s30  ;;  %v7152_v42 = vpop.eup %7151 }
0x1a4f   :  { %3132 = vrot.lane.b32.xlu1 %v7152_v42, %s7400_s30  ;;  %v7154_v30 = vpop.eup %7153 }
0x1a50   :  { %v7156_v37 = vpop.eup %7155 }
0x1a51   :  { %v7158_v31 = vpop.eup %7157 }
0x1a52   :  { %3134 = vrot.lane.b32.xlu0 %v7154_v30, %s7400_s30  ;;  %v7160_v26 = vpop.eup %7159  ;;  %v3179_v12 = vadd.f32 1.0, %v7158_v31  ;;  %v2873_v30 = vmul.f32 %v2867_v56, %v8632_v49  ;;  %v6835_v31 = vld [vmem:[%s9830_s9 + $0x8] sm:$0xff]  }
0x1a53   :  { %3199 = vrot.lane.b32.xlu1 %v7156_v37, %s7400_s30  ;;  %v7162_v48 = vpop.eup %7161  ;;  %v3114_v55 = vadd.f32 1.0, %v7160_v26  ;;  %v6836_v26 = vld [vmem:[%s9829_s8 + $0x8] sm:$0xff]   ;;  %6507 = vmatpush3.bf16.msra.mxu0 %v6835_v31 }
0x1a54   :  { %v7164_v57 = vpop.eup %7163  ;;  %7165 = vrcp.f32 %v3179_v12  ;;  %v3115_v1 = vadd.f32 1.0, %v7162_v48  ;;  %v3125_v59 = vrot.slane %v2873_v30, 7  ;;  %6499 = vmatpush3.bf16.msra.mxu1 %v6836_v26  ;;  %6520 = vmatprep.subr.bf16.mxu0 %v7397_v2 }
0x1a55   :  { %v3180_v9 = vadd.f32 1.0, %v7164_v57  ;;  %7167 = vrcp.f32 %v3114_v55  ;;  %6512 = vmatprep.subr.bf16.mxu1 %v7397_v2 }
0x1a56   :  { %7169 = vrcp.f32 %v3115_v1 }
0x1a57   :  { %7171 = vrcp.f32 %v3180_v9 }
0x1a5e   :  { %v8714_v16 = vpop.eup %7165 }
0x1a5f   :  { %v8717_v18 = vpop.eup %7167  ;;  %v3193_v37 = vmul.f32 %v8714_v16, %v3189_v54 }
0x1a60   :  { %v8721_v21 = vpop.eup %7169  ;;  %v3128_v42 = vmul.f32 %v8717_v18, %v3124_v5 }
0x1a61   :  { %v8725_v47 = vpop.eup %7171  ;;  %v3129_v32 = vmul.f32 %v8721_v21, %v3125_v59 }
0x1a62   :  { %v3194_v0 = vmul.f32 %v8725_v47, %v3190_v8 }
0x1ac0   :  { %v3198_v28 = vpop.permute.xlu0 %3197 }
0x1ac1   :  { %v3203_v38 = vmul.f32 %v8714_v16, %v3198_v28  ;;  %v3133_v22 = vpop.permute.xlu1 %3132 }
0x1ac2   :  { %v3138_v40 = vmul.f32 %v8717_v18, %v3133_v22 }
0x1ac3   :  { %3207 = vrot.lane.b32.xlu0 %v3203_v38, %s7400_s30 }
0x1ac4   :  { %v3135_v10 = vpop.permute.xlu0 %3134  ;;  %3142 = vrot.lane.b32.xlu1 %v3138_v40, %s7400_s30 }
0x1ac5   :  { %v3139_v51 = vmul.f32 %v8721_v21, %v3135_v10  ;;  %v3200_v24 = vpop.permute.xlu1 %3199 }
0x1ac6   :  { %v3204_v52 = vmul.f32 %v8725_v47, %v3200_v24 }
0x1ac7   :  { %3144 = vrot.lane.b32.xlu0 %v3139_v51, %s7400_s30 }
0x1ac8   :  { %3209 = vrot.lane.b32.xlu1 %v3204_v52, %s7400_s30 }
0x1acb   :  { %3228 = vperm.xlu0 %6748, %v3107_v36  }
0x1acc   :  { %3164 = vperm.xlu1 %6747, %v3107_v36  }
0x1acf   :  { %6749 = vset.pattern.permute.xlu0 %v9867_v58 }
0x1ad0   :  { %6750 = vset.pattern.permute.xlu1 %v9868_v27 }
0x1b35   :  { %v3208_v60 = vpop.permute.xlu0 %3207 }
0x1b36   :  { %v3143_v4 = vpop.permute.xlu1 %3142  ;;  %v8750_v61 = vadd.f32 %v3208_v60, %v3193_v37 }
0x1b37   :  { %v8748_v63 = vadd.f32 %v3143_v4, %v3128_v42 }
0x1b39   :  { %7173 = vtanh.f32 %v8748_v63  ;;  %v3145_v29 = vpop.permute.xlu0 %3144 }
0x1b3a   :  { %v3210_v20 = vpop.permute.xlu1 %3209  ;;  %7175 = vtanh.f32 %v8750_v61  ;;  %v8758_v49 = vadd.f32 %v3145_v29, %v3129_v32 }
0x1b3b   :  { %v8755_v39 = vadd.f32 %v3210_v20, %v3194_v0 }
0x1b3d   :  { %7177 = vtanh.f32 %v8755_v39 }
0x1b3e   :  { %7179 = vtanh.f32 %v8758_v49 }
0x1b43   :  { %v7174_v34 = vpop.eup %7173 }
0x1b44   :  { %3154 = vrot.lane.b32.xlu1 %v7174_v34, %s7400_s30  ;;  %v7176_v56 = vpop.eup %7175 }
0x1b47   :  { %v7178_v50 = vpop.eup %7177 }
0x1b48   :  { %3221 = vrot.lane.b32.xlu0 %v7178_v50, %s7400_s30  ;;  %3219 = vrot.lane.b32.xlu1 %v7176_v56, %s7400_s30  ;;  %v7180_v53 = vpop.eup %7179 }
0x1b4a   :  { %v8784_v48 = vpop.permute.xlu0 %3228 }
0x1b4b   :  { %v8782_v12 = vpop.permute.xlu1 %3164  ;;  %v3230_v22 = vrot.slane %v8784_v48, 2  ;;  %v3231_v40 = vrot.slane %v8784_v48, 3 }
0x1b4c   :  { %3156 = vrot.lane.b32.xlu1 %v7180_v53, %s7400_s30  ;;  %v3166_v57 = vrot.slane %v8782_v12, 7 }
0x1bb6   :  { %v3155_v55 = vpop.permute.xlu1 %3154 }
0x1bb7   :  { %v3160_v1 = vmul.f32 %v8717_v18, %v3155_v55 }
0x1bb9   :  { %v8790_v9 = vmul.f32 %v3166_v57, %v3160_v1 }
0x1bba   :  { %v3222_v28 = vpop.permute.xlu0 %3221  ;;  %v3220_v38 = vpop.permute.xlu1 %3219 }
0x1bbb   :  { %v3226_v10 = vmul.f32 %v8725_v47, %v3222_v28  ;;  %v3225_v51 = vmul.f32 %v8714_v16, %v3220_v38  ;;  %v3258_v24 = vpack.c.bf16 %v8790_v9, %v8790_v9 }
0x1bbd   :  { %v8800_v18 = vmul.f32 %v3231_v40, %v3226_v10  ;;  %v8804_v52 = vmul.f32 %v3230_v22, %v3225_v51  ;;  %v3266_v23 = vunpack.c.l.b16 %v3258_v24 }
0x1bbe   :  { %v3157_v36 = vpop.permute.xlu1 %3156 }
0x1bbf   :  { %v3329_v46 = vpack.c.bf16 %v8800_v18, %v8800_v18  ;;  %v3328_v47 = vpack.c.bf16 %v8804_v52, %v8804_v52  ;;  %v3161_v16 = vmul.f32 %v8721_v21, %v3157_v36  ;;  %v3268_v37 = vrot.slane %v3266_v23, 1 }
0x1bc1   :  { %v3337_v13 = vunpack.c.l.b16 %v3329_v46  ;;  %v3336_v5 = vunpack.c.l.b16 %v3328_v47  ;;  %v8812_v54 = vmul.f32 %v8782_v12, %v3161_v16 }
0x1bc3   :  { %v3339_v60 = vrot.slane %v3337_v13, 5  ;;  %v3338_v42 = vrot.slane %v3336_v5, 6  ;;  %v3259_v30 = vpack.c.bf16 %v8812_v54, %v8812_v54 }
0x1bc5   :  { %v3267_v4 = vunpack.c.l.b16 %v3259_v30  ;;  %v3340_v8 = vsel %vm432_vm2, %v3339_v60, %v3338_v42 }
0x1bc6   :  { %v3341_v59 = vpack.c.b16 %v3340_v8, %v3340_v8 }
0x1bc7   :  { %v3269_v0 = vsel %vm432_vm2, %v3267_v4, %v3268_v37 }
0x1bc8   :  { %3342 = vrot.lane.b32.xlu1 %v3341_v59, %s7402_s4  ;;  %v3270_v21 = vpack.c.b16 %v3269_v0, %v3269_v0 }
0x1bca   :  { %3271 = vrot.lane.b32.xlu0 %v3270_v21, %s7402_s4 }
0x1c3a   :  { %v3343_v29 = vpop.permute.xlu1 %3342 }
0x1c3b   :  { %6509 = vmatmul.mubr.msk.bf16.vlgmr.msra.gmra.mrb[52].mxu0 %vm105_vm1, %v3343_v29 }
0x1c3c   :  { %v3272_v20 = vpop.permute.xlu0 %3271  ;;  %6524 = vmatprep.mubr.msk.bf16.mxu0 %vm7399_vm0, %v7397_v2 }
0x1c3d   :  { %6501 = vmatmul.mubr.msk.bf16.vlgmr.msra.gmra.mrb[36].mxu1 %vm105_vm1, %v3272_v20 }
0x1c3e   :  { %6516 = vmatprep.mubr.msk.bf16.mxu1 %vm7399_vm0, %v7397_v2 }
0x1d0e   :  { %v3393_v32 = vpop.f32.mrb[52].mxu0 }
0x1d0f   :  { %v6510_v34 = vpop.f32.mrb[53].mxu0  ;;  %v3407_v11 = vrot.slane %v3393_v32, 3  ;;  %v3408_v55 = vrot.slane %v3393_v32, 4 }
0x1d10   :  { %v3322_v56 = vpop.f32.mrb[36].mxu1  ;;  %v3396_v50 = vpop.f32.mrb[54].mxu0 }
0x1d11   :  { %v3400_v62 = vrot.slane %v3322_v56, 6  ;;  %v3401_v53 = vrot.slane %v3322_v56, 7  ;;  %v6502_v31 = vpop.f32.mrb[37].mxu1  ;;  %v6511_v26 = vpop.f32.mrb[55].mxu0  ;;  %v3411_v51 = vadd.f32 %v3407_v11, %v8607_v45  ;;  %v3412_v24 = vadd.f32 %v3408_v55, %v8609_v6 }
0x1d12   :  { %v3325_v1 = vpop.f32.mrb[38].mxu1 }
0x1d13   :  { %v3404_v28 = vadd.f32 %v3400_v62, %v8611_v7  ;;  %v6503_v38 = vpop.f32.mrb[39].mxu1  ;;  %v3405_v10 = vadd.f32 %v3401_v53, %v8603_v17  ;;  %v3480_v5 = vsub.f32 0.0, %v3411_v51  ;;  %v3481_v42 = vsub.f32 0.0, %v3412_v24 }
0x1d15   :  { %7181 = vtanh.f32 %v3404_v28  ;;  %v3414_v23 = vsub.f32 0.0, %v3404_v28  ;;  %v3415_v13 = vsub.f32 0.0, %v3405_v10  ;;  %v3482_v37 = vmul.f32 1.442695, %v3480_v5 }
0x1d16   :  { %7183 = vtanh.f32 %v3405_v10  ;;  %v3484_v4 = vmul.f32 1.442695, %v3481_v42 }
0x1d17   :  { %7185 = vtanh.f32 %v3411_v51  ;;  %v3416_v60 = vmul.f32 1.442695, %v3414_v23  ;;  %v3418_v30 = vmul.f32 1.442695, %v3415_v13  ;;  %v3413_v51 = vld [vmem:[%s9866_s1] sm:$0x3]  ;;  %v3237_v13 = vmul.f32 %v3231_v40, %v8755_v39 }
0x1d18   :  { %7187 = vtanh.f32 %v3412_v24  ;;  %v9869_v24 = vmov 4  }
0x1d19   :  { %7189 = vpow2.f32 %v3416_v60 }
0x1d1a   :  { %7191 = vpow2.f32 %v3418_v30 }
0x1d1b   :  { %7193 = vpow2.f32 %v3482_v37 }
0x1d1c   :  { %7195 = vpow2.f32 %v3484_v4 }
0x1d1f   :  { %v7182_v36 = vpop.eup %7181 }
0x1d20   :  { %v7184_v46 = vpop.eup %7183  ;;  %3438 = vrot.lane.b32.xlu0 %v7182_v36, %s7400_s30  ;;  %v9870_v36 = vmov 3  }
0x1d21   :  { %3440 = vrot.lane.b32.xlu1 %v7184_v46, %s7400_s30  ;;  %v7186_v47 = vpop.eup %7185  ;;  %v3171_v46 = vmul.f32 %v3166_v57, %v8748_v63 }
0x1d22   :  { %v7188_v16 = vpop.eup %7187 }
0x1d23   :  { %v7190_v8 = vpop.eup %7189  ;;  %v3430_v23 = vrot.slane %v3171_v46, 7 }
0x1d24   :  { %3504 = vrot.lane.b32.xlu0 %v7186_v47, %s7400_s30  ;;  %v7192_v59 = vpop.eup %7191  ;;  %v3420_v0 = vadd.f32 1.0, %v7190_v8  ;;  %v3172_v47 = vmul.f32 %v8782_v12, %v8758_v49  ;;  %v3497_v12 = vrot.slane %v3237_v13, 1 }
0x1d25   :  { %3506 = vrot.lane.b32.xlu1 %v7188_v16, %s7400_s30  ;;  %v7194_v21 = vpop.eup %7193  ;;  %v3421_v29 = vadd.f32 1.0, %v7192_v59  ;;  %v3236_v16 = vmul.f32 %v3230_v22, %v8750_v61 }
0x1d26   :  { %v7196_v20 = vpop.eup %7195  ;;  %v3486_v32 = vadd.f32 1.0, %v7194_v21  ;;  %7197 = vrcp.f32 %v3420_v0  ;;  %v3431_v5 = vrot.slane %v3172_v47, 7 }
0x1d27   :  { %v3487_v34 = vadd.f32 1.0, %v7196_v20  ;;  %7199 = vrcp.f32 %v3421_v29  ;;  %v3496_v57 = vrot.slane %v3236_v16, 1  ;;  %v6837_v29 = vld [vmem:[%s9829_s8] sm:$0xff]  }
0x1d28   :  { %7201 = vrcp.f32 %v3486_v32  ;;  %v6839_v20 = vld [vmem:[%s9830_s9] sm:$0xff]   ;;  %6513 = vmatpush3.bf16.msra.mxu1 %v6837_v29  ;;  %v6838_v32 = vld [vmem:[%s9829_s8 + $0x8] sm:$0xff]  }
0x1d29   :  { %7203 = vrcp.f32 %v3487_v34  ;;  %6521 = vmatpush3.bf16.msra.mxu0 %v6839_v20  ;;  %6514 = vmatprep.subr.bf16.mxu1 %v7397_v2 }
0x1d2a   :  { %6522 = vmatprep.subr.bf16.mxu0 %v7397_v2 }
0x1d2c   :  { %6515 = vmatpush3.bf16.msra.mxu1 %v6838_v32 }
0x1d2d   :  { %6528 = vmatprep.subr.bf16.mxu1 %v7397_v2 }
0x1d30   :  { %v8834_v56 = vpop.eup %7197 }
0x1d31   :  { %v8836_v11 = vpop.eup %7199  ;;  %v3434_v60 = vmul.f32 %v8834_v56, %v3430_v23 }
0x1d32   :  { %v8841_v26 = vpop.eup %7201  ;;  %v3435_v42 = vmul.f32 %v8836_v11, %v3431_v5 }
0x1d33   :  { %v8844_v1 = vpop.eup %7203  ;;  %v3500_v61 = vmul.f32 %v8841_v26, %v3496_v57 }
0x1d34   :  { %v3501_v39 = vmul.f32 %v8844_v1, %v3497_v12 }
0x1d92   :  { %v3439_v50 = vpop.permute.xlu0 %3438 }
0x1d93   :  { %v3444_v62 = vmul.f32 %v8834_v56, %v3439_v50  ;;  %v3441_v53 = vpop.permute.xlu1 %3440 }
0x1d94   :  { %v3445_v31 = vmul.f32 %v8836_v11, %v3441_v53 }
0x1d95   :  { %3448 = vrot.lane.b32.xlu0 %v3444_v62, %s7400_s30 }
0x1d96   :  { %3450 = vrot.lane.b32.xlu1 %v3445_v31, %s7400_s30  ;;  %v3505_v55 = vpop.permute.xlu0 %3504 }
0x1d97   :  { %v3507_v28 = vpop.permute.xlu1 %3506  ;;  %v3510_v38 = vmul.f32 %v8841_v26, %v3505_v55 }
0x1d98   :  { %v3511_v10 = vmul.f32 %v8844_v1, %v3507_v28 }
0x1d99   :  { %3514 = vrot.lane.b32.xlu0 %v3510_v38, %s7400_s30 }
0x1d9a   :  { %3516 = vrot.lane.b32.xlu1 %v3511_v10, %s7400_s30  ;;  %v6840_v10 = vld [vmem:[%s9830_s9 + $0x8] sm:$0xff]  }
0x1d9b   :  { %6523 = vmatpush3.bf16.msra.mxu0 %v6840_v10 }
0x1d9c   :  { %6536 = vmatprep.subr.bf16.mxu0 %v7397_v2 }
0x1d9d   :  { %3470 = vperm.xlu0 %6749, %v3413_v51  }
0x1d9e   :  { %3535 = vperm.xlu1 %6750, %v3413_v51  }
0x1da1   :  { %6752 = vset.pattern.permute.xlu0 %v9869_v24 }
0x1da2   :  { %6751 = vset.pattern.permute.xlu1 %v9870_v36 }
0x1e07   :  { %v3449_v30 = vpop.permute.xlu0 %3448 }
0x1e08   :  { %v3451_v37 = vpop.permute.xlu1 %3450  ;;  %v8868_v63 = vadd.f32 %v3449_v30, %v3434_v60 }
0x1e09   :  { %v8870_v49 = vadd.f32 %v3451_v37, %v3435_v42 }
0x1e0a   :  { %7205 = vtanh.f32 %v8868_v63 }
0x1e0b   :  { %7207 = vtanh.f32 %v8870_v49  ;;  %v3515_v48 = vpop.permute.xlu0 %3514 }
0x1e0c   :  { %v3517_v22 = vpop.permute.xlu1 %3516  ;;  %v8876_v40 = vadd.f32 %v3515_v48, %v3500_v61 }
0x1e0d   :  { %v8878_v4 = vadd.f32 %v3517_v22, %v3501_v39 }
0x1e0e   :  { %7209 = vtanh.f32 %v8876_v40 }
0x1e0f   :  { %7211 = vtanh.f32 %v8878_v4 }
0x1e14   :  { %v7206_v8 = vpop.eup %7205 }
0x1e15   :  { %v7208_v59 = vpop.eup %7207  ;;  %3460 = vrot.lane.b32.xlu1 %v7206_v8, %s7400_s30 }
0x1e16   :  { %3462 = vrot.lane.b32.xlu0 %v7208_v59, %s7400_s30 }
0x1e18   :  { %v7210_v0 = vpop.eup %7209 }
0x1e19   :  { %v7212_v21 = vpop.eup %7211  ;;  %3526 = vrot.lane.b32.xlu1 %v7210_v0, %s7400_s30 }
0x1e1a   :  { %3528 = vrot.lane.b32.xlu0 %v7212_v21, %s7400_s30 }
0x1e1c   :  { %v8900_v50 = vpop.permute.xlu0 %3470 }
0x1e1d   :  { %v8898_v34 = vpop.permute.xlu1 %3535  ;;  %v3472_v53 = vrot.slane %v8900_v50, 6  ;;  %v3473_v28 = vrot.slane %v8900_v50, 7 }
0x1e1e   :  { %v3538_v16 = vrot.slane %v8898_v34, 4 }
0x1e87   :  { %v3461_v62 = vpop.permute.xlu1 %3460 }
0x1e88   :  { %v3466_v31 = vmul.f32 %v8834_v56, %v3461_v62  ;;  %v3463_v55 = vpop.permute.xlu0 %3462  ;;  %v3537_v56 = vrot.slane %v8898_v34, 3 }
0x1e89   :  { %v3467_v38 = vmul.f32 %v8836_v11, %v3463_v55 }
0x1e8a   :  { %v8911_v51 = vmul.f32 %v3472_v53, %v3466_v31 }
0x1e8b   :  { %v8915_v24 = vmul.f32 %v3473_v28, %v3467_v38  ;;  %v3527_v36 = vpop.permute.xlu1 %3526 }
0x1e8c   :  { %v3565_v46 = vpack.c.bf16 %v8911_v51, %v8911_v51  ;;  %v3529_v11 = vpop.permute.xlu0 %3528  ;;  %v3532_v47 = vmul.f32 %v8841_v26, %v3527_v36 }
0x1e8d   :  { %v3566_v23 = vpack.c.bf16 %v8915_v24, %v8915_v24  ;;  %v3533_v13 = vmul.f32 %v8844_v1, %v3529_v11 }
0x1e8e   :  { %v3573_v5 = vunpack.c.l.b16 %v3565_v46  ;;  %v8928_v60 = vmul.f32 %v3537_v56, %v3532_v47 }
0x1e8f   :  { %v3574_v42 = vunpack.c.l.b16 %v3566_v23  ;;  %v8932_v30 = vmul.f32 %v3538_v16, %v3533_v13 }
0x1e90   :  { %v3575_v26 = vrot.slane %v3573_v5, 2  ;;  %v3636_v37 = vpack.c.bf16 %v8928_v60, %v8928_v60 }
0x1e91   :  { %v3576_v57 = vrot.slane %v3574_v42, 1  ;;  %v3637_v12 = vpack.c.bf16 %v8932_v30, %v8932_v30 }
0x1e92   :  { %v3644_v61 = vunpack.c.l.b16 %v3636_v37 }
0x1e93   :  { %v3645_v1 = vunpack.c.l.b16 %v3637_v12  ;;  %v3577_v39 = vsel %vm432_vm2, %v3576_v57, %v3575_v26 }
0x1e94   :  { %v3646_v48 = vrot.slane %v3644_v61, 5  ;;  %v3578_v22 = vpack.c.b16 %v3577_v39, %v3577_v39 }
0x1e95   :  { %v3647_v8 = vrot.slane %v3645_v1, 4 }
0x1e96   :  { %3579 = vrot.lane.b32.xlu1 %v3578_v22, %s7402_s4 }
0x1e97   :  { %v3648_v59 = vsel %vm432_vm2, %v3647_v8, %v3646_v48 }
0x1e98   :  { %v3649_v0 = vpack.c.b16 %v3648_v59, %v3648_v59 }
0x1e9a   :  { %3650 = vrot.lane.b32.xlu0 %v3649_v0, %s7402_s4 }
0x1f08   :  { %v3580_v21 = vpop.permute.xlu1 %3579 }
0x1f09   :  { %6517 = vmatmul.mubr.msk.bf16.vlgmr.msra.gmra.mrb[40].mxu1 %vm105_vm1, %v3580_v21 }
0x1f0a   :  { %6532 = vmatprep.mubr.msk.bf16.mxu1 %vm7399_vm0, %v7397_v2 }
0x1f0c   :  { %v3651_v29 = vpop.permute.xlu0 %3650 }
0x1f0d   :  { %6525 = vmatmul.mubr.msk.bf16.vlgmr.msra.gmra.mrb[56].mxu0 %vm105_vm1, %v3651_v29 }
0x1f0e   :  { %6540 = vmatprep.mubr.msk.bf16.mxu0 %vm7399_vm0, %v7397_v2 }
0x1fdc   :  { %v3630_v20 = vpop.f32.mrb[40].mxu1 }
0x1fdd   :  { %v3708_v32 = vrot.slane %v3630_v20, 5  ;;  %v3709_v62 = vrot.slane %v3630_v20, 6  ;;  %v6518_v31 = vpop.f32.mrb[41].mxu1 }
0x1fde   :  { %v3633_v55 = vpop.f32.mrb[42].mxu1 }
0x1fdf   :  { %v3712_v38 = vadd.f32 %v3708_v32, %v8611_v7  ;;  %v3713_v10 = vadd.f32 %v3709_v62, %v8603_v17  ;;  %v6519_v36 = vpop.f32.mrb[43].mxu1 }
0x1fe0   :  { %v3701_v46 = vpop.f32.mrb[56].mxu0 }
0x1fe1   :  { %7213 = vtanh.f32 %v3712_v38  ;;  %v3715_v11 = vrot.slane %v3701_v46, 4  ;;  %v6526_v47 = vpop.f32.mrb[57].mxu0  ;;  %v3716_v23 = vrot.slane %v3701_v46, 5  ;;  %v3722_v1 = vsub.f32 0.0, %v3712_v38 }
0x1fe2   :  { %7215 = vtanh.f32 %v3713_v10  ;;  %v3704_v13 = vpop.f32.mrb[58].mxu0  ;;  %v3723_v39 = vsub.f32 0.0, %v3713_v10 }
0x1fe3   :  { %v3719_v5 = vadd.f32 %v3715_v11, %v8607_v45  ;;  %v6527_v42 = vpop.f32.mrb[59].mxu0  ;;  %v3720_v26 = vadd.f32 %v3716_v23, %v8609_v6  ;;  %v3724_v48 = vmul.f32 1.442695, %v3722_v1  ;;  %v3478_v1 = vmul.f32 %v3472_v53, %v8868_v63 }
0x1fe4   :  { %v3726_v22 = vmul.f32 1.442695, %v3723_v39  ;;  %v3479_v39 = vmul.f32 %v3473_v28, %v8870_v49 }
0x1fe5   :  { %7217 = vtanh.f32 %v3719_v5  ;;  %v3788_v8 = vsub.f32 0.0, %v3719_v5  ;;  %v3789_v59 = vsub.f32 0.0, %v3720_v26 }
0x1fe6   :  { %7219 = vtanh.f32 %v3720_v26 }
0x1fe7   :  { %7221 = vpow2.f32 %v3724_v48  ;;  %v3790_v0 = vmul.f32 1.442695, %v3788_v8  ;;  %v3792_v21 = vmul.f32 1.442695, %v3789_v59  ;;  %v3738_v48 = vrot.slane %v3478_v1, 7 }
0x1fe8   :  { %7223 = vpow2.f32 %v3726_v22  ;;  %v3543_v22 = vmul.f32 %v3537_v56, %v8876_v40  ;;  %v3739_v8 = vrot.slane %v3479_v39, 7 }
0x1fe9   :  { %7225 = vpow2.f32 %v3790_v0  ;;  %v3544_v0 = vmul.f32 %v3538_v16, %v8878_v4 }
0x1fea   :  { %7227 = vpow2.f32 %v3792_v21  ;;  %v3804_v49 = vrot.slane %v3543_v22, 1 }
0x1feb   :  { %v7214_v37 = vpop.eup %7213  ;;  %v3805_v28 = vrot.slane %v3544_v0, 1 }
0x1fec   :  { %v7216_v57 = vpop.eup %7215  ;;  %3746 = vrot.lane.b32.xlu1 %v7214_v37, %s7400_s30 }
0x1fed   :  { %3748 = vrot.lane.b32.xlu0 %v7216_v57, %s7400_s30 }
0x1fef   :  { %v7218_v12 = vpop.eup %7217 }
0x1ff0   :  { %v7220_v61 = vpop.eup %7219  ;;  %3812 = vrot.lane.b32.xlu1 %v7218_v12, %s7400_s30 }
0x1ff1   :  { %3814 = vrot.lane.b32.xlu0 %v7220_v61, %s7400_s30  ;;  %v7222_v29 = vpop.eup %7221  ;;  %v3721_v61 = vld [vmem:[%s9866_s1] sm:$0x3] }
0x1ff2   :  { %v7224_v20 = vpop.eup %7223  ;;  %v3728_v32 = vadd.f32 1.0, %v7222_v29 }
0x1ff3   :  { %v3729_v62 = vadd.f32 1.0, %v7224_v20  ;;  %v7226_v31 = vpop.eup %7225 }
0x1ff4   :  { %v7228_v55 = vpop.eup %7227  ;;  %7229 = vrcp.f32 %v3728_v32  ;;  %v3794_v38 = vadd.f32 1.0, %v7226_v31 }
0x1ff5   :  { %7231 = vrcp.f32 %v3729_v62  ;;  %v3795_v10 = vadd.f32 1.0, %v7228_v55 }
0x1ff6   :  { %7233 = vrcp.f32 %v3794_v38  ;;  %v6841_v38 = vld [vmem:[%s9829_s8] sm:$0xff]  }
0x1ff7   :  { %7235 = vrcp.f32 %v3795_v10  ;;  %v6843_v10 = vld [vmem:[%s9830_s9] sm:$0xff]   ;;  %6529 = vmatpush3.bf16.msra.mxu1 %v6841_v38 }
0x1ff8   :  { %6537 = vmatpush3.bf16.msra.mxu0 %v6843_v10  ;;  %6530 = vmatprep.subr.bf16.mxu1 %v7397_v2 }
0x1ff9   :  { %6538 = vmatprep.subr.bf16.mxu0 %v7397_v2 }
0x1ffe   :  { %v8956_v36 = vpop.eup %7229 }
0x1fff   :  { %v8958_v11 = vpop.eup %7231  ;;  %v3742_v59 = vmul.f32 %v8956_v36, %v3738_v48  ;;  %v6844_v48 = vld [vmem:[%s9830_s9 + $0x8] sm:$0xff]  }
0x2000   :  { %v8964_v5 = vpop.eup %7233  ;;  %v3743_v29 = vmul.f32 %v8958_v11, %v3739_v8  ;;  %6539 = vmatpush3.bf16.msra.mxu0 %v6844_v48 }
0x2001   :  { %v8966_v26 = vpop.eup %7235  ;;  %v3808_v40 = vmul.f32 %v8964_v5, %v3804_v49  ;;  %6552 = vmatprep.subr.bf16.mxu0 %v7397_v2 }
0x2002   :  { %v3809_v56 = vmul.f32 %v8966_v26, %v3805_v28 }
0x205e   :  { %v3747_v46 = vpop.permute.xlu1 %3746 }
0x205f   :  { %v3749_v47 = vpop.permute.xlu0 %3748  ;;  %v3752_v23 = vmul.f32 %v8956_v36, %v3747_v46  ;;  %v6842_v46 = vld [vmem:[%s9829_s8 + $0x8] sm:$0xff]  }
0x2060   :  { %v3753_v13 = vmul.f32 %v8958_v11, %v3749_v47  ;;  %6531 = vmatpush3.bf16.msra.mxu1 %v6842_v46 }
0x2061   :  { %3756 = vrot.lane.b32.xlu1 %v3752_v23, %s7400_s30  ;;  %6544 = vmatprep.subr.bf16.mxu1 %v7397_v2 }
0x2062   :  { %3758 = vrot.lane.b32.xlu0 %v3753_v13, %s7400_s30  ;;  %v3813_v42 = vpop.permute.xlu1 %3812 }
0x2063   :  { %v3815_v37 = vpop.permute.xlu0 %3814  ;;  %v3818_v57 = vmul.f32 %v8964_v5, %v3813_v42 }
0x2064   :  { %v3819_v12 = vmul.f32 %v8966_v26, %v3815_v37 }
0x2065   :  { %3822 = vrot.lane.b32.xlu1 %v3818_v57, %s7400_s30 }
0x2066   :  { %3824 = vrot.lane.b32.xlu0 %v3819_v12, %s7400_s30 }
0x2069   :  { %3778 = vperm.xlu1 %6751, %v3721_v61  }
0x206a   :  { %3843 = vperm.xlu0 %6752, %v3721_v61  }
0x20d3   :  { %v3757_v21 = vpop.permute.xlu1 %3756 }
0x20d4   :  { %v3759_v63 = vpop.permute.xlu0 %3758  ;;  %v8989_v53 = vadd.f32 %v3757_v21, %v3742_v59 }
0x20d5   :  { %v8991_v50 = vadd.f32 %v3759_v63, %v3743_v29 }
0x20d6   :  { %7237 = vtanh.f32 %v8989_v53 }
0x20d7   :  { %v3823_v20 = vpop.permute.xlu1 %3822  ;;  %7239 = vtanh.f32 %v8991_v50 }
0x20d8   :  { %v3825_v4 = vpop.permute.xlu0 %3824  ;;  %v8997_v34 = vadd.f32 %v3823_v20, %v3808_v40 }
0x20d9   :  { %v8999_v16 = vadd.f32 %v3825_v4, %v3809_v56 }
0x20da   :  { %7241 = vtanh.f32 %v8997_v34 }
0x20db   :  { %7243 = vtanh.f32 %v8999_v16 }
0x20e0   :  { %v7238_v32 = vpop.eup %7237 }
0x20e1   :  { %3768 = vrot.lane.b32.xlu1 %v7238_v32, %s7400_s30  ;;  %v7240_v62 = vpop.eup %7239 }
0x20e4   :  { %v7242_v31 = vpop.eup %7241 }
0x20e5   :  { %3770 = vrot.lane.b32.xlu1 %v7240_v62, %s7400_s30  ;;  %3834 = vrot.lane.b32.xlu0 %v7242_v31, %s7400_s30  ;;  %v7244_v55 = vpop.eup %7243 }
0x20e8   :  { %v9019_v47 = vpop.permute.xlu1 %3778 }
0x20e9   :  { %3836 = vrot.lane.b32.xlu1 %v7244_v55, %s7400_s30  ;;  %v3780_v13 = vrot.slane %v9019_v47, 5  ;;  %v9023_v37 = vpop.permute.xlu0 %3843  ;;  %v3781_v61 = vrot.slane %v9019_v47, 6 }
0x20ea   :  { %v3846_v0 = vrot.slane %v9023_v37, 5 }
0x2153   :  { %v3769_v23 = vpop.permute.xlu1 %3768 }
0x2154   :  { %v3774_v42 = vmul.f32 %v8956_v36, %v3769_v23  ;;  %v3845_v36 = vrot.slane %v9023_v37, 4 }
0x2156   :  { %v9027_v57 = vmul.f32 %v3780_v13, %v3774_v42 }
0x2157   :  { %v3771_v12 = vpop.permute.xlu1 %3770  ;;  %v3835_v22 = vpop.permute.xlu0 %3834 }
0x2158   :  { %v3873_v1 = vpack.c.bf16 %v9027_v57, %v9027_v57  ;;  %v3775_v39 = vmul.f32 %v8958_v11, %v3771_v12  ;;  %v3840_v59 = vmul.f32 %v8964_v5, %v3835_v22 }
0x215a   :  { %v9039_v8 = vmul.f32 %v3781_v61, %v3775_v39  ;;  %v3881_v11 = vunpack.c.l.b16 %v3873_v1  ;;  %v9048_v63 = vmul.f32 %v3845_v36, %v3840_v59 }
0x215b   :  { %v3837_v21 = vpop.permute.xlu1 %3836 }
0x215c   :  { %v3874_v29 = vpack.c.bf16 %v9039_v8, %v9039_v8  ;;  %v3841_v49 = vmul.f32 %v8966_v26, %v3837_v21  ;;  %v3944_v5 = vpack.c.bf16 %v9048_v63, %v9048_v63  ;;  %v3883_v56 = vrot.slane %v3881_v11, 3 }
0x215e   :  { %v3882_v28 = vunpack.c.l.b16 %v3874_v29  ;;  %v9055_v40 = vmul.f32 %v3846_v0, %v3841_v49  ;;  %v3952_v4 = vunpack.c.l.b16 %v3944_v5 }
0x2160   :  { %v3884_v20 = vrot.slane %v3882_v28, 2  ;;  %v3945_v32 = vpack.c.bf16 %v9055_v40, %v9055_v40  ;;  %v3954_v38 = vrot.slane %v3952_v4, 4 }
0x2162   :  { %v3953_v62 = vunpack.c.l.b16 %v3945_v32  ;;  %v3885_v31 = vsel %vm432_vm2, %v3884_v20, %v3883_v56 }
0x2163   :  { %v3886_v55 = vpack.c.b16 %v3885_v31, %v3885_v31 }
0x2164   :  { %v3955_v26 = vrot.slane %v3953_v62, 3 }
0x2165   :  { %3887 = vrot.lane.b32.xlu0 %v3886_v55, %s7402_s4 }
0x2166   :  { %v3956_v10 = vsel %vm432_vm2, %v3955_v26, %v3954_v38 }
0x2167   :  { %v3957_v46 = vpack.c.b16 %v3956_v10, %v3956_v10 }
0x2169   :  { %3958 = vrot.lane.b32.xlu1 %v3957_v46, %s7402_s4 }
0x21d7   :  { %v3888_v23 = vpop.permute.xlu0 %3887 }
0x21d8   :  { %6533 = vmatmul.mubr.msk.bf16.vlgmr.msra.gmra.mrb[44].mxu1 %vm105_vm1, %v3888_v23 }
0x21d9   :  { %6548 = vmatprep.mubr.msk.bf16.mxu1 %vm7399_vm0, %v7397_v2 }
0x21db   :  { %v3959_v42 = vpop.permute.xlu1 %3958 }
0x21dc   :  { %6541 = vmatmul.mubr.msk.bf16.vlgmr.msra.gmra.mrb[60].mxu0 %vm105_vm1, %v3959_v42 }
0x21dd   :  { %6556 = vmatprep.mubr.msk.bf16.mxu0 %vm7399_vm0, %v7397_v2 }
0x22ab   :  { %v3938_v12 = vpop.f32.mrb[44].mxu1 }
0x22ac   :  { %v4016_v1 = vrot.slane %v3938_v12, 4  ;;  %v4017_v39 = vrot.slane %v3938_v12, 5  ;;  %v6534_v48 = vpop.f32.mrb[45].mxu1 }
0x22ad   :  { %v3941_v22 = vpop.f32.mrb[46].mxu1 }
0x22ae   :  { %v4020_v59 = vadd.f32 %v4016_v1, %v8611_v7  ;;  %v4021_v21 = vadd.f32 %v4017_v39, %v8603_v17  ;;  %v6535_v11 = vpop.f32.mrb[47].mxu1 }
0x22af   :  { %v4009_v29 = vpop.f32.mrb[60].mxu0 }
0x22b0   :  { %7245 = vtanh.f32 %v4020_v59  ;;  %v4023_v49 = vrot.slane %v4009_v29, 5  ;;  %v6542_v28 = vpop.f32.mrb[61].mxu0  ;;  %v4024_v5 = vrot.slane %v4009_v29, 6  ;;  %v4030_v26 = vsub.f32 0.0, %v4020_v59 }
0x22b1   :  { %7247 = vtanh.f32 %v4021_v21  ;;  %v4012_v56 = vpop.f32.mrb[62].mxu0  ;;  %v4031_v10 = vsub.f32 0.0, %v4021_v21 }
0x22b2   :  { %v4027_v20 = vadd.f32 %v4023_v49, %v8607_v45  ;;  %v6543_v4 = vpop.f32.mrb[63].mxu0  ;;  %v4028_v32 = vadd.f32 %v4024_v5, %v8609_v6  ;;  %v4032_v46 = vmul.f32 1.442695, %v4030_v26 }
0x22b3   :  { %v4034_v23 = vmul.f32 1.442695, %v4031_v10 }
0x22b4   :  { %7249 = vtanh.f32 %v4027_v20  ;;  %v4096_v42 = vsub.f32 0.0, %v4027_v20  ;;  %v4097_v12 = vsub.f32 0.0, %v4028_v32 }
0x22b5   :  { %7251 = vtanh.f32 %v4028_v32 }
0x22b6   :  { %7253 = vpow2.f32 %v4032_v46  ;;  %v4098_v1 = vmul.f32 1.442695, %v4096_v42  ;;  %v4100_v39 = vmul.f32 1.442695, %v4097_v12  ;;  %v3786_v42 = vmul.f32 %v3780_v13, %v8989_v53 }
0x22b7   :  { %7255 = vpow2.f32 %v4034_v23  ;;  %v4029_v23 = vld [vmem:[%s9866_s1] sm:$0x3]  ;;  %v3787_v12 = vmul.f32 %v3781_v61, %v8991_v50 }
0x22b8   :  { %7257 = vpow2.f32 %v4098_v1  ;;  %v4046_v1 = vrot.slane %v3786_v42, 7 }
0x22b9   :  { %7259 = vpow2.f32 %v4100_v39  ;;  %v4047_v39 = vrot.slane %v3787_v12, 7 }
0x22ba   :  { %v7246_v62 = vpop.eup %7245 }
0x22bb   :  { %v7248_v31 = vpop.eup %7247  ;;  %4054 = vrot.lane.b32.xlu0 %v7246_v62, %s7400_s30 }
0x22bc   :  { %4056 = vrot.lane.b32.xlu1 %v7248_v31, %s7400_s30 }
0x22be   :  { %v7250_v55 = vpop.eup %7249 }
0x22bf   :  { %v7252_v38 = vpop.eup %7251  ;;  %4120 = vrot.lane.b32.xlu0 %v7250_v55, %s7400_s30 }
0x22c0   :  { %4122 = vrot.lane.b32.xlu1 %v7252_v38, %s7400_s30  ;;  %v7254_v48 = vpop.eup %7253 }
0x22c1   :  { %v7256_v22 = vpop.eup %7255  ;;  %v4036_v11 = vadd.f32 1.0, %v7254_v48  ;;  %v3851_v48 = vmul.f32 %v3845_v36, %v8997_v34 }
0x22c2   :  { %v4037_v29 = vadd.f32 1.0, %v7256_v22  ;;  %v7258_v49 = vpop.eup %7257 }
0x22c3   :  { %v7260_v28 = vpop.eup %7259  ;;  %7261 = vrcp.f32 %v4036_v11  ;;  %v4102_v59 = vadd.f32 1.0, %v7258_v49  ;;  %v4112_v50 = vrot.slane %v3851_v48, 1 }
0x22c4   :  { %7263 = vrcp.f32 %v4037_v29  ;;  %v4103_v21 = vadd.f32 1.0, %v7260_v28 }
0x22c5   :  { %7265 = vrcp.f32 %v4102_v59 }
0x22c6   :  { %7267 = vrcp.f32 %v4103_v21 }
0x22cd   :  { %v9077_v5 = vpop.eup %7261 }
0x22ce   :  { %v9079_v20 = vpop.eup %7263  ;;  %v4050_v22 = vmul.f32 %v9077_v5, %v4046_v1  ;;  %v6848_v1 = vld [vmem:[%s9830_s9 + $0x8] sm:$0xff]  }
0x22cf   :  { %v9085_v31 = vpop.eup %7265 }
0x22d0   :  { %v9087_v38 = vpop.eup %7267  ;;  %v4116_v61 = vmul.f32 %v9085_v31, %v4112_v50 }
0x232d   :  { %v4055_v56 = vpop.permute.xlu0 %4054 }
0x232e   :  { %v4057_v4 = vpop.permute.xlu1 %4056  ;;  %v4060_v32 = vmul.f32 %v9077_v5, %v4055_v56  ;;  %v6845_v56 = vld [vmem:[%s9829_s8] sm:$0xff]  }
0x232f   :  { %v4061_v62 = vmul.f32 %v9079_v20, %v4057_v4  ;;  %v6847_v4 = vld [vmem:[%s9830_s9] sm:$0xff]   ;;  %6545 = vmatpush3.bf16.msra.mxu1 %v6845_v56 }
0x2330   :  { %4064 = vrot.lane.b32.xlu0 %v4060_v32, %s7400_s30  ;;  %v6846_v32 = vld [vmem:[%s9829_s8 + $0x8] sm:$0xff]   ;;  %6553 = vmatpush3.bf16.msra.mxu0 %v6847_v4 }
0x2331   :  { %4066 = vrot.lane.b32.xlu1 %v4061_v62, %s7400_s30  ;;  %v4121_v55 = vpop.permute.xlu0 %4120  ;;  %6546 = vmatprep.subr.bf16.mxu1 %v7397_v2 }
0x2332   :  { %v4123_v26 = vpop.permute.xlu1 %4122  ;;  %v4126_v10 = vmul.f32 %v9085_v31, %v4121_v55  ;;  %6554 = vmatprep.subr.bf16.mxu0 %v7397_v2 }
0x2333   :  { %v4127_v46 = vmul.f32 %v9087_v38, %v4123_v26  ;;  %6547 = vmatpush3.bf16.msra.mxu1 %v6846_v32 }
0x2334   :  { %4130 = vrot.lane.b32.xlu0 %v4126_v10, %s7400_s30  ;;  %6560 = vmatprep.subr.bf16.mxu1 %v7397_v2 }
0x2335   :  { %4132 = vrot.lane.b32.xlu1 %v4127_v46, %s7400_s30  ;;  %6555 = vmatpush3.bf16.msra.mxu0 %v6848_v1 }
0x2336   :  { %6568 = vmatprep.subr.bf16.mxu0 %v7397_v2 }
0x2338   :  { %4086 = vperm.xlu0 %6752, %v4029_v23  }
0x2339   :  { %4151 = vperm.xlu1 %6751, %v4029_v23  }
0x233c   :  { %6753 = vset.pattern.permute.xlu0 %v9868_v27  ;;  %v4051_v27 = vmul.f32 %v9079_v20, %v4047_v39 }
0x233d   :  { %6754 = vset.pattern.permute.xlu1 %v9867_v58  ;;  %v3852_v58 = vmul.f32 %v3846_v0, %v8999_v16 }
0x233f   :  { %v4113_v34 = vrot.slane %v3852_v58, 1 }
0x2341   :  { %v4117_v36 = vmul.f32 %v9087_v38, %v4113_v34 }
0x23a2   :  { %v4065_v11 = vpop.permute.xlu0 %4064 }
0x23a3   :  { %v4067_v53 = vpop.permute.xlu1 %4066  ;;  %v9112_v13 = vadd.f32 %v4065_v11, %v4050_v22 }
0x23a4   :  { %v9114_v47 = vadd.f32 %v4067_v53, %v4051_v27 }
0x23a5   :  { %7269 = vtanh.f32 %v9112_v13 }
0x23a6   :  { %7271 = vtanh.f32 %v9114_v47  ;;  %v4131_v37 = vpop.permute.xlu0 %4130 }
0x23a7   :  { %v4133_v16 = vpop.permute.xlu1 %4132  ;;  %v9120_v0 = vadd.f32 %v4131_v37, %v4116_v61 }
0x23a8   :  { %v9122_v29 = vadd.f32 %v4133_v16, %v4117_v36 }
0x23a9   :  { %7273 = vtanh.f32 %v9120_v0 }
0x23aa   :  { %7275 = vtanh.f32 %v9122_v29 }
0x23af   :  { %v7270_v49 = vpop.eup %7269 }
0x23b0   :  { %v7272_v28 = vpop.eup %7271  ;;  %4076 = vrot.lane.b32.xlu0 %v7270_v49, %s7400_s30 }
0x23b1   :  { %4078 = vrot.lane.b32.xlu1 %v7272_v28, %s7400_s30 }
0x23b3   :  { %v7274_v59 = vpop.eup %7273 }
0x23b4   :  { %v7276_v21 = vpop.eup %7275  ;;  %4142 = vrot.lane.b32.xlu0 %v7274_v59, %s7400_s30 }
0x23b5   :  { %4144 = vrot.lane.b32.xlu1 %v7276_v21, %s7400_s30 }
0x23b7   :  { %v9142_v62 = vpop.permute.xlu0 %4086 }
0x23b8   :  { %v9144_v55 = vpop.permute.xlu1 %4151  ;;  %v4088_v10 = vrot.slane %v9142_v62, 4  ;;  %v4089_v42 = vrot.slane %v9142_v62, 5 }
0x23b9   :  { %v4153_v58 = vrot.slane %v9144_v55, 5  ;;  %v4154_v50 = vrot.slane %v9144_v55, 6 }
0x2422   :  { %v4077_v26 = vpop.permute.xlu0 %4076 }
0x2423   :  { %v4079_v46 = vpop.permute.xlu1 %4078  ;;  %v4082_v23 = vmul.f32 %v9077_v5, %v4077_v26 }
0x2424   :  { %v4083_v12 = vmul.f32 %v9079_v20, %v4079_v46 }
0x2425   :  { %v9155_v39 = vmul.f32 %v4088_v10, %v4082_v23 }
0x2426   :  { %v9159_v48 = vmul.f32 %v4089_v42, %v4083_v12  ;;  %v4143_v22 = vpop.permute.xlu0 %4142 }
0x2427   :  { %v4181_v5 = vpack.c.bf16 %v9155_v39, %v9155_v39  ;;  %v4145_v11 = vpop.permute.xlu1 %4144  ;;  %v4148_v53 = vmul.f32 %v9085_v31, %v4143_v22 }
0x2428   :  { %v4182_v20 = vpack.c.bf16 %v9159_v48, %v9159_v48  ;;  %v4149_v61 = vmul.f32 %v9087_v38, %v4145_v11 }
0x2429   :  { %v4189_v27 = vunpack.c.l.b16 %v4181_v5  ;;  %v9172_v37 = vmul.f32 %v4153_v58, %v4148_v53 }
0x242a   :  { %v4190_v34 = vunpack.c.l.b16 %v4182_v20  ;;  %v9176_v49 = vmul.f32 %v4154_v50, %v4149_v61 }
0x242b   :  { %v4191_v36 = vrot.slane %v4189_v27, 4  ;;  %v4252_v28 = vpack.c.bf16 %v9172_v37, %v9172_v37 }
0x242c   :  { %v4192_v16 = vrot.slane %v4190_v34, 3  ;;  %v4253_v31 = vpack.c.bf16 %v9176_v49, %v9176_v49 }
0x242d   :  { %v4260_v21 = vunpack.c.l.b16 %v4252_v28 }
0x242e   :  { %v4193_v59 = vsel %vm432_vm2, %v4192_v16, %v4191_v36  ;;  %v4261_v56 = vunpack.c.l.b16 %v4253_v31 }
0x242f   :  { %v4194_v38 = vpack.c.b16 %v4193_v59, %v4193_v59  ;;  %v4262_v4 = vrot.slane %v4260_v21, 3 }
0x2430   :  { %v4263_v32 = vrot.slane %v4261_v56, 2 }
0x2431   :  { %4195 = vrot.lane.b32.xlu0 %v4194_v38, %s7402_s4 }
0x2432   :  { %v4264_v26 = vsel %vm432_vm2, %v4263_v32, %v4262_v4 }
0x2433   :  { %v4265_v46 = vpack.c.b16 %v4264_v26, %v4264_v26 }
0x2435   :  { %4266 = vrot.lane.b32.xlu1 %v4265_v46, %s7402_s4 }
0x24a3   :  { %v4196_v23 = vpop.permute.xlu0 %4195 }
0x24a4   :  { %6549 = vmatmul.mubr.msk.bf16.vlgmr.msra.gmra.mrb[48].mxu1 %vm105_vm1, %v4196_v23 }
0x24a5   :  { %6564 = vmatprep.mubr.msk.bf16.mxu1 %vm7399_vm0, %v7397_v2 }
0x24a7   :  { %v4267_v12 = vpop.permute.xlu1 %4266 }
0x24a8   :  { %6557 = vmatmul.mubr.msk.bf16.vlgmr.msra.gmra.mrb[64].mxu0 %vm105_vm1, %v4267_v12 }
0x24a9   :  { %6572 = vmatprep.mubr.msk.bf16.mxu0 %vm7399_vm0, %v7397_v2 }
0x2577   :  { %v4246_v1 = vpop.f32.mrb[48].mxu1 }
0x2578   :  { %v4324_v5 = vrot.slane %v4246_v1, 3  ;;  %v4325_v20 = vrot.slane %v4246_v1, 4  ;;  %v6550_v22 = vpop.f32.mrb[49].mxu1 }
0x2579   :  { %v4249_v27 = vpop.f32.mrb[50].mxu1 }
0x257a   :  { %v4328_v11 = vadd.f32 %v4324_v5, %v8611_v7  ;;  %v4329_v53 = vadd.f32 %v4325_v20, %v8603_v17  ;;  %v6551_v34 = vpop.f32.mrb[51].mxu1 }
0x257b   :  { %v4317_v61 = vpop.f32.mrb[64].mxu0 }
0x257c   :  { %7277 = vtanh.f32 %v4328_v11  ;;  %v4331_v36 = vrot.slane %v4317_v61, 6  ;;  %v4332_v16 = vrot.slane %v4317_v61, 7  ;;  %v6558_v28 = vpop.f32.mrb[65].mxu0  ;;  %v4338_v46 = vsub.f32 0.0, %v4328_v11 }
0x257d   :  { %7279 = vtanh.f32 %v4329_v53  ;;  %v4320_v21 = vpop.f32.mrb[66].mxu0  ;;  %v4339_v23 = vsub.f32 0.0, %v4329_v53 }
0x257e   :  { %v4335_v31 = vadd.f32 %v4331_v36, %v8607_v45  ;;  %v4336_v59 = vadd.f32 %v4332_v16, %v8609_v6  ;;  %v6559_v38 = vpop.f32.mrb[67].mxu0  ;;  %v4340_v12 = vmul.f32 1.442695, %v4338_v46 }
0x257f   :  { %v4342_v1 = vmul.f32 1.442695, %v4339_v23 }
0x2580   :  { %7281 = vtanh.f32 %v4335_v31  ;;  %v4404_v5 = vsub.f32 0.0, %v4335_v31  ;;  %v4405_v20 = vsub.f32 0.0, %v4336_v59 }
0x2581   :  { %7283 = vtanh.f32 %v4336_v59 }
0x2582   :  { %7285 = vpow2.f32 %v4340_v12  ;;  %v4406_v22 = vmul.f32 1.442695, %v4404_v5  ;;  %v4408_v27 = vmul.f32 1.442695, %v4405_v20  ;;  %v4337_v20 = vld [vmem:[%s9866_s1] sm:$0x3] }
0x2583   :  { %7287 = vpow2.f32 %v4342_v1 }
0x2584   :  { %7289 = vpow2.f32 %v4406_v22  ;;  %v4094_v22 = vmul.f32 %v4088_v10, %v9112_v13 }
0x2585   :  { %7291 = vpow2.f32 %v4408_v27  ;;  %v4095_v27 = vmul.f32 %v4089_v42, %v9114_v47 }
0x2586   :  { %v7278_v56 = vpop.eup %7277 }
0x2587   :  { %v7280_v4 = vpop.eup %7279  ;;  %4362 = vrot.lane.b32.xlu0 %v7278_v56, %s7400_s30 }
0x2588   :  { %4364 = vrot.lane.b32.xlu1 %v7280_v4, %s7400_s30 }
0x258a   :  { %v7282_v32 = vpop.eup %7281 }
0x258b   :  { %v7284_v26 = vpop.eup %7283  ;;  %4428 = vrot.lane.b32.xlu0 %v7282_v32, %s7400_s30 }
0x258c   :  { %4430 = vrot.lane.b32.xlu1 %v7284_v26, %s7400_s30  ;;  %v7286_v34 = vpop.eup %7285 }
0x258d   :  { %v7288_v61 = vpop.eup %7287  ;;  %v4344_v36 = vadd.f32 1.0, %v7286_v34  ;;  %v4354_v34 = vrot.slane %v4094_v22, 7 }
0x258e   :  { %v4345_v16 = vadd.f32 1.0, %v7288_v61  ;;  %v7290_v28 = vpop.eup %7289  ;;  %v4355_v61 = vrot.slane %v4095_v27, 7 }
0x258f   :  { %v7292_v21 = vpop.eup %7291  ;;  %7293 = vrcp.f32 %v4344_v36  ;;  %v4410_v11 = vadd.f32 1.0, %v7290_v28  ;;  %v4159_v36 = vmul.f32 %v4153_v58, %v9120_v0 }
0x2590   :  { %7295 = vrcp.f32 %v4345_v16  ;;  %v4411_v53 = vadd.f32 1.0, %v7292_v21 }
0x2591   :  { %7297 = vrcp.f32 %v4410_v11  ;;  %v4420_v47 = vrot.slane %v4159_v36, 1  ;;  %v6852_v36 = vld [vmem:[%s9830_s9 + $0x8] sm:$0xff]  }
0x2592   :  { %7299 = vrcp.f32 %v4411_v53 }
0x2599   :  { %v9200_v31 = vpop.eup %7293 }
0x259a   :  { %v9202_v38 = vpop.eup %7295  ;;  %v4358_v16 = vmul.f32 %v9200_v31, %v4354_v34 }
0x259b   :  { %v9208_v26 = vpop.eup %7297 }
0x259c   :  { %v9210_v23 = vpop.eup %7299  ;;  %v4424_v42 = vmul.f32 %v9208_v26, %v4420_v47 }
0x25f9   :  { %v4363_v59 = vpop.permute.xlu0 %4362 }
0x25fa   :  { %v4365_v56 = vpop.permute.xlu1 %4364  ;;  %v4368_v4 = vmul.f32 %v9200_v31, %v4363_v59 }
0x25fb   :  { %v4369_v32 = vmul.f32 %v9202_v38, %v4365_v56 }
0x25fc   :  { %4372 = vrot.lane.b32.xlu0 %v4368_v4, %s7400_s30  ;;  %v6849_v4 = vld [vmem:[%s9829_s8] sm:$0xff]  }
0x25fd   :  { %4374 = vrot.lane.b32.xlu1 %v4369_v32, %s7400_s30  ;;  %v4429_v46 = vpop.permute.xlu0 %4428  ;;  %v6851_v32 = vld [vmem:[%s9830_s9] sm:$0xff]   ;;  %6561 = vmatpush3.bf16.msra.mxu1 %v6849_v4 }
0x25fe   :  { %v4431_v12 = vpop.permute.xlu1 %4430  ;;  %v4434_v1 = vmul.f32 %v9208_v26, %v4429_v46  ;;  %v6850_v46 = vld [vmem:[%s9829_s8 + $0x8] sm:$0xff]   ;;  %6569 = vmatpush3.bf16.msra.mxu0 %v6851_v32  ;;  %6562 = vmatprep.subr.bf16.mxu1 %v7397_v2 }
0x25ff   :  { %v4435_v5 = vmul.f32 %v9210_v23, %v4431_v12  ;;  %6570 = vmatprep.subr.bf16.mxu0 %v7397_v2 }
0x2600   :  { %4438 = vrot.lane.b32.xlu0 %v4434_v1, %s7400_s30 }
0x2601   :  { %4440 = vrot.lane.b32.xlu1 %v4435_v5, %s7400_s30  ;;  %6563 = vmatpush3.bf16.msra.mxu1 %v6850_v46 }
0x2602   :  { %6576 = vmatprep.subr.bf16.mxu1 %v7397_v2  ;;  %6571 = vmatpush3.bf16.msra.mxu0 %v6852_v36 }
0x2603   :  { %6584 = vmatprep.subr.bf16.mxu0 %v7397_v2 }
0x2604   :  { %4394 = vperm.xlu0 %6753, %v4337_v20  }
0x2605   :  { %4459 = vperm.xlu1 %6754, %v4337_v20  }
0x2608   :  { %6756 = vset.pattern.permute.xlu0 %v7404_v43  ;;  %v4359_v43 = vmul.f32 %v9202_v38, %v4355_v61 }
0x2609   :  { %6755 = vset.pattern.permute.xlu1 %v7403_v41  ;;  %v4160_v41 = vmul.f32 %v4154_v50, %v9122_v29 }
0x260b   :  { %v4421_v0 = vrot.slane %v4160_v41, 1 }
0x260d   :  { %v4425_v58 = vmul.f32 %v9210_v23, %v4421_v0 }
0x266e   :  { %v4373_v28 = vpop.permute.xlu0 %4372 }
0x266f   :  { %v4375_v13 = vpop.permute.xlu1 %4374  ;;  %v9235_v10 = vadd.f32 %v4373_v28, %v4358_v16 }
0x2670   :  { %v9237_v62 = vadd.f32 %v4375_v13, %v4359_v43 }
0x2671   :  { %7301 = vtanh.f32 %v9235_v10 }
0x2672   :  { %7303 = vtanh.f32 %v9237_v62  ;;  %v4439_v55 = vpop.permute.xlu0 %4438 }
0x2673   :  { %v4441_v29 = vpop.permute.xlu1 %4440  ;;  %v9243_v50 = vadd.f32 %v4439_v55, %v4424_v42 }
0x2674   :  { %v9245_v21 = vadd.f32 %v4441_v29, %v4425_v58 }
0x2675   :  { %7305 = vtanh.f32 %v9243_v50 }
0x2676   :  { %7307 = vtanh.f32 %v9245_v21 }
0x267b   :  { %v7302_v11 = vpop.eup %7301 }
0x267c   :  { %v7304_v53 = vpop.eup %7303  ;;  %4384 = vrot.lane.b32.xlu1 %v7302_v11, %s7400_s30 }
0x267d   :  { %4386 = vrot.lane.b32.xlu0 %v7304_v53, %s7400_s30 }
0x267f   :  { %v7306_v59 = vpop.eup %7305 }
0x2680   :  { %v7308_v56 = vpop.eup %7307  ;;  %4450 = vrot.lane.b32.xlu1 %v7306_v59, %s7400_s30 }
0x2681   :  { %4452 = vrot.lane.b32.xlu0 %v7308_v56, %s7400_s30 }
0x2683   :  { %v9267_v1 = vpop.permute.xlu0 %4394 }
0x2684   :  { %v9265_v12 = vpop.permute.xlu1 %4459  ;;  %v4396_v20 = vrot.slane %v9267_v1, 3  ;;  %v4397_v34 = vrot.slane %v9267_v1, 4 }
0x2685   :  { %v4461_v28 = vrot.slane %v9265_v12, 6  ;;  %v4462_v42 = vrot.slane %v9265_v12, 7 }
0x26ee   :  { %v4385_v5 = vpop.permute.xlu1 %4384 }
0x26ef   :  { %v4390_v22 = vmul.f32 %v9200_v31, %v4385_v5  ;;  %v4387_v27 = vpop.permute.xlu0 %4386 }
0x26f0   :  { %v4391_v61 = vmul.f32 %v9202_v38, %v4387_v27 }
0x26f1   :  { %v9278_v16 = vmul.f32 %v4396_v20, %v4390_v22 }
0x26f2   :  { %v9282_v41 = vmul.f32 %v4397_v34, %v4391_v61  ;;  %v4451_v43 = vpop.permute.xlu1 %4450 }
0x26f3   :  { %v4489_v31 = vpack.c.bf16 %v9278_v16, %v9278_v16  ;;  %v4453_v47 = vpop.permute.xlu0 %4452  ;;  %v4456_v0 = vmul.f32 %v9208_v26, %v4451_v43 }
0x26f4   :  { %v4490_v38 = vpack.c.bf16 %v9282_v41, %v9282_v41  ;;  %v4457_v55 = vmul.f32 %v9210_v23, %v4453_v47 }
0x26f5   :  { %v4497_v13 = vunpack.c.l.b16 %v4489_v31  ;;  %v9295_v11 = vmul.f32 %v4461_v28, %v4456_v0 }
0x26f6   :  { %v4498_v58 = vunpack.c.l.b16 %v4490_v38  ;;  %v9299_v59 = vmul.f32 %v4462_v42, %v4457_v55 }
0x26f7   :  { %v4499_v29 = vrot.slane %v4497_v13, 5  ;;  %v4560_v56 = vpack.c.bf16 %v9295_v11, %v9295_v11 }
0x26f8   :  { %v4500_v53 = vrot.slane %v4498_v58, 4  ;;  %v4561_v26 = vpack.c.bf16 %v9299_v59, %v9299_v59 }
0x26f9   :  { %v4568_v32 = vunpack.c.l.b16 %v4560_v56 }
0x26fa   :  { %v4501_v4 = vsel %vm432_vm2, %v4500_v53, %v4499_v29  ;;  %v4569_v46 = vunpack.c.l.b16 %v4561_v26 }
0x26fb   :  { %v4502_v23 = vpack.c.b16 %v4501_v4, %v4501_v4  ;;  %v4570_v5 = vrot.slane %v4568_v32, 2 }
0x26fc   :  { %v4571_v22 = vrot.slane %v4569_v46, 1 }
0x26fd   :  { %4503 = vrot.lane.b32.xlu1 %v4502_v23, %s7402_s4 }
0x26fe   :  { %v4572_v27 = vsel %vm432_vm2, %v4571_v22, %v4570_v5 }
0x26ff   :  { %v4573_v61 = vpack.c.b16 %v4572_v27, %v4572_v27 }
0x2701   :  { %4574 = vrot.lane.b32.xlu0 %v4573_v61, %s7402_s4 }
0x276f   :  { %v4504_v36 = vpop.permute.xlu1 %4503 }
0x2770   :  { %6565 = vmatmul.mubr.msk.bf16.vlgmr.msra.gmra.mrb[52].mxu1 %vm105_vm1, %v4504_v36 }
0x2771   :  { %6580 = vmatprep.mubr.msk.bf16.mxu1 %vm7399_vm0, %v7397_v2 }
0x2773   :  { %v4575_v31 = vpop.permute.xlu0 %4574 }
0x2774   :  { %6573 = vmatmul.mubr.msk.bf16.vlgmr.msra.gmra.mrb[68].mxu0 %vm105_vm1, %v4575_v31 }
0x2775   :  { %6588 = vmatprep.mubr.msk.bf16.mxu0 %vm7399_vm0, %v7397_v2 }
0x2843   :  { %v4554_v38 = vpop.f32.mrb[52].mxu1 }
0x2844   :  { %v4632_v43 = vrot.slane %v4554_v38, 2  ;;  %v4633_v13 = vrot.slane %v4554_v38, 3  ;;  %v6566_v47 = vpop.f32.mrb[53].mxu1 }
0x2845   :  { %v4557_v0 = vpop.f32.mrb[54].mxu1 }
0x2846   :  { %v4636_v58 = vadd.f32 %v4632_v43, %v8611_v7  ;;  %v4637_v55 = vadd.f32 %v4633_v13, %v8603_v17  ;;  %v6567_v29 = vpop.f32.mrb[55].mxu1 }
0x2847   :  { %v4625_v53 = vpop.f32.mrb[68].mxu0 }
0x2848   :  { %7309 = vtanh.f32 %v4636_v58  ;;  %v4639_v56 = vrot.slane %v4625_v53, 7  ;;  %v6574_v26 = vpop.f32.mrb[69].mxu0  ;;  %v4643_v4 = vadd.f32 %v4625_v53, %v8609_v6  ;;  %v4645_v36 = vsub.f32 0.0, %v4636_v58 }
0x2849   :  { %7311 = vtanh.f32 %v4637_v55  ;;  %v4628_v32 = vpop.f32.mrb[70].mxu0  ;;  %v4646_v31 = vsub.f32 0.0, %v4637_v55 }
0x284a   :  { %v4642_v23 = vadd.f32 %v4639_v56, %v8607_v45  ;;  %v6575_v46 = vpop.f32.mrb[71].mxu0  ;;  %v4647_v38 = vmul.f32 1.442695, %v4645_v36  ;;  %v4712_v47 = vsub.f32 0.0, %v4643_v4 }
0x284b   :  { %v4649_v43 = vmul.f32 1.442695, %v4646_v31 }
0x284c   :  { %7313 = vtanh.f32 %v4642_v23  ;;  %v4711_v13 = vsub.f32 0.0, %v4642_v23  ;;  %v4715_v29 = vmul.f32 1.442695, %v4712_v47 }
0x284d   :  { %7315 = vtanh.f32 %v4643_v4 }
0x284e   :  { %7317 = vpow2.f32 %v4647_v38  ;;  %v4713_v0 = vmul.f32 1.442695, %v4711_v13 }
0x284f   :  { %7319 = vpow2.f32 %v4649_v43 }
0x2850   :  { %7321 = vpow2.f32 %v4713_v0 }
0x2851   :  { %7323 = vpow2.f32 %v4715_v29  ;;  %v4644_v29 = vld [vmem:[%s9866_s1] sm:$0x3] }
0x2852   :  { %v7310_v5 = vpop.eup %7309 }
0x2853   :  { %v7312_v22 = vpop.eup %7311  ;;  %4669 = vrot.lane.b32.xlu1 %v7310_v5, %s7400_s30 }
0x2854   :  { %4671 = vrot.lane.b32.xlu0 %v7312_v22, %s7400_s30 }
0x2856   :  { %v7314_v27 = vpop.eup %7313 }
0x2857   :  { %v7316_v61 = vpop.eup %7315  ;;  %4735 = vrot.lane.b32.xlu1 %v7314_v27, %s7400_s30 }
0x2858   :  { %4737 = vrot.lane.b32.xlu0 %v7316_v61, %s7400_s30  ;;  %v7318_v53 = vpop.eup %7317 }
0x2859   :  { %v7320_v56 = vpop.eup %7319  ;;  %v4651_v26 = vadd.f32 1.0, %v7318_v53  ;;  %v4402_v53 = vmul.f32 %v4396_v20, %v9235_v10 }
0x285a   :  { %v4652_v32 = vadd.f32 1.0, %v7320_v56  ;;  %v7322_v46 = vpop.eup %7321  ;;  %v4403_v56 = vmul.f32 %v4397_v34, %v9237_v62 }
0x285b   :  { %v7324_v5 = vpop.eup %7323  ;;  %7325 = vrcp.f32 %v4651_v26  ;;  %v4717_v58 = vadd.f32 1.0, %v7322_v46  ;;  %v4661_v26 = vrot.slane %v4402_v53, 7 }
0x285c   :  { %7327 = vrcp.f32 %v4652_v32  ;;  %v4718_v55 = vadd.f32 1.0, %v7324_v5  ;;  %v4662_v32 = vrot.slane %v4403_v56, 7  ;;  %v4467_v5 = vmul.f32 %v4461_v28, %v9243_v50 }
0x285d   :  { %7329 = vrcp.f32 %v4717_v58 }
0x285e   :  { %7331 = vrcp.f32 %v4718_v55  ;;  %v4727_v62 = vrot.slane %v4467_v5, 1 }
0x2865   :  { %v9323_v23 = vpop.eup %7325 }
0x2866   :  { %v9325_v22 = vpop.eup %7327  ;;  %v4665_v46 = vmul.f32 %v9323_v23, %v4661_v26 }
0x2867   :  { %v9331_v31 = vpop.eup %7329  ;;  %v4666_v55 = vmul.f32 %v9325_v22, %v4662_v32 }
0x2868   :  { %v9333_v43 = vpop.eup %7331 }
0x28c5   :  { %v4670_v4 = vpop.permute.xlu1 %4669 }
0x28c6   :  { %v4672_v27 = vpop.permute.xlu0 %4671  ;;  %v4675_v61 = vmul.f32 %v9323_v23, %v4670_v4  ;;  %v4731_v4 = vmul.f32 %v9331_v31, %v4727_v62 }
0x28c7   :  { %v4676_v36 = vmul.f32 %v9325_v22, %v4672_v27 }
0x28c8   :  { %4679 = vrot.lane.b32.xlu1 %v4675_v61, %s7400_s30 }
0x28c9   :  { %4681 = vrot.lane.b32.xlu0 %v4676_v36, %s7400_s30  ;;  %v4736_v38 = vpop.permute.xlu1 %4735 }
0x28ca   :  { %v4738_v13 = vpop.permute.xlu0 %4737  ;;  %v4741_v47 = vmul.f32 %v9331_v31, %v4736_v38  ;;  %v6853_v38 = vld [vmem:[%s9829_s8] sm:$0xff]  }
0x28cb   :  { %v4742_v0 = vmul.f32 %v9333_v43, %v4738_v13  ;;  %v6854_v13 = vld [vmem:[%s9830_s9] sm:$0xff]   ;;  %6577 = vmatpush3.bf16.msra.mxu1 %v6853_v38 }
0x28cc   :  { %4745 = vrot.lane.b32.xlu1 %v4741_v47, %s7400_s30  ;;  %6585 = vmatpush3.bf16.msra.mxu0 %v6854_v13 }
0x28cd   :  { %4747 = vrot.lane.b32.xlu0 %v4742_v0, %s7400_s30  ;;  %v6855_v0 = vld [vmem:[%s9829_s8 + $0x8] sm:$0xff]   ;;  %6578 = vmatprep.subr.bf16.mxu1 %v7397_v2 }
0x28ce   :  { %6586 = vmatprep.subr.bf16.mxu0 %v7397_v2 }
0x28cf   :  { %6579 = vmatpush3.bf16.msra.mxu1 %v6855_v0 }
0x28d0   :  { %4701 = vperm.xlu1 %6755, %v4644_v29   ;;  %6592 = vmatprep.subr.bf16.mxu1 %v7397_v2 }
0x28d1   :  { %4766 = vperm.xlu0 %6756, %v4644_v29   ;;  %v6856_v29 = vld [vmem:[%s9830_s9 + $0x8] sm:$0xff]  }
0x28d2   :  { %6587 = vmatpush3.bf16.msra.mxu0 %v6856_v29 }
0x28d4   :  { %6758 = vset.pattern.permute.xlu1 %v7398_v3 }
0x28d5   :  { %6757 = vset.pattern.permute.xlu0 %v7401_v44  ;;  %v4468_v44 = vmul.f32 %v4462_v42, %v9245_v21 }
0x28d7   :  { %v4728_v34 = vrot.slane %v4468_v44, 1 }
0x28d9   :  { %v4732_v50 = vmul.f32 %v9333_v43, %v4728_v34 }
0x293a   :  { %v4680_v58 = vpop.permute.xlu1 %4679 }
0x293b   :  { %v4682_v10 = vpop.permute.xlu0 %4681  ;;  %v9358_v20 = vadd.f32 %v4680_v58, %v4665_v46 }
0x293c   :  { %v9360_v1 = vadd.f32 %v4682_v10, %v4666_v55 }
0x293d   :  { %7333 = vtanh.f32 %v9358_v20 }
0x293e   :  { %v4746_v28 = vpop.permute.xlu1 %4745  ;;  %7335 = vtanh.f32 %v9360_v1 }
0x293f   :  { %v4748_v12 = vpop.permute.xlu0 %4747  ;;  %v9366_v21 = vadd.f32 %v4746_v28, %v4731_v4 }
0x2940   :  { %v9368_v42 = vadd.f32 %v4748_v12, %v4732_v50 }
0x2941   :  { %7337 = vtanh.f32 %v9366_v21 }
0x2942   :  { %7339 = vtanh.f32 %v9368_v42 }
0x2947   :  { %v7334_v27 = vpop.eup %7333 }
0x2948   :  { %4691 = vrot.lane.b32.xlu1 %v7334_v27, %s7400_s30  ;;  %v7336_v61 = vpop.eup %7335 }
0x294b   :  { %v7338_v36 = vpop.eup %7337 }
0x294c   :  { %4693 = vrot.lane.b32.xlu1 %v7336_v61, %s7400_s30  ;;  %4757 = vrot.lane.b32.xlu0 %v7338_v36, %s7400_s30  ;;  %v7340_v47 = vpop.eup %7339 }
0x294f   :  { %v9391_v53 = vpop.permute.xlu1 %4701 }
0x2950   :  { %4759 = vrot.lane.b32.xlu1 %v7340_v47, %s7400_s30  ;;  %v4703_v26 = vrot.slane %v9391_v53, 2  ;;  %v9395_v46 = vpop.permute.xlu0 %4766  ;;  %v4704_v44 = vrot.slane %v9391_v53, 3 }
0x2951   :  { %v4768_v34 = vrot.slane %v9395_v46, 7 }
0x29ba   :  { %v4692_v56 = vpop.permute.xlu1 %4691 }
0x29bb   :  { %v4697_v32 = vmul.f32 %v9323_v23, %v4692_v56 }
0x29bd   :  { %v9399_v5 = vmul.f32 %v4703_v26, %v4697_v32 }
0x29be   :  { %v4694_v58 = vpop.permute.xlu1 %4693  ;;  %v4758_v62 = vpop.permute.xlu0 %4757 }
0x29bf   :  { %v4795_v55 = vpack.c.bf16 %v9399_v5, %v9399_v5  ;;  %v4698_v10 = vmul.f32 %v9325_v22, %v4694_v58  ;;  %v4763_v4 = vmul.f32 %v9331_v31, %v4758_v62 }
0x29c1   :  { %v9408_v23 = vmul.f32 %v4704_v44, %v4698_v10  ;;  %v4803_v28 = vunpack.c.l.b16 %v4795_v55  ;;  %v9415_v27 = vmul.f32 %v4768_v34, %v4763_v4 }
0x29c2   :  { %v4760_v50 = vpop.permute.xlu1 %4759 }
0x29c3   :  { %v4796_v12 = vpack.c.bf16 %v9408_v23, %v9408_v23  ;;  %v4764_v22 = vmul.f32 %v9333_v43, %v4760_v50  ;;  %v4866_v36 = vpack.c.bf16 %v9415_v27, %v9415_v27  ;;  %v4805_v13 = vrot.slane %v4803_v28, 6 }
0x29c5   :  { %v4804_v61 = vunpack.c.l.b16 %v4796_v12  ;;  %v9421_v38 = vmul.f32 %v9395_v46, %v4764_v22  ;;  %v4874_v47 = vunpack.c.l.b16 %v4866_v36 }
0x29c7   :  { %v4806_v31 = vrot.slane %v4804_v61, 5  ;;  %v4867_v0 = vpack.c.bf16 %v9421_v38, %v9421_v38  ;;  %v4876_v29 = vrot.slane %v4874_v47, 1 }
0x29c9   :  { %v4875_v56 = vunpack.c.l.b16 %v4867_v0  ;;  %v4807_v32 = vsel %vm432_vm2, %v4806_v31, %v4805_v13 }
0x29ca   :  { %v4808_v58 = vpack.c.b16 %v4807_v32, %v4807_v32 }
0x29cb   :  { %v4877_v43 = vsel %vm432_vm2, %v4875_v56, %v4876_v29 }
0x29cc   :  { %4809 = vrot.lane.b32.xlu0 %v4808_v58, %s7402_s4  ;;  %v4878_v55 = vpack.c.b16 %v4877_v43, %v4877_v43 }
0x29ce   :  { %4879 = vrot.lane.b32.xlu1 %v4878_v55, %s7402_s4 }
0x2a3e   :  { %v4810_v10 = vpop.permute.xlu0 %4809 }
0x2a3f   :  { %6581 = vmatmul.mubr.msk.bf16.vlgmr.msra.gmra.mrb[56].mxu1 %vm105_vm1, %v4810_v10 }
0x2a40   :  { %v4880_v62 = vpop.permute.xlu1 %4879  ;;  %6600 = vmatprep.mubr.msk.bf16.mxu1 %vm7399_vm0, %v7397_v2  ;;  %vm9871_vm0 = vcmask 519427  }
0x2a41   :  { %6589 = vmatmul.mubr.msk.bf16.vlgmr.msra.gmra.mrb[72].mxu0 %vm105_vm1, %v4880_v62  ;;  %vm9872_vm2 = vmmov %vm9871_vm0 }
0x2b12   :  { %v4860_v4 = vpop.f32.mrb[56].mxu1 }
0x2b13   :  { %v4937_v50 = vrot.slane %v4860_v4, 1  ;;  %v4938_v28 = vrot.slane %v4860_v4, 2  ;;  %v6582_v12 = vpop.f32.mrb[57].mxu1 }
0x2b14   :  { %v4863_v22 = vpop.f32.mrb[58].mxu1  ;;  %v4930_v61 = vpop.f32.mrb[72].mxu0 }
0x2b15   :  { %v4941_v36 = vadd.f32 %v4937_v50, %v8611_v7  ;;  %v4942_v13 = vadd.f32 %v4938_v28, %v8603_v17  ;;  %v4944_v31 = vrot.slane %v4930_v61, 1  ;;  %v6583_v47 = vpop.f32.mrb[59].mxu1  ;;  %v6590_v0 = vpop.f32.mrb[73].mxu0  ;;  %v4947_v56 = vadd.f32 %v4930_v61, %v8607_v45 }
0x2b16   :  { %v4933_v29 = vpop.f32.mrb[74].mxu0 }
0x2b17   :  { %7341 = vtanh.f32 %v4941_v36  ;;  %v6591_v32 = vpop.f32.mrb[75].mxu0  ;;  %v4948_v58 = vadd.f32 %v4944_v31, %v8609_v6  ;;  %v4950_v10 = vsub.f32 0.0, %v4941_v36  ;;  %v4951_v45 = vsub.f32 0.0, %v4942_v13 }
0x2b18   :  { %7343 = vtanh.f32 %v4942_v13  ;;  %v5014_v4 = vsub.f32 0.0, %v4947_v56 }
0x2b19   :  { %7345 = vtanh.f32 %v4947_v56  ;;  %v4952_v62 = vmul.f32 1.442695, %v4950_v10  ;;  %v4954_v50 = vmul.f32 1.442695, %v4951_v45  ;;  %v5015_v6 = vsub.f32 0.0, %v4948_v58 }
0x2b1a   :  { %7347 = vtanh.f32 %v4948_v58  ;;  %v5016_v28 = vmul.f32 1.442695, %v5014_v4 }
0x2b1b   :  { %7349 = vpow2.f32 %v4952_v62  ;;  %v5018_v12 = vmul.f32 1.442695, %v5015_v6  ;;  %v4949_v6 = vld [vmem:[%s9866_s1] sm:$0x3] }
0x2b1c   :  { %7351 = vpow2.f32 %v4954_v50 }
0x2b1d   :  { %7353 = vpow2.f32 %v5016_v28  ;;  %v4709_v28 = vmul.f32 %v4703_v26, %v9358_v20 }
0x2b1e   :  { %7355 = vpow2.f32 %v5018_v12  ;;  %v4710_v12 = vmul.f32 %v4704_v44, %v9360_v1 }
0x2b21   :  { %v7342_v43 = vpop.eup %7341 }
0x2b22   :  { %v7344_v55 = vpop.eup %7343  ;;  %4974 = vrot.lane.b32.xlu0 %v7342_v43, %s7400_s30 }
0x2b23   :  { %4976 = vrot.lane.b32.xlu1 %v7344_v55, %s7400_s30  ;;  %v7346_v17 = vpop.eup %7345 }
0x2b24   :  { %v7348_v7 = vpop.eup %7347 }
0x2b25   :  { %v7350_v22 = vpop.eup %7349 }
0x2b26   :  { %5038 = vrot.lane.b32.xlu0 %v7346_v17, %s7400_s30  ;;  %v7352_v61 = vpop.eup %7351  ;;  %v4956_v31 = vadd.f32 1.0, %v7350_v22  ;;  %v4966_v22 = vrot.slane %v4709_v28, 7 }
0x2b27   :  { %5040 = vrot.lane.b32.xlu1 %v7348_v7, %s7400_s30  ;;  %v7354_v47 = vpop.eup %7353  ;;  %v4957_v0 = vadd.f32 1.0, %v7352_v61  ;;  %v4773_v61 = vmul.f32 %v4768_v34, %v9366_v21 }
0x2b28   :  { %v7356_v29 = vpop.eup %7355  ;;  %7357 = vrcp.f32 %v4956_v31  ;;  %v5020_v32 = vadd.f32 1.0, %v7354_v47  ;;  %v4774_v31 = vmul.f32 %v9395_v46, %v9368_v42  ;;  %v4967_v47 = vrot.slane %v4710_v12, 7 }
0x2b29   :  { %7359 = vrcp.f32 %v4957_v0  ;;  %v5021_v36 = vadd.f32 1.0, %v7356_v29  ;;  %v5030_v26 = vrot.slane %v4773_v61, 1 }
0x2b2a   :  { %7361 = vrcp.f32 %v5020_v32 }
0x2b2b   :  { %7363 = vrcp.f32 %v5021_v36  ;;  %v5031_v36 = vrot.slane %v4774_v31, 1 }
0x2b32   :  { %v9441_v13 = vpop.eup %7357 }
0x2b33   :  { %v9443_v58 = vpop.eup %7359  ;;  %v4970_v0 = vmul.f32 %v9441_v13, %v4966_v22 }
0x2b34   :  { %v9448_v7 = vpop.eup %7361  ;;  %v4971_v29 = vmul.f32 %v9443_v58, %v4967_v47 }
0x2b35   :  { %v9451_v45 = vpop.eup %7363  ;;  %v5034_v1 = vmul.f32 %v9448_v7, %v5030_v26 }
0x2b36   :  { %v5035_v21 = vmul.f32 %v9451_v45, %v5031_v36 }
0x2b94   :  { %v4975_v56 = vpop.permute.xlu0 %4974 }
0x2b95   :  { %v4977_v43 = vpop.permute.xlu1 %4976  ;;  %v4980_v55 = vmul.f32 %v9441_v13, %v4975_v56 }
0x2b96   :  { %v4981_v17 = vmul.f32 %v9443_v58, %v4977_v43 }
0x2b97   :  { %4984 = vrot.lane.b32.xlu0 %v4980_v55, %s7400_s30 }
0x2b98   :  { %4986 = vrot.lane.b32.xlu1 %v4981_v17, %s7400_s30  ;;  %v5039_v10 = vpop.permute.xlu0 %5038 }
0x2b99   :  { %v5044_v62 = vmul.f32 %v9448_v7, %v5039_v10  ;;  %v5041_v4 = vpop.permute.xlu1 %5040 }
0x2b9a   :  { %v5045_v50 = vmul.f32 %v9451_v45, %v5041_v4 }
0x2b9b   :  { %5048 = vrot.lane.b32.xlu0 %v5044_v62, %s7400_s30 }
0x2b9c   :  { %5050 = vrot.lane.b32.xlu1 %v5045_v50, %s7400_s30 }
0x2b9f   :  { %5006 = vperm.xlu0 %6757, %v4949_v6  }
0x2ba0   :  { %5069 = vperm.xlu1 %6758, %v4949_v6  }
0x2ba3   :  { %6774 = vset.pattern.permute.xlu0 %v7398_v3 }
0x2c09   :  { %v4985_v3 = vpop.permute.xlu0 %4984 }
0x2c0a   :  { %v4990_v32 = vadd.f32 %v4985_v3, %v4970_v0  ;;  %v4987_v20 = vpop.permute.xlu1 %4986 }
0x2c0b   :  { %v4991_v53 = vadd.f32 %v4987_v20, %v4971_v29 }
0x2c0c   :  { %7365 = vtanh.f32 %v4990_v32 }
0x2c0d   :  { %7367 = vtanh.f32 %v4991_v53  ;;  %v5049_v44 = vpop.permute.xlu0 %5048 }
0x2c0e   :  { %v5054_v34 = vadd.f32 %v5049_v44, %v5034_v1  ;;  %v5051_v42 = vpop.permute.xlu1 %5050 }
0x2c0f   :  { %v5055_v46 = vadd.f32 %v5051_v42, %v5035_v21 }
0x2c10   :  { %7369 = vtanh.f32 %v5054_v34 }
0x2c11   :  { %7371 = vtanh.f32 %v5055_v46  ;;  %v5188_v46 = vld [vmem:[%s9833_s12] sm:$0xff] }
0x2c16   :  { %v7366_v56 = vpop.eup %7365 }
0x2c17   :  { %v7368_v43 = vpop.eup %7367  ;;  %4996 = vrot.lane.b32.xlu1 %v7366_v56, %s7400_s30  ;;  %v5189_v56 = vld [vmem:[%s9833_s12 + $0x8] sm:$0xff] }
0x2c18   :  { %4998 = vrot.lane.b32.xlu0 %v7368_v43, %s7400_s30  ;;  %v5190_v43 = vld [vmem:[%s9833_s12 + $0x10] sm:$0xff] }
0x2c1a   :  { %v7370_v55 = vpop.eup %7369 }
0x2c1b   :  { %v7372_v17 = vpop.eup %7371  ;;  %5060 = vrot.lane.b32.xlu1 %v7370_v55, %s7400_s30  ;;  %v6650_v55 = vpack.c.bf16 %v5189_v56, %v5188_v46 }
0x2c1c   :  { %5062 = vrot.lane.b32.xlu0 %v7372_v17, %s7400_s30  ;;  %v5191_v17 = vld [vmem:[%s9833_s12 + $0x18] sm:$0xff] }
0x2c1d   :  { %6651 = vmatprep.subr.bf16.mxu0 %v6650_v55 }
0x2c1e   :  { %6653 = vmatpush3.bf16.msra.mxu0 %v6650_v55 }
0x2c1f   :  { %2935 = vrot.lane.b32.xlu1 %v8692_v33, %s7402_s4  ;;  %v5007_v33 = vpop.permute.xlu0 %5006 }
0x2c20   :  { %2937 = vrot.lane.b32.xlu0 %v8672_v25, %s7402_s4  ;;  %v6857_v25 = vld [vmem:[%s9831_s10] sm:$0xff]  }
0x2c21   :  { %6593 = vmatpush3.bf16.msra.mxu1 %v6857_v25  ;;  %v6654_v25 = vpack.c.bf16 %v5191_v17, %v5190_v43 }
0x2c22   :  { %6594 = vmatprep.subr.bf16.mxu1 %v7397_v2 }
0x2c23   :  { %2945 = vrot.lane.b32.xlu1 %v8680_v14, %s7409_s2  ;;  %v6858_v14 = vld [vmem:[%s9831_s10 + $0x8] sm:$0xff]   ;;  %6655 = vmatprep.subr.bf16.mxu0 %v6654_v25 }
0x2c24   :  { %2947 = vrot.lane.b32.xlu0 %v8684_v35, %s7409_s2  ;;  %v5070_v35 = vpop.permute.xlu1 %5069  ;;  %6657 = vmatpush3.bf16.msra.mxu0 %v6654_v25  ;;  %v5752_v25 = vld [vmem:[%s9834_s13 + $0x8] sm:$0xff] }
0x2c25   :  { %6595 = vmatpush3.bf16.msra.mxu1 %v6858_v14  ;;  %v6181_v14 = vld [vmem:[%s9832_s11] ss:$0 sm:$0xff]  ;;  %s7410_s11 = smov 48  }
0x2c26   :  { %6596 = vmatprep.subr.bf16.mxu1 %v7397_v2 }
0x2c27   :  { %3240 = vrot.lane.b32.xlu1 %v8790_v9, %s7402_s4  ;;  %v6859_v9 = vld [vmem:[%s9831_s10 + $0x10] sm:$0xff]  }
0x2c28   :  { %3242 = vrot.lane.b32.xlu0 %v8812_v54, %s7402_s4  ;;  %v5008_v54 = vrot.slane %v5007_v33, 1 }
0x2c29   :  { %6597 = vmatpush3.bf16.msra.mxu1 %v6859_v9 }
0x2c2a   :  { %6598 = vmatprep.subr.bf16.mxu1 %v7397_v2 }
0x2c2b   :  { %3250 = vrot.lane.b32.xlu1 %v8804_v52, %s7409_s2 }
0x2c2c   :  { %3252 = vrot.lane.b32.xlu0 %v8800_v18, %s7409_s2  ;;  %v6860_v18 = vld [vmem:[%s9831_s10 + $0x18] sm:$0xff]  }
0x2c2d   :  { %6599 = vmatpush3.bf16.msra.mxu1 %v6860_v18 }
0x2c2f   :  { %3547 = vrot.lane.b32.xlu1 %v8911_v51, %s7402_s4 }
0x2c30   :  { %3549 = vrot.lane.b32.xlu0 %v8915_v24, %s7402_s4 }
0x2c33   :  { %3557 = vrot.lane.b32.xlu1 %v8928_v60, %s7409_s2  ;;  %v5009_v60 = vrot.slane %v5007_v33, 2 }
0x2c34   :  { %3559 = vrot.lane.b32.xlu0 %v8932_v30, %s7409_s2 }
0x2c37   :  { %3855 = vrot.lane.b32.xlu1 %v9027_v57, %s7402_s4 }
0x2c38   :  { %3857 = vrot.lane.b32.xlu0 %v9039_v8, %s7402_s4 }
0x2c3b   :  { %3865 = vrot.lane.b32.xlu1 %v9048_v63, %s7409_s2 }
0x2c3c   :  { %3867 = vrot.lane.b32.xlu0 %v9055_v40, %s7409_s2 }
0x2c3f   :  { %4163 = vrot.lane.b32.xlu1 %v9155_v39, %s7402_s4 }
0x2c40   :  { %4165 = vrot.lane.b32.xlu0 %v9159_v48, %s7402_s4  ;;  %v5071_v48 = vrot.slane %v5070_v35, 1 }
0x2c43   :  { %4173 = vrot.lane.b32.xlu1 %v9172_v37, %s7409_s2 }
0x2c44   :  { %4175 = vrot.lane.b32.xlu0 %v9176_v49, %s7409_s2 }
0x2c47   :  { %4471 = vrot.lane.b32.xlu1 %v9278_v16, %s7402_s4 }
0x2c48   :  { %4473 = vrot.lane.b32.xlu0 %v9282_v41, %s7402_s4 }
0x2c4b   :  { %4481 = vrot.lane.b32.xlu1 %v9295_v11, %s7409_s2 }
0x2c4c   :  { %4483 = vrot.lane.b32.xlu0 %v9299_v59, %s7409_s2 }
0x2c4f   :  { %4777 = vrot.lane.b32.xlu1 %v9399_v5, %s7402_s4 }
0x2c50   :  { %4779 = vrot.lane.b32.xlu0 %v9408_v23, %s7402_s4 }
0x2c53   :  { %4787 = vrot.lane.b32.xlu1 %v9415_v27, %s7409_s2 }
0x2c54   :  { %4789 = vrot.lane.b32.xlu0 %v9421_v38, %s7409_s2 }
0x2c89   :  { %v4997_v52 = vpop.permute.xlu1 %4996 }
0x2c8a   :  { %v4999_v51 = vpop.permute.xlu0 %4998  ;;  %v5002_v24 = vmul.f32 %v9441_v13, %v4997_v52 }
0x2c8b   :  { %v5003_v30 = vmul.f32 %v9443_v58, %v4999_v51 }
0x2c8c   :  { %v5012_v57 = vmul.f32 %v5008_v54, %v5002_v24 }
0x2c8d   :  { %v5013_v8 = vmul.f32 %v5009_v60, %v5003_v30  ;;  %v5061_v63 = vpop.permute.xlu1 %5060 }
0x2c8e   :  { %v5066_v40 = vmul.f32 %v9448_v7, %v5061_v63  ;;  %v5063_v39 = vpop.permute.xlu0 %5062  ;;  %5078 = vrot.lane.b32.xlu1 %v5012_v57, %s7402_s4 }
0x2c8f   :  { %v5067_v37 = vmul.f32 %v9451_v45, %v5063_v39  ;;  %5080 = vrot.lane.b32.xlu0 %v5013_v8, %s7402_s4 }
0x2c90   :  { %v5074_v49 = vmul.f32 %v5070_v35, %v5066_v40 }
0x2c91   :  { %v5075_v16 = vmul.f32 %v5071_v48, %v5067_v37  ;;  %v2936_v41 = vpop.permute.xlu1 %2935 }
0x2c92   :  { %2941 = vst.msk [vmem:[#allocation3] sm:$0x1] %vm407_vm3, %v2936_v41  ;;  %v2938_v11 = vpop.permute.xlu0 %2937  ;;  %5088 = vrot.lane.b32.xlu1 %v5074_v49, %s7409_s2  ;;  %v6187_v41 = vld [vmem:[%s9833_s12 + $0x20] ss:$0 sm:$0xff] }
0x2c93   :  { %2942 = vst.msk [vmem:[#allocation3 + $0x8] sm:$0x1] %vm407_vm3, %v2938_v11  ;;  %5090 = vrot.lane.b32.xlu0 %v5075_v16, %s7409_s2  ;;  %vm9873_vm3 = vcmask 259077   ;;  %v5282_v16 = vld [vmem:[%s9836_s15] sm:$0xff] }
0x2c95   :  { %v2946_v59 = vpop.permute.xlu1 %2945 }
0x2c96   :  { %2951 = vst.msk [vmem:[#allocation3] sm:$0x80] %vm418_vm4, %v2946_v59  ;;  %v2948_v5 = vpop.permute.xlu0 %2947 }
0x2c97   :  { %2952 = vst.msk [vmem:[#allocation3 + $0x8] sm:$0x80] %vm418_vm4, %v2948_v5  ;;  %vm9874_vm4 = vmmov %vm9873_vm3 }
0x2c99   :  { %v3241_v23 = vpop.permute.xlu1 %3240 }
0x2c9a   :  { %3246 = vst.msk [vmem:[#allocation3] sm:$0x2] %vm715_vm5, %v3241_v23  ;;  %v3243_v27 = vpop.permute.xlu0 %3242 }
0x2c9b   :  { %3247 = vst.msk [vmem:[#allocation3 + $0x8] sm:$0x2] %vm715_vm5, %v3243_v27  ;;  %vm9875_vm5 = vcmask 518402  }
0x2c9d   :  { %v3251_v38 = vpop.permute.xlu1 %3250 }
0x2c9e   :  { %3256 = vst.msk [vmem:[#allocation3] sm:$0x40] %vm726_vm6, %v3251_v38  ;;  %v3253_v13 = vpop.permute.xlu0 %3252  ;;  %v5283_v38 = vld [vmem:[%s9836_s15 + $0x8] sm:$0xf]  ;;  %s7417_s15 = smov 68  }
0x2c9f   :  { %3257 = vst.msk [vmem:[#allocation3 + $0x8] sm:$0x40] %vm726_vm6, %v3253_v13  ;;  %vm9876_vm6 = vmmov %vm9875_vm5 }
0x2ca1   :  { %v3548_v58 = vpop.permute.xlu1 %3547 }
0x2ca2   :  { %3553 = vst.msk [vmem:[#allocation3] sm:$0x4] %vm1024_vm7, %v3548_v58  ;;  %v3550_v7 = vpop.permute.xlu0 %3549 }
0x2ca3   :  { %3554 = vst.msk [vmem:[#allocation3 + $0x8] sm:$0x4] %vm1024_vm7, %v3550_v7  ;;  %vm9877_vm7 = vcmask 260102   ;;  %v5455_v7 = vld [vmem:[%s9838_s17] sm:$0xff] }
0x2ca5   :  { %v3558_v10 = vpop.permute.xlu1 %3557 }
0x2ca6   :  { %3563 = vst.msk [vmem:[#allocation3] sm:$0x20] %vm1035_vm8, %v3558_v10  ;;  %v3560_v45 = vpop.permute.xlu0 %3559  ;;  %v5456_v10 = vld [vmem:[%s9838_s17 + $0x8] sm:$0xff]  ;;  %s7419_s17 = smov 119  }
0x2ca7   :  { %3564 = vst.msk [vmem:[#allocation3 + $0x8] sm:$0x20] %vm1035_vm8, %v3560_v45  ;;  %vm9878_vm8 = vmmov %vm9877_vm7  ;;  %v6668_v45 = vpack.c.bf16 %v5456_v10, %v5455_v7  ;;  %v5929_v7 = vld [vmem:[%s9835_s14 + $0x38] sm:$0xff] }
0x2ca9   :  { %v3856_v62 = vpop.permute.xlu1 %3855 }
0x2caa   :  { %3861 = vst.msk [vmem:[#allocation3] sm:$0x8] %vm1334_vm9, %v3856_v62  ;;  %v3858_v4 = vpop.permute.xlu0 %3857  ;;  %v9637_v62 = vld [vmem:[%s9837_s16] sm:$0xff] }
0x2cab   :  { %3862 = vst.msk [vmem:[#allocation3 + $0x8] sm:$0x8] %vm1334_vm9, %v3858_v4 }
0x2cad   :  { %v3866_v50 = vpop.permute.xlu1 %3865 }
0x2cae   :  { %3871 = vst.msk [vmem:[#allocation3] sm:$0x10] %vm1345_vm10, %v3866_v50  ;;  %v3868_v6 = vpop.permute.xlu0 %3867  ;;  %v5452_v50 = vld [vmem:[%s9837_s16 + $0x8] sm:$0xf] }
0x2caf   :  { %3872 = vst.msk [vmem:[#allocation3 + $0x8] sm:$0x10] %vm1345_vm10, %v3868_v6 }
0x2cb1   :  { %v4164_v28 = vpop.permute.xlu1 %4163 }
0x2cb2   :  { %4169 = vst.msk [vmem:[#allocation3] sm:$0x10] %vm1644_vm11, %v4164_v28  ;;  %v4166_v12 = vpop.permute.xlu0 %4165 }
0x2cb3   :  { %4170 = vst.msk [vmem:[#allocation3 + $0x8] sm:$0x10] %vm1644_vm11, %v4166_v12  ;;  %vm6663_vm11 = vmpackc.low %vm105_vm1, %vm105_vm1 }
0x2cb5   :  { %v4174_v22 = vpop.permute.xlu1 %4173 }
0x2cb6   :  { %4179 = vst.msk [vmem:[#allocation3] sm:$0x8] %vm9871_vm0, %v4174_v22  ;;  %v4176_v61 = vpop.permute.xlu0 %4175  ;;  %v5542_v22 = vld [vmem:[%s9839_s18 + $0x8] sm:$0xf] }
0x2cb7   :  { %4180 = vst.msk [vmem:[#allocation3 + $0x8] sm:$0x8] %vm9872_vm2, %v4176_v61  ;;  %v5541_v61 = vld [vmem:[%s9839_s18] sm:$0xff] }
0x2cb9   :  { %v4472_v31 = vpop.permute.xlu1 %4471 }
0x2cba   :  { %4477 = vst.msk [vmem:[#allocation3] sm:$0x20] %vm9873_vm3, %v4472_v31  ;;  %v4474_v47 = vpop.permute.xlu0 %4473 }
0x2cbb   :  { %4478 = vst.msk [vmem:[#allocation3 + $0x8] sm:$0x20] %vm9874_vm4, %v4474_v47 }
0x2cbd   :  { %v4482_v0 = vpop.permute.xlu1 %4481 }
0x2cbe   :  { %4487 = vst.msk [vmem:[#allocation3] sm:$0x4] %vm9875_vm5, %v4482_v0  ;;  %v4484_v3 = vpop.permute.xlu0 %4483  ;;  %vm5897_vm5 = vcmask 138240  }
0x2cbf   :  { %4488 = vst.msk [vmem:[#allocation3 + $0x8] sm:$0x4] %vm9876_vm6, %v4484_v3  ;;  %vm5900_vm6 = vcmask 277504  }
0x2cc1   :  { %v4778_v29 = vpop.permute.xlu1 %4777 }
0x2cc2   :  { %4783 = vst.msk [vmem:[#allocation3] sm:$0x40] %vm9877_vm7, %v4778_v29  ;;  %v4780_v32 = vpop.permute.xlu0 %4779  ;;  %vm5903_vm7 = vcmask 416768  }
0x2cc3   :  { %4784 = vst.msk [vmem:[#allocation3 + $0x8] sm:$0x40] %vm9878_vm8, %v4780_v32  ;;  %vm5906_vm8 = vcmask 556032  }
0x2cc5   :  { %v4788_v20 = vpop.permute.xlu1 %4787 }
0x2cc6   :  { %4793 = vst.msk [vmem:[#allocation3] sm:$0x2] %vm2273_vm12, %v4788_v20  ;;  %v4790_v26 = vpop.permute.xlu0 %4789  ;;  %v9879_v20 = vlaneseq }
0x2cc7   :  { %4794 = vst.msk [vmem:[#allocation3 + $0x8] sm:$0x2] %vm2273_vm12, %v4790_v26  ;;  %vm5284_vm12 = vcmask 130048  }
0x2cc8   :  { %v5539_v26 = vand.u32 127, %v9879_v20 }
0x2d00   :  { %v5079_v36 = vpop.permute.xlu1 %5078 }
0x2d01   :  { %5084 = vst.msk [vmem:[#allocation3] sm:$0x80] %vm2565_vm13, %v5079_v36  ;;  %v5081_v53 = vpop.permute.xlu0 %5080  ;;  %v9661_v36 = vcvt.s32.f32 %v5539_v26 }
0x2d02   :  { %5085 = vst.msk [vmem:[#allocation3 + $0x8] sm:$0x80] %vm2565_vm13, %v5081_v53  ;;  %vm5543_vm13 = vcmp.gt.f32.partialorder %v5541_v61, 0.5  ;;  %v5933_v61 = vld [vmem:[%s9835_s14 + $0x58] sm:$0xff] }
0x2d04   :  { %v5089_v1 = vpop.permute.xlu1 %5088 }
0x2d05   :  { %5094 = vst.msk [vmem:[#allocation3] sm:$0x1] %vm2576_vm14, %v5089_v1  ;;  %v5091_v44 = vpop.permute.xlu0 %5090 }
0x2d06   :  { %5095 = vst.msk [vmem:[#allocation3 + $0x8] sm:$0x1] %vm2576_vm14, %v5091_v44  ;;  %vm5551_vm14 = vcmask 60416  }
0x2d0c   :  { %v5096_v21 = vld [vmem:[#allocation3] sm:$0xff] }
0x2d0d   :  { %v5097_v34 = vld [vmem:[#allocation3 + $0x8] sm:$0xff] }
0x2d0e   :  { %v5098_v42 = vpack.c.bf16 %v5097_v34, %v5096_v21 }
0x2d10   :  { %6601 = vmatmul.mubr.msk.bf16.vlgmr.msra.gmra.mrb[60].mxu1 %vm2642_vm15, %v5098_v42  ;;  %vm5547_vm15 = vcmask 64512  }
0x2de3   :  { %v5175_v35 = vpop.f32.mrb[60].mxu1 }
0x2de4   :  { %v5176_v33 = vadd.f32 %v6181_v14, %v5175_v35  ;;  %v6602_v9 = vpop.f32.mrb[61].mxu1 }
0x2de5   :  { %v5178_v18 = vpop.f32.mrb[62].mxu1 }
0x2de6   :  { %vm5182_vm9 = vcmp.ge.f32.partialorder %v5176_v33, 0.0  ;;  %v5184_v52 = vmul.f32 0.1, %v5176_v33  ;;  %v5179_v54 = vadd.f32 %v6181_v14, %v5178_v18  ;;  %v6603_v51 = vpop.f32.mrb[63].mxu1  ;;  %v5754_v14 = vld [vmem:[%s9834_s13 + $0x18] sm:$0xff] }
0x2de7   :  { %v6680_v35 = vpack.c.bf16 %v5754_v14, %v5752_v25 }
0x2de8   :  { %vm5183_vm10 = vcmp.ge.f32.partialorder %v5179_v54, 0.0  ;;  %v5185_v24 = vmul.f32 0.1, %v5179_v54  ;;  %v5186_v60 = vsel %vm5182_vm9, %v5176_v33, %v5184_v52  ;;  %vm5909_vm9 = vcmask 695296  }
0x2de9   :  { %5199 = vrot.lane.b32.xlu1 %v5186_v60, %s7409_s2 }
0x2dea   :  { %v5187_v30 = vsel %vm5183_vm10, %v5179_v54, %v5185_v24  ;;  %vm5912_vm10 = vcmask 834560  }
0x2deb   :  { %5201 = vrot.lane.b32.xlu0 %v5187_v30, %s7409_s2  ;;  %v6759_v57 = vpack.i.bf16 %v5187_v30, %v5186_v60  ;;  %v6662_v8 = vpack.c.bf16 %v5187_v30, %v5186_v60 }
0x2ded   :  { %6760 = vrot.lane.b32.xlu1 %v6759_v57, %s7410_s11  ;;  %6664 = vmatprep.subr.msk.bf16.mxu1 %vm6663_vm11, %v6662_v8  ;;  %s7414_s11 = smov 34  }
0x2dee   :  { %6667 = vmatpush3.bf16.xpose.msk.msra.mxu1 %vm6663_vm11, %v6662_v8  ;;  %v5753_v8 = vld [vmem:[%s9834_s13 + $0x10] sm:$0xff]  ;;  %vm5915_vm11 = vcmask 973824  }
0x2e5b   :  { %v5200_v63 = vpop.permute.xlu1 %5199 }
0x2e5c   :  { %6612 = vmatprep.mubr.msk.f32.mxu0 %vm105_vm1, %v5200_v63 }
0x2e5d   :  { %v5202_v40 = vpop.permute.xlu0 %5201 }
0x2e5e   :  { %6613 = vmatmul.mubr.msk.f32.vlgmr.msra.gmra.mrb[76].mxu0 %vm105_vm1, %v5202_v40 }
0x2e5f   :  { %v6761_v39 = vpop.permute.xlu1 %6760  ;;  %6619 = vmatprep.mubr.msk.f32.mxu0 %vm5284_vm12, %v5282_v16 }
0x2e60   :  { %v6763_v48 = vunpack.i.h.bf16 %v6761_v39  ;;  %v6762_v37 = vunpack.i.l.bf16 %v6761_v39 }
0x2e62   :  { %v6676_v49 = vpack.c.bf16 %v6763_v48, %v6762_v37 }
0x2e64   :  { %6677 = vmatprep.subr.bf16.mxu1 %v6676_v49 }
0x2f31   :  { %v6614_v11 = vpop.f32.mrb[76].mxu0 }
0x2f32   :  { %v5279_v59 = vadd.f32 %v6614_v11, %v6187_v41  ;;  %v5273_v5 = vpop.f32.mrb[77].mxu0  ;;  %v7412_v11 = vmov 0.0|0.0  }
0x2f33   :  { %v5274_v23 = vadd.f32 %v6187_v41, %v5273_v5  ;;  %v5924_v41 = vld [vmem:[%s9835_s14 + $0x10] sm:$0xff]  ;;  %v5925_v5 = vld [vmem:[%s9835_s14 + $0x18] sm:$0xff] }
0x2f35   :  { %v6658_v27 = vpack.c.bf16 %v5279_v59, %v5274_v23  ;;  %v6688_v23 = vpack.c.bf16 %v5925_v5, %v5924_v41 }
0x2f37   :  { %6659 = vmatprep.subr.bf16.mxu0 %v6658_v27 }
0x2f38   :  { %6661 = vmatpush3.bf16.msra.mxu0 %v6658_v27  ;;  %v5926_v27 = vld [vmem:[%s9835_s14 + $0x20] sm:$0xff] }
0x2f39   :  { %6669 = vmatprep.subr.bf16.mxu0 %v6668_v45 }
0x2f3b   :  { %6620 = vmatmul.mubr.msk.f32.vlgmr.msra.gmra.mrb[78].mxu0 %vm5284_vm12, %v5283_v38 }
0x2f3c   :  { %6671 = vmatpush3.bf16.msra.mxu0 %v6668_v45  ;;  %v5930_v45 = vld [vmem:[%s9835_s14 + $0x40] sm:$0xff] }
0x300e   :  { %v6621_v13 = vpop.f32.mrb[78].mxu0 }
0x300f   :  { %v5357_v58 = vpop.f32.mrb[79].mxu0 }
0x3010   :  { %6626 = vmatprep.mubr.msk.f32.mxu1 %vm105_vm1, %v5357_v58  ;;  %v5928_v58 = vld [vmem:[%s9835_s14 + $0x30] sm:$0xff] }
0x3011   :  { %6627 = vmatmul.mubr.msk.f32.vlgmr.msra.gmra.mrb[64].mxu1 %vm105_vm1, %v6621_v13  ;;  %vm5544_vm1 = vcmp.gt.f32.partialorder %v5542_v22, 0.5  ;;  %v6694_v10 = vpack.c.bf16 %v5929_v7, %v5928_v58  ;;  %v5932_v22 = vld [vmem:[%s9835_s14 + $0x50] sm:$0xff] }
0x3012   :  { %6679 = vmatpush3.bf16.msra.mxu1 %v6676_v49  ;;  %6647 = vmatprep.mubr.msk.f32.mxu1 %vm5284_vm12, %v5282_v16  ;;  %v5922_v49 = vld [vmem:[%s9835_s14] sm:$0xff]  ;;  %v5923_v16 = vld [vmem:[%s9835_s14 + $0x8] sm:$0xff] }
0x3013   :  { %6684 = vmatprep.subr.bf16.mxu1 %v7412_v11  ;;  %v6685_v59 = vpack.c.bf16 %v5923_v16, %v5922_v49 }
0x3015   :  { %6648 = vmatmul.mubr.msk.f32.vlgmr.msra.gmra.mrb[66].mxu1 %vm5284_vm12, %v5283_v38  ;;  %v5927_v38 = vld [vmem:[%s9835_s14 + $0x28] sm:$0xff] }
0x3016   :  { %6686 = vmatpush1.bf16.msra.mxu1 %v6685_v59  ;;  %v6691_v13 = vpack.c.bf16 %v5927_v38, %v5926_v27 }
0x3017   :  { %6687 = vmatprep.subr.bf16.mxu1 %v7412_v11 }
0x301a   :  { %6689 = vmatpush1.bf16.msra.mxu1 %v6688_v23 }
0x301b   :  { %6690 = vmatprep.subr.bf16.mxu1 %v7412_v11 }
0x301e   :  { %6692 = vmatpush1.bf16.msra.mxu1 %v6691_v13 }
0x301f   :  { %6693 = vmatprep.subr.bf16.mxu1 %v7412_v11 }
0x3022   :  { %6695 = vmatpush1.bf16.msra.mxu1 %v6694_v10 }
0x3023   :  { %6696 = vmatprep.subr.bf16.mxu1 %v7412_v11 }
0x30e4   :  { %v6628_v4 = vpop.f32.mrb[64].mxu1 }
0x30e5   :  { %v5442_v6 = vpop.f32.mrb[65].mxu1  ;;  %v5454_v12 = vmul.f32 %v6628_v4, %v5452_v50 }
0x30e6   :  { %v5453_v28 = vmul.f32 %v9637_v62, %v5442_v6 }
0x30e8   :  { %6633 = vmatprep.mubr.msk.f32.mxu0 %vm5284_vm12, %v5453_v28  ;;  %v6649_v33 = vpop.f32.mrb[66].mxu1 }
0x30e9   :  { %6634 = vmatmul.mubr.msk.f32.vlgmr.msra.gmra.mrb[80].mxu0 %vm5284_vm12, %v5454_v12  ;;  %v5742_v18 = vpop.f32.mrb[67].mxu1 }
0x31bc   :  { %v9651_v31 = vpop.f32.mrb[80].mxu0 }
0x31bd   :  { %v5546_v47 = vsel %vm5544_vm1, %v9651_v31, -1e+30  ;;  %v9654_v0 = vpop.f32.mrb[81].mxu0 }
0x31be   :  { %v5545_v3 = vsel %vm5543_vm13, %v9654_v0, -1e+30  ;;  %v5552_v29 = vsel %vm5551_vm14, %v5546_v47, -inf }
0x31bf   :  { %5553 = vmax.xlane.f32.xlu1 %v5552_v29  ;;  %v5548_v32 = vsel %vm5547_vm15, %v5545_v3, -inf  ;;  %v5934_v29 = vld [vmem:[%s9835_s14 + $0x60] sm:$0xff] }
0x31c0   :  { %5549 = vmax.xlane.f32.xlu0 %v5548_v32  ;;  %v5935_v32 = vld [vmem:[%s9835_s14 + $0x68] sm:$0xff] }
0x31c1   :  { %v6703_v20 = vpack.c.bf16 %v5935_v32, %v5934_v29 }
0x31d0   :  { %6765 = vrot.lane.b32.xlu1 %v6759_v57, %s7402_s4  ;;  %v5751_v57 = vld [vmem:[%s9834_s13] sm:$0xff]  ;;  %s7413_s4 = smov 17  }
0x31d1   :  { %v6682_v37 = vpack.c.bf16 %v5753_v8, %v5751_v57 }
0x324c   :  { %v5554_v53 = vpop.xlane.xlu1 %5553 }
0x324d   :  { %v5550_v1 = vpop.xlane.xlu0 %5549  ;;  %vm5556_vm0 = vcmp.eq.f32.partialorder %v5546_v47, %v5554_v53  ;;  %v6700_v47 = vpack.c.bf16 %v5933_v61, %v5932_v22 }
0x324e   :  { %vm5555_vm2 = vcmp.eq.f32.partialorder %v5545_v3, %v5550_v1  ;;  %v5558_v42 = vsel %vm5556_vm0, %v9661_v36, 8.0  ;;  %v5936_v1 = vld [vmem:[%s9835_s14 + $0x70] sm:$0xff] }
0x324f   :  { %v5557_v44 = vsel %vm5555_vm2, %v9661_v36, 8.0  ;;  %v5562_v55 = vsel %vm5551_vm14, %v5558_v42, inf  ;;  %v5938_v42 = vld [vmem:[%s9835_s14 + $0x80] sm:$0xff] }
0x3250   :  { %v6766_v21 = vpop.permute.xlu1 %6765  ;;  %v5559_v34 = vsel %vm5547_vm15, %v5557_v44, inf  ;;  %v5937_v44 = vld [vmem:[%s9835_s14 + $0x78] sm:$0xff] }
0x3251   :  { %v6768_v46 = vunpack.i.h.bf16 %v6766_v21  ;;  %v6767_v56 = vunpack.i.l.bf16 %v6766_v21  ;;  %5560 = vmin.xlane.f32.xlu0 %v5559_v34  ;;  %v6706_v34 = vpack.c.bf16 %v5937_v44, %v5936_v1 }
0x3253   :  { %v6672_v43 = vpack.c.bf16 %v6768_v46, %v6767_v56 }
0x3255   :  { %6673 = vmatprep.subr.bf16.mxu0 %v6672_v43  ;;  %5563 = vmin.xlane.f32.xlu0 %v5562_v55 }
0x3256   :  { %6675 = vmatpush3.bf16.msra.mxu0 %v6672_v43 }
0x3257   :  { %6681 = vmatprep.subr.bf16.mxu0 %v6680_v35 }
0x32de   :  { %v9667_v17 = vpop.xlane.xlu0 %5560 }
0x32df   :  { %vm5565_vm3 = vcmp.eq.f32.partialorder %v9661_v36, %v9667_v17 }
0x32e0   :  { %v6198_v52 = vsel %vm5565_vm3, 1.0, %v7397_v2 }
0x32e2   :  { %v9677_v9 = vpop.xlane.xlu0 %5563 }
0x32e3   :  { %vm5566_vm4 = vcmp.eq.f32.partialorder %v9661_v36, %v9677_v9 }
0x32e4   :  { %v6199_v54 = vsel %vm5566_vm4, 1.0, %v7397_v2 }
0x32e5   :  { %v6769_v51 = vpack.i.bf16 %v6199_v54, %v6198_v52 }
0x32e7   :  { %6770 = vrot.lane.b32.xlu0 %v6769_v51, %s7411_s5 }
0x3359   :  { %v6771_v24 = vpop.permute.xlu0 %6770 }
0x335a   :  { %v6773_v60 = vunpack.i.h.bf16 %v6771_v24  ;;  %v6772_v30 = vunpack.i.l.bf16 %v6771_v24 }
0x335c   :  { %v5580_v63 = vsel %vm5547_vm15, %v6199_v54, %v6773_v60  ;;  %v5579_v40 = vsel %vm5547_vm15, %v6198_v52, %v6772_v30 }
0x335d   :  { %v5582_v39 = vmul.f32 %v5580_v63, %v5452_v50  ;;  %v5581_v48 = vmul.f32 %v5579_v40, %v9637_v62  ;;  %v5931_v62 = vld [vmem:[%s9835_s14 + $0x48] sm:$0xff] }
0x335e   :  { %v6697_v4 = vpack.c.bf16 %v5931_v62, %v5930_v45 }
0x335f   :  { %6640 = vmatprep.mubr.msk.f32.mxu0 %vm5284_vm12, %v5581_v48 }
0x3360   :  { %6641 = vmatmul.mubr.msk.f32.vlgmr.msra.gmra.mrb[82].mxu0 %vm5284_vm12, %v5582_v39  ;;  %6698 = vmatpush1.bf16.msra.mxu1 %v6697_v4 }
0x3361   :  { %6683 = vmatpush1.bf16.msra.mxu0 %v6682_v37  ;;  %5838 = vmatprep.mubr.f32.mxu0 %v7397_v2 }
0x3362   :  { %6699 = vmatprep.subr.bf16.mxu1 %v7412_v11 }
0x3364   :  { %6205 = vmatmul.mubr.msk.f32.vlgmr.msra.gmra.mrb[84].mxu0 %vm5284_vm12, %v5742_v18  ;;  %6701 = vmatpush1.bf16.msra.mxu1 %v6700_v47  ;;  %v6204_v18 = vld [vmem:[%s9834_s13 + $0x20] ss:$8 sm:$0x3]  ;;  %s7420_s13 = smov [#allocation3]  }
0x3365   :  { %5844 = vmatprep.mubr.f32.mxu0 %v7397_v2  ;;  %6702 = vmatprep.subr.bf16.mxu1 %v7412_v11  ;;  %v5765_v60 = vrot.slane %v6204_v18, %v7583_v19  ;;  %v5761_v30 = vrot.slane %v6204_v18, %v7577_v15  ;;  %s6060_s21 = sshll.u32 %s7420_s13, 4  ;;  %s6061_s21 = int_to_ptr.vmem [resolvable:$true] %s6060_s21 }
0x3366   :  { %s7373_s22 = scalar_lea.vmem %s6061_s21, 256  ;;  %p7378_p1 = scmp.lt.s32.totalorder %s6061_s21, %s6061_s21 }
0x3367   :  { %p7374_p0 = scmp.ne.s32.totalorder %s6061_s21, %s7373_s22  ;;  %p7379_p2 = scmp.lt.s32.totalorder %s7373_s22, %s7373_s22 }
0x3368   :  { %6206 = vmatmul.mubr.msk.f32.gmra.mrb[86].mxu0 %vm5284_vm12, %v6649_v33  ;;  %6704 = vmatpush1.bf16.msra.mxu1 %v6703_v20 }
0x3369   :  { %6705 = vmatprep.subr.bf16.mxu1 %v7412_v11  ;;  %p7380_p3 = por %p7379_p2, %p7378_p1 }
0x336b   :  { %p7381_p4 = pnand %p7380_p3, %p7374_p0 }
0x336c   :  { %6707 = vmatpush1.bf16.msra.mxu1 %v6706_v34 }
0x336d   :  { %5977 = vmatprep.subr.mxu1 %v7397_v2 }
0x3370   :  { %5978 = vmatpush1.msra.mxu1 %v5938_v42 }
0x3433   :  { %v6642_v50 = vpop.f32.mrb[82].mxu0 }
0x3434   :  { %v9730_v6 = vsel %vm5284_vm12, %v6642_v50, 1.0  ;;  %v5661_v28 = vpop.f32.mrb[83].mxu0 }
0x3435   :  { %v5851_v12 = vsel %vm5284_vm12, %v5661_v28, 1.0  ;;  %5857 = vrot.lane.b32.xlu0 %v9730_v6, %s7413_s4 }
0x3436   :  { %5855 = vrot.lane.b32.xlu1 %v5851_v12, %s7413_s4 }
0x3437   :  { %v9741_v3 = vpop.f32.mrb[84].mxu0 }
0x3438   :  { %v5842_v26 = vpop.f32.mrb[85].mxu0  ;;  %v5841_v16 = vadd.f32 %v9741_v3, %v5761_v30 }
0x3439   :  { %5863 = vrot.lane.b32.xlu0 %v9730_v6, %s7414_s11  ;;  %v5843_v37 = vadd.f32 %v5842_v26, %v5765_v60 }
0x343a   :  { %5861 = vrot.lane.b32.xlu1 %v5851_v12, %s7414_s11 }
0x343b   :  { %v9750_v53 = vpop.f32.mrb[86].mxu0 }
0x343c   :  { %v5848_v21 = vpop.f32.mrb[87].mxu0  ;;  %v5847_v13 = vadd.f32 %v9750_v53, %v5761_v30 }
0x343d   :  { %5869 = vrot.lane.b32.xlu0 %v9730_v6, %s7415_s7  ;;  %v5849_v27 = vadd.f32 %v5848_v21, %v5765_v60 }
0x343e   :  { %5881 = vrot.lane.b32.xlu1 %v9730_v6, %s7416_s6 }
0x3441   :  { %5867 = vrot.lane.b32.xlu0 %v5851_v12, %s7415_s7 }
0x3442   :  { %5873 = vrot.lane.b32.xlu1 %v5851_v12, %s7417_s15 }
0x3445   :  { %5875 = vrot.lane.b32.xlu0 %v9730_v6, %s7417_s15 }
0x3446   :  { %5879 = vrot.lane.b32.xlu1 %v5851_v12, %s7416_s6 }
0x3449   :  { %5887 = vrot.lane.b32.xlu0 %v9730_v6, %s7418_s29 }
0x344a   :  { %5885 = vrot.lane.b32.xlu1 %v5851_v12, %s7418_s29 }
0x344e   :  { %5891 = vrot.lane.b32.xlu1 %v5851_v12, %s7419_s17 }
0x3452   :  { %5893 = vrot.lane.b32.xlu1 %v9730_v6, %s7419_s17 }
0x34a7   :  { %v5858_v46 = vpop.permute.xlu0 %5857 }
0x34a8   :  { %v5856_v2 = vpop.permute.xlu1 %5855  ;;  %v5899_v8 = vsel %vm5897_vm5, %v9730_v6, %v5858_v46 }
0x34a9   :  { %v5898_v52 = vsel %vm5897_vm5, %v5851_v12, %v5856_v2 }
0x34ab   :  { %v5864_v56 = vpop.permute.xlu0 %5863 }
0x34ac   :  { %v5862_v43 = vpop.permute.xlu1 %5861  ;;  %v5902_v63 = vsel %vm5900_vm6, %v5899_v8, %v5864_v56 }
0x34ad   :  { %v5901_v54 = vsel %vm5900_vm6, %v5898_v52, %v5862_v43 }
0x34af   :  { %v5870_v55 = vpop.permute.xlu0 %5869 }
0x34b0   :  { %v5882_v25 = vpop.permute.xlu1 %5881  ;;  %v5905_v39 = vsel %vm5903_vm7, %v5902_v63, %v5870_v55 }
0x34b3   :  { %v5868_v35 = vpop.permute.xlu0 %5867 }
0x34b4   :  { %v5874_v14 = vpop.permute.xlu1 %5873  ;;  %v5904_v51 = vsel %vm5903_vm7, %v5901_v54, %v5868_v35 }
0x34b5   :  { %v5907_v40 = vsel %vm5906_vm8, %v5904_v51, %v5874_v14 }
0x34b7   :  { %v5876_v24 = vpop.permute.xlu0 %5875 }
0x34b8   :  { %v5880_v33 = vpop.permute.xlu1 %5879  ;;  %v5908_v49 = vsel %vm5906_vm8, %v5905_v39, %v5876_v24 }
0x34b9   :  { %v5910_v48 = vsel %vm5909_vm9, %v5907_v40, %v5880_v33  ;;  %v5911_v23 = vsel %vm5909_vm9, %v5908_v49, %v5882_v25 }
0x34bb   :  { %v5888_v11 = vpop.permute.xlu0 %5887 }
0x34bc   :  { %v5886_v57 = vpop.permute.xlu1 %5885  ;;  %v5914_v38 = vsel %vm5912_vm10, %v5911_v23, %v5888_v11 }
0x34bd   :  { %v5913_v19 = vsel %vm5912_vm10, %v5910_v48, %v5886_v57 }
0x34c0   :  { %v5892_v41 = vpop.permute.xlu1 %5891 }
0x34c1   :  { %v5916_v15 = vsel %vm5915_vm11, %v5913_v19, %v5892_v41  ;;  %v5919_v59 = vmul.f32 %v5892_v41, %v5843_v37 }
0x34c2   :  { %v5918_v5 = vmul.f32 %v5916_v15, %v5841_v16 }
0x34c3   :  { %6207 = vmatprep.mubr.msk.f32.mxu1 %vm5547_vm15, %v5919_v59 }
0x34c4   :  { %v5894_v58 = vpop.permute.xlu1 %5893  ;;  %6010 = vmatmul.mubr.f32.vlgmr.msra.gmra.mrb[68].mxu1 %v5918_v5 }
0x34c5   :  { %v5917_v7 = vsel %vm5915_vm11, %v5914_v38, %v5894_v58  ;;  %v5921_v10 = vmul.f32 %v5894_v58, %v5849_v27 }
0x34c6   :  { %v5920_v45 = vmul.f32 %v5917_v7, %v5847_v13 }
0x34c7   :  { %6208 = vmatprep.mubr.msk.f32.mxu1 %vm5547_vm15, %v5921_v10 }
0x34c8   :  { %6015 = vmatmul.mubr.f32.gmra.mrb[70].mxu1 %v5920_v45 }
0x3597   :  { %v6011_v62 = vpop.f32.mrb[68].mxu1 }
0x3598   :  { %v6013_v4 = vpop.f32.mrb[69].mxu1  ;;  %v6020_v50 = vsel %vm5547_vm15, %v6011_v62, -inf }
0x3599   :  { %6021 = vmax.xlane.f32.xlu0 %v6020_v50 }
0x359b   :  { %v6016_v6 = vpop.f32.mrb[70].mxu1 }
0x359c   :  { %v6018_v28 = vpop.f32.mrb[71].mxu1  ;;  %v6023_v12 = vsel %vm5551_vm14, %v6016_v6, -inf }
0x359d   :  { %6024 = vmax.xlane.f32.xlu1 %v6023_v12 }
0x35ae   :  { %6038 = vrot.lane.b32.xlu1 %v6011_v62, %s7411_s5 }
0x3626   :  { %v6022_v22 = vpop.xlane.xlu0 %6021 }
0x3627   :  { %vm6026_vm1 = vcmp.eq.f32.partialorder %v6011_v62, %v6022_v22 }
0x3628   :  { %v6028_v61 = vsel %vm6026_vm1, %v9661_v36, 8.0 }
0x3629   :  { %v6030_v47 = vsel %vm5547_vm15, %v6028_v61, inf }
0x362a   :  { %6031 = vmin.xlane.f32.xlu0 %v6030_v47  ;;  %v6025_v3 = vpop.xlane.xlu1 %6024 }
0x362b   :  { %vm6027_vm13 = vcmp.eq.f32.partialorder %v6016_v6, %v6025_v3 }
0x362c   :  { %v6029_v29 = vsel %vm6027_vm13, %v9661_v36, 8.0 }
0x362d   :  { %v6033_v32 = vsel %vm5551_vm14, %v6029_v29, inf }
0x362e   :  { %6034 = vmin.xlane.f32.xlu0 %v6033_v32 }
0x3644   :  { %6040 = vrot.lane.b32.xlu0 %v6016_v6, %s7411_s5 }
0x3645   :  { %7384 = shalt.err (!%p7381_p4)
}
0x3646   :  { %s7385_s4 = scalar_lea.hbm %s9840_s19, 256 }
0x3647   :  { %p7386_p5 = scmp.ne.s32.totalorder %s9840_s19, %s7385_s4  ;;  %p7389_p6 = scmp.lt.u32.totalorder %s7385_s4, %s9840_s19 }
0x3649   :  { %p7391_p7 = pnand %p7389_p6, %p7386_p5 }
0x364b   :  { %7394 = shalt.err (!%p7391_p7)
}
0x364c   :  { %s7421_s11 = smov 128   ;;  %v6039_v36 = vpop.permute.xlu1 %6038  ;;  %vm6050_vm14 = vcmask 146432  }
0x364d   :  { %6066 = dma.vmem_to_hbm [thread:$0]  %s6061_s21, 256, %s9840_s19, [#allocation4], %s7421_s11, %s7421_s11, %s7411_s5   ;;  %v6044_v20 = vsel %vm5547_vm15, %v9654_v0, %v6039_v36 }
0x364e   :  { %v6046_v53 = vsel %vm5284_vm12, %v6044_v20, %v9667_v17 }
0x36b7   :  { %v6032_v26 = vpop.xlane.xlu0 %6031 }
0x36b8   :  { %v6048_v1 = vsel %vm5897_vm5, %v6046_v53, %v6032_v26 }
0x36b9   :  { %v6051_v44 = vsel %vm6050_vm14, %v6048_v1, 0.0 }
0x36ba   :  { %6053 = vst [vmem:[%s9841_s20] sm:$0xff] %v6051_v44 }
0x36bb   :  { %v6035_v21 = vpop.xlane.xlu0 %6034 }
0x36bf   :  { %v6041_v34 = vpop.permute.xlu0 %6040 }
0x36c0   :  { %v6045_v42 = vsel %vm5547_vm15, %v9651_v31, %v6041_v34 }
0x36c1   :  { %v6047_v0 = vsel %vm5284_vm12, %v6045_v42, %v9677_v9 }
0x36c2   :  { %v6049_v46 = vsel %vm5897_vm5, %v6047_v0, %v6035_v21 }
0x36c3   :  { %v6052_v2 = vsel %vm6050_vm14, %v6049_v46, 0.0 }
0x36c4   :  { %6054 = vst [vmem:[%s9841_s20 + $0x8] sm:$0xf] %v6052_v2 }
0x36c5   :  { %7395 = dma.done.wait [#allocation4], 256  }
0x36c6   :  { %7396 = vsyncadd [#allocation4], 4294967040 }
0x36c7   :  { %6074 = vsyncpa [#allocation4], 1 }

</bundles_post_ra>
